<compile_context>
chip_gen: v7x
topology: tpu7x:2x2x1
jax: 0.10.0
libtpu: 0.0.40
codegen_flags: <defaults>
</compile_context>

<pallas_src>
import math
import numpy as np
import jax
import jax.numpy as jnp
from jax.experimental import pallas as pl
from jax.experimental.pallas import tpu as pltpu

# ----------------------------- config ---------------------------------------
N_DIR_DIMS = 3
N_OUTPUT_DIMS = 3
N_FREQS = 4                              # frequency encoding: sin/cos * 4 freqs
ENC_DIM = 2 * N_DIR_DIMS * N_FREQS       # 24
FEAT_DIM = 16
LATENT_DIM = 8
HIDDEN = 32
MAX_TM = 4096                            # max row tile (VMEM-safe on v5e/v6e/v7x)

# reference-only constant (lives outside the kernel, so no capture issue)
_FREQ_ROW = np.repeat((2.0 ** np.arange(N_FREQS)) * np.pi,
                      N_DIR_DIMS).astype(np.float32)[None, :]   # (1, 12)


# ----------------------------- kernel ---------------------------------------
def radiance_kernel(dirs_ref, feat_ref,
                    w1_ref, b1_ref, w2_ref, b2_ref, w3_ref, b3_ref,
                    out_ref):
    f32 = jnp.float32

    # direction remap + frequency encoding (f32; scalar freq multiplies only,
    # so nothing is captured as an array constant)
    d01 = (dirs_ref[...] + 1.0) * 0.5                           # (TM, 3) f32
    angs = [d01 * float((2.0 ** k) * math.pi) for k in range(N_FREQS)]
    ang = jnp.concatenate(angs, axis=-1)                        # (TM, 12)
    enc = jnp.concatenate([jnp.sin(ang), jnp.cos(ang)], axis=-1)  # (TM, 24)

    # fused layer-1 input: [features | enc] in bf16, f32 accumulation on MXU
    x = jnp.concatenate([feat_ref[...], enc.astype(jnp.bfloat16)], axis=-1)
    h1 = jnp.dot(x, w1_ref[...], preferred_element_type=f32) + b1_ref[...]
    h1 = jnp.maximum(h1, 0.0)

    h2 = jnp.dot(h1, w2_ref[...], preferred_element_type=f32) + b2_ref[...]
    h2 = jnp.maximum(h2, 0.0)

    out = jnp.dot(h2, w3_ref[...], preferred_element_type=f32) + b3_ref[...]
    # NOTE: output last dim is 3 (masked stores); lane-dense output only worth
    # it on v5e if profiling shows the store slot binding.
    out_ref[...] = jax.nn.sigmoid(out)                          # color_activation


# ----------------------------- wrapper ---------------------------------------
def volume_radiance_forward(features, dirs, z, params):
    """features: (..., FEAT_DIM), dirs: (..., 3), z: (1, LATENT_DIM)."""
    w1f, w1e, w1z, b1, w2, b2, w3, b3 = params

    # streamed inputs: features in bf16 (dominant HBM traffic), dirs in f32
    feat2d = features.reshape(-1, features.shape[-1]).astype(jnp.bfloat16)
    dirs2d = dirs.reshape(-1, N_DIR_DIMS).astype(jnp.float32)
    n = feat2d.shape[0]

    # row tile: as large as reasonable (amortizes per-step overhead) but no
    # bigger than needed for small inputs; always a multiple of 256.
    tm = min(MAX_TM, ((n + 255) // 256) * 256)
    n_pad = pl.cdiv(n, tm) * tm
    if n_pad != n:
        feat2d = jnp.pad(feat2d, ((0, n_pad - n), (0, 0)))
        dirs2d = jnp.pad(dirs2d, ((0, n_pad - n), (0, 0)))

    # constant-fold the z path into the layer-1 bias; stack layer-1 weights
    w1 = jnp.concatenate([w1f, w1e], axis=0).astype(jnp.bfloat16)    # (40, H)
    b1_eff = (b1 + z.astype(jnp.float32) @ w1z).astype(jnp.float32)  # (1, H)

    grid = (n_pad // tm,)
    full = lambda i: (0, 0)     # whole-array resident blocks (weights/biases)

    out = pl.pallas_call(
        radiance_kernel,
        out_shape=jax.ShapeDtypeStruct((n_pad, N_OUTPUT_DIMS), jnp.float32),
        grid_spec=pltpu.PrefetchScalarGridSpec(
            num_scalar_prefetch=0,
            grid=grid,
            in_specs=[
                pl.BlockSpec((tm, N_DIR_DIMS), lambda i: (i, 0)),        # dirs
                pl.BlockSpec((tm, FEAT_DIM), lambda i: (i, 0)),          # features
                pl.BlockSpec((FEAT_DIM + ENC_DIM, HIDDEN), full),        # w1 (stacked)
                pl.BlockSpec((1, HIDDEN), full),                         # b1_eff
                pl.BlockSpec((HIDDEN, HIDDEN), full),                    # w2
                pl.BlockSpec((1, HIDDEN), full),                         # b2
                pl.BlockSpec((HIDDEN, N_OUTPUT_DIMS), full),             # w3
                pl.BlockSpec((1, N_OUTPUT_DIMS), full),                  # b3
            ],
            out_specs=pl.BlockSpec((tm, N_OUTPUT_DIMS), lambda i: (i, 0)),
        ),
        compiler_params=pltpu.CompilerParams(
            dimension_semantics=("parallel",)),
    )(dirs2d, feat2d, w1, b1_eff, w2, b2, w3, b3)

    out = out[:n]
    return out.reshape(*features.shape[:-1], N_OUTPUT_DIMS).astype(jnp.float32)


# ----------------------------- pure-JAX reference -----------------------------
def volume_radiance_reference(features, dirs, z, params):
    w1f, w1e, w1z, b1, w2, b2, w3, b3 = params
    feat2d = features.reshape(-1, features.shape[-1]).astype(jnp.float32)
    dirs2d = dirs.reshape(-1, N_DIR_DIMS).astype(jnp.float32)
    d01 = (dirs2d + 1.0) * 0.5
    tiled = jnp.concatenate([d01] * N_FREQS, axis=-1)
    ang = tiled * jnp.asarray(_FREQ_ROW)
    enc = jnp.concatenate([jnp.sin(ang), jnp.cos(ang)], axis=-1)
    h1 = jnp.maximum(feat2d @ w1f + enc @ w1e + z @ w1z + b1, 0.0)
    h2 = jnp.maximum(h1 @ w2 + b2, 0.0)
    out = jax.nn.sigmoid(h2 @ w3 + b3)
    return out.reshape(*features.shape[:-1], N_OUTPUT_DIMS)


# ----------------------------- main -------------------------------------------
if __name__ == "__main__":
    key = jax.random.PRNGKey(0)
    keys = jax.random.split(key, 12)

    # deterministic synthetic parameters (this is not a checkpoint load)
    def init(k, shape, scale=0.1):
        return (scale * jax.random.normal(k, shape)).astype(jnp.float32)

    params = (
        init(keys[0], (FEAT_DIM, HIDDEN)),
        init(keys[1], (ENC_DIM, HIDDEN)),
        init(keys[2], (LATENT_DIM, HIDDEN)),
        init(keys[3], (1, HIDDEN)),
        init(keys[4], (HIDDEN, HIDDEN)),
        init(keys[5], (1, HIDDEN)),
        init(keys[6], (HIDDEN, N_OUTPUT_DIMS)),
        init(keys[7], (1, N_OUTPUT_DIMS)),
    )

    # small inputs: batch=2, 128 samples per batch, FEAT_DIM features
    features = jax.random.normal(keys[8], (2, 128, FEAT_DIM), dtype=jnp.float32)
    dirs = jax.random.uniform(keys[9], (2, 128, N_DIR_DIMS),
                              minval=-1.0, maxval=1.0, dtype=jnp.float32)
    z = jax.random.normal(keys[10], (1, LATENT_DIM), dtype=jnp.float32)

    color = volume_radiance_forward(features, dirs, z, params)
    jax.block_until_ready(color)

    ref = volume_radiance_reference(features, dirs, z, params)
    assert color.shape == (2, 128, N_OUTPUT_DIMS)
    assert color.dtype == jnp.float32
    assert jnp.allclose(color, ref, rtol=5e-3, atol=5e-3), "mismatch vs reference"

    print("KERNEL_OK")
</pallas_src>

<mosaic_0001>
module attributes {stable_mosaic.version = 11 : i64} {
  func.func @radiance_kernel(%arg0: i32, %arg1: memref<256x3xf32, #tpu.memory_space<vmem>>, %arg2: memref<256x16xbf16, #tpu.memory_space<vmem>>, %arg3: memref<40x32xbf16, #tpu.memory_space<vmem>>, %arg4: memref<1x32xf32, #tpu.memory_space<vmem>>, %arg5: memref<32x32xf32, #tpu.memory_space<vmem>>, %arg6: memref<1x32xf32, #tpu.memory_space<vmem>>, %arg7: memref<32x3xf32, #tpu.memory_space<vmem>>, %arg8: memref<1x3xf32, #tpu.memory_space<vmem>>, %arg9: memref<256x3xf32, #tpu.memory_space<vmem>>) attributes {dimension_semantics = [#tpu.dimension_semantics<parallel>], iteration_bounds = array<i64: 1>, scalar_prefetch = 0 : i64, scratch_operands = 0 : i64, tpu.core_type = #tpu.core_type<tc>, window_params = [{transform_indices = @transform_0, window_bounds = array<i64: 256, 3>}, {transform_indices = @transform_1, window_bounds = array<i64: 256, 16>}, {pipeline_mode = #tpu.pipeline_mode<synchronous>, transform_indices = @transform_2, window_bounds = array<i64: 40, 32>}, {pipeline_mode = #tpu.pipeline_mode<synchronous>, transform_indices = @transform_3, window_bounds = array<i64: 1, 32>}, {pipeline_mode = #tpu.pipeline_mode<synchronous>, transform_indices = @transform_4, window_bounds = array<i64: 32, 32>}, {pipeline_mode = #tpu.pipeline_mode<synchronous>, transform_indices = @transform_5, window_bounds = array<i64: 1, 32>}, {pipeline_mode = #tpu.pipeline_mode<synchronous>, transform_indices = @transform_6, window_bounds = array<i64: 32, 3>}, {pipeline_mode = #tpu.pipeline_mode<synchronous>, transform_indices = @transform_7, window_bounds = array<i64: 1, 3>}, {transform_indices = @transform_8, window_bounds = array<i64: 256, 3>}]} {
    %c0 = arith.constant 0 : index
    %c0_0 = arith.constant 0 : index
    %0 = vector.load %arg1[%c0, %c0_0] : memref<256x3xf32, #tpu.memory_space<vmem>>, vector<256x3xf32>
    %cst = arith.constant 1.000000e+00 : f32
    %1 = vector.broadcast %cst : f32 to vector<256x3xf32>
    %2 = arith.addf %0, %1 : vector<256x3xf32>
    %cst_1 = arith.constant 5.000000e-01 : f32
    %3 = vector.broadcast %cst_1 : f32 to vector<256x3xf32>
    %4 = arith.mulf %2, %3 : vector<256x3xf32>
    %cst_2 = arith.constant 3.14159274 : f32
    %5 = vector.broadcast %cst_2 : f32 to vector<256x3xf32>
    %6 = arith.mulf %4, %5 : vector<256x3xf32>
    %cst_3 = arith.constant 6.28318548 : f32
    %7 = vector.broadcast %cst_3 : f32 to vector<256x3xf32>
    %8 = arith.mulf %4, %7 : vector<256x3xf32>
    %cst_4 = arith.constant 12.566371 : f32
    %9 = vector.broadcast %cst_4 : f32 to vector<256x3xf32>
    %10 = arith.mulf %4, %9 : vector<256x3xf32>
    %cst_5 = arith.constant 25.1327419 : f32
    %11 = vector.broadcast %cst_5 : f32 to vector<256x3xf32>
    %12 = arith.mulf %4, %11 : vector<256x3xf32>
    %13 = tpu.concatenate %6, %8, %10, %12 in 1 : vector<256x3xf32>, vector<256x3xf32>, vector<256x3xf32>, vector<256x3xf32> -> vector<256x12xf32>
    %14 = math.sin %13 : vector<256x12xf32>
    %15 = math.cos %13 : vector<256x12xf32>
    %16 = tpu.concatenate %14, %15 in 1 : vector<256x12xf32>, vector<256x12xf32> -> vector<256x24xf32>
    %c0_6 = arith.constant 0 : index
    %c0_7 = arith.constant 0 : index
    %17 = vector.load %arg2[%c0_6, %c0_7] : memref<256x16xbf16, #tpu.memory_space<vmem>>, vector<256x16xbf16>
    %18 = arith.truncf %16 : vector<256x24xf32> to vector<256x24xbf16>
    %19 = tpu.concatenate %17, %18 in 1 : vector<256x16xbf16>, vector<256x24xbf16> -> vector<256x40xbf16>
    %c0_8 = arith.constant 0 : index
    %c0_9 = arith.constant 0 : index
    %20 = vector.load %arg3[%c0_8, %c0_9] : memref<40x32xbf16, #tpu.memory_space<vmem>>, vector<40x32xbf16>
    %cst_10 = arith.constant dense<0.000000e+00> : vector<256x32xf32>
    %21 = tpu.matmul %19, %20, %cst_10 {dimension_numbers = #tpu.dot_dimension_numbers<[1], [0], [0], [1], [0, 0, 1, 1], [], []>} : vector<256x40xbf16>, vector<40x32xbf16>, vector<256x32xf32> -> vector<256x32xf32>
    %c0_11 = arith.constant 0 : index
    %c0_12 = arith.constant 0 : index
    %22 = vector.load %arg4[%c0_11, %c0_12] : memref<1x32xf32, #tpu.memory_space<vmem>>, vector<1x32xf32>
    %23 = vector.broadcast %22 : vector<1x32xf32> to vector<256x32xf32>
    %24 = arith.addf %21, %23 : vector<256x32xf32>
    %cst_13 = arith.constant 0.000000e+00 : f32
    %25 = vector.broadcast %cst_13 : f32 to vector<256x32xf32>
    %26 = arith.maximumf %24, %25 : vector<256x32xf32>
    %c0_14 = arith.constant 0 : index
    %c0_15 = arith.constant 0 : index
    %27 = vector.load %arg5[%c0_14, %c0_15] : memref<32x32xf32, #tpu.memory_space<vmem>>, vector<32x32xf32>
    %cst_16 = arith.constant dense<0.000000e+00> : vector<256x32xf32>
    %28 = tpu.matmul %26, %27, %cst_16 {dimension_numbers = #tpu.dot_dimension_numbers<[1], [0], [0], [1], [0, 0, 1, 1], [], []>} : vector<256x32xf32>, vector<32x32xf32>, vector<256x32xf32> -> vector<256x32xf32>
    %c0_17 = arith.constant 0 : index
    %c0_18 = arith.constant 0 : index
    %29 = vector.load %arg6[%c0_17, %c0_18] : memref<1x32xf32, #tpu.memory_space<vmem>>, vector<1x32xf32>
    %30 = vector.broadcast %29 : vector<1x32xf32> to vector<256x32xf32>
    %31 = arith.addf %28, %30 : vector<256x32xf32>
    %cst_19 = arith.constant 0.000000e+00 : f32
    %32 = vector.broadcast %cst_19 : f32 to vector<256x32xf32>
    %33 = arith.maximumf %31, %32 : vector<256x32xf32>
    %c0_20 = arith.constant 0 : index
    %c0_21 = arith.constant 0 : index
    %34 = vector.load %arg7[%c0_20, %c0_21] : memref<32x3xf32, #tpu.memory_space<vmem>>, vector<32x3xf32>
    %cst_22 = arith.constant dense<0.000000e+00> : vector<256x3xf32>
    %35 = tpu.matmul %33, %34, %cst_22 {dimension_numbers = #tpu.dot_dimension_numbers<[1], [0], [0], [1], [0, 0, 1, 1], [], []>} : vector<256x32xf32>, vector<32x3xf32>, vector<256x3xf32> -> vector<256x3xf32>
    %c0_23 = arith.constant 0 : index
    %c0_24 = arith.constant 0 : index
    %36 = vector.load %arg8[%c0_23, %c0_24] : memref<1x3xf32, #tpu.memory_space<vmem>>, vector<1x3xf32>
    %37 = vector.broadcast %36 : vector<1x3xf32> to vector<256x3xf32>
    %38 = arith.addf %35, %37 : vector<256x3xf32>
    %39 = arith.negf %38 : vector<256x3xf32>
    %40 = math.exp %39 : vector<256x3xf32>
    %cst_25 = arith.constant 1.000000e+00 : f32
    %41 = vector.broadcast %cst_25 : f32 to vector<256x3xf32>
    %42 = arith.addf %41, %40 : vector<256x3xf32>
    %43 = arith.divf %41, %42 : vector<256x3xf32>
    %c0_26 = arith.constant 0 : index
    %c0_27 = arith.constant 0 : index
    %44 = vector.load %arg9[%c0_26, %c0_27] : memref<256x3xf32, #tpu.memory_space<vmem>>, vector<256x3xf32>
    tpu.vector_store %arg9[%c0_26, %c0_27], %43 {strides = array<i32>} : memref<256x3xf32, #tpu.memory_space<vmem>>, vector<256x3xf32>,
    return
  }
  func.func @transform_0(%arg0: i32) -> (i32, i32) {
    %c0_i32 = arith.constant 0 : i32
    %c0_i32_0 = arith.constant 0 : i32
    return %arg0, %c0_i32 : i32, i32
  }
  func.func @transform_1(%arg0: i32) -> (i32, i32) {
    %c0_i32 = arith.constant 0 : i32
    %c0_i32_0 = arith.constant 0 : i32
    return %arg0, %c0_i32 : i32, i32
  }
  func.func @transform_2(%arg0: i32) -> (i32, i32) {
    %c0_i32 = arith.constant 0 : i32
    %c0_i32_0 = arith.constant 0 : i32
    %c0_i32_1 = arith.constant 0 : i32
    return %c0_i32, %c0_i32_0 : i32, i32
  }
  func.func @transform_3(%arg0: i32) -> (i32, i32) {
    %c0_i32 = arith.constant 0 : i32
    %c0_i32_0 = arith.constant 0 : i32
    %c0_i32_1 = arith.constant 0 : i32
    return %c0_i32, %c0_i32_0 : i32, i32
  }
  func.func @transform_4(%arg0: i32) -> (i32, i32) {
    %c0_i32 = arith.constant 0 : i32
    %c0_i32_0 = arith.constant 0 : i32
    %c0_i32_1 = arith.constant 0 : i32
    return %c0_i32, %c0_i32_0 : i32, i32
  }
  func.func @transform_5(%arg0: i32) -> (i32, i32) {
    %c0_i32 = arith.constant 0 : i32
    %c0_i32_0 = arith.constant 0 : i32
    %c0_i32_1 = arith.constant 0 : i32
    return %c0_i32, %c0_i32_0 : i32, i32
  }
  func.func @transform_6(%arg0: i32) -> (i32, i32) {
    %c0_i32 = arith.constant 0 : i32
    %c0_i32_0 = arith.constant 0 : i32
    %c0_i32_1 = arith.constant 0 : i32
    return %c0_i32, %c0_i32_0 : i32, i32
  }
  func.func @transform_7(%arg0: i32) -> (i32, i32) {
    %c0_i32 = arith.constant 0 : i32
    %c0_i32_0 = arith.constant 0 : i32
    %c0_i32_1 = arith.constant 0 : i32
    return %c0_i32, %c0_i32_0 : i32, i32
  }
  func.func @transform_8(%arg0: i32) -> (i32, i32) {
    %c0_i32 = arith.constant 0 : i32
    %c0_i32_0 = arith.constant 0 : i32
    return %arg0, %c0_i32 : i32, i32
  }
}

</mosaic_0001>

<bundles_post_ra>
// kernel: tpu_custom_call.1
= control target key start
LH: loop header
LB: loop body
LE: loop exit
PB: predicated region body
PF: predicated region fallthrough
CT: control target
= control target key end

     0   :  { %s10075_s13 = smov 3   ;;  %s10076_s14 = smov 6   ;;  %vm15802_vm0 = vcmask 23552   ;;  %vm671_vm1 = vcmask 48128   ;;  %vm15659_vm2 = vcmask 72704   ;;  %s15530_s0 = inlined_call_operand.vmem [shape: f32[256,3], index: 0, kind: input, shape index: {}]   ;;  %s15531_s2 = inlined_call_operand.vmem [shape: bf16[40,32], index: 2, kind: input, shape index: {}]   ;;  %s15532_s1 = inlined_call_operand.vmem [shape: bf16[256,16], index: 1, kind: input, shape index: {}]   ;;  %s15533_s4 = inlined_call_operand.vmem [shape: f32[32,32], index: 4, kind: input, shape index: {}]   ;;  %s15534_s3 = inlined_call_operand.vmem [shape: f32[1,32], index: 3, kind: input, shape index: {}]   ;;  %s15535_s6 = inlined_call_operand.vmem [shape: f32[32,3], index: 6, kind: input, shape index: {}]   ;;  %s15536_s5 = inlined_call_operand.vmem [shape: f32[1,32], index: 5, kind: input, shape index: {}]   ;;  %s15537_s7 = inlined_call_operand.vmem [shape: f32[1,3], index: 7, kind: input, shape index: {}]   ;;  %s15538_s8 = inlined_call_operand.vmem [shape: f32[256,3], index: 8, kind: output, shape index: {}]  }
   0x1   :  { %v32_v0 = vld [vmem:[%s15530_s0 + $0x10] sm:$0xff]  ;;  %v30_v1 = vld [vmem:[%s15530_s0] sm:$0xff]  ;;  %v33_v2 = vld [vmem:[%s15530_s0 + $0x18] sm:$0xff]  ;;  %s10077_s23 = smov 9   ;;  %s10085_s15 = smov 16  }
   0x2   :  { %v64_v3 = vadd.f32 1.0, %v32_v0  ;;  %v62_v4 = vadd.f32 1.0, %v30_v1  ;;  %v65_v5 = vadd.f32 1.0, %v33_v2  ;;  %v31_v6 = vld [vmem:[%s15530_s0 + $0x8] sm:$0xff]  ;;  %v34_v21 = vld [vmem:[%s15530_s0 + $0x20] sm:$0xff]  ;;  %v37_v26 = vld [vmem:[%s15530_s0 + $0x38] sm:$0xff] }
   0x3   :  { %v63_v7 = vadd.f32 1.0, %v31_v6  ;;  %v35_v20 = vld [vmem:[%s15530_s0 + $0x28] sm:$0xff]  ;;  %v66_v25 = vadd.f32 1.0, %v34_v21  ;;  %v36_v27 = vld [vmem:[%s15530_s0 + $0x30] sm:$0xff]  ;;  %v69_v29 = vadd.f32 1.0, %v37_v26  ;;  %v38_v45 = vld [vmem:[%s15530_s0 + $0x40] sm:$0xff] }
   0x4   :  { %v10143_v8 = vmul.f32 0.5, %v64_v3  ;;  %v10145_v9 = vmul.f32 0.5, %v62_v4  ;;  %v10147_v10 = vmul.f32 0.5, %v65_v5  ;;  %v67_v22 = vadd.f32 1.0, %v35_v20  ;;  %v39_v44 = vld [vmem:[%s15530_s0 + $0x48] sm:$0xff]  ;;  %v41_v50 = vld [vmem:[%s15530_s0 + $0x58] sm:$0xff] }
   0x5   :  { %v10149_v11 = vmul.f32 0.5, %v63_v7  ;;  %v10187_v32 = vmul.f32 0.5, %v66_v25  ;;  %v68_v33 = vadd.f32 1.0, %v36_v27  ;;  %v10193_v36 = vmul.f32 0.5, %v69_v29  ;;  %v40_v51 = vld [vmem:[%s15530_s0 + $0x50] sm:$0xff]  ;;  %v43_v4 = vld [vmem:[%s15530_s0 + $0x68] sm:$0xff] }
   0x6   :  { %v160_v12 = vmul.f32 6.2831855, %v10143_v8  ;;  %v158_v13 = vmul.f32 6.2831855, %v10145_v9  ;;  %v161_v14 = vmul.f32 6.2831855, %v10147_v10 }
   0x7   :  { %v159_v15 = vmul.f32 6.2831855, %v10149_v11  ;;  %v191_v16 = vmul.f32 12.566371, %v10149_v11  ;;  %v190_v17 = vmul.f32 12.566371, %v10145_v9 }
   0x8   :  { %290 = vrot.lane.b32.xlu1 %v160_v12, %s10075_s13  ;;  %286 = vrot.lane.b32.xlu0 %v158_v13, %s10075_s13  ;;  %v193_v18 = vmul.f32 12.566371, %v10147_v10  ;;  %v192_v19 = vmul.f32 12.566371, %v10143_v8  ;;  %v223_v23 = vmul.f32 25.132742, %v10149_v11 }
   0x9   :  { %v222_v24 = vmul.f32 25.132742, %v10145_v9  ;;  %v10181_v28 = vmul.f32 0.5, %v67_v22  ;;  %v225_v30 = vmul.f32 25.132742, %v10147_v10  ;;  %v10195_v37 = vmul.f32 0.5, %v68_v33 }
   0xa   :  { %v224_v31 = vmul.f32 25.132742, %v10143_v8  ;;  %v162_v35 = vmul.f32 6.2831855, %v10187_v32  ;;  %v165_v38 = vmul.f32 6.2831855, %v10193_v36 }
   0xb   :  { %v163_v34 = vmul.f32 6.2831855, %v10181_v28  ;;  %v164_v39 = vmul.f32 6.2831855, %v10195_v37  ;;  %v195_v40 = vmul.f32 12.566371, %v10181_v28 }
   0xc   :  { %292 = vrot.lane.b32.xlu1 %v161_v14, %s10075_s13  ;;  %288 = vrot.lane.b32.xlu0 %v159_v15, %s10075_s13  ;;  %v194_v41 = vmul.f32 12.566371, %v10187_v32  ;;  %v197_v42 = vmul.f32 12.566371, %v10193_v36  ;;  %v196_v43 = vmul.f32 12.566371, %v10195_v37 }
   0xd   :  { %v227_v46 = vmul.f32 25.132742, %v10181_v28  ;;  %v226_v47 = vmul.f32 25.132742, %v10187_v32  ;;  %v71_v48 = vadd.f32 1.0, %v39_v44  ;;  %v70_v49 = vadd.f32 1.0, %v38_v45 }
   0xe   :  { %v229_v52 = vmul.f32 25.132742, %v10193_v36  ;;  %v228_v53 = vmul.f32 25.132742, %v10195_v37  ;;  %v73_v56 = vadd.f32 1.0, %v41_v50  ;;  %v72_v57 = vadd.f32 1.0, %v40_v51 }
   0xf   :  { %v10229_v54 = vmul.f32 0.5, %v71_v48  ;;  %v10231_v55 = vmul.f32 0.5, %v70_v49  ;;  %v42_v5 = vld [vmem:[%s15530_s0 + $0x60] sm:$0xff]  ;;  %v75_v6 = vadd.f32 1.0, %v43_v4  ;;  %v45_v14 = vld [vmem:[%s15530_s0 + $0x78] sm:$0xff]  ;;  %v44_v15 = vld [vmem:[%s15530_s0 + $0x70] sm:$0xff] }
  0x10   :  { %416 = vrot.lane.b32.xlu1 %v191_v16, %s10076_s14  ;;  %414 = vrot.lane.b32.xlu0 %v190_v17, %s10076_s14  ;;  %v10237_v60 = vmul.f32 0.5, %v73_v56  ;;  %v10239_v61 = vmul.f32 0.5, %v72_v57  ;;  %v74_v13 = vadd.f32 1.0, %v42_v5  ;;  %v77_v17 = vadd.f32 1.0, %v45_v14 }
  0x11   :  { %15864 = vst [vmem:[#allocation2_spill] sm:$0xff] %v10229_v54  ;;  %15865 = vst [vmem:[#allocation3_spill] sm:$0xff] %v10231_v55  ;;  %v167_v58 = vmul.f32 6.2831855, %v10229_v54  ;;  %v166_v59 = vmul.f32 6.2831855, %v10231_v55 }
  0x12   :  { %15866 = vst [vmem:[#allocation4_spill] sm:$0xff] %v10237_v60  ;;  %15867 = vst [vmem:[#allocation5_spill] sm:$0xff] %v10239_v61  ;;  %v169_v62 = vmul.f32 6.2831855, %v10237_v60  ;;  %v168_v63 = vmul.f32 6.2831855, %v10239_v61 }
  0x13   :  { %v199_v0 = vmul.f32 12.566371, %v10229_v54  ;;  %v198_v1 = vmul.f32 12.566371, %v10231_v55  ;;  %v201_v2 = vmul.f32 12.566371, %v10237_v60 }
  0x14   :  { %420 = vrot.lane.b32.xlu1 %v193_v18, %s10076_s14  ;;  %418 = vrot.lane.b32.xlu0 %v192_v19, %s10076_s14  ;;  %v200_v3 = vmul.f32 12.566371, %v10239_v61  ;;  %v231_v7 = vmul.f32 25.132742, %v10229_v54  ;;  %v230_v12 = vmul.f32 25.132742, %v10231_v55 }
  0x15   :  { %v10269_v16 = vmul.f32 0.5, %v75_v6  ;;  %v233_v18 = vmul.f32 25.132742, %v10237_v60  ;;  %v232_v19 = vmul.f32 25.132742, %v10239_v61  ;;  %v10275_v20 = vmul.f32 0.5, %v74_v13 }
  0x16   :  { %v76_v21 = vadd.f32 1.0, %v44_v15  ;;  %v53_v6 = vld [vmem:[%s15530_s0 + $0xb8] sm:$0xff] }
  0x17   :  { %15868 = vst [vmem:[#allocation6_spill] sm:$0xff] %v10269_v16  ;;  %15869 = vst [vmem:[#allocation7_spill] sm:$0xff] %v10275_v20  ;;  %v171_v22 = vmul.f32 6.2831855, %v10269_v16  ;;  %v203_v29 = vmul.f32 12.566371, %v10269_v16 }
  0x18   :  { %544 = vrot.lane.b32.xlu1 %v223_v23, %s10077_s23  ;;  %542 = vrot.lane.b32.xlu0 %v222_v24, %s10077_s23  ;;  %v170_v23 = vmul.f32 6.2831855, %v10275_v20  ;;  %v10281_v24 = vmul.f32 0.5, %v77_v17  ;;  %v10283_v25 = vmul.f32 0.5, %v76_v21  ;;  %v85_v17 = vadd.f32 1.0, %v53_v6 }
  0x1a   :  { %15870 = vst [vmem:[#allocation8_spill] sm:$0xff] %v10281_v24  ;;  %15871 = vst [vmem:[#allocation9_spill] sm:$0xff] %v10283_v25  ;;  %v173_v26 = vmul.f32 6.2831855, %v10281_v24  ;;  %v172_v27 = vmul.f32 6.2831855, %v10283_v25 }
  0x1b   :  { %v204_v33 = vmul.f32 12.566371, %v10283_v25  ;;  %v237_v44 = vmul.f32 25.132742, %v10281_v24  ;;  %v236_v45 = vmul.f32 25.132742, %v10283_v25 }
  0x1c   :  { %548 = vrot.lane.b32.xlu1 %v225_v30, %s10077_s23  ;;  %546 = vrot.lane.b32.xlu0 %v224_v31, %s10077_s23  ;;  %v202_v30 = vmul.f32 12.566371, %v10275_v20  ;;  %v205_v31 = vmul.f32 12.566371, %v10281_v24 }
  0x20   :  { %296 = vrot.lane.b32.xlu1 %v163_v34, %s10075_s13  ;;  %294 = vrot.lane.b32.xlu0 %v162_v35, %s10075_s13  ;;  %v47_v34 = vld [vmem:[%s15530_s0 + $0x88] sm:$0xff]  ;;  %v46_v35 = vld [vmem:[%s15530_s0 + $0x80] sm:$0xff] }
  0x24   :  { %300 = vrot.lane.b32.xlu1 %v165_v38, %s10075_s13  ;;  %298 = vrot.lane.b32.xlu0 %v164_v39, %s10075_s13  ;;  %v235_v38 = vmul.f32 25.132742, %v10269_v16  ;;  %v234_v39 = vmul.f32 25.132742, %v10275_v20 }
  0x28   :  { %424 = vrot.lane.b32.xlu1 %v195_v40, %s10076_s14  ;;  %422 = vrot.lane.b32.xlu0 %v194_v41, %s10076_s14  ;;  %v79_v40 = vadd.f32 1.0, %v47_v34  ;;  %v78_v41 = vadd.f32 1.0, %v46_v35 }
  0x2c   :  { %428 = vrot.lane.b32.xlu1 %v197_v42, %s10076_s14  ;;  %426 = vrot.lane.b32.xlu0 %v196_v43, %s10076_s14  ;;  %v49_v42 = vld [vmem:[%s15530_s0 + $0x98] sm:$0xff]  ;;  %v48_v43 = vld [vmem:[%s15530_s0 + $0x90] sm:$0xff] }
  0x2d   :  { %v81_v48 = vadd.f32 1.0, %v49_v42  ;;  %v80_v49 = vadd.f32 1.0, %v48_v43 }
  0x30   :  { %552 = vrot.lane.b32.xlu1 %v227_v46, %s10077_s23  ;;  %550 = vrot.lane.b32.xlu0 %v226_v47, %s10077_s23  ;;  %v10317_v46 = vmul.f32 0.5, %v79_v40  ;;  %v10319_v47 = vmul.f32 0.5, %v78_v41  ;;  %v126_v40 = vmul.f32 3.1415927, %v10145_v9  ;;  %v127_v41 = vmul.f32 3.1415927, %v10149_v11 }
  0x31   :  { %v55_v9 = vld [vmem:[%s15530_s0 + $0xc8] sm:$0xff] }
  0x32   :  { %15872 = vst [vmem:[#allocation10_spill] sm:$0xff] %v10317_v46  ;;  %15873 = vst [vmem:[#allocation11_spill] sm:$0xff] %v10319_v47  ;;  %v175_v50 = vmul.f32 6.2831855, %v10317_v46  ;;  %v174_v51 = vmul.f32 6.2831855, %v10319_v47 }
  0x33   :  { %v238_v4 = vmul.f32 25.132742, %v10319_v47 }
  0x34   :  { %556 = vrot.lane.b32.xlu1 %v229_v52, %s10077_s23  ;;  %554 = vrot.lane.b32.xlu0 %v228_v53, %s10077_s23  ;;  %v10325_v52 = vmul.f32 0.5, %v81_v48  ;;  %v10327_v53 = vmul.f32 0.5, %v80_v49  ;;  %v54_v49 = vld [vmem:[%s15530_s0 + $0xc0] sm:$0xff] }
  0x36   :  { %15874 = vst [vmem:[#allocation12_spill] sm:$0xff] %v10325_v52  ;;  %15875 = vst [vmem:[#allocation13_spill] sm:$0xff] %v10327_v53  ;;  %v177_v56 = vmul.f32 6.2831855, %v10325_v52  ;;  %v176_v57 = vmul.f32 6.2831855, %v10327_v53 }
  0x37   :  { %v240_v14 = vmul.f32 25.132742, %v10327_v53 }
  0x38   :  { %304 = vrot.lane.b32.xlu1 %v167_v58, %s10075_s13  ;;  %302 = vrot.lane.b32.xlu0 %v166_v59, %s10075_s13  ;;  %v207_v58 = vmul.f32 12.566371, %v10317_v46  ;;  %v206_v59 = vmul.f32 12.566371, %v10319_v47 }
  0x3c   :  { %308 = vrot.lane.b32.xlu1 %v169_v62, %s10075_s13  ;;  %306 = vrot.lane.b32.xlu0 %v168_v63, %s10075_s13  ;;  %v209_v62 = vmul.f32 12.566371, %v10325_v52  ;;  %v208_v63 = vmul.f32 12.566371, %v10327_v53 }
  0x40   :  { %432 = vrot.lane.b32.xlu1 %v199_v0, %s10076_s14  ;;  %430 = vrot.lane.b32.xlu0 %v198_v1, %s10076_s14  ;;  %v51_v0 = vld [vmem:[%s15530_s0 + $0xa8] sm:$0xff]  ;;  %v50_v1 = vld [vmem:[%s15530_s0 + $0xa0] sm:$0xff] }
  0x41   :  { %v82_v5 = vadd.f32 1.0, %v50_v1 }
  0x43   :  { %v10363_v15 = vmul.f32 0.5, %v82_v5 }
  0x44   :  { %436 = vrot.lane.b32.xlu1 %v201_v2, %s10076_s14  ;;  %434 = vrot.lane.b32.xlu0 %v200_v3, %s10076_s14  ;;  %v83_v2 = vadd.f32 1.0, %v51_v0  ;;  %v239_v3 = vmul.f32 25.132742, %v10317_v46  ;;  %v56_v0 = vld [vmem:[%s15530_s0 + $0xd0] sm:$0xff] }
  0x45   :  { %15877 = vst [vmem:[#allocation15_spill] sm:$0xff] %v10363_v15 }
  0x46   :  { %v10358_v13 = vmul.f32 0.5, %v83_v2 }
  0x48   :  { %560 = vrot.lane.b32.xlu1 %v231_v7, %s10077_s23  ;;  %558 = vrot.lane.b32.xlu0 %v230_v12, %s10077_s23  ;;  %v52_v7 = vld [vmem:[%s15530_s0 + $0xb0] sm:$0xff]  ;;  %v241_v12 = vmul.f32 25.132742, %v10325_v52  ;;  %15876 = vst [vmem:[#allocation14_spill] sm:$0xff] %v10358_v13  ;;  %v243_v2 = vmul.f32 25.132742, %v10358_v13 }
  0x4c   :  { %564 = vrot.lane.b32.xlu1 %v233_v18, %s10077_s23  ;;  %562 = vrot.lane.b32.xlu0 %v232_v19, %s10077_s23  ;;  %v84_v18 = vadd.f32 1.0, %v52_v7 }
  0x50   :  { %312 = vrot.lane.b32.xlu1 %v171_v22, %s10075_s13  ;;  %310 = vrot.lane.b32.xlu0 %v170_v23, %s10075_s13  ;;  %v179_v22 = vmul.f32 6.2831855, %v10358_v13  ;;  %v178_v23 = vmul.f32 6.2831855, %v10363_v15 }
  0x54   :  { %316 = vrot.lane.b32.xlu1 %v173_v26, %s10075_s13  ;;  %314 = vrot.lane.b32.xlu0 %v172_v27, %s10075_s13  ;;  %v10371_v26 = vmul.f32 0.5, %v85_v17  ;;  %v10373_v27 = vmul.f32 0.5, %v84_v18 }
  0x56   :  { %15878 = vst [vmem:[#allocation16_spill] sm:$0xff] %v10371_v26  ;;  %15879 = vst [vmem:[#allocation17_spill] sm:$0xff] %v10373_v27  ;;  %v245_v18 = vmul.f32 25.132742, %v10371_v26 }
  0x58   :  { %440 = vrot.lane.b32.xlu1 %v203_v29, %s10076_s14  ;;  %438 = vrot.lane.b32.xlu0 %v202_v30, %s10076_s14 }
  0x5c   :  { %444 = vrot.lane.b32.xlu1 %v205_v31, %s10076_s14  ;;  %442 = vrot.lane.b32.xlu0 %v204_v33, %s10076_s14  ;;  %v181_v31 = vmul.f32 6.2831855, %v10371_v26  ;;  %v180_v33 = vmul.f32 6.2831855, %v10373_v27 }
  0x60   :  { %568 = vrot.lane.b32.xlu1 %v235_v38, %s10077_s23  ;;  %566 = vrot.lane.b32.xlu0 %v234_v39, %s10077_s23  ;;  %v211_v38 = vmul.f32 12.566371, %v10358_v13  ;;  %v210_v39 = vmul.f32 12.566371, %v10363_v15 }
  0x64   :  { %572 = vrot.lane.b32.xlu1 %v237_v44, %s10077_s23  ;;  %570 = vrot.lane.b32.xlu0 %v236_v45, %s10077_s23  ;;  %v213_v44 = vmul.f32 12.566371, %v10371_v26  ;;  %v212_v45 = vmul.f32 12.566371, %v10373_v27 }
  0x68   :  { %320 = vrot.lane.b32.xlu1 %v175_v50, %s10075_s13  ;;  %318 = vrot.lane.b32.xlu0 %v174_v51, %s10075_s13 }
  0x6c   :  { %324 = vrot.lane.b32.xlu1 %v177_v56, %s10075_s13  ;;  %322 = vrot.lane.b32.xlu0 %v176_v57, %s10075_s13 }
  0x70   :  { %448 = vrot.lane.b32.xlu1 %v207_v58, %s10076_s14  ;;  %446 = vrot.lane.b32.xlu0 %v206_v59, %s10076_s14 }
  0x74   :  { %452 = vrot.lane.b32.xlu1 %v209_v62, %s10076_s14  ;;  %450 = vrot.lane.b32.xlu0 %v208_v63, %s10076_s14  ;;  %v87_v62 = vadd.f32 1.0, %v55_v9  ;;  %v57_v63 = vld [vmem:[%s15530_s0 + $0xd8] sm:$0xff] }
  0x75   :  { %v89_v7 = vadd.f32 1.0, %v57_v63 }
  0x78   :  { %576 = vrot.lane.b32.xlu1 %v239_v3, %s10077_s23  ;;  %574 = vrot.lane.b32.xlu0 %v238_v4, %s10077_s23  ;;  %v242_v3 = vmul.f32 25.132742, %v10363_v15  ;;  %v86_v4 = vadd.f32 1.0, %v54_v49 }
  0x7a   :  { %v10365_v19 = vpop.permute.xlu1 %290  ;;  %v287_v21 = vpop.permute.xlu0 %286 }
  0x7b   :  { %v639_v11 = vsel %vm15802_vm0, %v126_v40, %v287_v21  ;;  %v10425_v21 = vmul.f32 0.5, %v87_v62 }
  0x7c   :  { %580 = vrot.lane.b32.xlu1 %v241_v12, %s10077_s23  ;;  %578 = vrot.lane.b32.xlu0 %v240_v14, %s10077_s23  ;;  %v88_v12 = vadd.f32 1.0, %v56_v0  ;;  %v129_v14 = vmul.f32 3.1415927, %v10147_v10 }
  0x7d   :  { %15882 = vst [vmem:[#allocation20_spill] sm:$0xff] %v10425_v21 }
  0x7e   :  { %v10375_v29 = vpop.permute.xlu1 %292  ;;  %v289_v30 = vpop.permute.xlu0 %288  ;;  %v10435_v10 = vmul.f32 0.5, %v88_v12 }
  0x7f   :  { %v640_v48 = vsel %vm15802_vm0, %v127_v41, %v289_v30  ;;  %v244_v30 = vmul.f32 25.132742, %v10373_v27  ;;  %v642_v49 = vsel %vm15802_vm0, %v129_v14, %v10375_v29  ;;  %v15542_v14 = vmov 2102212464  }
  0x80   :  { %328 = vrot.lane.b32.xlu1 %v179_v22, %s10075_s13  ;;  %326 = vrot.lane.b32.xlu0 %v178_v23, %s10075_s13  ;;  %15885 = vst [vmem:[#allocation23_spill] sm:$0xff] %v10435_v10  ;;  %v10457_v0 = vmul.f32 12.566371, %v10435_v10 }
  0x82   :  { %v417_v34 = vpop.permute.xlu1 %416  ;;  %v415_v35 = vpop.permute.xlu0 %414 }
  0x83   :  { %v673_v50 = vsel %vm671_vm1, %v640_v48, %v417_v34  ;;  %v672_v51 = vsel %vm671_vm1, %v639_v11, %v415_v35  ;;  %v10433_v35 = vmul.f32 0.5, %v89_v7  ;;  %v184_v48 = vmul.f32 6.2831855, %v10435_v10 }
  0x84   :  { %332 = vrot.lane.b32.xlu1 %v181_v31, %s10075_s13  ;;  %330 = vrot.lane.b32.xlu0 %v180_v33, %s10075_s13  ;;  %v10431_v31 = vmul.f32 0.5, %v86_v4 }
  0x85   :  { %15884 = vst [vmem:[#allocation22_spill] sm:$0xff] %v10433_v35  ;;  %v185_v11 = vmul.f32 6.2831855, %v10433_v35 }
  0x86   :  { %v10387_v42 = vpop.permute.xlu1 %420  ;;  %v10389_v43 = vpop.permute.xlu0 %418  ;;  %15883 = vst [vmem:[#allocation21_spill] sm:$0xff] %v10431_v31  ;;  %v182_v41 = vmul.f32 6.2831855, %v10431_v31 }
  0x88   :  { %456 = vrot.lane.b32.xlu1 %v211_v38, %s10076_s14  ;;  %454 = vrot.lane.b32.xlu0 %v210_v39, %s10076_s14  ;;  %v183_v39 = vmul.f32 6.2831855, %v10425_v21 }
  0x8a   :  { %v545_v56 = vpop.permute.xlu1 %544  ;;  %v543_v57 = vpop.permute.xlu0 %542 }
  0x8b   :  { %v10406_v58 = vsel %vm15659_vm2, %v673_v50, %v545_v56  ;;  %v10409_v59 = vsel %vm15659_vm2, %v672_v51, %v543_v57  ;;  %v215_v50 = vmul.f32 12.566371, %v10425_v21  ;;  %v214_v51 = vmul.f32 12.566371, %v10431_v31 }
  0x8c   :  { %15880 = vst [vmem:[#allocation18_spill] sm:$0xff] %v10406_v58  ;;  %15881 = vst [vmem:[#allocation19_spill] sm:$0xff] %v10409_v59  ;;  %v844_v1 = vand.u32 2139095040, %v10406_v58  ;;  %460 = vrot.lane.b32.xlu1 %v213_v44, %s10076_s14  ;;  %458 = vrot.lane.b32.xlu0 %v212_v45, %s10076_s14  ;;  %v740_v5 = vand.u32 2139095040, %v10409_v59  ;;  %v15539_v22 = vand.u32 2147483647, %v10406_v58  ;;  %v675_v57 = vsel %vm671_vm1, %v642_v49, %v10387_v42 }
  0x8d   :  { %v10450_v56 = vmul.f32 12.566371, %v10433_v35  ;;  %v15553_v49 = vand.u32 2147483647, %v10409_v59 }
  0x8e   :  { %v845_v6 = vshrl.u32 %v844_v1, 23  ;;  %v741_v17 = vshrl.u32 %v740_v5, 23  ;;  %v848_v40 = vand.u32 8388607, %v15539_v22  ;;  %v15550_v1 = vmov 683565275  }
  0x90   :  { %v8933_v23 = vadd.s32 4294967169, %v845_v6  ;;  %584 = vrot.lane.b32.xlu1 %v243_v2, %s10077_s23  ;;  %582 = vrot.lane.b32.xlu0 %v242_v3, %s10077_s23  ;;  %v8929_v33 = vadd.s32 4294967169, %v741_v17  ;;  %v849_v62 = vor.u32 8388608, %v848_v40  ;;  %v15544_v3 = vmov 2475754826  }
  0x91   :  { %v15540_v6 = vmov 2131351028  }
  0x92   :  { %v851_v34 = vadd.s32 1, %v8933_v23  ;;  %v747_v38 = vadd.s32 1, %v8929_v33 }
  0x94   :  { %vm852_vm3 = vcmp.gt.s32.totalorder %v851_v34, 0  ;;  %588 = vrot.lane.b32.xlu1 %v245_v18, %s10077_s23  ;;  %586 = vrot.lane.b32.xlu0 %v244_v30, %s10077_s23  ;;  %vm748_vm4 = vcmp.gt.s32.totalorder %v747_v38, 0  ;;  %v549_v18 = vpop.permute.xlu1 %548  ;;  %v15548_v30 = vmov 920167782  }
  0x95   :  { %v853_v44 = vsel %vm852_vm3, %v851_v34, 0  ;;  %v749_v9 = vsel %vm748_vm4, %v747_v38, 0  ;;  %v15546_v38 = vmov 1326507024  }
  0x96   :  { %v855_v45 = vand.u32 31, %v853_v44  ;;  %v10459_v29 = vshrl.u32 %v853_v44, 5  ;;  %v751_v5 = vand.u32 31, %v749_v9 }
  0x98   :  { %v856_v63 = vsub.s32 32, %v855_v45  ;;  %336 = vrot.lane.b32.xlu1 %v183_v39, %s10075_s13  ;;  %334 = vrot.lane.b32.xlu0 %v182_v41, %s10075_s13  ;;  %v858_v2 = vshll.u32 %v15550_v1, %v855_v45  ;;  %v861_v4 = vshll.u32 %v15544_v3, %v855_v45  ;;  %v864_v12 = vshll.u32 %v15540_v6, %v855_v45 }
  0x99   :  { %v867_v23 = vshll.u32 %v15542_v14, %v855_v45  ;;  %v870_v34 = vshll.u32 %v15548_v30, %v855_v45  ;;  %vm873_vm5 = vcmp.lt.s32.totalorder %v10459_v29, 1  ;;  %vm876_vm6 = vcmp.lt.s32.totalorder %v10459_v29, 4 }
  0x9a   :  { %v859_v42 = vshrl.u32 %v15544_v3, %v856_v63  ;;  %v862_v7 = vshrl.u32 %v15540_v6, %v856_v63  ;;  %v865_v17 = vshrl.u32 %v15542_v14, %v856_v63  ;;  %v868_v33 = vshrl.u32 %v15548_v30, %v856_v63 }
  0x9b   :  { %v871_v39 = vshrl.u32 %v15546_v38, %v856_v63  ;;  %v10476_v14 = vsel %vm15659_vm2, %v675_v57, %v549_v18  ;;  %vm875_vm7 = vcmp.lt.s32.totalorder %v10459_v29, 3  ;;  %vm874_vm8 = vcmp.lt.s32.totalorder %v10459_v29, 2 }
  0x9c   :  { %v860_v40 = vor.u32 %v859_v42, %v858_v2  ;;  %v863_v41 = vor.u32 %v862_v7, %v861_v4  ;;  %v866_v44 = vor.u32 %v865_v17, %v864_v12  ;;  %340 = vrot.lane.b32.xlu1 %v185_v11, %s10075_s13  ;;  %338 = vrot.lane.b32.xlu0 %v184_v48, %s10075_s13  ;;  %v889_v4 = vshll.u32 %v849_v62, 8 }
  0x9d   :  { %v869_v22 = vor.u32 %v868_v33, %v867_v23  ;;  %v872_v6 = vor.u32 %v871_v39, %v870_v34  ;;  %15886 = vst [vmem:[#allocation24_spill] sm:$0xff] %v10476_v14  ;;  %v10484_v42 = vsub.s32 32, %v751_v5  ;;  %v857_v17 = vshrl.u32 %v15550_v1, %v856_v63 }
  0x9e   :  { %v881_v45 = vsel %vm873_vm5, %v860_v40, %v863_v41  ;;  %v885_v2 = vsel %vm873_vm5, %v863_v41, %v866_v44  ;;  %v878_v7 = vsel %vm876_vm6, %v866_v44, 2102212464  ;;  %v10497_v18 = vshrl.u32 %v749_v9, 5 }
  0x9f   :  { %v882_v11 = vsel %vm876_vm6, %v869_v22, 920167782  ;;  %v886_v48 = vsel %vm876_vm6, %v872_v6, 1326507024  ;;  %v755_v63 = vshrl.u32 %v15544_v3, %v10484_v42  ;;  %v15887_v9 = vmov 2131351028  }
  0xa0   :  { %v883_v57 = vsel %vm875_vm7, %v866_v44, %v882_v11  ;;  %v887_v12 = vsel %vm875_vm7, %v869_v22, %v886_v48  ;;  %464 = vrot.lane.b32.xlu1 %v215_v50, %s10076_s14  ;;  %462 = vrot.lane.b32.xlu0 %v214_v51, %s10076_s14  ;;  %v877_v22 = vsel %vm873_vm5, %v857_v17, %v860_v40  ;;  %v15888_v51 = vmov 2102212464  }
  0xa1   :  { %v884_v62 = vsel %vm874_vm8, %v881_v45, %v883_v57  ;;  %v888_v6 = vsel %vm874_vm8, %v885_v2, %v887_v12  ;;  %v879_v50 = vsel %vm875_vm7, %v863_v41, %v878_v7  ;;  %v758_v44 = vshrl.u32 %v15887_v9, %v10484_v42 }
  0xa2   :  { %v10500_v23 = vmul.u32.u64.low %v889_v4, %v888_v6  ;;  %v10501_v33 = vmul.u32.u64.high %v889_v4, %v888_v6, %v10500_v23  ;;  %v10503_v34 = vmul.u32.u64.low %v889_v4, %v884_v62  ;;  %v10504_v39 = vmul.u32.u64.high %v889_v4, %v884_v62, %v10503_v34 }
  0xa3   :  { %v761_v45 = vshrl.u32 %v15888_v51, %v10484_v42  ;;  %v763_v2 = vshll.u32 %v15888_v51, %v751_v5  ;;  %v764_v11 = vshrl.u32 %v15548_v30, %v10484_v42  ;;  %v767_v40 = vshrl.u32 %v15546_v38, %v10484_v42 }
  0xa4   :  { %468 = vrot.lane.b32.xlu1 %v10450_v56, %s10076_s14  ;;  %v754_v41 = vshll.u32 %v15550_v1, %v751_v5  ;;  %v757_v48 = vshll.u32 %v15544_v3, %v751_v5  ;;  %v766_v7 = vshll.u32 %v15548_v30, %v751_v5  ;;  %v1052_v57 = vand.u32 2139095040, %v10476_v14  ;;  %466 = vrot.lane.b32.xlu0 %v10457_v0, %s10076_s14 }
  0xa5   :  { %vm898_vm9 = vc.u32 %v10501_v33, %v10503_v34  ;;  %v899_v12 = vadd.s32 1, %v10504_v39  ;;  %v760_v17 = vshll.u32 %v15887_v9, %v751_v5  ;;  %v765_v62 = vor.u32 %v764_v11, %v763_v2 }
  0xa6   :  { %v880_v56 = vsel %vm874_vm8, %v877_v22, %v879_v50  ;;  %v744_v6 = vand.u32 8388607, %v15553_v49  ;;  %v768_v23 = vor.u32 %v767_v40, %v766_v7  ;;  %v756_v3 = vor.u32 %v755_v63, %v754_v41 }
  0xa7   :  { %v759_v38 = vor.u32 %v758_v44, %v757_v48  ;;  %v762_v30 = vor.u32 %v761_v45, %v760_v17  ;;  %vm772_vm10 = vcmp.lt.s32.totalorder %v10497_v18, 4  ;;  %v900_v0 = vsel %vm898_vm9, %v899_v12, %v10504_v39 }
  0xa8   :  { %v778_v1 = vsel %vm772_vm10, %v765_v62, 920167782  ;;  %v1053_v27 = vshrl.u32 %v1052_v57, 23  ;;  %v896_v5 = vmul.u32 %v889_v4, %v880_v56  ;;  %v782_v29 = vsel %vm772_vm10, %v768_v23, 1326507024  ;;  %v547_v56 = vpop.permute.xlu0 %546 }
  0xa9   :  { %vm769_vm11 = vcmp.lt.s32.totalorder %v10497_v18, 1  ;;  %vm771_vm12 = vcmp.lt.s32.totalorder %v10497_v18, 3  ;;  %v745_v50 = vor.u32 8388608, %v744_v6  ;;  %vm770_vm13 = vcmp.lt.s32.totalorder %v10497_v18, 2 }
  0xaa   :  { %v901_v22 = vadd.s32 %v900_v0, %v896_v5  ;;  %v777_v63 = vsel %vm769_vm11, %v756_v3, %v759_v38  ;;  %v779_v39 = vsel %vm771_vm12, %v762_v30, %v778_v1  ;;  %v781_v44 = vsel %vm769_vm11, %v759_v38, %v762_v30 }
  0xab   :  { %v783_v4 = vsel %vm771_vm12, %v765_v62, %v782_v29  ;;  %v8941_v45 = vadd.s32 4294967169, %v1053_v27  ;;  %v780_v2 = vsel %vm770_vm13, %v777_v63, %v779_v39  ;;  %v785_v41 = vshll.u32 %v745_v50, 8 }
  0xac   :  { %v902_v11 = vadd.s32 536870912, %v901_v22  ;;  %v784_v40 = vsel %vm770_vm13, %v781_v44, %v783_v4  ;;  %v128_v57 = vmul.f32 3.1415927, %v10143_v8  ;;  %v774_v62 = vsel %vm772_vm10, %v762_v30, 2102212464 }
  0xad   :  { %v1059_v48 = vadd.s32 1, %v8941_v45  ;;  %v10559_v7 = vmul.u32.u64.low %v785_v41, %v780_v2  ;;  %v10560_v1 = vmul.u32.u64.high %v785_v41, %v780_v2, %v10559_v7  ;;  %v15889_v23 = vmov 683565275   ;;  %v10594_v45 = vpop.permute.xlu1 %296 }
  0xae   :  { %v10564_v12 = vmul.u32.u64.low %v785_v41, %v784_v40  ;;  %v10565_v17 = vmul.u32.u64.high %v785_v41, %v784_v40, %v10564_v12  ;;  %v10567_v27 = vshrl.u32 %v902_v11, 30  ;;  %v641_v6 = vsel %vm15802_vm0, %v128_v57, %v10365_v19 }
  0xaf   :  { %vm1060_vm14 = vcmp.gt.s32.totalorder %v1059_v48, 0  ;;  %v753_v0 = vshrl.u32 %v15889_v23, %v10484_v42  ;;  %v674_v5 = vsel %vm671_vm1, %v641_v6, %v10389_v43  ;;  %v775_v63 = vsel %vm771_vm12, %v759_v38, %v774_v62 }
  0xb0   :  { %v904_v8 = vshll.u32 %v10567_v27, 30  ;;  %v1061_v29 = vsel %vm1060_vm14, %v1059_v48, 0  ;;  %v10583_v30 = vsel %vm15659_vm2, %v674_v5, %v547_v56  ;;  %v795_v19 = vadd.s32 1, %v10560_v1  ;;  %v10600_v56 = vpop.permute.xlu0 %294 }
  0xb1   :  { %v773_v50 = vsel %vm769_vm11, %v753_v0, %v756_v3  ;;  %15890 = vst [vmem:[#allocation25_spill] sm:$0xff] %v10583_v30  ;;  %vm794_vm15 = vc.u32 %v10565_v17, %v10559_v7  ;;  %v1063_v42 = vand.u32 31, %v1061_v29  ;;  %v948_v44 = vand.u32 2139095040, %v10583_v30  ;;  %v10605_v5 = vpop.permute.xlu1 %300 }
  0xb2   :  { %v10588_v39 = vsub.s32 %v901_v22, %v904_v8  ;;  %v776_v43 = vsel %vm770_vm13, %v773_v50, %v775_v63  ;;  %v796_v3 = vsel %vm794_vm15, %v795_v19, %v10560_v1  ;;  %v15891_v48 = vmov 920167782  }
  0xb3   :  { %v792_v4 = vmul.u32 %v785_v41, %v776_v43  ;;  %v1064_v38 = vsub.s32 32, %v1063_v42  ;;  %v949_v11 = vshrl.u32 %v948_v44, 23  ;;  %v15892_v12 = vmov 1326507024  }
  0xb4   :  { %v907_v2 = vsub.s32 0, %v10588_v39  ;;  %v1075_v41 = vshll.u32 %v15888_v51, %v1063_v42  ;;  %v1078_v0 = vshll.u32 %v15891_v48, %v1063_v42  ;;  %v10607_v8 = vshrl.u32 %v1061_v29, 5  ;;  %v10620_v47 = vpop.permute.xlu0 %298 }
  0xb5   :  { %v797_v40 = vadd.s32 %v796_v3, %v792_v4  ;;  %v1076_v57 = vshrl.u32 %v15891_v48, %v1064_v38  ;;  %v1079_v22 = vshrl.u32 %v15892_v12, %v1064_v38  ;;  %v8937_v18 = vadd.s32 4294967169, %v949_v11 }
  0xb6   :  { %v8934_v62 = vmin.u32 %v907_v2, %v10588_v39  ;;  %v15893_v50 = vmov 2475754826   ;;  %v1070_v19 = vshrl.u32 %v15887_v9, %v1064_v38  ;;  %v1073_v43 = vshrl.u32 %v15888_v51, %v1064_v38 }
  0xb7   :  { %v798_v6 = vadd.s32 536870912, %v797_v40  ;;  %v1067_v63 = vshrl.u32 %v15893_v50, %v1064_v38  ;;  %v1066_v44 = vshll.u32 %v15889_v23, %v1063_v42  ;;  %v1077_v3 = vor.u32 %v1076_v57, %v1075_v41 }
  0xb8   :  { %v1080_v4 = vor.u32 %v1079_v22, %v1078_v0  ;;  %v909_v2 = vclz %v8934_v62  ;;  %v1069_v11 = vshll.u32 %v15893_v50, %v1063_v42  ;;  %v1072_v49 = vshll.u32 %v15887_v9, %v1063_v42  ;;  %v425_v42 = vpop.permute.xlu1 %424 }
  0xb9   :  { %v955_v1 = vadd.s32 1, %v8937_v18  ;;  %v10615_v26 = vshrl.u32 %v798_v6, 30  ;;  %v15894_v29 = vand.u32 2147483647, %v10476_v14  ;;  %v1068_v13 = vor.u32 %v1067_v63, %v1066_v44 }
  0xba   :  { %v1071_v53 = vor.u32 %v1070_v19, %v1069_v11  ;;  %v1074_v52 = vor.u32 %v1073_v43, %v1072_v49  ;;  %vm1084_vm3 = vcmp.lt.s32.totalorder %v10607_v8, 4  ;;  %v8935_v62 = vadd.s32 4294967294, %v909_v2 }
  0xbb   :  { %v1056_v15 = vand.u32 8388607, %v15894_v29  ;;  %v1090_v57 = vsel %vm1084_vm3, %v1077_v3, 920167782  ;;  %v1094_v22 = vsel %vm1084_vm3, %v1080_v4, 1326507024 }
  0xbc   :  { %vm956_vm4 = vcmp.gt.s32.totalorder %v955_v1, 0  ;;  %v800_v18 = vshll.u32 %v10615_v26, 30  ;;  %vm1081_vm5 = vcmp.lt.s32.totalorder %v10607_v8, 1  ;;  %vm1083_vm6 = vcmp.lt.s32.totalorder %v10607_v8, 3  ;;  %v10644_v2 = vpop.permute.xlu1 %428 }
  0xbd   :  { %v1057_v6 = vor.u32 8388608, %v1056_v15  ;;  %v1089_v49 = vsel %vm1081_vm5, %v1068_v13, %v1071_v53  ;;  %v1091_v41 = vsel %vm1083_vm6, %v1074_v52, %v1090_v57  ;;  %v1093_v0 = vsel %vm1081_vm5, %v1071_v53, %v1074_v52  ;;  %v423_v15 = vpop.permute.xlu0 %422 }
  0xbe   :  { %v1095_v63 = vsel %vm1083_vm6, %v1077_v3, %v1094_v22  ;;  %v957_v19 = vsel %vm956_vm4, %v955_v1, 0  ;;  %vm8936_vm7 = vcmp.lt.s32.totalorder %v8935_v62, 0  ;;  %vm1082_vm8 = vcmp.lt.s32.totalorder %v10607_v8, 2 }
  0xbf   :  { %v1092_v43 = vsel %vm1082_vm8, %v1089_v49, %v1091_v41  ;;  %v1096_v44 = vsel %vm1082_vm8, %v1093_v0, %v1095_v63  ;;  %v10642_v4 = vshll.u32 %v1057_v6, 8  ;;  %v927_v11 = vsub.s32 4, %v10567_v27 }
  0xc0   :  { %v10647_v29 = vsub.s32 %v797_v40, %v800_v18  ;;  %v1086_v1 = vsel %vm1084_vm3, %v1074_v52, 2102212464  ;;  %v959_v3 = vand.u32 31, %v957_v19  ;;  %v10651_v57 = vsel %vm8936_vm7, 0, %v8935_v62 }
  0xc1   :  { %v1065_v22 = vshrl.u32 %v15889_v23, %v1064_v38  ;;  %v131_v41 = vmul.f32 3.1415927, %v10181_v28  ;;  %v10657_v6 = vmul.u32.u64.low %v10642_v4, %v1096_v44  ;;  %v10658_v0 = vmul.u32.u64.high %v10642_v4, %v1096_v44, %v10657_v6 }
  0xc2   :  { %v10661_v63 = vmul.u32.u64.low %v10642_v4, %v1092_v43  ;;  %v10662_v40 = vmul.u32.u64.high %v10642_v4, %v1092_v43, %v10661_v63  ;;  %vm843_vm9 = vcmp.lt.s32.totalorder %v10406_v58, 0  ;;  %v1087_v38 = vsel %vm1083_vm6, %v1071_v53, %v1086_v1  ;;  %v10678_v6 = vpop.permute.xlu0 %426  ;;  %v553_v1 = vpop.permute.xlu1 %552 }
  0xc3   :  { %v1085_v52 = vsel %vm1081_vm5, %v1065_v22, %v1068_v13  ;;  %v130_v62 = vmul.f32 3.1415927, %v10187_v32  ;;  %v913_v28 = vsub.s32 32, %v10651_v57  ;;  %v928_v18 = vsel %vm843_vm9, %v927_v11, %v10567_v27 }
  0xc4   :  { %v803_v43 = vsub.s32 0, %v10647_v29  ;;  %v10676_v44 = vsub.s32 32, %v959_v3  ;;  %v15895_v49 = vand.u32 2147483647, %v10406_v58  ;;  %v917_v32 = vsub.s32 4294967266, %v10651_v57 }
  0xc5   :  { %v10688_v53 = vmul.f32 3.1415927, %v10193_v36  ;;  %v897_v27 = vadd.s32 %v10503_v34, %v10501_v33  ;;  %v1088_v11 = vsel %vm1082_vm8, %v1085_v52, %v1087_v38  ;;  %v15898_v22 = vand.u32 2147483647, %v10583_v30 }
  0xc6   :  { %vm10682_vm10 = vcmp.le.f32.partialorder %v15895_v49, 0.7853982  ;;  %v644_v49 = vsel %vm15802_vm0, %v131_v41, %v10594_v45  ;;  %v914_v25 = vshll.u32 %v10588_v39, %v10651_v57  ;;  %v643_v33 = vsel %vm15802_vm0, %v130_v62, %v10600_v56 }
  0xc7   :  { %v10696_v46 = vand.u32 8388607, %v15898_v22  ;;  %v10704_v36 = vsel %vm10682_vm10, 0, %v928_v18  ;;  %v677_v34 = vsel %vm671_vm1, %v644_v49, %v425_v42  ;;  %v915_v8 = vshrl.u32 %v897_v27, %v913_v28  ;;  %v551_v28 = vpop.permute.xlu0 %550 }
  0xc8   :  { %v8930_v52 = vmin.u32 %v803_v43, %v10647_v29  ;;  %v972_v38 = vshrl.u32 %v15891_v48, %v10676_v44  ;;  %v10713_v45 = vsel %vm15659_vm2, %v677_v34, %v553_v1  ;;  %v918_v41 = vadd.s32 127, %v917_v32 }
  0xc9   :  { %15899 = vst [vmem:[#allocation26_spill] sm:$0xff] %v10713_v45  ;;  %v1104_v39 = vmul.u32 %v10642_v4, %v1088_v11  ;;  %v975_v57 = vshrl.u32 %v15892_v12, %v10676_v44  ;;  %v1260_v18 = vand.u32 2139095040, %v10713_v45  ;;  %vm1106_vm11 = vc.u32 %v10658_v0, %v10661_v63 }
  0xca   :  { %v1107_v56 = vadd.s32 1, %v10662_v40  ;;  %v10722_v42 = vshrl.u32 %v957_v19, 5  ;;  %v971_v62 = vshll.u32 %v15888_v51, %v959_v3  ;;  %v963_v43 = vshrl.u32 %v15893_v50, %v10676_v44 }
  0xcb   :  { %v966_v4 = vshrl.u32 %v15887_v9, %v10676_v44  ;;  %v969_v32 = vshrl.u32 %v15888_v51, %v10676_v44  ;;  %v974_v1 = vshll.u32 %v15891_v48, %v959_v3  ;;  %v962_v27 = vshll.u32 %v15889_v23, %v959_v3 }
  0xcc   :  { %v973_v11 = vor.u32 %v972_v38, %v971_v62  ;;  %v676_v19 = vsel %vm671_vm1, %v643_v33, %v423_v15  ;;  %v1261_v22 = vshrl.u32 %v1260_v18, 23  ;;  %v965_v49 = vshll.u32 %v15893_v50, %v959_v3 }
  0xcd   :  { %v968_v34 = vshll.u32 %v15887_v9, %v959_v3  ;;  %v976_v24 = vor.u32 %v975_v57, %v974_v1  ;;  %v10737_v20 = vsel %vm15659_vm2, %v676_v19, %v551_v28  ;;  %v919_v16 = vshll.u32 %v918_v41, 23 }
  0xce   :  { %15900 = vst [vmem:[#allocation27_spill] sm:$0xff] %v10737_v20  ;;  %v805_v61 = vclz %v8930_v52  ;;  %v1108_v60 = vsel %vm1106_vm11, %v1107_v56, %v10662_v40  ;;  %v8949_v55 = vadd.s32 4294967169, %v1261_v22  ;;  %v10743_v38 = vor.u32 %v963_v43, %v962_v27 }
  0xcf   :  { %v10745_v15 = vor.u32 %v966_v4, %v965_v49  ;;  %v970_v33 = vor.u32 %v969_v32, %v968_v34  ;;  %vm980_vm12 = vcmp.lt.s32.totalorder %v10722_v42, 4  ;;  %v934_v3 = vadd.s32 3, %v10704_v36 }
  0xd0   :  { %v986_v57 = vsel %vm980_vm12, %v973_v11, 920167782  ;;  %v1267_v41 = vadd.s32 1, %v8949_v55  ;;  %v1156_v52 = vand.u32 2139095040, %v10737_v20  ;;  %v10752_v18 = vor.u32 %v915_v8, %v914_v25 }
  0xd1   :  { %v10754_v62 = vadd.s32 %v1108_v60, %v1104_v39  ;;  %v953_v40 = vor.u32 8388608, %v10696_v46  ;;  %v990_v56 = vsel %vm980_vm12, %v976_v24, 1326507024  ;;  %v8931_v28 = vadd.s32 4294967294, %v805_v61 }
  0xd2   :  { %vm977_vm13 = vcmp.lt.s32.totalorder %v10722_v42, 1  ;;  %vm979_vm14 = vcmp.lt.s32.totalorder %v10722_v42, 3  ;;  %vm1268_vm15 = vcmp.gt.s32.totalorder %v1267_v41, 0  ;;  %v10761_v43 = vor.u32 4788187, %v919_v16 }
  0xd3   :  { %v985_v55 = vsel %vm977_vm13, %v10743_v38, %v10745_v15  ;;  %v987_v60 = vsel %vm979_vm14, %v970_v33, %v986_v57  ;;  %v1269_v25 = vsel %vm1268_vm15, %v1267_v41, 0  ;;  %v989_v61 = vsel %vm977_vm13, %v10745_v15, %v970_v33 }
  0xd4   :  { %v991_v24 = vsel %vm979_vm14, %v973_v11, %v990_v56  ;;  %v1271_v46 = vand.u32 31, %v1269_v25  ;;  %v1157_v8 = vshrl.u32 %v1156_v52, 23  ;;  %v1110_v16 = vadd.s32 536870912, %v10754_v62 }
  0xd5   :  { %vm978_vm3 = vcmp.lt.s32.totalorder %v10722_v42, 2  ;;  %v10779_v39 = vsel %vm15802_vm0, %v10688_v53, %v10605_v5  ;;  %v10782_v4 = vmul.f32 3.1415927, %v10195_v37  ;;  %v10786_v32 = vadd.s32 %v10559_v7, %v10565_v17 }
  0xd6   :  { %vm8932_vm4 = vcmp.lt.s32.totalorder %v8931_v28, 0  ;;  %v988_v1 = vsel %vm978_vm3, %v985_v55, %v987_v60  ;;  %v10790_v27 = vsub.s32 32, %v1271_v46  ;;  %v10792_v11 = vand.u32 3, %v934_v3 }
  0xd7   :  { %v10795_v19 = vand.u32 3, %v10704_v36  ;;  %v992_v5 = vsel %vm978_vm3, %v989_v61, %v991_v24  ;;  %v10799_v37 = vshll.u32 %v953_v40, 8  ;;  %v921_v53 = vand.u32 2147483647, %v10761_v43 }
  0xd8   :  { %15901 = vst [vmem:[#allocation28_spill] sm:$0xff] %v10792_v11  ;;  %v923_v7 = vcvt.s32.f32 %v10752_v18  ;;  %v823_v17 = vsub.s32 4, %v10615_v26  ;;  %v8945_v22 = vadd.s32 4294967169, %v1157_v8  ;;  %v10804_v49 = vsel %vm8932_vm4, 0, %v8931_v28 }
  0xd9   :  { %15902 = vst [vmem:[#allocation29_spill] sm:$0xff] %v10795_v19  ;;  %v10806_v34 = vshrl.u32 %v1110_v16, 30  ;;  %v10809_v3 = vmul.u32.u64.low %v10799_v37, %v988_v1  ;;  %v10810_v36 = vmul.u32.u64.high %v10799_v37, %v988_v1, %v10809_v3  ;;  %v15573_v52 = vand.u32 2147483647, %v10713_v45 }
  0xda   :  { %v10814_v57 = vmul.u32.u64.low %v10799_v37, %v992_v5  ;;  %v10815_v41 = vmul.u32.u64.high %v10799_v37, %v992_v5, %v10814_v57  ;;  %v1275_v18 = vshrl.u32 %v15893_v50, %v10790_v27  ;;  %v982_v40 = vsel %vm980_vm12, %v970_v33, 2102212464 }
  0xdb   :  { %v10822_v56 = vshrl.u32 %v1269_v25, 5  ;;  %v1278_v28 = vshrl.u32 %v15887_v9, %v10790_v27  ;;  %v1281_v43 = vshrl.u32 %v15888_v51, %v10790_v27  ;;  %v1274_v55 = vshll.u32 %v15889_v23, %v1271_v46 }
  0xdc   :  { %v1283_v60 = vshll.u32 %v15888_v51, %v1271_v46  ;;  %v1284_v61 = vshrl.u32 %v15891_v48, %v10790_v27  ;;  %v1163_v24 = vadd.s32 1, %v8945_v22  ;;  %vm739_vm5 = vcmp.lt.s32.totalorder %v10409_v59, 0 }
  0xdd   :  { %v1277_v33 = vshll.u32 %v15893_v50, %v1271_v46  ;;  %v1280_v25 = vshll.u32 %v15887_v9, %v1271_v46  ;;  %v1286_v8 = vshll.u32 %v15891_v48, %v1271_v46  ;;  %v1287_v16 = vshrl.u32 %v15892_v12, %v10790_v27 }
  0xde   :  { %v961_v1 = vshrl.u32 %v15889_v23, %v10676_v44  ;;  %v1264_v5 = vand.u32 8388607, %v15573_v52  ;;  %v10842_v57 = vor.u32 %v1275_v18, %v1274_v55  ;;  %v1285_v22 = vor.u32 %v1284_v61, %v1283_v60 }
  0xdf   :  { %v10844_v19 = vor.u32 %v1278_v28, %v1277_v33  ;;  %v1282_v11 = vor.u32 %v1281_v43, %v1280_v25  ;;  %v1288_v54 = vor.u32 %v1287_v16, %v1286_v8  ;;  %vm1292_vm6 = vcmp.lt.s32.totalorder %v10822_v56, 4 }
  0xe0   :  { %v813_v46 = vsub.s32 4294967266, %v10804_v49  ;;  %v981_v10 = vsel %vm977_vm13, %v961_v1, %v10743_v38  ;;  %v983_v44 = vsel %vm979_vm14, %v10745_v15, %v982_v40  ;;  %v1298_v18 = vsel %vm1292_vm6, %v1285_v22, 920167782 }
  0xe1   :  { %v1112_v28 = vshll.u32 %v10806_v34, 30  ;;  %v1003_v43 = vadd.s32 1, %v10810_v36  ;;  %v1302_v55 = vsel %vm1292_vm6, %v1288_v54, 1326507024  ;;  %vm1164_vm7 = vcmp.gt.s32.totalorder %v1163_v24, 0 }
  0xe2   :  { %v809_v60 = vsub.s32 32, %v10804_v49  ;;  %vm1002_vm8 = vc.u32 %v10815_v41, %v10809_v3  ;;  %vm1289_vm11 = vcmp.lt.s32.totalorder %v10822_v56, 1  ;;  %vm1291_vm12 = vcmp.lt.s32.totalorder %v10822_v56, 3 }
  0xe3   :  { %v984_v38 = vsel %vm978_vm3, %v981_v10, %v983_v44  ;;  %v1265_v15 = vor.u32 8388608, %v1264_v5  ;;  %v1297_v40 = vsel %vm1289_vm11, %v10842_v57, %v10844_v19  ;;  %v1299_v54 = vsel %vm1291_vm12, %v1282_v11, %v1298_v18 }
  0xe4   :  { %v814_v61 = vadd.s32 127, %v813_v46  ;;  %v1301_v33 = vsel %vm1289_vm11, %v10844_v19, %v1282_v11  ;;  %v1303_v25 = vsel %vm1291_vm12, %v1285_v22, %v1302_v55  ;;  %v1165_v8 = vsel %vm1164_vm7, %v1163_v24, 0 }
  0xe5   :  { %v10879_v10 = vsub.s32 %v10754_v62, %v1112_v28  ;;  %v1004_v42 = vsel %vm1002_vm8, %v1003_v43, %v10810_v36  ;;  %vm1290_vm13 = vcmp.lt.s32.totalorder %v10822_v56, 2  ;;  %v1167_v16 = vand.u32 31, %v1165_v8 }
  0xe6   :  { %v810_v1 = vshll.u32 %v10647_v29, %v10804_v49  ;;  %v10888_v5 = vsel %vm739_vm5, %v823_v17, %v10615_v26  ;;  %v1000_v46 = vmul.u32 %v10799_v37, %v984_v38  ;;  %v1300_v24 = vsel %vm1290_vm13, %v1297_v40, %v1299_v54 }
  0xe7   :  { %v10893_v62 = vmul.f32 %v923_v7, %v921_v53  ;;  %v1304_v36 = vsel %vm1290_vm13, %v1301_v33, %v1303_v25  ;;  %v10897_v22 = vshll.u32 %v1265_v15, 8  ;;  %v10899_v44 = vsub.s32 32, %v1167_v16  ;;  %v557_v15 = vpop.permute.xlu1 %556 }
  0xe8   :  { %v811_v29 = vshrl.u32 %v10786_v32, %v809_v60  ;;  %v10902_v49 = vadd.s32 %v1004_v42, %v1000_v46  ;;  %v679_v26 = vsel %vm671_vm1, %v10779_v39, %v10644_v2  ;;  %v15574_v37 = vand.u32 2147483647, %v10737_v20 }
  0xe9   :  { %v815_v17 = vshll.u32 %v814_v61, 23  ;;  %v1115_v53 = vsub.s32 0, %v10879_v10  ;;  %v10910_v7 = vmul.u32.u64.low %v10897_v22, %v1300_v24  ;;  %v10911_v18 = vmul.u32.u64.high %v10897_v22, %v1300_v24, %v10910_v7 }
  0xea   :  { %v10915_v28 = vmul.u32.u64.low %v10897_v22, %v1304_v36  ;;  %v10916_v43 = vmul.u32.u64.high %v10897_v22, %v1304_v36, %v10915_v28  ;;  %v10918_v32 = vshrl.u32 %v1165_v8, 5  ;;  %v1179_v55 = vshll.u32 %v15888_v51, %v1167_v16 }
  0xeb   :  { %v1171_v2 = vshrl.u32 %v15893_v50, %v10899_v44  ;;  %v1174_v39 = vshrl.u32 %v15887_v9, %v10899_v44  ;;  %v1177_v60 = vshrl.u32 %v15888_v51, %v10899_v44  ;;  %v1180_v38 = vshrl.u32 %v15891_v48, %v10899_v44 }
  0xec   :  { %v15903_v40 = vand.u32 2147483647, %v10409_v59  ;;  %v1006_v61 = vadd.s32 536870912, %v10902_v49  ;;  %v1160_v33 = vand.u32 8388607, %v15574_v37  ;;  %v1182_v25 = vshll.u32 %v15891_v48, %v1167_v16 }
  0xed   :  { %v1183_v8 = vshrl.u32 %v15892_v12, %v10899_v44  ;;  %v1170_v42 = vshll.u32 %v15889_v23, %v1167_v16  ;;  %v1173_v46 = vshll.u32 %v15893_v50, %v1167_v16  ;;  %v1176_v24 = vshll.u32 %v15887_v9, %v1167_v16 }
  0xee   :  { %vm10931_vm14 = vcmp.le.f32.partialorder %v15903_v40, 0.7853982  ;;  %v1181_v36 = vor.u32 %v1180_v38, %v1179_v55  ;;  %v1273_v28 = vshrl.u32 %v15889_v23, %v10790_v27  ;;  %v1294_v40 = vsel %vm1292_vm6, %v1282_v11, 2102212464 }
  0xef   :  { %v1184_v52 = vor.u32 %v1183_v8, %v1182_v25  ;;  %v10949_v37 = vsel %vm15659_vm2, %v679_v26, %v557_v15  ;;  %v10951_v20 = vor.u32 %v1171_v2, %v1170_v42  ;;  %v10953_v45 = vor.u32 %v1174_v39, %v1173_v46 }
  0xf0   :  { %15906 = vst [vmem:[#allocation30_spill] sm:$0xff] %v10949_v37  ;;  %v1178_v35 = vor.u32 %v1177_v60, %v1176_v24  ;;  %vm1188_vm15 = vcmp.lt.s32.totalorder %v10918_v32, 4  ;;  %v812_v30 = vor.u32 %v811_v29, %v810_v1  ;;  %v816_v16 = vor.u32 4788187, %v815_v17 }
  0xf1   :  { %v10956_v55 = vshrl.u32 %v1006_v61, 30  ;;  %v1194_v27 = vsel %vm1188_vm15, %v1181_v36, 920167782  ;;  %v8942_v11 = vmin.u32 %v1115_v53, %v10879_v10  ;;  %v1293_v26 = vsel %vm1289_vm11, %v1273_v28, %v10842_v57 }
  0xf2   :  { %v1295_v2 = vsel %vm1291_vm12, %v10844_v19, %v1294_v40  ;;  %v1468_v39 = vand.u32 2139095040, %v10949_v37  ;;  %v1315_v1 = vadd.s32 1, %v10911_v18  ;;  %vm1185_vm3 = vcmp.lt.s32.totalorder %v10918_v32, 1 }
  0xf3   :  { %vm1187_vm4 = vcmp.lt.s32.totalorder %v10918_v32, 3  ;;  %v1198_v29 = vsel %vm1188_vm15, %v1184_v52, 1326507024  ;;  %vm1314_vm6 = vc.u32 %v10916_v43, %v10910_v7  ;;  %v1161_v17 = vor.u32 8388608, %v1160_v33 }
  0xf4   :  { %v1193_v19 = vsel %vm1185_vm3, %v10951_v20, %v10953_v45  ;;  %v1195_v57 = vsel %vm1187_vm4, %v1178_v35, %v1194_v27  ;;  %vm1051_vm7 = vcmp.lt.s32.totalorder %v10476_v14, 0  ;;  %v1008_v53 = vshll.u32 %v10956_v55, 30  ;;  %v555_v27 = vpop.permute.xlu0 %554 }
  0xf5   :  { %v1296_v60 = vsel %vm1290_vm13, %v1293_v26, %v1295_v2  ;;  %v1197_v52 = vsel %vm1185_vm3, %v10953_v45, %v1178_v35  ;;  %v1199_v38 = vsel %vm1187_vm4, %v1181_v36, %v1198_v29  ;;  %v925_v15 = vxor.u32 2147483648, %v10893_v62 }
  0xf6   :  { %v826_v61 = vsel %vm10931_vm14, 0, %v10888_v5  ;;  %v645_v33 = vsel %vm15802_vm0, %v10782_v4, %v10620_v47  ;;  %vm1186_vm8 = vcmp.lt.s32.totalorder %v10918_v32, 2  ;;  %v1117_v56 = vclz %v8942_v11 }
  0xf7   :  { %v1316_v25 = vsel %vm1314_vm6, %v1315_v1, %v10911_v18  ;;  %v1196_v8 = vsel %vm1186_vm8, %v1193_v19, %v1195_v57  ;;  %v1469_v42 = vshrl.u32 %v1468_v39, 23  ;;  %v817_v46 = vand.u32 2147483647, %v816_v16 }
  0xf8   :  { %v15907_v24 = vand.u32 2147483647, %v10476_v14  ;;  %v1312_v5 = vmul.u32 %v10897_v22, %v1296_v60  ;;  %v1200_v47 = vsel %vm1186_vm8, %v1197_v52, %v1199_v38  ;;  %v11010_v4 = vshll.u32 %v1161_v17, 8 }
  0xf9   :  { %v819_v28 = vcvt.s32.f32 %v812_v30  ;;  %v1135_v18 = vsub.s32 4, %v10806_v34  ;;  %v11014_v40 = vsub.s32 %v10902_v49, %v1008_v53  ;;  %v8957_v16 = vadd.s32 4294967169, %v1469_v42 }
  0xfa   :  { %vm11003_vm11 = vcmp.le.f32.partialorder %v15907_v24, 0.7853982  ;;  %v678_v11 = vsel %vm671_vm1, %v645_v33, %v10678_v6  ;;  %v11018_v26 = vadd.s32 %v1316_v25, %v1312_v5  ;;  %v8943_v39 = vadd.s32 4294967294, %v1117_v56 }
  0xfb   :  { %v11021_v22 = vmul.u32.u64.low %v11010_v4, %v1196_v8  ;;  %v11022_v2 = vmul.u32.u64.high %v11010_v4, %v1196_v8, %v11021_v22  ;;  %v11026_v30 = vmul.u32.u64.low %v11010_v4, %v1200_v47  ;;  %v11027_v1 = vmul.u32.u64.high %v11010_v4, %v1200_v47, %v11026_v30 }
  0xfc   :  { %v1475_v29 = vadd.s32 1, %v8957_v16  ;;  %v926_v49 = vsel %vm843_vm9, %v925_v15, %v10893_v62  ;;  %v820_v17 = vmul.f32 %v819_v28, %v817_v46  ;;  %v830_v19 = vadd.s32 3, %v826_v61 }
  0xfd   :  { %v11033_v6 = vsel %vm15659_vm2, %v678_v11, %v555_v27  ;;  %v1011_v57 = vsub.s32 0, %v11014_v40  ;;  %v247_v53 = vmul.f32 25.132742, %v10425_v21  ;;  %v246_v60 = vmul.f32 25.132742, %v10431_v31 }
  0xfe   :  { %15910 = vst [vmem:[#allocation31_spill] sm:$0xff] %v11033_v6  ;;  %vm1476_vm12 = vcmp.gt.s32.totalorder %v1475_v29, 0  ;;  %v1136_v52 = vsel %vm1051_vm7, %v1135_v18, %v10806_v34  ;;  %v1318_v38 = vadd.s32 536870912, %v11018_v26  ;;  %v1190_v62 = vsel %vm1188_vm15, %v1178_v35, 2102212464 }
  0xff   :  { %v1477_v15 = vsel %vm1476_vm12, %v1475_v29, 0  ;;  %vm8944_vm9 = vcmp.lt.s32.totalorder %v8943_v39, 0  ;;  %v1169_v33 = vshrl.u32 %v15889_v23, %v10899_v44  ;;  %v1364_v25 = vand.u32 2139095040, %v11033_v6  ;;  %592 = vrot.lane.b32.xlu1 %v247_v53, %s10077_s23  ;;  %590 = vrot.lane.b32.xlu0 %v246_v60, %s10077_s23 }
 0x100   :  { %v1479_v56 = vand.u32 31, %v1477_v15  ;;  %v929_v34 = vsel %vm10682_vm10, %v10406_v58, %v926_v49  ;;  %v821_v8 = vxor.u32 2147483648, %v820_v17  ;;  %v11052_v42 = vand.u32 3, %v830_v19 }
 0x101   :  { %v11054_v35 = vand.u32 3, %v826_v61  ;;  %v1138_v46 = vsel %vm11003_vm11, 0, %v1136_v52  ;;  %v8938_v44 = vmin.u32 %v1011_v57, %v11014_v40  ;;  %v1189_v24 = vsel %vm1185_vm3, %v1169_v33, %v10951_v20 }
 0x102   :  { %15911 = vst [vmem:[#allocation32_spill] sm:$0xff] %v11052_v42  ;;  %v1191_v5 = vsel %vm1187_vm4, %v10953_v45, %v1190_v62  ;;  %v1120_v13 = vsel %vm8944_vm9, 0, %v8943_v39  ;;  %v11065_v47 = vshrl.u32 %v1318_v38, 30  ;;  %v1211_v28 = vadd.s32 1, %v11022_v2 }
 0x103   :  { %15912 = vst [vmem:[#allocation33_spill] sm:$0xff] %v11054_v35  ;;  %v11068_v61 = vsub.s32 32, %v1479_v56  ;;  %9819 = vcosq.f32 %v929_v34  ;;  %v1105_v18 = vadd.s32 %v10661_v63, %v10658_v0  ;;  %vm1210_vm10 = vc.u32 %v11027_v1, %v11021_v22 }
 0x104   :  { %v1365_v16 = vshrl.u32 %v1364_v25, 23  ;;  %9821 = vsinq.f32 %v929_v34  ;;  %v1142_v20 = vadd.s32 3, %v1138_v46  ;;  %v11074_v27 = vand.u32 3, %v1138_v46 }
 0x105   :  { %v1192_v45 = vsel %vm1186_vm8, %v1189_v24, %v1191_v5  ;;  %v822_v11 = vsel %vm739_vm5, %v821_v8, %v820_v17  ;;  %v1121_v39 = vsub.s32 32, %v1120_v13  ;;  %v1125_v30 = vsub.s32 4294967266, %v1120_v13 }
 0x106   :  { %15913 = vst [vmem:[#allocation34_spill] sm:$0xff] %v11074_v27  ;;  %v1013_v29 = vclz %v8938_v44  ;;  %v1320_v49 = vshll.u32 %v11065_v47, 30  ;;  %v1212_v0 = vsel %vm1210_vm10, %v1211_v28, %v11022_v2  ;;  %v15583_v63 = vand.u32 2147483647, %v10949_v37 }
 0x107   :  { %v1492_v19 = vshrl.u32 %v15891_v48, %v11068_v61  ;;  %v1208_v57 = vmul.u32 %v11010_v4, %v1192_v45  ;;  %v11086_v53 = vshrl.u32 %v1477_v15, 5  ;;  %v1491_v32 = vshll.u32 %v15888_v51, %v1479_v56 }
 0x108   :  { %v8953_v60 = vadd.s32 4294967169, %v1365_v16  ;;  %v1486_v17 = vshrl.u32 %v15887_v9, %v11068_v61  ;;  %v1489_v52 = vshrl.u32 %v15888_v51, %v11068_v61  ;;  %v1494_v2 = vshll.u32 %v15891_v48, %v1479_v56 }
 0x109   :  { %v1495_v38 = vshrl.u32 %v15892_v12, %v11068_v61  ;;  %v1126_v62 = vadd.s32 127, %v1125_v30  ;;  %v8939_v33 = vadd.s32 4294967294, %v1013_v29  ;;  %v11096_v25 = vadd.s32 %v1212_v0, %v1208_v57 }
 0x10a   :  { %v1483_v4 = vshrl.u32 %v15893_v50, %v11068_v61  ;;  %v1485_v15 = vshll.u32 %v15893_v50, %v1479_v56  ;;  %v1488_v34 = vshll.u32 %v15887_v9, %v1479_v56  ;;  %v1493_v8 = vor.u32 %v1492_v19, %v1491_v32 }
 0x10b   :  { %v1496_v46 = vor.u32 %v1495_v38, %v1494_v2  ;;  %v1123_v44 = vshrl.u32 %v1105_v18, %v1121_v39  ;;  %v11103_v24 = vsub.s32 %v11018_v26, %v1320_v49  ;;  %v1482_v5 = vshll.u32 %v15889_v23, %v1479_v56 }
 0x10c   :  { %v1371_v28 = vadd.s32 1, %v8953_v60  ;;  %v1472_v16 = vand.u32 8388607, %v15583_v63  ;;  %v11108_v45 = vor.u32 %v1486_v17, %v1485_v15  ;;  %v11110_v30 = vor.u32 %v1489_v52, %v1488_v34 }
 0x10d   :  { %vm1500_vm5 = vcmp.lt.s32.totalorder %v11086_v53, 4  ;;  %v11113_v29 = vpop.eup %9819  ;;  %v1127_v0 = vshll.u32 %v1126_v62, 23  ;;  %v1214_v18 = vadd.s32 536870912, %v11096_v25  ;;  %v11116_v39 = vor.u32 %v1483_v4, %v1482_v5 }
 0x10e   :  { %15914 = vst [vmem:[#allocation35_spill] sm:$0xff] %v11113_v29  ;;  %v1510_v26 = vsel %vm1500_vm5, %v1496_v46, 1326507024  ;;  %v11120_v56 = vpop.eup %9821  ;;  %v11125_v49 = vsel %vm10931_vm14, %v10409_v59, %v822_v11  ;;  %v1122_v19 = vshll.u32 %v10879_v10, %v1120_v13  ;;  %vm8940_vm13 = vcmp.lt.s32.totalorder %v8939_v33, 0  ;;  %v11161_v46 = vpop.permute.xlu1 %304 }
 0x10f   :  { %15915 = vst [vmem:[#allocation36_spill] sm:$0xff] %v11120_v56  ;;  %v1506_v57 = vsel %vm1500_vm5, %v1493_v8, 920167782  ;;  %v1323_v32 = vsub.s32 0, %v11103_v24  ;;  %vm1497_vm15 = vcmp.lt.s32.totalorder %v11086_v53, 1  ;;  %vm1499_vm3 = vcmp.lt.s32.totalorder %v11086_v53, 3 }
 0x110   :  { %vm1372_vm4 = vcmp.gt.s32.totalorder %v1371_v28, 0  ;;  %v11133_v60 = vor.u32 %v1123_v44, %v1122_v19  ;;  %v1473_v17 = vor.u32 8388608, %v1472_v16  ;;  %v1509_v54 = vsel %vm1497_vm15, %v11108_v45, %v11110_v30  ;;  %v15917_v44 = vld [vmem:[#allocation25_spill] sm:$0xff] }
 0x111   :  { %v1511_v10 = vsel %vm1499_vm3, %v1493_v8, %v1510_v26  ;;  %v11141_v13 = vor.u32 4788187, %v1127_v0  ;;  %v11143_v11 = vshrl.u32 %v1214_v18, 30  ;;  %v1505_v52 = vsel %vm1497_vm15, %v11116_v39, %v11108_v45 }
 0x112   :  { %v1507_v2 = vsel %vm1499_vm3, %v11110_v30, %v1506_v57  ;;  %v11152_v38 = vand.u32 3, %v1142_v20  ;;  %v11154_v62 = vsel %vm8940_vm13, 0, %v8939_v33  ;;  %vm1498_vm14 = vcmp.lt.s32.totalorder %v11086_v53, 2  ;;  %v11202_v63 = vpop.permute.xlu1 %308  ;;  %v59_v53 = vld [vmem:[%s15530_s0 + $0xe8] sm:$0xff] }
 0x113   :  { %v1373_v4 = vsel %vm1372_vm4, %v1371_v28, 0  ;;  %9823 = vcosq.f32 %v11125_v49  ;;  %v8950_v15 = vmin.u32 %v1323_v32, %v11103_v24  ;;  %v1512_v34 = vsel %vm1498_vm14, %v1509_v54, %v1511_v10 }
 0x114   :  { %15916 = vst [vmem:[#allocation37_spill] sm:$0xff] %v11152_v38  ;;  %v1375_v8 = vand.u32 31, %v1373_v4  ;;  %v1001_v20 = vadd.s32 %v10809_v3, %v10815_v41  ;;  %v1508_v33 = vsel %vm1498_vm14, %v1505_v52, %v1507_v2  ;;  %v11168_v5 = vshll.u32 %v1473_v17, 8 }
 0x115   :  { %v1129_v28 = vand.u32 2147483647, %v11141_v13  ;;  %v1017_v16 = vsub.s32 32, %v11154_v62  ;;  %v1216_v0 = vshll.u32 %v11143_v11, 30  ;;  %v1021_v26 = vsub.s32 4294967266, %v11154_v62 }
 0x116   :  { %v11173_v18 = vsub.s32 32, %v1375_v8  ;;  %v11177_v19 = vmul.u32.u64.low %v11168_v5, %v1512_v34  ;;  %v11178_v57 = vmul.u32.u64.high %v11168_v5, %v1512_v34, %v11177_v19  ;;  %v1325_v41 = vclz %v8950_v15 }
 0x117   :  { %v11182_v32 = vmul.u32.u64.low %v11168_v5, %v1508_v33  ;;  %v11183_v17 = vmul.u32.u64.high %v11168_v5, %v1508_v33, %v11182_v32  ;;  %v1387_v54 = vshll.u32 %v15888_v51, %v1375_v8  ;;  %v11196_v15 = vsub.s32 %v11096_v25, %v1216_v0 }
 0x118   :  { %v1379_v10 = vshrl.u32 %v15893_v50, %v11173_v18  ;;  %v1382_v13 = vshrl.u32 %v15887_v9, %v11173_v18  ;;  %v1385_v52 = vshrl.u32 %v15888_v51, %v11173_v18  ;;  %v1388_v2 = vshrl.u32 %v15891_v48, %v11173_v18 }
 0x119   :  { %v11198_v34 = vshrl.u32 %v1373_v4, 5  ;;  %v1378_v33 = vshll.u32 %v15889_v23, %v1375_v8  ;;  %v1381_v19 = vshll.u32 %v15893_v50, %v1375_v8  ;;  %vm947_vm6 = vcmp.lt.s32.totalorder %v15917_v44, 0 }
 0x11a   :  { %v1384_v3 = vshll.u32 %v15887_v9, %v1375_v8  ;;  %v1389_v31 = vor.u32 %v1388_v2, %v1387_v54  ;;  %v1390_v21 = vshll.u32 %v15891_v48, %v1375_v8  ;;  %v1391_v27 = vshrl.u32 %v15892_v12, %v11173_v18  ;;  %v11221_v2 = vpop.permute.xlu0 %302 }
 0x11b   :  { %v1022_v25 = vadd.s32 127, %v1021_v26  ;;  %v1031_v4 = vsub.s32 4, %v10956_v55  ;;  %v1502_v0 = vsel %vm1500_vm5, %v11110_v30, 2102212464  ;;  %v15918_v38 = vand.u32 2147483647, %v11033_v6 }
 0x11c   :  { %v11215_v35 = vor.u32 %v1379_v10, %v1378_v33  ;;  %v11217_v42 = vor.u32 %v1382_v13, %v1381_v19  ;;  %v11219_v54 = vor.u32 %v1385_v52, %v1384_v3  ;;  %v1392_v8 = vor.u32 %v1391_v27, %v1390_v21 }
 0x11d   :  { %v1368_v58 = vand.u32 8388607, %v15918_v38  ;;  %v11223_v29 = vpop.eup %9823  ;;  %v1018_v26 = vshll.u32 %v11014_v40, %v11154_v62  ;;  %v8951_v56 = vadd.s32 4294967294, %v1325_v41  ;;  %v1481_v30 = vshrl.u32 %v15889_v23, %v11068_v61  ;;  %v11243_v61 = vpop.permute.xlu1 %432 }
 0x11e   :  { %15919 = vst [vmem:[#allocation38_spill] sm:$0xff] %v11223_v29  ;;  %vm1396_vm8 = vcmp.lt.s32.totalorder %v11198_v34, 4  ;;  %v1019_v38 = vshrl.u32 %v1001_v20, %v1017_v16  ;;  %v1219_v10 = vsub.s32 0, %v11196_v15  ;;  %v1503_v40 = vsel %vm1499_vm3, %v11108_v45, %v1502_v0  ;;  %v11272_v0 = vpop.permute.xlu0 %306 }
 0x11f   :  { %v1402_v3 = vsel %vm1396_vm8, %v1389_v31, 920167782  ;;  %v1406_v21 = vsel %vm1396_vm8, %v1392_v8, 1326507024  ;;  %v1501_v27 = vsel %vm1497_vm15, %v1481_v30, %v11116_v39  ;;  %vm1393_vm12 = vcmp.lt.s32.totalorder %v11198_v34, 1 }
 0x120   :  { %vm1395_vm9 = vcmp.lt.s32.totalorder %v11198_v34, 3  ;;  %v15920_v62 = vand.u32 2147483647, %v15917_v44  ;;  %v1023_v16 = vshll.u32 %v1022_v25, 23  ;;  %v1369_v41 = vor.u32 8388608, %v1368_v58 }
 0x121   :  { %v1401_v39 = vsel %vm1393_vm12, %v11215_v35, %v11217_v42  ;;  %v1403_v45 = vsel %vm1395_vm9, %v11219_v54, %v1402_v3  ;;  %vm8952_vm5 = vcmp.lt.s32.totalorder %v8951_v56, 0  ;;  %v1523_v13 = vadd.s32 1, %v11183_v17 }
 0x122   :  { %vm11247_vm10 = vcmp.le.f32.partialorder %v15920_v62, 0.7853982  ;;  %v1405_v52 = vsel %vm1393_vm12, %v11217_v42, %v11219_v54  ;;  %v1407_v58 = vsel %vm1395_vm9, %v1389_v31, %v1406_v21  ;;  %v15923_v33 = vcvt.s32.f32 %v11133_v60  ;;  %v15925_v62 = vld [vmem:[#allocation23_spill] sm:$0xff] }
 0x123   :  { %v1504_v25 = vsel %vm1498_vm14, %v1501_v27, %v1503_v40  ;;  %vm1522_vm13 = vc.u32 %v11178_v57, %v11182_v32  ;;  %vm1394_vm15 = vcmp.lt.s32.totalorder %v11198_v34, 2  ;;  %v1020_v8 = vor.u32 %v1019_v38, %v1018_v26  ;;  %v61_v38 = vld [vmem:[%s15530_s0 + $0xf8] sm:$0xff]  ;;  %v15924_v27 = vld [vmem:[#allocation22_spill] sm:$0xff] }
 0x124   :  { %v1132_v19 = vmul.f32 %v15923_v33, %v1129_v28  ;;  %v1032_v30 = vsel %vm947_vm6, %v1031_v4, %v10956_v55  ;;  %v8946_v31 = vmin.u32 %v1219_v10, %v11196_v15  ;;  %v1404_v60 = vsel %vm1394_vm15, %v1401_v39, %v1403_v45  ;;  %v58_v28 = vld [vmem:[%s15530_s0 + $0xe0] sm:$0xff]  ;;  %v11300_v39 = vpop.permute.xlu1 %436 }
 0x125   :  { %v1024_v3 = vor.u32 4788187, %v1023_v16  ;;  %v11287_v26 = vsel %vm8952_vm5, 0, %v8951_v56  ;;  %v1408_v55 = vsel %vm1394_vm15, %v1405_v52, %v1407_v58  ;;  %v11291_v4 = vshll.u32 %v1369_v41, 8 }
 0x126   :  { %v1520_v10 = vmul.u32 %v11168_v5, %v1504_v25  ;;  %v1524_v21 = vsel %vm1522_vm13, %v1523_v13, %v11183_v17  ;;  %v249_v40 = vmul.f32 25.132742, %v15924_v27  ;;  %v248_v16 = vmul.f32 25.132742, %v15925_v62  ;;  %v60_v17 = vld [vmem:[%s15530_s0 + $0xf0] sm:$0xff]  ;;  %s10084_s0 = smov 12  }
 0x127   :  { %v11303_v56 = vmul.u32.u64.low %v11291_v4, %v1404_v60  ;;  %v11304_v45 = vmul.u32.u64.high %v11291_v4, %v1404_v60, %v11303_v56  ;;  %v91_v41 = vadd.f32 1.0, %v59_v53  ;;  %v90_v52 = vadd.f32 1.0, %v58_v28  ;;  %v15926_v53 = vld [vmem:[#allocation2_spill] sm:$0xff]  ;;  %v11320_v28 = vpop.permute.xlu0 %430 }
 0x128   :  { %v1221_v58 = vclz %v8946_v31  ;;  %v11308_v33 = vmul.u32.u64.low %v11291_v4, %v1408_v55  ;;  %v11309_v29 = vmul.u32.u64.high %v11291_v4, %v1408_v55, %v11308_v33  ;;  %596 = vrot.lane.b32.xlu1 %v249_v40, %s10077_s23  ;;  %594 = vrot.lane.b32.xlu0 %v248_v16, %s10077_s23  ;;  %v93_v5 = vadd.f32 1.0, %v61_v38 }
 0x129   :  { %v1133_v13 = vxor.u32 2147483648, %v1132_v19  ;;  %v1333_v25 = vsub.s32 4294967266, %v11287_v26  ;;  %v11317_v60 = vadd.s32 %v1524_v21, %v1520_v10  ;;  %v135_v31 = vmul.f32 3.1415927, %v15926_v53 }
 0x12a   :  { %v1027_v55 = vcvt.s32.f32 %v1020_v8  ;;  %v11324_v40 = vsel %vm11247_vm10, 0, %v1032_v30  ;;  %v11326_v16 = vmul.f32 0.5, %v91_v41  ;;  %v11328_v38 = vmul.f32 0.5, %v90_v52  ;;  %v561_v41 = vpop.permute.xlu1 %560 }
 0x12b   :  { %v1025_v33 = vand.u32 2147483647, %v1024_v3  ;;  %v1398_v62 = vsel %vm1396_vm8, %v11219_v54, 2102212464  ;;  %v11333_v10 = vmul.f32 0.5, %v93_v5  ;;  %v92_v21 = vadd.f32 1.0, %v60_v17 }
 0x12c   :  { %15927 = vst [vmem:[#allocation2_spill] sm:$0xff] %v11326_v16  ;;  %15928 = vst [vmem:[#allocation39_spill] sm:$0xff] %v11328_v38  ;;  %v8947_v53 = vadd.s32 4294967294, %v1221_v58  ;;  %v1377_v8 = vshrl.u32 %v15889_v23, %v11173_v18  ;;  %v187_v27 = vmul.f32 6.2831855, %v11326_v16  ;;  %v1334_v59 = vadd.s32 127, %v1333_v25  ;;  %v11359_v25 = vpop.permute.xlu0 %434 }
 0x12d   :  { %15929 = vst [vmem:[#allocation40_spill] sm:$0xff] %v11333_v10  ;;  %v186_v30 = vmul.f32 6.2831855, %v11328_v38  ;;  %v1526_v52 = vadd.s32 536870912, %v11317_v60  ;;  %v648_v3 = vsel %vm15802_vm0, %v135_v31, %v11161_v46  ;;  %v11342_v6 = vmul.f32 0.5, %v92_v21 }
 0x12e   :  { %v1397_v54 = vsel %vm1393_vm12, %v1377_v8, %v11215_v35  ;;  %v1399_v18 = vsel %vm1395_vm9, %v11217_v42, %v1398_v62  ;;  %344 = vrot.lane.b32.xlu1 %v187_v27, %s10075_s13  ;;  %v681_v58 = vsel %vm671_vm1, %v648_v3, %v11243_v61  ;;  %v189_v5 = vmul.f32 6.2831855, %v11333_v10 }
 0x12f   :  { %15930 = vst [vmem:[#allocation41_spill] sm:$0xff] %v11342_v6  ;;  %342 = vrot.lane.b32.xlu0 %v186_v30, %s10075_s13  ;;  %v1134_v46 = vsel %vm1051_vm7, %v1133_v13, %v1132_v19  ;;  %v1419_v17 = vadd.s32 1, %v11304_v45  ;;  %v188_v35 = vmul.f32 6.2831855, %v11342_v6  ;;  %v11362_v42 = vsel %vm15659_vm2, %v681_v58, %v561_v41  ;;  %v15932_v13 = vld [vmem:[#allocation3_spill] sm:$0xff] }
 0x130   :  { %15931 = vst [vmem:[#allocation42_spill] sm:$0xff] %v11362_v42  ;;  %v1028_v27 = vmul.f32 %v1027_v55, %v1025_v33  ;;  %v1329_v62 = vsub.s32 32, %v11287_v26  ;;  %vm8948_vm3 = vcmp.lt.s32.totalorder %v8947_v53, 0  ;;  %vm1418_vm4 = vc.u32 %v11309_v29, %v11303_v56 }
 0x131   :  { %v1335_v61 = vshll.u32 %v1334_v59, 23  ;;  %v1400_v19 = vsel %vm1394_vm15, %v1397_v54, %v1399_v18  ;;  %v134_v31 = vmul.f32 3.1415927, %v15932_v13  ;;  %v1676_v21 = vand.u32 2139095040, %v11362_v42 }
 0x132   :  { %v1313_v8 = vadd.s32 %v10910_v7, %v10916_v43  ;;  %v11373_v30 = vshrl.u32 %v1526_v52, 30  ;;  %348 = vrot.lane.b32.xlu1 %v189_v5, %s10075_s13  ;;  %v219_v55 = vmul.f32 12.566371, %v11326_v16  ;;  %v218_v59 = vmul.f32 12.566371, %v11328_v38  ;;  %v15933_v52 = vld [vmem:[#allocation26_spill] sm:$0xff]  ;;  %v559_v5 = vpop.permute.xlu0 %558 }
 0x133   :  { %346 = vrot.lane.b32.xlu0 %v188_v35, %s10075_s13  ;;  %9825 = vsinq.f32 %v11125_v49  ;;  %v11380_v34 = vsel %vm8948_vm3, 0, %v8947_v53  ;;  %v1420_v33 = vsel %vm1418_vm4, %v1419_v17, %v11304_v45  ;;  %v1677_v41 = vshrl.u32 %v1676_v21, 23 }
 0x134   :  { %v1137_v7 = vsel %vm11003_vm11, %v10476_v14, %v1134_v46  ;;  %v1029_v43 = vxor.u32 2147483648, %v1028_v27  ;;  %vm1259_vm7 = vcmp.lt.s32.totalorder %v15933_v52, 0  ;;  %v1331_v3 = vshrl.u32 %v1313_v8, %v1329_v62 }
 0x135   :  { %v1416_v54 = vmul.u32 %v11291_v4, %v1400_v19  ;;  %v1038_v18 = vadd.s32 3, %v11324_v40  ;;  %v1330_v49 = vshll.u32 %v11103_v24, %v11287_v26  ;;  %v1336_v53 = vor.u32 4788187, %v1335_v61 }
 0x136   :  { %v8965_v58 = vadd.s32 4294967169, %v1677_v41  ;;  %v1229_v45 = vsub.s32 4294967266, %v11380_v34  ;;  %v1528_v17 = vshll.u32 %v11373_v30, 30  ;;  %v647_v46 = vsel %vm15802_vm0, %v134_v31, %v11221_v2  ;;  %472 = vrot.lane.b32.xlu1 %v219_v55, %s10076_s14 }
 0x137   :  { %v11393_v36 = vadd.s32 %v1420_v33, %v1416_v54  ;;  %470 = vrot.lane.b32.xlu0 %v218_v59, %s10076_s14  ;;  %9827 = vcosq.f32 %v1137_v7  ;;  %v11400_v4 = vand.u32 3, %v11324_v40  ;;  %v680_v24 = vsel %vm671_vm1, %v647_v46, %v11320_v28 }
 0x138   :  { %v1683_v26 = vadd.s32 1, %v8965_v58  ;;  %v1030_v35 = vsel %vm947_vm6, %v1029_v43, %v1028_v27  ;;  %v1332_v62 = vor.u32 %v1331_v3, %v1330_v49  ;;  %v1343_v61 = vsub.s32 4, %v11065_v47 }
 0x139   :  { %15934 = vst [vmem:[#allocation3_spill] sm:$0xff] %v11400_v4  ;;  %v11408_v2 = vsel %vm15659_vm2, %v680_v24, %v559_v5  ;;  %v1337_v19 = vand.u32 2147483647, %v1336_v53  ;;  %v1225_v13 = vsub.s32 32, %v11380_v34  ;;  %v221_v40 = vmul.f32 12.566371, %v11333_v10 }
 0x13a   :  { %15935 = vst [vmem:[#allocation43_spill] sm:$0xff] %v11408_v2  ;;  %vm1684_vm11 = vcmp.gt.s32.totalorder %v1683_v26, 0  ;;  %v1230_v31 = vadd.s32 127, %v1229_v45  ;;  %v11413_v21 = vsub.s32 %v11317_v60, %v1528_v17  ;;  %v1422_v28 = vadd.s32 536870912, %v11393_v36  ;;  %v15941_v24 = vld [vmem:[#allocation27_spill] sm:$0xff] }
 0x13b   :  { %v1685_v8 = vsel %vm1684_vm11, %v1683_v26, 0  ;;  %v15599_v27 = vand.u32 2147483647, %v11362_v42  ;;  %v1572_v59 = vand.u32 2139095040, %v11408_v2  ;;  %476 = vrot.lane.b32.xlu1 %v221_v40, %s10076_s14  ;;  %v220_v33 = vmul.f32 12.566371, %v11342_v6 }
 0x13c   :  { %v1687_v55 = vand.u32 31, %v1685_v8  ;;  %9829 = vsinq.f32 %v1137_v7  ;;  %v11420_v41 = vand.u32 3, %v1038_v18  ;;  %v1339_v43 = vcvt.s32.f32 %v1332_v62 }
 0x13d   :  { %v1209_v60 = vadd.s32 %v11021_v22, %v11027_v1  ;;  %v11424_v3 = vpop.eup %9825  ;;  %v11429_v54 = vsel %vm11247_vm10, %v15917_v44, %v1030_v35  ;;  %v1344_v49 = vsel %vm1259_vm7, %v1343_v61, %v11065_v47  ;;  %v1239_v53 = vsub.s32 4, %v11143_v11  ;;  %474 = vrot.lane.b32.xlu0 %v220_v33, %s10076_s14 }
 0x13e   :  { %15936 = vst [vmem:[#allocation44_spill] sm:$0xff] %v11420_v41  ;;  %15937 = vst [vmem:[#allocation45_spill] sm:$0xff] %v11424_v3  ;;  %v11435_v7 = vsub.s32 32, %v1687_v55  ;;  %v1340_v18 = vmul.f32 %v1339_v43, %v1337_v19  ;;  %v1231_v22 = vshll.u32 %v1230_v31, 23  ;;  %v1531_v1 = vsub.s32 0, %v11413_v21 }
 0x13f   :  { %v1227_v58 = vshrl.u32 %v1209_v60, %v1225_v13  ;;  %v11439_v5 = vshrl.u32 %v1422_v28, 30  ;;  %v1680_v20 = vand.u32 8388607, %v15599_v27  ;;  %v1573_v47 = vshrl.u32 %v1572_v59, 23 }
 0x140   :  { %v1691_v45 = vshrl.u32 %v15893_v50, %v11435_v7  ;;  %v15938_v17 = vand.u32 2147483647, %v15933_v52  ;;  %vm1155_vm6 = vcmp.lt.s32.totalorder %v15941_v24, 0  ;;  %v11452_v26 = vshrl.u32 %v1685_v8, 5 }
 0x141   :  { %v1690_v35 = vshll.u32 %v15889_v23, %v1687_v55  ;;  %v1693_v62 = vshll.u32 %v15893_v50, %v1687_v55  ;;  %v1694_v61 = vshrl.u32 %v15887_v9, %v11435_v7  ;;  %v11458_v19 = vpop.eup %9827  ;;  %v1696_v13 = vshll.u32 %v15887_v9, %v1687_v55 }
 0x142   :  { %vm11447_vm14 = vcmp.le.f32.partialorder %v15938_v17, 0.7853982  ;;  %15942 = vst [vmem:[#allocation46_spill] sm:$0xff] %v11458_v19  ;;  %v1697_v40 = vshrl.u32 %v15888_v51, %v11435_v7  ;;  %v1699_v31 = vshll.u32 %v15888_v51, %v1687_v55  ;;  %v1700_v28 = vshrl.u32 %v15891_v48, %v11435_v7 }
 0x143   :  { %v11466_v8 = vor.u32 %v1691_v45, %v1690_v35  ;;  %v11468_v59 = vor.u32 %v1694_v61, %v1693_v62  ;;  %v1702_v33 = vshll.u32 %v15891_v48, %v1687_v55  ;;  %v1703_v43 = vshrl.u32 %v15892_v12, %v11435_v7 }
 0x144   :  { %v1226_v60 = vshll.u32 %v11196_v15, %v11380_v34  ;;  %v1698_v17 = vor.u32 %v1697_v40, %v1696_v13  ;;  %v1701_v27 = vor.u32 %v1700_v28, %v1699_v31  ;;  %v8961_v4 = vadd.s32 4294967169, %v1573_v47 }
 0x145   :  { %v1341_v14 = vxor.u32 2147483648, %v1340_v18  ;;  %v1232_v19 = vor.u32 4788187, %v1231_v22  ;;  %v8958_v41 = vmin.u32 %v1531_v1, %v11413_v21  ;;  %v1704_v44 = vor.u32 %v1703_v43, %v1702_v33 }
 0x146   :  { %v15943_v45 = vand.u32 2147483647, %v15941_v24  ;;  %v1228_v55 = vor.u32 %v1227_v58, %v1226_v60  ;;  %v1424_v62 = vshll.u32 %v11439_v5, 30  ;;  %vm1705_vm12 = vcmp.lt.s32.totalorder %v11452_v26, 1  ;;  %v11485_v15 = vpop.eup %9829  ;;  %v15947_v60 = vld [vmem:[#allocation4_spill] sm:$0xff] }
 0x147   :  { %vm1708_vm9 = vcmp.lt.s32.totalorder %v11452_v26, 4  ;;  %15946 = vst [vmem:[#allocation47_spill] sm:$0xff] %v11485_v15  ;;  %v1681_v34 = vor.u32 8388608, %v1680_v20  ;;  %vm1707_vm10 = vcmp.lt.s32.totalorder %v11452_v26, 3  ;;  %v1713_v22 = vsel %vm1705_vm12, %v11466_v8, %v11468_v59 }
 0x148   :  { %vm11478_vm8 = vcmp.le.f32.partialorder %v15943_v45, 0.7853982  ;;  %v1714_v1 = vsel %vm1708_vm9, %v1701_v27, 920167782  ;;  %v1717_v47 = vsel %vm1705_vm12, %v11468_v59, %v1698_v17  ;;  %v1718_v20 = vsel %vm1708_vm9, %v1704_v44, 1326507024 }
 0x149   :  { %v1715_v58 = vsel %vm1707_vm10, %v1698_v17, %v1714_v1  ;;  %v1579_v61 = vadd.s32 1, %v8961_v4  ;;  %9831 = vcosq.f32 %v11429_v54  ;;  %v1233_v13 = vand.u32 2147483647, %v1232_v19 }
 0x14a   :  { %v1533_v40 = vclz %v8958_v41  ;;  %v1719_v31 = vsel %vm1707_vm10, %v1701_v27, %v1718_v20  ;;  %v1346_v28 = vsel %vm11447_vm14, 0, %v1344_v49  ;;  %v1235_v33 = vcvt.s32.f32 %v1228_v55 }
 0x14b   :  { %v1240_v43 = vsel %vm1155_vm6, %v1239_v53, %v11143_v11  ;;  %vm1706_vm5 = vcmp.lt.s32.totalorder %v11452_v26, 2  ;;  %v137_v44 = vmul.f32 3.1415927, %v15947_v60  ;;  %vm1580_vm13 = vcmp.gt.s32.totalorder %v1579_v61, 0 }
 0x14c   :  { %v1716_v4 = vsel %vm1706_vm5, %v1713_v22, %v1715_v58  ;;  %v1720_v41 = vsel %vm1706_vm5, %v1717_v47, %v1719_v31  ;;  %v1342_v27 = vsel %vm1259_vm7, %v1341_v14, %v1340_v18  ;;  %v11518_v49 = vsub.s32 %v11393_v36, %v1424_v62  ;;  %v565_v14 = vpop.permute.xlu1 %564 }
 0x14d   :  { %v11520_v19 = vshll.u32 %v1681_v34, 8  ;;  %v1581_v11 = vsel %vm1580_vm13, %v1579_v61, 0  ;;  %v1350_v53 = vadd.s32 3, %v1346_v28  ;;  %v1236_v45 = vmul.f32 %v1235_v33, %v1233_v13 }
 0x14e   :  { %v8959_v55 = vadd.s32 4294967294, %v1533_v40  ;;  %v1583_v1 = vand.u32 31, %v1581_v11  ;;  %v1345_v36 = vsel %vm11447_vm14, %v15933_v52, %v1342_v27  ;;  %v11536_v18 = vsel %vm11478_vm8, 0, %v1240_v43 }
 0x14f   :  { %v11523_v20 = vmul.u32.u64.low %v11520_v19, %v1720_v41  ;;  %v11524_v22 = vmul.u32.u64.high %v11520_v19, %v1720_v41, %v11523_v20  ;;  %v11527_v58 = vmul.u32.u64.low %v11520_v19, %v1716_v4  ;;  %v11528_v47 = vmul.u32.u64.high %v11520_v19, %v1716_v4, %v11527_v58 }
 0x150   :  { %v650_v62 = vsel %vm15802_vm0, %v137_v44, %v11202_v63  ;;  %v1710_v34 = vsel %vm1708_vm9, %v1698_v17, 2102212464  ;;  %v1427_v61 = vsub.s32 0, %v11518_v49  ;;  %v1689_v40 = vshrl.u32 %v15889_v23, %v11435_v7 }
 0x151   :  { %v683_v13 = vsel %vm671_vm1, %v650_v62, %v11300_v39  ;;  %v11547_v46 = vsub.s32 32, %v1583_v1  ;;  %9833 = vsinq.f32 %v11429_v54  ;;  %v11550_v31 = vand.u32 3, %v1346_v28 }
 0x152   :  { %v1237_v33 = vxor.u32 2147483648, %v1236_v45  ;;  %v11553_v63 = vsel %vm15659_vm2, %v683_v13, %v565_v14  ;;  %9835 = vcosq.f32 %v1345_v36  ;;  %vm8960_vm15 = vcmp.lt.s32.totalorder %v8959_v55, 0 }
 0x153   :  { %15948 = vst [vmem:[#allocation4_spill] sm:$0xff] %v11550_v31  ;;  %15949 = vst [vmem:[#allocation48_spill] sm:$0xff] %v11553_v63  ;;  %v1709_v17 = vsel %vm1705_vm12, %v1689_v40, %v11466_v8  ;;  %v1711_v39 = vsel %vm1707_vm10, %v11468_v59, %v1710_v34  ;;  %v11561_v7 = vpop.eup %9831  ;;  %9837 = vsinq.f32 %v1345_v36  ;;  %v11563_v54 = vand.u32 3, %v1350_v53 }
 0x154   :  { %15950 = vst [vmem:[#allocation49_spill] sm:$0xff] %v11561_v7  ;;  %v11566_v28 = vadd.s32 3, %v11536_v18  ;;  %v1521_v43 = vadd.s32 %v11182_v32, %v11178_v57  ;;  %v8954_v60 = vmin.u32 %v1427_v61, %v11518_v49  ;;  %v15606_v44 = vand.u32 2147483647, %v11408_v2 }
 0x155   :  { %15951 = vst [vmem:[#allocation50_spill] sm:$0xff] %v11563_v54  ;;  %v1596_v8 = vshrl.u32 %v15891_v48, %v11547_v46  ;;  %v1884_v59 = vand.u32 2139095040, %v11553_v63  ;;  %v1238_v4 = vsel %vm1155_vm6, %v1237_v33, %v1236_v45  ;;  %v11577_v41 = vsel %vm8960_vm15, 0, %v8959_v55 }
 0x156   :  { %v1712_v27 = vsel %vm1706_vm5, %v1709_v17, %v1711_v39  ;;  %v1599_v57 = vshrl.u32 %v15892_v12, %v11547_v46  ;;  %vm1730_vm3 = vc.u32 %v11524_v22, %v11527_v58  ;;  %v1731_v32 = vadd.s32 1, %v11528_v47 }
 0x157   :  { %v11586_v53 = vshrl.u32 %v1581_v11, 5  ;;  %v1595_v20 = vshll.u32 %v15888_v51, %v1583_v1  ;;  %v1587_v45 = vshrl.u32 %v15893_v50, %v11547_v46  ;;  %v1590_v55 = vshrl.u32 %v15887_v9, %v11547_v46 }
 0x158   :  { %v1593_v26 = vshrl.u32 %v15888_v51, %v11547_v46  ;;  %v1598_v14 = vshll.u32 %v15891_v48, %v1583_v1  ;;  %v1429_v36 = vclz %v8954_v60  ;;  %v1576_v62 = vand.u32 8388607, %v15606_v44 }
 0x159   :  { %v1597_v34 = vor.u32 %v1596_v8, %v1595_v20  ;;  %v1885_v11 = vshrl.u32 %v1884_v59, 23  ;;  %v1586_v61 = vshll.u32 %v15889_v23, %v1583_v1  ;;  %v1589_v13 = vshll.u32 %v15893_v50, %v1583_v1 }
 0x15a   :  { %v1592_v40 = vshll.u32 %v15887_v9, %v1583_v1  ;;  %v1600_v33 = vor.u32 %v1599_v57, %v1598_v14  ;;  %v11604_v17 = vsel %vm11478_vm8, %v15941_v24, %v1238_v4  ;;  %v1551_v39 = vsub.s32 4, %v11373_v30 }
 0x15b   :  { %v1728_v60 = vmul.u32 %v11520_v19, %v1712_v27  ;;  %v1732_v8 = vsel %vm1730_vm3, %v1731_v32, %v11528_v47  ;;  %v11612_v59 = vpop.eup %9833  ;;  %v1588_v20 = vor.u32 %v1587_v45, %v1586_v61  ;;  %v1591_v44 = vor.u32 %v1590_v55, %v1589_v13  ;;  %v15955_v61 = vld [vmem:[#allocation5_spill] sm:$0xff] }
 0x15c   :  { %15952 = vst [vmem:[#allocation51_spill] sm:$0xff] %v11612_v59  ;;  %v1594_v1 = vor.u32 %v1593_v26, %v1592_v40  ;;  %vm1604_vm4 = vcmp.lt.s32.totalorder %v11586_v53, 4  ;;  %v11615_v57 = vpop.eup %9835  ;;  %v1537_v35 = vsub.s32 32, %v11577_v41  ;;  %v1541_v4 = vsub.s32 4294967266, %v11577_v41 }
 0x15d   :  { %15953 = vst [vmem:[#allocation52_spill] sm:$0xff] %v11615_v57  ;;  %v1577_v14 = vor.u32 8388608, %v1576_v62  ;;  %v1610_v19 = vsel %vm1604_vm4, %v1597_v34, 920167782  ;;  %v11621_v27 = vpop.eup %9837  ;;  %v8955_v47 = vadd.s32 4294967294, %v1429_v36  ;;  %v11623_v32 = vadd.s32 %v1732_v8, %v1728_v60 }
 0x15e   :  { %15954 = vst [vmem:[#allocation53_spill] sm:$0xff] %v11621_v27  ;;  %v1614_v45 = vsel %vm1604_vm4, %v1600_v33, 1326507024  ;;  %v8973_v55 = vadd.s32 4294967169, %v1885_v11  ;;  %vm1467_vm7 = vcmp.lt.s32.totalorder %v10949_v37, 0  ;;  %vm1601_vm11 = vcmp.lt.s32.totalorder %v11586_v53, 1 }
 0x15f   :  { %vm1603_vm14 = vcmp.lt.s32.totalorder %v11586_v53, 3  ;;  %v251_v26 = vmul.f32 25.132742, %v11326_v16  ;;  %v250_v62 = vmul.f32 25.132742, %v11328_v38  ;;  %v1609_v36 = vsel %vm1601_vm11, %v1588_v20, %v1591_v44 }
 0x160   :  { %v136_v13 = vmul.f32 3.1415927, %v15955_v61  ;;  %v1611_v40 = vsel %vm1603_vm14, %v1594_v1, %v1610_v19  ;;  %v1891_v33 = vadd.s32 1, %v8973_v55  ;;  %v1539_v11 = vshrl.u32 %v1521_v43, %v1537_v35 }
 0x161   :  { %v1613_v60 = vsel %vm1601_vm11, %v1591_v44, %v1594_v1  ;;  %v1615_v8 = vsel %vm1603_vm14, %v1597_v34, %v1614_v45  ;;  %600 = vrot.lane.b32.xlu1 %v251_v26, %s10077_s23  ;;  %598 = vrot.lane.b32.xlu0 %v250_v62, %s10077_s23  ;;  %vm8956_vm6 = vcmp.lt.s32.totalorder %v8955_v47, 0  ;;  %v1734_v61 = vadd.s32 536870912, %v11623_v32 }
 0x162   :  { %vm1602_vm8 = vcmp.lt.s32.totalorder %v11586_v53, 2  ;;  %vm1892_vm12 = vcmp.gt.s32.totalorder %v1891_v33, 0  ;;  %v1542_v19 = vadd.s32 127, %v1541_v4  ;;  %v11648_v35 = vshll.u32 %v1577_v14, 8 }
 0x163   :  { %v1612_v43 = vsel %vm1602_vm8, %v1609_v36, %v1611_v40  ;;  %v1893_v55 = vsel %vm1892_vm12, %v1891_v33, 0  ;;  %v1585_v34 = vshrl.u32 %v15889_v23, %v11547_v46  ;;  %v1606_v45 = vsel %vm1604_vm4, %v1594_v1, 2102212464 }
 0x164   :  { %v1616_v26 = vsel %vm1602_vm8, %v1613_v60, %v1615_v8  ;;  %v1895_v62 = vand.u32 31, %v1893_v55  ;;  %v1538_v54 = vshll.u32 %v11413_v21, %v11577_v41  ;;  %v11658_v4 = vsel %vm8956_vm6, 0, %v8955_v47 }
 0x165   :  { %v649_v14 = vsel %vm15802_vm0, %v136_v13, %v11272_v0  ;;  %v15956_v36 = vand.u32 2147483647, %v11553_v63  ;;  %v11664_v33 = vshrl.u32 %v1734_v61, 30  ;;  %v1605_v46 = vsel %vm1601_vm11, %v1585_v34, %v1588_v20 }
 0x166   :  { %v11669_v1 = vmul.u32.u64.low %v11648_v35, %v1612_v43  ;;  %v11670_v60 = vmul.u32.u64.high %v11648_v35, %v1612_v43, %v11669_v1  ;;  %v1607_v21 = vsel %vm1603_vm14, %v1591_v44, %v1606_v45  ;;  %v1896_v0 = vsub.s32 32, %v1895_v62 }
 0x167   :  { %v1888_v40 = vand.u32 8388607, %v15956_v36  ;;  %v11676_v41 = vmul.u32.u64.low %v11648_v35, %v1616_v26  ;;  %v11677_v47 = vmul.u32.u64.high %v11648_v35, %v1616_v26, %v11676_v41  ;;  %v11679_v13 = vor.u32 %v1539_v11, %v1538_v54  ;;  %v563_v26 = vpop.permute.xlu0 %562 }
 0x168   :  { %v1543_v8 = vshll.u32 %v1542_v19, 23  ;;  %v1552_v20 = vsel %vm1467_vm7, %v1551_v39, %v11373_v30  ;;  %v682_v61 = vsel %vm671_vm1, %v649_v14, %v11359_v25  ;;  %v1437_v43 = vsub.s32 4294967266, %v11658_v4 }
 0x169   :  { %v1899_v34 = vshrl.u32 %v15893_v50, %v1896_v0  ;;  %v1902_v44 = vshrl.u32 %v15887_v9, %v1896_v0  ;;  %v1905_v45 = vshrl.u32 %v15888_v51, %v1896_v0  ;;  %v1736_v54 = vshll.u32 %v11664_v33, 30 }
 0x16a   :  { %v1608_v11 = vsel %vm1602_vm8, %v1605_v46, %v1607_v21  ;;  %v1898_v19 = vshll.u32 %v15889_v23, %v1895_v62  ;;  %v1901_v30 = vshll.u32 %v15893_v50, %v1895_v62  ;;  %v1889_v39 = vor.u32 8388608, %v1888_v40 }
 0x16b   :  { %v1904_v25 = vshll.u32 %v15887_v9, %v1895_v62  ;;  %v1907_v14 = vshll.u32 %v15888_v51, %v1895_v62  ;;  %v1908_v36 = vshrl.u32 %v15891_v48, %v1896_v0  ;;  %v1894_v41 = vshrl.u32 %v1893_v55, 5 }
 0x16c   :  { %v1900_v38 = vor.u32 %v1899_v34, %v1898_v19  ;;  %v1903_v16 = vor.u32 %v1902_v44, %v1901_v30  ;;  %v11699_v31 = vsel %vm15659_vm2, %v682_v61, %v563_v26  ;;  %v15958_v53 = vand.u32 2147483647, %v10949_v37 }
 0x16d   :  { %15957 = vst [vmem:[#allocation5_spill] sm:$0xff] %v11699_v31  ;;  %v1906_v21 = vor.u32 %v1905_v45, %v1904_v25  ;;  %v1909_v40 = vor.u32 %v1908_v36, %v1907_v14  ;;  %v1910_v57 = vshll.u32 %v15891_v48, %v1895_v62  ;;  %v1911_v27 = vshrl.u32 %v15892_v12, %v1896_v0  ;;  %v11724_v14 = vpop.permute.xlu1 %312 }
 0x16e   :  { %vm11703_vm9 = vcmp.le.f32.partialorder %v15958_v53, 0.7853982  ;;  %v1544_v52 = vor.u32 4788187, %v1543_v8  ;;  %v1433_v55 = vsub.s32 32, %v11658_v4  ;;  %v1438_v34 = vadd.s32 127, %v1437_v43 }
 0x16f   :  { %v1627_v44 = vadd.s32 1, %v11670_v60  ;;  %v11712_v61 = vsub.s32 %v11623_v32, %v1736_v54  ;;  %vm1626_vm10 = vc.u32 %v11677_v47, %v11669_v1  ;;  %v1912_v26 = vor.u32 %v1911_v27, %v1910_v57 }
 0x170   :  { %v1780_v45 = vand.u32 2139095040, %v11699_v31  ;;  %v1624_v19 = vmul.u32 %v11648_v35, %v1608_v11  ;;  %vm1913_vm5 = vcmp.lt.s32.totalorder %v1894_v41, 1  ;;  %vm1916_vm13 = vcmp.lt.s32.totalorder %v1894_v41, 4 }
 0x171   :  { %v1929_v62 = vshll.u32 %v1889_v39, 8  ;;  %vm1915_vm15 = vcmp.lt.s32.totalorder %v1894_v41, 3  ;;  %v1918_v8 = vsel %vm1916_vm13, %v1906_v21, 2102212464  ;;  %v1921_v43 = vsel %vm1913_vm5, %v1900_v38, %v1903_v16 }
 0x172   :  { %v1922_v30 = vsel %vm1916_vm13, %v1909_v40, 920167782  ;;  %v1628_v25 = vsel %vm1626_vm10, %v1627_v44, %v11670_v60  ;;  %v1897_v32 = vshrl.u32 %v15889_v23, %v1896_v0  ;;  %vm1914_vm3 = vcmp.lt.s32.totalorder %v1894_v41, 2 }
 0x173   :  { %v1923_v54 = vsel %vm1915_vm15, %v1906_v21, %v1922_v30  ;;  %v1925_v27 = vsel %vm1913_vm5, %v1903_v16, %v1906_v21  ;;  %v1926_v35 = vsel %vm1916_vm13, %v1912_v26, 1326507024  ;;  %v1781_v11 = vshrl.u32 %v1780_v45, 23 }
 0x174   :  { %v1924_v57 = vsel %vm1914_vm3, %v1921_v43, %v1923_v54  ;;  %v1739_v39 = vsub.s32 0, %v11712_v61  ;;  %v1917_v36 = vsel %vm1913_vm5, %v1897_v32, %v1900_v38  ;;  %v1919_v53 = vsel %vm1915_vm15, %v1903_v16, %v1918_v8 }
 0x175   :  { %v1927_v60 = vsel %vm1915_vm15, %v1909_v40, %v1926_v35  ;;  %v1417_v0 = vadd.s32 %v11303_v56, %v11309_v29  ;;  %v11733_v43 = vmul.u32.u64.low %v1929_v62, %v1924_v57  ;;  %v11734_v30 = vmul.u32.u64.high %v1929_v62, %v1924_v57, %v11733_v43 }
 0x176   :  { %v1928_v44 = vsel %vm1914_vm3, %v1925_v27, %v1927_v60  ;;  %v1554_v21 = vsel %vm11703_vm9, 0, %v1552_v20  ;;  %v11739_v26 = vadd.s32 %v1628_v25, %v1624_v19  ;;  %v1545_v16 = vand.u32 2147483647, %v1544_v52  ;;  %v11752_v52 = vpop.permute.xlu1 %316 }
 0x177   :  { %v11741_v45 = vmul.u32.u64.low %v1929_v62, %v1928_v44  ;;  %v11742_v38 = vmul.u32.u64.high %v1929_v62, %v1928_v44, %v11741_v45  ;;  %v1435_v8 = vshrl.u32 %v1417_v0, %v1433_v55  ;;  %v1920_v40 = vsel %vm1914_vm3, %v1917_v36, %v1919_v53  ;;  %v11762_v53 = vpop.permute.xlu0 %310  ;;  %v15963_v0 = vld [vmem:[#allocation31_spill] sm:$0xff] }
 0x178   :  { %v8969_v32 = vadd.s32 4294967169, %v1781_v11  ;;  %v1547_v29 = vcvt.s32.f32 %v11679_v13  ;;  %v1434_v56 = vshll.u32 %v11518_v49, %v11658_v4  ;;  %v1439_v54 = vshll.u32 %v1438_v34, 23 }
 0x179   :  { %v8966_v57 = vmin.u32 %v1739_v39, %v11712_v61  ;;  %v1939_v20 = vadd.s32 1, %v11734_v30  ;;  %v253_v25 = vmul.f32 25.132742, %v11333_v10  ;;  %v252_v27 = vmul.f32 25.132742, %v11342_v6 }
 0x17a   :  { %v1787_v19 = vadd.s32 1, %v8969_v32  ;;  %v1558_v41 = vadd.s32 3, %v1554_v21  ;;  %v1630_v55 = vadd.s32 536870912, %v11739_v26  ;;  %v1936_v35 = vmul.u32 %v1929_v62, %v1920_v40 }
 0x17b   :  { %vm1938_vm4 = vc.u32 %v11742_v38, %v11733_v43  ;;  %v1548_v49 = vmul.f32 %v1547_v29, %v1545_v16  ;;  %v1436_v4 = vor.u32 %v1435_v8, %v1434_v56  ;;  %604 = vrot.lane.b32.xlu1 %v253_v25, %s10077_s23  ;;  %602 = vrot.lane.b32.xlu0 %v252_v27, %s10077_s23  ;;  %v1440_v34 = vor.u32 4788187, %v1439_v54  ;;  %v11781_v29 = vpop.permute.xlu1 %440 }
 0x17c   :  { %v1940_v13 = vsel %vm1938_vm4, %v1939_v20, %v11734_v30  ;;  %vm1788_vm11 = vcmp.gt.s32.totalorder %v1787_v19, 0  ;;  %v1741_v11 = vclz %v8966_v57  ;;  %9839 = vcosq.f32 %v11604_v17 }
 0x17d   :  { %v11760_v39 = vadd.s32 %v1940_v13, %v1936_v35  ;;  %v1789_v36 = vsel %vm1788_vm11, %v1787_v19, 0  ;;  %v11766_v62 = vand.u32 3, %v11566_v28  ;;  %v11769_v60 = vand.u32 3, %v11536_v18  ;;  %v15966_v19 = vld [vmem:[#allocation6_spill] sm:$0xff] }
 0x17e   :  { %vm1363_vm14 = vcmp.lt.s32.totalorder %v15963_v0, 0  ;;  %v1791_v44 = vand.u32 31, %v1789_v36  ;;  %9841 = vsinq.f32 %v11604_v17  ;;  %v11773_v30 = vand.u32 3, %v1554_v21 }
 0x17f   :  { %15961 = vst [vmem:[#allocation54_spill] sm:$0xff] %v11766_v62  ;;  %15962 = vst [vmem:[#allocation55_spill] sm:$0xff] %v11769_v60  ;;  %v11775_v45 = vshrl.u32 %v1630_v55, 30  ;;  %v15616_v16 = vand.u32 2147483647, %v11699_v31  ;;  %v1549_v8 = vxor.u32 2147483648, %v1548_v49  ;;  %v1443_v56 = vcvt.s32.f32 %v1436_v4  ;;  %v11793_v4 = vpop.permute.xlu0 %314  ;;  %v11808_v7 = vpop.permute.xlu1 %444 }
 0x180   :  { %15964 = vst [vmem:[#allocation56_spill] sm:$0xff] %v11773_v30  ;;  %v11778_v40 = vand.u32 3, %v1558_v41  ;;  %v1447_v28 = vsub.s32 4, %v11439_v5  ;;  %v1792_v32 = vsub.s32 32, %v1791_v44  ;;  %v1441_v18 = vand.u32 2147483647, %v1440_v34 }
 0x181   :  { %v8967_v54 = vadd.s32 4294967294, %v1741_v11  ;;  %v1942_v57 = vadd.s32 536870912, %v11760_v39  ;;  %v139_v25 = vmul.f32 3.1415927, %v15966_v19  ;;  %v1632_v27 = vshll.u32 %v11775_v45, 30 }
 0x182   :  { %15965 = vst [vmem:[#allocation57_spill] sm:$0xff] %v11778_v40  ;;  %v1795_v17 = vshrl.u32 %v15893_v50, %v1792_v32  ;;  %v1798_v21 = vshrl.u32 %v15887_v9, %v1792_v32  ;;  %v1801_v20 = vshrl.u32 %v15888_v51, %v1792_v32  ;;  %v1784_v41 = vand.u32 8388607, %v15616_v16 }
 0x183   :  { %v1794_v55 = vshll.u32 %v15889_v23, %v1791_v44  ;;  %v1804_v35 = vshrl.u32 %v15891_v48, %v1792_v32  ;;  %v1797_v13 = vshll.u32 %v15893_v50, %v1791_v44  ;;  %v1800_v34 = vshll.u32 %v15887_v9, %v1791_v44 }
 0x184   :  { %v1803_v11 = vshll.u32 %v15888_v51, %v1791_v44  ;;  %v1807_v40 = vshrl.u32 %v15892_v12, %v1792_v32  ;;  %vm8968_vm6 = vcmp.lt.s32.totalorder %v8967_v54, 0  ;;  %v11799_v19 = vshrl.u32 %v1942_v57, 30 }
 0x185   :  { %v1790_v62 = vshrl.u32 %v1789_v36, 5  ;;  %v1806_v16 = vshll.u32 %v15891_v48, %v1791_v44  ;;  %v15967_v6 = vand.u32 2147483647, %v15963_v0  ;;  %v1796_v30 = vor.u32 %v1795_v17, %v1794_v55 }
 0x186   :  { %v1799_v60 = vor.u32 %v1798_v21, %v1797_v13  ;;  %v1802_v24 = vor.u32 %v1801_v20, %v1800_v34  ;;  %v1805_v15 = vor.u32 %v1804_v35, %v1803_v11  ;;  %v1550_v59 = vsel %vm1467_vm7, %v1549_v8, %v1548_v49 }
 0x187   :  { %vm11804_vm8 = vcmp.le.f32.partialorder %v15967_v6, 0.7853982  ;;  %v11812_v57 = vmul.f32 %v1443_v56, %v1441_v18  ;;  %v1448_v36 = vsel %vm1363_vm14, %v1447_v28, %v11439_v5  ;;  %v1785_v44 = vor.u32 8388608, %v1784_v41  ;;  %v11817_v6 = vpop.eup %9839  ;;  %v11830_v5 = vpop.permute.xlu0 %438 }
 0x188   :  { %15970 = vst [vmem:[#allocation6_spill] sm:$0xff] %v11817_v6  ;;  %v11819_v3 = vsel %vm8968_vm6, 0, %v8967_v54  ;;  %v11822_v17 = vsub.s32 %v11739_v26, %v1632_v27  ;;  %v1808_v21 = vor.u32 %v1807_v40, %v1806_v16  ;;  %v652_v20 = vsel %vm15802_vm0, %v139_v25, %v11724_v14  ;;  %v11826_v55 = vpop.eup %9841  ;;  %v569_v41 = vpop.permute.xlu1 %568 }
 0x189   :  { %15971 = vst [vmem:[#allocation58_spill] sm:$0xff] %v11826_v55  ;;  %v1944_v49 = vshll.u32 %v11799_v19, 30  ;;  %v1793_v8 = vshrl.u32 %v15889_v23, %v1792_v32  ;;  %vm1809_vm7 = vcmp.lt.s32.totalorder %v1790_v62, 1  ;;  %vm1812_vm12 = vcmp.lt.s32.totalorder %v1790_v62, 4 }
 0x18a   :  { %vm1811_vm10 = vcmp.lt.s32.totalorder %v1790_v62, 3  ;;  %v1814_v28 = vsel %vm1812_vm12, %v1802_v24, 2102212464  ;;  %v1817_v18 = vsel %vm1809_vm7, %v1796_v30, %v1799_v60  ;;  %v1818_v56 = vsel %vm1812_vm12, %v1805_v15, 920167782 }
 0x18b   :  { %vm1810_vm5 = vcmp.lt.s32.totalorder %v1790_v62, 2  ;;  %v1819_v26 = vsel %vm1811_vm10, %v1802_v24, %v1818_v56  ;;  %v1821_v16 = vsel %vm1809_vm7, %v1799_v60, %v1802_v24  ;;  %v1825_v40 = vshll.u32 %v1785_v44, 8 }
 0x18c   :  { %v1749_v14 = vsub.s32 4294967266, %v11819_v3  ;;  %v1813_v54 = vsel %vm1809_vm7, %v1793_v8, %v1796_v30  ;;  %v1820_v25 = vsel %vm1810_vm5, %v1817_v18, %v1819_v26  ;;  %v1822_v27 = vsel %vm1812_vm12, %v1808_v21, 1326507024  ;;  %v11851_v8 = vpop.permute.xlu0 %442 }
 0x18d   :  { %v1815_v32 = vsel %vm1811_vm10, %v1799_v60, %v1814_v28  ;;  %v1823_v35 = vsel %vm1811_vm10, %v1805_v15, %v1822_v27  ;;  %v11834_v13 = vmul.u32.u64.low %v1825_v40, %v1820_v25  ;;  %v11835_v34 = vmul.u32.u64.high %v1825_v40, %v1820_v25, %v11834_v13 }
 0x18e   :  { %vm1675_vm13 = vcmp.lt.s32.totalorder %v11362_v42, 0  ;;  %v1635_v11 = vsub.s32 0, %v11822_v17  ;;  %v11841_v24 = vsub.s32 %v11760_v39, %v1944_v49  ;;  %v1824_v44 = vsel %vm1810_vm5, %v1821_v16, %v1823_v35 }
 0x18f   :  { %v685_v30 = vsel %vm671_vm1, %v652_v20, %v11781_v29  ;;  %v1450_v60 = vsel %vm11804_vm8, 0, %v1448_v36  ;;  %v11848_v15 = vmul.u32.u64.low %v1825_v40, %v1824_v44  ;;  %v11849_v21 = vmul.u32.u64.high %v1825_v40, %v1824_v44, %v11848_v15 }
 0x190   :  { %v11854_v28 = vsel %vm15659_vm2, %v685_v30, %v569_v41  ;;  %v1553_v39 = vsel %vm11703_vm9, %v10949_v37, %v1550_v59  ;;  %v1745_v49 = vsub.s32 32, %v11819_v3  ;;  %v1816_v18 = vsel %vm1810_vm5, %v1813_v54, %v1815_v32  ;;  %v15976_v54 = vld [vmem:[#allocation7_spill] sm:$0xff] }
 0x191   :  { %15972 = vst [vmem:[#allocation59_spill] sm:$0xff] %v11854_v28  ;;  %v2092_v29 = vand.u32 2139095040, %v11854_v28  ;;  %v1445_v36 = vxor.u32 2147483648, %v11812_v57  ;;  %v15973_v20 = vand.u32 2147483647, %v11362_v42  ;;  %v1729_v26 = vadd.s32 %v11527_v58, %v11524_v22 }
 0x192   :  { %v1750_v16 = vadd.s32 127, %v1749_v14  ;;  %v1835_v59 = vadd.s32 1, %v11835_v34  ;;  %v8962_v46 = vmin.u32 %v1635_v11, %v11822_v17  ;;  %v1947_v62 = vsub.s32 0, %v11841_v24 }
 0x193   :  { %vm11865_vm15 = vcmp.le.f32.partialorder %v15973_v20, 0.7853982  ;;  %v138_v25 = vmul.f32 3.1415927, %v15976_v54  ;;  %v2093_v27 = vshrl.u32 %v2092_v29, 23  ;;  %v1454_v41 = vadd.s32 3, %v1450_v60 }
 0x194   :  { %v1759_v32 = vsub.s32 4, %v11664_v33  ;;  %v1832_v35 = vmul.u32 %v1825_v40, %v1816_v18  ;;  %vm1834_vm9 = vc.u32 %v11849_v21, %v11834_v13  ;;  %9843 = vcosq.f32 %v1553_v39  ;;  %v567_v40 = vpop.permute.xlu0 %566 }
 0x195   :  { %v1747_v44 = vshrl.u32 %v1729_v26, %v1745_v49  ;;  %vm1571_vm3 = vcmp.lt.s32.totalorder %v11408_v2, 0  ;;  %v1836_v22 = vsel %vm1834_vm9, %v1835_v59, %v11835_v34  ;;  %v8981_v58 = vadd.s32 4294967169, %v2093_v27 }
 0x196   :  { %v1446_v14 = vsel %vm1363_vm14, %v1445_v36, %v11812_v57  ;;  %v1746_v11 = vshll.u32 %v11712_v61, %v11819_v3  ;;  %v1751_v30 = vshll.u32 %v1750_v16, 23  ;;  %v1837_v15 = vadd.s32 %v1836_v22, %v1832_v35 }
 0x197   :  { %v1637_v18 = vclz %v8962_v46  ;;  %v8974_v29 = vmin.u32 %v1947_v62, %v11841_v24  ;;  %v651_v49 = vsel %vm15802_vm0, %v138_v25, %v11762_v53  ;;  %v2099_v20 = vadd.s32 1, %v8981_v58 }
 0x198   :  { %9845 = vsinq.f32 %v1553_v39  ;;  %v1760_v34 = vsel %vm1675_vm13, %v1759_v32, %v11664_v33  ;;  %v1838_v26 = vadd.s32 536870912, %v1837_v15  ;;  %v684_v57 = vsel %vm671_vm1, %v651_v49, %v11830_v5 }
 0x199   :  { %v1449_v3 = vsel %vm11804_vm8, %v15963_v0, %v1446_v14  ;;  %v1748_v61 = vor.u32 %v1747_v44, %v1746_v11  ;;  %vm2100_vm4 = vcmp.gt.s32.totalorder %v2099_v20, 0  ;;  %v11897_v36 = vsel %vm15659_vm2, %v684_v57, %v567_v40 }
 0x19a   :  { %15977 = vst [vmem:[#allocation7_spill] sm:$0xff] %v11897_v36  ;;  %v1752_v53 = vor.u32 4788187, %v1751_v30  ;;  %v1655_v39 = vsub.s32 4, %v11775_v45  ;;  %v11900_v16 = vshrl.u32 %v1838_v26, 30  ;;  %v2101_v59 = vsel %vm2100_vm4, %v2099_v20, 0 }
 0x19b   :  { %v1762_v33 = vsel %vm11865_vm15, 0, %v1760_v34  ;;  %v8963_v46 = vadd.s32 4294967294, %v1637_v18  ;;  %v1949_v5 = vclz %v8974_v29  ;;  %v2103_v62 = vand.u32 31, %v2101_v59 }
 0x19c   :  { %9847 = vcosq.f32 %v1449_v3  ;;  %v11904_v10 = vand.u32 3, %v1450_v60  ;;  %v15626_v54 = vand.u32 2147483647, %v11854_v28  ;;  %v1988_v25 = vand.u32 2139095040, %v11897_v36 }
 0x19d   :  { %9849 = vsinq.f32 %v1449_v3  ;;  %v11908_v27 = vand.u32 3, %v1454_v41  ;;  %v1840_v32 = vshll.u32 %v11900_v16, 30  ;;  %v11911_v35 = vsub.s32 32, %v2103_v62 }
 0x19e   :  { %15978 = vst [vmem:[#allocation60_spill] sm:$0xff] %v11904_v10  ;;  %v1753_v44 = vand.u32 2147483647, %v1752_v53  ;;  %v1755_v22 = vcvt.s32.f32 %v1748_v61  ;;  %v1766_v58 = vadd.s32 3, %v1762_v33  ;;  %v1656_v14 = vsel %vm1571_vm3, %v1655_v39, %v11775_v45  ;;  %v11916_v60 = vpop.eup %9843 }
 0x19f   :  { %15979 = vst [vmem:[#allocation61_spill] sm:$0xff] %v11908_v27  ;;  %15980 = vst [vmem:[#allocation62_spill] sm:$0xff] %v11916_v60  ;;  %vm8964_vm11 = vcmp.lt.s32.totalorder %v8963_v46, 0  ;;  %v8975_v11 = vadd.s32 4294967294, %v1949_v5  ;;  %v2107_v30 = vshrl.u32 %v15893_v50, %v11911_v35  ;;  %v2110_v41 = vshrl.u32 %v15887_v9, %v11911_v35 }
 0x1a0   :  { %v15981_v40 = vand.u32 2147483647, %v11408_v2  ;;  %v2096_v29 = vand.u32 8388607, %v15626_v54  ;;  %v2106_v45 = vshll.u32 %v15889_v23, %v2103_v62  ;;  %v2109_v49 = vshll.u32 %v15893_v50, %v2103_v62 }
 0x1a1   :  { %v1989_v20 = vshrl.u32 %v1988_v25, 23  ;;  %v11932_v34 = vsub.s32 %v1837_v15, %v1840_v32  ;;  %v11934_v26 = vshrl.u32 %v2101_v59, 5  ;;  %v2112_v57 = vshll.u32 %v15887_v9, %v2103_v62 }
 0x1a2   :  { %vm11924_vm14 = vcmp.le.f32.partialorder %v15981_v40, 0.7853982  ;;  %v2113_v3 = vshrl.u32 %v15888_v51, %v11911_v35  ;;  %v11939_v61 = vpop.eup %9845  ;;  %v11941_v53 = vor.u32 %v2107_v30, %v2106_v45  ;;  %v11943_v39 = vor.u32 %v2110_v41, %v2109_v49 }
 0x1a3   :  { %15984 = vst [vmem:[#allocation63_spill] sm:$0xff] %v11939_v61  ;;  %v2115_v5 = vshll.u32 %v15888_v51, %v2103_v62  ;;  %v2116_v25 = vshrl.u32 %v15891_v48, %v11911_v35  ;;  %v1756_v15 = vmul.f32 %v1755_v22, %v1753_v44  ;;  %v2118_v59 = vshll.u32 %v15891_v48, %v2103_v62 }
 0x1a4   :  { %v2114_v32 = vor.u32 %v2113_v3, %v2112_v57  ;;  %v2119_v40 = vshrl.u32 %v15892_v12, %v11911_v35  ;;  %v11952_v54 = vsel %vm8964_vm11, 0, %v8963_v46  ;;  %vm8976_vm6 = vcmp.lt.s32.totalorder %v8975_v11, 0 }
 0x1a5   :  { %v2097_v30 = vor.u32 8388608, %v2096_v29  ;;  %v2117_v45 = vor.u32 %v2116_v25, %v2115_v5  ;;  %vm2121_vm8 = vcmp.lt.s32.totalorder %v11934_v26, 1  ;;  %vm2124_vm7 = vcmp.lt.s32.totalorder %v11934_v26, 4 }
 0x1a6   :  { %v2120_v41 = vor.u32 %v2119_v40, %v2118_v59  ;;  %v8977_v49 = vadd.s32 4294967169, %v1989_v20  ;;  %v11956_v27 = vpop.eup %9847  ;;  %v1843_v44 = vsub.s32 0, %v11932_v34  ;;  %vm2123_vm12 = vcmp.lt.s32.totalorder %v11934_v26, 3 }
 0x1a7   :  { %15985 = vst [vmem:[#allocation64_spill] sm:$0xff] %v11956_v27  ;;  %v2129_v46 = vsel %vm2121_vm8, %v11941_v53, %v11943_v39  ;;  %v2130_v62 = vsel %vm2124_vm7, %v2117_v45, 920167782  ;;  %v11966_v22 = vpop.eup %9849  ;;  %vm2122_vm10 = vcmp.lt.s32.totalorder %v11934_v26, 2  ;;  %v2133_v20 = vsel %vm2121_vm8, %v11943_v39, %v2114_v32 }
 0x1a8   :  { %15986 = vst [vmem:[#allocation65_spill] sm:$0xff] %v11966_v22  ;;  %v2131_v29 = vsel %vm2123_vm12, %v2114_v32, %v2130_v62  ;;  %v2134_v57 = vsel %vm2124_vm7, %v2120_v41, 1326507024  ;;  %v1645_v3 = vsub.s32 4294967266, %v11952_v54  ;;  %v11981_v59 = vshll.u32 %v2097_v30, 8 }
 0x1a9   :  { %v2132_v5 = vsel %vm2122_vm10, %v2129_v46, %v2131_v29  ;;  %v2135_v25 = vsel %vm2123_vm12, %v2117_v45, %v2134_v57  ;;  %v1757_v40 = vxor.u32 2147483648, %v1756_v15  ;;  %v11983_v60 = vand.u32 3, %v1762_v33  ;;  %v15989_v45 = vld [vmem:[#allocation8_spill] sm:$0xff] }
 0x1aa   :  { %v1658_v62 = vsel %vm11924_vm14, 0, %v1656_v14  ;;  %v11988_v10 = vsel %vm8976_vm6, 0, %v8975_v11  ;;  %v8970_v41 = vmin.u32 %v1843_v44, %v11932_v34  ;;  %v2136_v61 = vsel %vm2122_vm10, %v2133_v20, %v2135_v25 }
 0x1ab   :  { %15987 = vst [vmem:[#allocation66_spill] sm:$0xff] %v11983_v60  ;;  %v11994_v46 = vmul.u32.u64.low %v11981_v59, %v2132_v5  ;;  %v11995_v29 = vmul.u32.u64.high %v11981_v59, %v2132_v5, %v11994_v46  ;;  %v11998_v30 = vand.u32 3, %v1766_v58  ;;  %v1625_v33 = vadd.s32 %v11669_v1, %v11677_v47 }
 0x1ac   :  { %v141_v14 = vmul.f32 3.1415927, %v15989_v45  ;;  %v1995_v57 = vadd.s32 1, %v8977_v49  ;;  %v1641_v11 = vsub.s32 32, %v11952_v54  ;;  %v1646_v60 = vadd.s32 127, %v1645_v3  ;;  %v573_v3 = vpop.permute.xlu1 %572 }
 0x1ad   :  { %15988 = vst [vmem:[#allocation67_spill] sm:$0xff] %v11998_v30  ;;  %v12004_v44 = vadd.s32 3, %v1658_v62  ;;  %v1957_v20 = vsub.s32 4294967266, %v11988_v10  ;;  %v12008_v25 = vmul.u32.u64.low %v11981_v59, %v2136_v61  ;;  %v12009_v5 = vmul.u32.u64.high %v11981_v59, %v2136_v61, %v12008_v25 }
 0x1ae   :  { %vm1996_vm5 = vcmp.gt.s32.totalorder %v1995_v57, 0  ;;  %v12014_v1 = vsel %vm1675_vm13, %v1757_v40, %v1756_v15  ;;  %v12016_v47 = vand.u32 3, %v1658_v62  ;;  %v1845_v49 = vclz %v8970_v41 }
 0x1af   :  { %v1997_v45 = vsel %vm1996_vm5, %v1995_v57, 0  ;;  %v1642_v30 = vshll.u32 %v11822_v17, %v11952_v54  ;;  %v654_v27 = vsel %vm15802_vm0, %v141_v14, %v11752_v52  ;;  %v2126_v61 = vsel %vm2124_vm7, %v2114_v32, 2102212464 }
 0x1b0   :  { %15990 = vst [vmem:[#allocation8_spill] sm:$0xff] %v12016_v47  ;;  %v1999_v25 = vand.u32 31, %v1997_v45  ;;  %v1643_v58 = vshrl.u32 %v1625_v33, %v1641_v11  ;;  %v1647_v37 = vshll.u32 %v1646_v60, 23  ;;  %v687_v15 = vsel %vm671_vm1, %v654_v27, %v11808_v7 }
 0x1b1   :  { %v2105_v40 = vshrl.u32 %v15889_v23, %v11911_v35  ;;  %v1958_v62 = vadd.s32 127, %v1957_v20  ;;  %v15991_v41 = vand.u32 2147483647, %v11897_v36  ;;  %v12033_v52 = vsel %vm15659_vm2, %v687_v15, %v573_v3 }
 0x1b2   :  { %v12030_v17 = vsub.s32 32, %v1999_v25  ;;  %15992 = vst [vmem:[#allocation68_spill] sm:$0xff] %v12033_v52  ;;  %v8971_v54 = vadd.s32 4294967294, %v1845_v49  ;;  %v2127_v7 = vsel %vm2123_vm12, %v11943_v39, %v2126_v61  ;;  %v2147_v27 = vadd.s32 1, %v11995_v29 }
 0x1b3   :  { %v1992_v57 = vand.u32 8388607, %v15991_v41  ;;  %v2125_v60 = vsel %vm2121_vm8, %v2105_v40, %v11941_v53  ;;  %v2002_v35 = vshll.u32 %v15889_v23, %v1999_v25  ;;  %v2005_v33 = vshll.u32 %v15893_v50, %v1999_v25 }
 0x1b4   :  { %v2003_v32 = vshrl.u32 %v15893_v50, %v12030_v17  ;;  %v2006_v14 = vshrl.u32 %v15887_v9, %v12030_v17  ;;  %v2009_v11 = vshrl.u32 %v15888_v51, %v12030_v17  ;;  %v2011_v53 = vshll.u32 %v15888_v51, %v1999_v25 }
 0x1b5   :  { %v2012_v39 = vshrl.u32 %v15891_v48, %v12030_v17  ;;  %v2015_v20 = vshrl.u32 %v15892_v12, %v12030_v17  ;;  %v2128_v49 = vsel %vm2122_vm10, %v2125_v60, %v2127_v7  ;;  %vm2146_vm13 = vc.u32 %v12009_v5, %v11994_v46 }
 0x1b6   :  { %v12059_v3 = vshrl.u32 %v1997_v45, 5  ;;  %v2008_v61 = vshll.u32 %v15887_v9, %v1999_v25  ;;  %v12062_v15 = vor.u32 %v2003_v32, %v2002_v35  ;;  %v12064_v40 = vor.u32 %v2006_v14, %v2005_v33 }
 0x1b7   :  { %v2013_v41 = vor.u32 %v2012_v39, %v2011_v53  ;;  %v2014_v47 = vshll.u32 %v15891_v48, %v1999_v25  ;;  %v1644_v22 = vor.u32 %v1643_v58, %v1642_v30  ;;  %v1937_v0 = vadd.s32 %v11733_v43, %v11742_v38 }
 0x1b8   :  { %v1993_v26 = vor.u32 8388608, %v1992_v57  ;;  %v2300_v60 = vand.u32 2139095040, %v12033_v52  ;;  %v1648_v7 = vor.u32 4788187, %v1647_v37  ;;  %v2148_v45 = vsel %vm2146_vm13, %v2147_v27, %v11995_v29 }
 0x1b9   :  { %v2010_v6 = vor.u32 %v2009_v11, %v2008_v61  ;;  %v2016_v55 = vor.u32 %v2015_v20, %v2014_v47  ;;  %v1953_v35 = vsub.s32 32, %v11988_v10  ;;  %v2144_v32 = vmul.u32 %v11981_v59, %v2128_v49 }
 0x1ba   :  { %vm2017_vm9 = vcmp.lt.s32.totalorder %v12059_v3, 1  ;;  %vm2020_vm4 = vcmp.lt.s32.totalorder %v12059_v3, 4  ;;  %v1959_v30 = vshll.u32 %v1958_v62, 23  ;;  %vm8972_vm11 = vcmp.lt.s32.totalorder %v8971_v54, 0 }
 0x1bb   :  { %v2025_v43 = vsel %vm2017_vm9, %v12062_v15, %v12064_v40  ;;  %v2026_v37 = vsel %vm2020_vm4, %v2013_v41, 920167782  ;;  %v12081_v38 = vadd.s32 %v2148_v45, %v2144_v32  ;;  %vm2019_vm6 = vcmp.lt.s32.totalorder %v12059_v3, 3 }
 0x1bc   :  { %v12084_v29 = vshll.u32 %v1993_v26, 8  ;;  %v2301_v59 = vshrl.u32 %v2300_v60, 23  ;;  %vm2018_vm8 = vcmp.lt.s32.totalorder %v12059_v3, 2  ;;  %v2027_v58 = vsel %vm2019_vm6, %v2010_v6, %v2026_v37 }
 0x1bd   :  { %v2029_v47 = vsel %vm2017_vm9, %v12064_v40, %v2010_v6  ;;  %v2030_v25 = vsel %vm2020_vm4, %v2016_v55, 1326507024  ;;  %v1649_v62 = vand.u32 2147483647, %v1648_v7  ;;  %v1955_v57 = vshrl.u32 %v1937_v0, %v1953_v35 }
 0x1be   :  { %v2028_v27 = vsel %vm2018_vm8, %v2025_v43, %v2027_v58  ;;  %v2031_v33 = vsel %vm2019_vm6, %v2013_v41, %v2030_v25  ;;  %v1848_v14 = vsel %vm8972_vm11, 0, %v8971_v54  ;;  %v2150_v20 = vadd.s32 536870912, %v12081_v38 }
 0x1bf   :  { %v2032_v11 = vsel %vm2018_vm8, %v2029_v47, %v2031_v33  ;;  %v12101_v53 = vmul.u32.u64.low %v12084_v29, %v2028_v27  ;;  %v12102_v39 = vmul.u32.u64.high %v12084_v29, %v2028_v27, %v12101_v53  ;;  %v8989_v49 = vadd.s32 4294967169, %v2301_v59  ;;  %v571_v27 = vpop.permute.xlu0 %570 }
 0x1c0   :  { %v12107_v55 = vmul.u32.u64.low %v12084_v29, %v2032_v11  ;;  %v12108_v0 = vmul.u32.u64.high %v12084_v29, %v2032_v11, %v12107_v55  ;;  %v1651_v61 = vcvt.s32.f32 %v1644_v22  ;;  %v12111_v26 = vand.u32 3, %v12004_v44  ;;  %v15994_v22 = vld [vmem:[#allocation9_spill] sm:$0xff] }
 0x1c1   :  { %v1954_v54 = vshll.u32 %v11841_v24, %v11988_v10  ;;  %v1960_v41 = vor.u32 4788187, %v1959_v30  ;;  %v12119_v60 = vsel %vm11865_vm15, %v11362_v42, %v12014_v1  ;;  %v1849_v7 = vsub.s32 32, %v1848_v14 }
 0x1c2   :  { %15993 = vst [vmem:[#allocation69_spill] sm:$0xff] %v12111_v26  ;;  %v1853_v45 = vsub.s32 4294967266, %v1848_v14  ;;  %v2307_v35 = vadd.s32 1, %v8989_v49  ;;  %v12121_v32 = vmul.f32 %v1651_v61, %v1649_v62  ;;  %v140_v37 = vmul.f32 3.1415927, %v15994_v22 }
 0x1c3   :  { %v1956_v43 = vor.u32 %v1955_v57, %v1954_v54  ;;  %v2022_v44 = vsel %vm2020_vm4, %v2010_v6, 2102212464  ;;  %v1833_v24 = vadd.s32 %v11834_v13, %v11849_v21  ;;  %v12128_v10 = vshrl.u32 %v2150_v20, 30 }
 0x1c4   :  { %v2001_v56 = vshrl.u32 %v15889_v23, %v12030_v17  ;;  %vm2308_vm15 = vcmp.gt.s32.totalorder %v2307_v35, 0  ;;  %v1961_v1 = vand.u32 2147483647, %v1960_v41  ;;  %v1967_v30 = vsub.s32 4, %v11799_v19 }
 0x1c5   :  { %v15642_v59 = vand.u32 2147483647, %v12033_v52  ;;  %v2309_v58 = vsel %vm2308_vm15, %v2307_v35, 0  ;;  %v1851_v47 = vshrl.u32 %v1833_v24, %v1849_v7  ;;  %v1854_v25 = vadd.s32 127, %v1853_v45 }
 0x1c6   :  { %v2021_v6 = vsel %vm2017_vm9, %v2001_v56, %v12062_v15  ;;  %v2023_v13 = vsel %vm2019_vm6, %v12064_v40, %v2022_v44  ;;  %v1653_v21 = vxor.u32 2147483648, %v12121_v32  ;;  %vm1883_vm7 = vcmp.lt.s32.totalorder %v11553_v63, 0 }
 0x1c7   :  { %v1963_v17 = vcvt.s32.f32 %v1956_v43  ;;  %v2043_v62 = vadd.s32 1, %v12102_v39  ;;  %v2311_v57 = vand.u32 31, %v2309_v58  ;;  %v1850_v33 = vshll.u32 %v11932_v34, %v1848_v14 }
 0x1c8   :  { %v653_v11 = vsel %vm15802_vm0, %v140_v37, %v11793_v4  ;;  %v2152_v15 = vshll.u32 %v12128_v10, 30  ;;  %vm2042_vm12 = vc.u32 %v12108_v0, %v12101_v53  ;;  %v2024_v55 = vsel %vm2018_vm8, %v2021_v6, %v2023_v13 }
 0x1c9   :  { %v12149_v40 = vmul.f32 %v1963_v17, %v1961_v1  ;;  %v686_v20 = vsel %vm671_vm1, %v653_v11, %v11851_v8  ;;  %v2312_v49 = vsub.s32 32, %v2311_v57  ;;  %v12155_v61 = vor.u32 %v1851_v47, %v1850_v33 }
 0x1ca   :  { %v1855_v34 = vshll.u32 %v1854_v25, 23  ;;  %v2304_v4 = vand.u32 8388607, %v15642_v59  ;;  %v12160_v14 = vsel %vm15659_vm2, %v686_v20, %v571_v27  ;;  %v2044_v54 = vsel %vm2042_vm12, %v2043_v62, %v12102_v39 }
 0x1cb   :  { %15995 = vst [vmem:[#allocation9_spill] sm:$0xff] %v12160_v14  ;;  %v2315_v41 = vshrl.u32 %v15893_v50, %v2312_v49  ;;  %v2318_v7 = vshrl.u32 %v15887_v9, %v2312_v49  ;;  %v2321_v8 = vshrl.u32 %v15888_v51, %v2312_v49  ;;  %v12167_v3 = vsub.s32 %v12081_v38, %v2152_v15 }
 0x1cc   :  { %v2040_v45 = vmul.u32 %v12084_v29, %v2024_v55  ;;  %v2314_v35 = vshll.u32 %v15889_v23, %v2311_v57  ;;  %v2317_v43 = vshll.u32 %v15893_v50, %v2311_v57  ;;  %v2320_v22 = vshll.u32 %v15887_v9, %v2311_v57 }
 0x1cd   :  { %v2323_v37 = vshll.u32 %v15888_v51, %v2311_v57  ;;  %v2324_v39 = vshrl.u32 %v15891_v48, %v2312_v49  ;;  %v2196_v44 = vand.u32 2139095040, %v12160_v14  ;;  %v2310_v56 = vshrl.u32 %v2309_v58, 5 }
 0x1ce   :  { %v12176_v24 = vadd.s32 %v2044_v54, %v2040_v45  ;;  %v2316_v1 = vor.u32 %v2315_v41, %v2314_v35  ;;  %v2319_v38 = vor.u32 %v2318_v7, %v2317_v43  ;;  %v15996_v47 = vand.u32 2147483647, %v11553_v63 }
 0x1cf   :  { %v2322_v25 = vor.u32 %v2321_v8, %v2320_v22  ;;  %v2325_v6 = vor.u32 %v2324_v39, %v2323_v37  ;;  %v2326_v13 = vshll.u32 %v15891_v48, %v2311_v57  ;;  %v2327_v17 = vshrl.u32 %v15892_v12, %v2312_v49 }
 0x1d0   :  { %vm12180_vm10 = vcmp.le.f32.partialorder %v15996_v47, 0.7853982  ;;  %v1965_v62 = vxor.u32 2147483648, %v12149_v40  ;;  %v1968_v58 = vsel %vm1883_vm7, %v1967_v30, %v11799_v19  ;;  %vm1779_vm5 = vcmp.lt.s32.totalorder %v11699_v31, 0 }
 0x1d1   :  { %v1856_v27 = vor.u32 4788187, %v1855_v34  ;;  %v1863_v33 = vsub.s32 4, %v11900_v16  ;;  %v1859_v11 = vcvt.s32.f32 %v12155_v61  ;;  %v2155_v15 = vsub.s32 0, %v12167_v3 }
 0x1d2   :  { %v2305_v20 = vor.u32 8388608, %v2304_v4  ;;  %v2328_v55 = vor.u32 %v2327_v17, %v2326_v13  ;;  %v2046_v57 = vadd.s32 536870912, %v12176_v24  ;;  %vm2329_vm13 = vcmp.lt.s32.totalorder %v2310_v56, 1 }
 0x1d3   :  { %vm2332_vm9 = vcmp.lt.s32.totalorder %v2310_v56, 4  ;;  %v2197_v54 = vshrl.u32 %v2196_v44, 23  ;;  %v15999_v41 = vand.u32 2147483647, %v11699_v31  ;;  %vm2331_vm11 = vcmp.lt.s32.totalorder %v2310_v56, 3 }
 0x1d4   :  { %v2334_v30 = vsel %vm2332_vm9, %v2322_v25, 2102212464  ;;  %v2337_v34 = vsel %vm2329_vm13, %v2316_v1, %v2319_v38  ;;  %v2338_v61 = vsel %vm2332_vm9, %v2325_v6, 920167782  ;;  %v2313_v7 = vshrl.u32 %v15889_v23, %v2312_v49 }
 0x1d5   :  { %vm12197_vm4 = vcmp.le.f32.partialorder %v15999_v41, 0.7853982  ;;  %vm2330_vm6 = vcmp.lt.s32.totalorder %v2310_v56, 2  ;;  %v2339_v4 = vsel %vm2331_vm11, %v2322_v25, %v2338_v61  ;;  %v2341_v8 = vsel %vm2329_vm13, %v2319_v38, %v2322_v25 }
 0x1d6   :  { %v1857_v45 = vand.u32 2147483647, %v1856_v27  ;;  %v2340_v35 = vsel %vm2330_vm6, %v2337_v34, %v2339_v4  ;;  %v2342_v43 = vsel %vm2332_vm9, %v2328_v55, 1326507024  ;;  %v2345_v22 = vshll.u32 %v2305_v20, 8 }
 0x1d7   :  { %v12205_v37 = vshrl.u32 %v2046_v57, 30  ;;  %v2333_v39 = vsel %vm2329_vm13, %v2313_v7, %v2316_v1  ;;  %v2335_v44 = vsel %vm2331_vm11, %v2319_v38, %v2334_v30  ;;  %v2343_v47 = vsel %vm2331_vm11, %v2325_v6, %v2342_v43 }
 0x1d8   :  { %v8982_v13 = vmin.u32 %v2155_v15, %v12167_v3  ;;  %v2344_v17 = vsel %vm2330_vm6, %v2341_v8, %v2343_v47  ;;  %v12210_v49 = vmul.u32.u64.low %v2345_v22, %v2340_v35  ;;  %v12211_v41 = vmul.u32.u64.high %v2345_v22, %v2340_v35, %v12210_v49 }
 0x1d9   :  { %v1970_v25 = vsel %vm12180_vm10, 0, %v1968_v58  ;;  %v12216_v27 = vmul.u32.u64.low %v2345_v22, %v2344_v17  ;;  %v12217_v55 = vmul.u32.u64.high %v2345_v22, %v2344_v17, %v12216_v27  ;;  %v8985_v20 = vadd.s32 4294967169, %v2197_v54 }
 0x1da   :  { %v1654_v1 = vsel %vm1571_vm3, %v1653_v21, %v12121_v32  ;;  %v1860_v38 = vmul.f32 %v1859_v11, %v1857_v45  ;;  %v1864_v6 = vsel %vm1779_vm5, %v1863_v33, %v11900_v16  ;;  %v2336_v15 = vsel %vm2330_vm6, %v2333_v39, %v2335_v44 }
 0x1db   :  { %9851 = vcosq.f32 %v12119_v60  ;;  %v1966_v58 = vsel %vm1883_vm7, %v1965_v62, %v12149_v40  ;;  %v2048_v57 = vshll.u32 %v12205_v37, 30  ;;  %v2203_v54 = vadd.s32 1, %v8985_v20 }
 0x1dc   :  { %9853 = vsinq.f32 %v12119_v60  ;;  %v12234_v30 = vadd.s32 3, %v1970_v25  ;;  %v2157_v32 = vclz %v8982_v13  ;;  %v2355_v21 = vadd.s32 1, %v12211_v41 }
 0x1dd   :  { %v1657_v16 = vsel %vm11924_vm14, %v11408_v2, %v1654_v1  ;;  %v12242_v56 = vsel %vm12197_vm4, 0, %v1864_v6  ;;  %v2352_v33 = vmul.u32 %v2345_v22, %v2336_v15  ;;  %vm2354_vm3 = vc.u32 %v12217_v55, %v12210_v49 }
 0x1de   :  { %v1969_v60 = vsel %vm12180_vm10, %v11553_v63, %v1966_v58  ;;  %v1861_v40 = vxor.u32 2147483648, %v1860_v38  ;;  %v2356_v62 = vsel %vm2354_vm3, %v2355_v21, %v12211_v41  ;;  %vm2204_vm8 = vcmp.gt.s32.totalorder %v2203_v54, 0  ;;  %v16021_v63 = vld [vmem:[#allocation18_spill] sm:$0xff] }
 0x1df   :  { %v2175_v11 = vsub.s32 4, %v12128_v10  ;;  %v12252_v18 = vsub.s32 %v12176_v24, %v2048_v57  ;;  %v2357_v34 = vadd.s32 %v2356_v62, %v2352_v33  ;;  %v2205_v61 = vsel %vm2204_vm8, %v2203_v54, 0 }
 0x1e0   :  { %9855 = vcosq.f32 %v1657_v16  ;;  %v12254_v7 = vand.u32 3, %v1970_v25  ;;  %v8983_v4 = vadd.s32 4294967294, %v2157_v32  ;;  %v2207_v8 = vand.u32 31, %v2205_v61 }
 0x1e1   :  { %9857 = vsinq.f32 %v1657_v16  ;;  %vm15656_vm14 = vcmp.lt.s32.totalorder %v11854_v28, 0  ;;  %v2358_v29 = vadd.s32 536870912, %v2357_v34  ;;  %v15641_v45 = vand.u32 2147483647, %v12160_v14 }
 0x1e2   :  { %16002 = vst [vmem:[#allocation70_spill] sm:$0xff] %v12254_v7  ;;  %9859 = vcosq.f32 %v1969_v60  ;;  %v12259_v35 = vadd.s32 3, %v12242_v56  ;;  %v16003_v24 = vand.u32 2147483647, %v11854_v28  ;;  %v2208_v22 = vsub.s32 32, %v2207_v8 }
 0x1e3   :  { %v1862_v39 = vsel %vm1779_vm5, %v1861_v40, %v1860_v38  ;;  %v2176_v44 = vsel %vm15656_vm14, %v2175_v11, %v12128_v10  ;;  %v2051_v47 = vsub.s32 0, %v12252_v18  ;;  %v12273_v13 = vshrl.u32 %v2358_v29, 30 }
 0x1e4   :  { %vm12263_vm15 = vcmp.le.f32.partialorder %v16003_v24, 0.7853982  ;;  %vm8984_vm7 = vcmp.lt.s32.totalorder %v8983_v4, 0  ;;  %v2211_v17 = vshrl.u32 %v15893_v50, %v2208_v22  ;;  %v2214_v41 = vshrl.u32 %v15887_v9, %v2208_v22 }
 0x1e5   :  { %v2217_v25 = vshrl.u32 %v15888_v51, %v2208_v22  ;;  %v12278_v27 = vpop.eup %9851  ;;  %v2200_v20 = vand.u32 8388607, %v15641_v45  ;;  %v2210_v1 = vshll.u32 %v15889_v23, %v2207_v8  ;;  %v2213_v10 = vshll.u32 %v15893_v50, %v2207_v8 }
 0x1e6   :  { %16006 = vst [vmem:[#allocation71_spill] sm:$0xff] %v12278_v27  ;;  %v2220_v38 = vshrl.u32 %v15891_v48, %v2208_v22  ;;  %v12285_v6 = vpop.eup %9853  ;;  %v2360_v15 = vshll.u32 %v12273_v13, 30  ;;  %v2216_v58 = vshll.u32 %v15887_v9, %v2207_v8  ;;  %v2219_v57 = vshll.u32 %v15888_v51, %v2207_v8 }
 0x1e7   :  { %16007 = vst [vmem:[#allocation72_spill] sm:$0xff] %v12285_v6  ;;  %v2223_v54 = vshrl.u32 %v15892_v12, %v2208_v22  ;;  %v12291_v32 = vsel %vm8984_vm7, 0, %v8983_v4  ;;  %v8978_v21 = vmin.u32 %v2051_v47, %v12252_v18  ;;  %v2206_v16 = vshrl.u32 %v2205_v61, 5 }
 0x1e8   :  { %v2222_v33 = vshll.u32 %v15891_v48, %v2207_v8  ;;  %v2212_v40 = vor.u32 %v2211_v17, %v2210_v1  ;;  %v2215_v62 = vor.u32 %v2214_v41, %v2213_v10  ;;  %v2218_v11 = vor.u32 %v2217_v25, %v2216_v58 }
 0x1e9   :  { %v2221_v29 = vor.u32 %v2220_v38, %v2219_v57  ;;  %9861 = vsinq.f32 %v1969_v60  ;;  %v12298_v24 = vsel %vm12197_vm4, %v11699_v31, %v1862_v39  ;;  %v12302_v45 = vadd.s32 %v11994_v46, %v12009_v5 }
 0x1ea   :  { %v2201_v4 = vor.u32 8388608, %v2200_v20  ;;  %v12304_v59 = vpop.eup %9855  ;;  %v2165_v61 = vsub.s32 4294967266, %v12291_v32  ;;  %v12309_v8 = vsel %vm12263_vm15, 0, %v2176_v44  ;;  %v12311_v47 = vsub.s32 %v2357_v34, %v2360_v15 }
 0x1eb   :  { %16008 = vst [vmem:[#allocation73_spill] sm:$0xff] %v12304_v59  ;;  %v2224_v60 = vor.u32 %v2223_v54, %v2222_v33  ;;  %v12313_v17 = vpop.eup %9857  ;;  %v2053_v19 = vclz %v8978_v21  ;;  %v2209_v39 = vshrl.u32 %v15889_v23, %v2208_v22  ;;  %vm2225_vm12 = vcmp.lt.s32.totalorder %v2206_v16, 1 }
 0x1ec   :  { %16009 = vst [vmem:[#allocation74_spill] sm:$0xff] %v12313_v17  ;;  %vm2228_vm10 = vcmp.lt.s32.totalorder %v2206_v16, 4  ;;  %v12316_v46 = vpop.eup %9859  ;;  %vm2227_vm5 = vcmp.lt.s32.totalorder %v2206_v16, 3  ;;  %v2233_v41 = vsel %vm2225_vm12, %v2212_v40, %v2215_v62  ;;  %vm2226_vm13 = vcmp.lt.s32.totalorder %v2206_v16, 2  ;;  %v16018_v16 = vld [vmem:[#allocation32_spill] sm:$0xff] }
 0x1ed   :  { %16010 = vst [vmem:[#allocation75_spill] sm:$0xff] %v12316_v46  ;;  %v2230_v5 = vsel %vm2228_vm10, %v2218_v11, 2102212464  ;;  %v2234_v25 = vsel %vm2228_vm10, %v2221_v29, 920167782  ;;  %v2237_v44 = vsel %vm2225_vm12, %v2215_v62, %v2218_v11  ;;  %v2241_v1 = vshll.u32 %v2201_v4, 8 }
 0x1ee   :  { %v2235_v20 = vsel %vm2227_vm5, %v2218_v11, %v2234_v25  ;;  %v2363_v34 = vsub.s32 0, %v12311_v47  ;;  %v2229_v10 = vsel %vm2225_vm12, %v2209_v39, %v2212_v40  ;;  %v2238_v15 = vsel %vm2228_vm10, %v2224_v60, 1326507024  ;;  %v16011_v11 = vld [vmem:[#allocation10_spill] sm:$0xff]  ;;  %v12334_v60 = vpop.permute.xlu1 %320 }
 0x1ef   :  { %v2236_v38 = vsel %vm2226_vm13, %v2233_v41, %v2235_v20  ;;  %v2231_v58 = vsel %vm2227_vm5, %v2215_v62, %v2230_v5  ;;  %v2239_v22 = vsel %vm2227_vm5, %v2221_v29, %v2238_v15  ;;  %v2161_v21 = vsub.s32 32, %v12291_v32  ;;  %v16012_v62 = vld [vmem:[#allocation19_spill] sm:$0xff]  ;;  %v12338_v5 = vpop.permute.xlu0 %318  ;;  %v16013_v41 = vld [vmem:[#allocation45_spill] sm:$0xff]  ;;  %v16014_v20 = vld [vmem:[#allocation36_spill] sm:$0xff] }
 0x1f0   :  { %v12320_v57 = vmul.u32.u64.low %v2241_v1, %v2236_v38  ;;  %v12321_v54 = vmul.u32.u64.high %v2241_v1, %v2236_v38, %v12320_v57  ;;  %v12325_v33 = vadd.s32 127, %v2165_v61  ;;  %v2240_v25 = vsel %vm2226_vm13, %v2237_v44, %v2239_v22  ;;  %v16015_v44 = vld [vmem:[#allocation35_spill] sm:$0xff] }
 0x1f1   :  { %v12329_v4 = vmul.f32 3.1415927, %v16011_v11  ;;  %v8979_v26 = vadd.s32 4294967294, %v2053_v19  ;;  %v12331_v40 = vmul.u32.u64.low %v2241_v1, %v2240_v25  ;;  %v12332_v39 = vmul.u32.u64.high %v2241_v1, %v2240_v25, %v12331_v40  ;;  %v16017_v11 = vld [vmem:[#allocation28_spill] sm:$0xff] }
 0x1f2   :  { %vm829_vm9 = vweird.f32 %v16012_v62  ;;  %v2232_v29 = vsel %vm2226_vm13, %v2229_v10, %v2231_v58  ;;  %v834_v61 = vxor.u32 2147483648, %v16013_v41  ;;  %v938_v38 = vxor.u32 2147483648, %v16014_v20  ;;  %v16019_v10 = vld [vmem:[#allocation38_spill] sm:$0xff]  ;;  %v12362_v42 = vpop.permute.xlu1 %324 }
 0x1f3   :  { %v941_v15 = vxor.u32 2147483648, %v16015_v44  ;;  %v12343_v22 = vpop.eup %9861  ;;  %v8990_v19 = vmin.u32 %v2363_v34, %v12311_v47  ;;  %v2251_v25 = vadd.s32 1, %v12321_v54  ;;  %vm937_vm4 = vcmp.eq.s32.totalorder %v16017_v11, 0  ;;  %v16020_v34 = vld [vmem:[#allocation33_spill] sm:$0xff] }
 0x1f4   :  { %16016 = vst [vmem:[#allocation10_spill] sm:$0xff] %v12343_v22  ;;  %vm940_vm11 = vcmp.eq.s32.totalorder %v16017_v11, 2  ;;  %vm833_vm6 = vcmp.eq.s32.totalorder %v16018_v16, 0  ;;  %v837_v58 = vxor.u32 2147483648, %v16019_v10  ;;  %v939_v40 = vsel %vm937_vm4, %v16015_v44, %v938_v38 }
 0x1f5   :  { %v942_v7 = vsel %vm940_vm11, %v941_v15, %v16014_v20  ;;  %v2248_v46 = vmul.u32 %v2241_v1, %v2232_v29  ;;  %vm2250_vm3 = vc.u32 %v12332_v39, %v12320_v57  ;;  %vm936_vm8 = vcmp.lt.s32.totalorder %v16017_v11, 2  ;;  %v12369_v29 = vpop.permute.xlu0 %322 }
 0x1f6   :  { %vm4160_vm7 = vcmp.eq.s32.totalorder %v16020_v34, 0  ;;  %v2252_v22 = vsel %vm2250_vm3, %v2251_v25, %v12321_v54  ;;  %vm933_vm12 = vweird.f32 %v16021_v63  ;;  %v943_v31 = vsel %vm936_vm8, %v939_v40, %v942_v7  ;;  %v16023_v54 = vld [vmem:[#allocation29_spill] sm:$0xff] }
 0x1f7   :  { %v4162_v27 = vsel %vm4160_vm7, %v16019_v10, %v834_v61  ;;  %v2365_v6 = vclz %v8990_v19  ;;  %v12360_v59 = vadd.s32 %v2252_v22, %v2248_v46  ;;  %v12366_v1 = vsel %vm933_vm12, nan, %v943_v31 }
 0x1f8   :  { %16022 = vst [vmem:[#allocation19_spill] sm:$0xff] %v12366_v1  ;;  %vm4163_vm10 = vcmp.eq.s32.totalorder %v16020_v34, 2  ;;  %vm836_vm5 = vcmp.eq.s32.totalorder %v16018_v16, 2  ;;  %vm4159_vm13 = vcmp.lt.s32.totalorder %v16020_v34, 2  ;;  %vm4262_vm4 = vcmp.lt.s32.totalorder %v16023_v54, 2 }
 0x1f9   :  { %v4165_v7 = vsel %vm4163_vm10, %v837_v58, %v16013_v41  ;;  %v2254_v46 = vadd.s32 536870912, %v12360_v59  ;;  %vm4263_vm11 = vcmp.eq.s32.totalorder %v16023_v54, 0  ;;  %vm4266_vm3 = vcmp.eq.s32.totalorder %v16023_v54, 2 }
 0x1fa   :  { %v4166_v22 = vsel %vm4159_vm13, %v4162_v27, %v4165_v7  ;;  %v4265_v19 = vsel %vm4263_vm11, %v16015_v44, %v938_v38  ;;  %v4268_v25 = vsel %vm4266_vm3, %v941_v15, %v16014_v20  ;;  %v835_v11 = vsel %vm833_vm6, %v16019_v10, %v834_v61  ;;  %v12395_v15 = vpop.permute.xlu1 %448  ;;  %v16029_v10 = vld [vmem:[#allocation51_spill] sm:$0xff] }
 0x1fb   :  { %v4167_v31 = vsel %vm829_vm9, nan, %v4166_v22  ;;  %vm8980_vm8 = vcmp.lt.s32.totalorder %v8979_v26, 0  ;;  %vm832_vm7 = vcmp.lt.s32.totalorder %v16018_v16, 2  ;;  %v4269_v40 = vsel %vm4262_vm4, %v4265_v19, %v4268_v25  ;;  %v16030_v22 = vld [vmem:[#allocation25_spill] sm:$0xff]  ;;  %v16032_v25 = vld [vmem:[#allocation47_spill] sm:$0xff] }
 0x1fc   :  { %v838_v27 = vsel %vm836_vm5, %v837_v58, %v16013_v41  ;;  %v2163_v34 = vshrl.u32 %v12302_v45, %v2161_v21  ;;  %v2167_v7 = vshll.u32 %v12325_v33, 23  ;;  %v4270_v54 = vsel %vm933_vm12, nan, %v4269_v40  ;;  %v12407_v21 = vpop.permute.xlu0 %446  ;;  %v16028_v33 = vld [vmem:[#allocation11_spill] sm:$0xff]  ;;  %v16033_v40 = vld [vmem:[#allocation44_spill] sm:$0xff] }
 0x1fd   :  { %v839_v38 = vsel %vm832_vm7, %v835_v11, %v838_v27  ;;  %v12392_v20 = vand.u32 3, %v12234_v30  ;;  %9863 = vcosq.f32 %v12298_v24  ;;  %v8991_v61 = vadd.s32 4294967294, %v2365_v6 }
 0x1fe   :  { %v9720_v44 = vpack.i.bf16 %v4270_v54, %v4167_v31  ;;  %v2162_v41 = vshll.u32 %v12167_v3, %v12291_v32  ;;  %v12399_v16 = vsel %vm8980_vm8, 0, %v8979_v26  ;;  %v12401_v45 = vshrl.u32 %v2254_v46, 30  ;;  %v16031_v31 = vld [vmem:[#allocation49_spill] sm:$0xff] }
 0x1ff   :  { %16024 = vst [vmem:[#allocation45_spill] sm:$0xff] %v12392_v20  ;;  %v12405_v63 = vsel %vm829_vm9, nan, %v839_v38  ;;  %9865 = vsinq.f32 %v12298_v24  ;;  %v12411_v30 = vand.u32 3, %v12259_v35  ;;  %v12414_v6 = vand.u32 3, %v12242_v56  ;;  %v16037_v38 = vld [vmem:[#allocation3_spill] sm:$0xff] }
 0x200   :  { %16025 = vst [vmem:[#allocation36_spill] sm:$0xff] %v12405_v63  ;;  %v12417_v3 = vadd.s32 3, %v12309_v8  ;;  %9721 = vrot.lane.b32.xlu0 %v9720_v44, %s10084_s0  ;;  %v12420_v26 = vor.u32 %v2163_v34, %v2162_v41  ;;  %v12422_v32 = vor.u32 4788187, %v2167_v7  ;;  %v656_v24 = vsel %vm15802_vm0, %v12329_v4, %v12334_v60  ;;  %v16034_v4 = vld [vmem:[#allocation37_spill] sm:$0xff]  ;;  %v16035_v60 = vld [vmem:[#allocation46_spill] sm:$0xff]  ;;  %v12439_v34 = vpop.permute.xlu1 %452  ;;  %v12445_v44 = vpop.permute.xlu0 %450 }
 0x201   :  { %16026 = vst [vmem:[#allocation35_spill] sm:$0xff] %v12411_v30  ;;  %16027 = vst [vmem:[#allocation28_spill] sm:$0xff] %v12414_v6  ;;  %v142_v35 = vmul.f32 3.1415927, %v16028_v33  ;;  %v2061_v62 = vsub.s32 4294967266, %v12399_v16  ;;  %vm8992_vm9 = vcmp.lt.s32.totalorder %v8991_v61, 0  ;;  %vm1037_vm6 = vweird.f32 %v16030_v22 }
 0x202   :  { %v1042_v58 = vxor.u32 2147483648, %v16029_v10  ;;  %v2256_v46 = vshll.u32 %v12401_v45, 30  ;;  %v1045_v19 = vxor.u32 2147483648, %v16031_v31  ;;  %v1146_v11 = vxor.u32 2147483648, %v16032_v25  ;;  %v16036_v7 = vld [vmem:[#allocation24_spill] sm:$0xff]  ;;  %v16038_v30 = vld [vmem:[#allocation34_spill] sm:$0xff] }
 0x203   :  { %vm1040_vm12 = vcmp.lt.s32.totalorder %v16033_v40, 2  ;;  %vm1041_vm10 = vcmp.eq.s32.totalorder %v16033_v40, 0  ;;  %vm1145_vm5 = vcmp.eq.s32.totalorder %v16034_v4, 0  ;;  %v1149_v27 = vxor.u32 2147483648, %v16035_v60 }
 0x204   :  { %vm1141_vm13 = vweird.f32 %v16036_v7  ;;  %v1147_v54 = vsel %vm1145_vm5, %v16035_v60, %v1146_v11  ;;  %vm1148_vm4 = vcmp.eq.s32.totalorder %v16034_v4, 2  ;;  %vm4366_vm11 = vcmp.eq.s32.totalorder %v16037_v38, 0 }
 0x205   :  { %vm1144_vm3 = vcmp.lt.s32.totalorder %v16034_v4, 2  ;;  %v1150_v41 = vsel %vm1148_vm4, %v1149_v27, %v16032_v25  ;;  %v4368_v33 = vsel %vm4366_vm11, %v16031_v31, %v1042_v58  ;;  %vm4369_vm8 = vcmp.eq.s32.totalorder %v16037_v38, 2 }
 0x206   :  { %vm1987_vm7 = vcmp.lt.s32.totalorder %v11897_v36, 0  ;;  %v1151_v56 = vsel %vm1144_vm3, %v1147_v54, %v1150_v41  ;;  %vm4365_vm14 = vcmp.lt.s32.totalorder %v16037_v38, 2  ;;  %v4371_v20 = vsel %vm4369_vm8, %v1045_v19, %v16029_v10 }
 0x207   :  { %vm4469_vm5 = vcmp.eq.s32.totalorder %v16038_v30, 0  ;;  %v12455_v63 = vpop.eup %9863  ;;  %vm1044_vm2 = vcmp.eq.s32.totalorder %v16033_v40, 2  ;;  %v12460_v4 = vsel %vm1141_vm13, nan, %v1151_v56  ;;  %v4372_v1 = vsel %vm4365_vm14, %v4368_v33, %v4371_v20 }
 0x208   :  { %16039 = vst [vmem:[#allocation32_spill] sm:$0xff] %v12455_v63  ;;  %16040 = vst [vmem:[#allocation38_spill] sm:$0xff] %v12460_v4  ;;  %v4471_v6 = vsel %vm4469_vm5, %v16035_v60, %v1146_v11  ;;  %v12464_v17 = vsub.s32 %v12360_v59, %v2256_v46  ;;  %vm4472_vm4 = vcmp.eq.s32.totalorder %v16038_v30, 2  ;;  %v1043_v54 = vsel %vm1041_vm10, %v16031_v31, %v1042_v58  ;;  %v577_v46 = vpop.permute.xlu1 %576  ;;  %v575_v31 = vpop.permute.xlu0 %574 }
 0x209   :  { %v1046_v38 = vsel %vm1044_vm2, %v1045_v19, %v16029_v10  ;;  %v12471_v41 = vpop.eup %9865  ;;  %v4373_v56 = vsel %vm1037_vm6, nan, %v4372_v1  ;;  %vm4468_vm14 = vcmp.lt.s32.totalorder %v16038_v30, 2  ;;  %v4474_v20 = vsel %vm4472_vm4, %v1149_v27, %v16032_v25 }
 0x20a   :  { %16041 = vst [vmem:[#allocation33_spill] sm:$0xff] %v12471_v41  ;;  %v1047_v59 = vsel %vm1040_vm12, %v1043_v54, %v1046_v38  ;;  %v2169_v11 = vand.u32 2147483647, %v12422_v32  ;;  %v16042_v60 = vand.u32 2147483647, %v11897_v36  ;;  %v12487_v10 = vsel %vm8992_vm9, 0, %v8991_v61 }
 0x20b   :  { %v4475_v1 = vsel %vm4468_vm14, %v4471_v6, %v4474_v20  ;;  %v12491_v30 = vsel %vm1037_vm6, nan, %v1047_v59  ;;  %v2057_v19 = vsub.s32 32, %v12399_v16  ;;  %v655_v32 = vsel %vm15802_vm0, %v142_v35, %v12338_v5 }
 0x20c   :  { %vm12482_vm10 = vcmp.le.f32.partialorder %v16042_v60, 0.7853982  ;;  %16045 = vst [vmem:[#allocation18_spill] sm:$0xff] %v12491_v30  ;;  %v689_v25 = vsel %vm671_vm1, %v656_v24, %v12395_v15  ;;  %v4476_v40 = vsel %vm1141_vm13, nan, %v4475_v1  ;;  %v2062_v27 = vadd.s32 127, %v2061_v62 }
 0x20d   :  { %v9725_v61 = vpack.i.bf16 %v4476_v40, %v4373_v56  ;;  %v688_v6 = vsel %vm671_vm1, %v655_v32, %v12407_v21  ;;  %vm16046_vm2 = vcmask 72704   ;;  %v2171_v33 = vcvt.s32.f32 %v12420_v26  ;;  %v16053_v56 = vld [vmem:[#allocation12_spill] sm:$0xff] }
 0x20e   :  { %v12503_v22 = vsel %vm16046_vm2, %v689_v25, %v577_v46  ;;  %v2373_v54 = vsub.s32 4294967266, %v12487_v10  ;;  %v2259_v5 = vsub.s32 0, %v12464_v17  ;;  %vm16048_vm9 = vmmov %vm16046_vm2  ;;  %v12512_v15 = vand.u32 3, %v12309_v8 }
 0x20f   :  { %16047 = vst [vmem:[#allocation29_spill] sm:$0xff] %v12503_v22  ;;  %v12509_v35 = vsel %vm16048_vm9, %v688_v6, %v575_v31  ;;  %v2041_v24 = vadd.s32 %v12101_v53, %v12108_v0  ;;  %9726 = vrot.lane.b32.xlu1 %v9725_v61, %s10084_s0  ;;  %v15663_v21 = vand.u32 2147483647, %v12503_v22  ;;  %v2508_v62 = vand.u32 2139095040, %v12503_v22  ;;  %vm16055_vm13 = vmmov %vm16046_vm2 }
 0x210   :  { %16049 = vst [vmem:[#allocation11_spill] sm:$0xff] %v12509_v35  ;;  %16050 = vst [vmem:[#allocation51_spill] sm:$0xff] %v12512_v15  ;;  %v2172_v26 = vmul.f32 %v2171_v33, %v2169_v11  ;;  %v12520_v7 = vand.u32 3, %v12417_v3  ;;  %v16052_v38 = vsub.s32 4, %v12205_v37  ;;  %v145_v20 = vmul.f32 3.1415927, %v16053_v56 }
 0x211   :  { %v2059_v59 = vshrl.u32 %v2041_v24, %v2057_v19  ;;  %v2063_v53 = vshll.u32 %v2062_v27, 23  ;;  %v2509_v0 = vshrl.u32 %v2508_v62, 23  ;;  %v2404_v46 = vand.u32 2139095040, %v12509_v35 }
 0x212   :  { %16051 = vst [vmem:[#allocation25_spill] sm:$0xff] %v12520_v7  ;;  %v2072_v8 = vsel %vm1987_vm7, %v16052_v38, %v12205_v37  ;;  %v2369_v60 = vsub.s32 32, %v12487_v10  ;;  %v2374_v1 = vadd.s32 127, %v2373_v54  ;;  %v8986_v11 = vmin.u32 %v2259_v5, %v12464_v17  ;;  %v581_v54 = vpop.permute.xlu1 %580 }
 0x213   :  { %v15662_v3 = vand.u32 2147483647, %v12509_v35  ;;  %v2058_v31 = vshll.u32 %v12252_v18, %v12399_v16  ;;  %v8997_v32 = vadd.s32 4294967169, %v2509_v0  ;;  %v2512_v37 = vand.u32 8388607, %v15663_v21 }
 0x214   :  { %v2405_v25 = vshrl.u32 %v2404_v46, 23  ;;  %v2173_v19 = vxor.u32 2147483648, %v2172_v26  ;;  %v12538_v40 = vsel %vm12482_vm10, 0, %v2072_v8  ;;  %v2353_v27 = vadd.s32 %v12210_v49, %v12217_v55 }
 0x215   :  { %v658_v61 = vsel %vm15802_vm0, %v145_v20, %v12362_v42  ;;  %v12544_v6 = vor.u32 %v2059_v59, %v2058_v31  ;;  %v12546_v33 = vor.u32 4788187, %v2063_v53  ;;  %v2515_v18 = vadd.s32 1, %v8997_v32 }
 0x216   :  { %v8993_v16 = vadd.s32 4294967169, %v2405_v25  ;;  %v2371_v5 = vshrl.u32 %v2353_v27, %v2369_v60  ;;  %v2375_v24 = vshll.u32 %v2374_v1, 23  ;;  %v2261_v62 = vclz %v8986_v11 }
 0x217   :  { %v12550_v38 = vand.u32 8388607, %v15662_v3  ;;  %v691_v49 = vsel %vm671_vm1, %v658_v61, %v12439_v34  ;;  %v2513_v55 = vor.u32 8388608, %v2512_v37  ;;  %vm2516_vm6 = vcmp.gt.s32.totalorder %v2515_v18, 0 }
 0x218   :  { %v2411_v42 = vadd.s32 1, %v8993_v16  ;;  %vm16054_vm12 = vcmp.lt.s32.totalorder %v11854_v28, 0  ;;  %v2370_v56 = vshll.u32 %v12311_v47, %v12487_v10  ;;  %v2517_v20 = vsel %vm2516_vm6, %v2515_v18, 0 }
 0x219   :  { %v12556_v8 = vsel %vm16054_vm12, %v2173_v19, %v2172_v26  ;;  %v12561_v59 = vsel %vm16055_vm13, %v691_v49, %v581_v54  ;;  %v2519_v46 = vand.u32 31, %v2517_v20  ;;  %v12567_v60 = vor.u32 4788187, %v2375_v24 }
 0x21a   :  { %16056 = vst [vmem:[#allocation49_spill] sm:$0xff] %v12561_v59  ;;  %vm2412_vm11 = vcmp.gt.s32.totalorder %v2411_v42, 0  ;;  %v12565_v34 = vor.u32 %v2371_v5, %v2370_v56  ;;  %v12569_v1 = vadd.s32 4294967294, %v2261_v62  ;;  %v2409_v26 = vor.u32 8388608, %v12550_v38 }
 0x21b   :  { %v2518_v11 = vshrl.u32 %v2517_v20, 5  ;;  %v2520_v47 = vsub.s32 32, %v2519_v46  ;;  %v12572_v10 = vshll.u32 %v2513_v55, 8  ;;  %v2716_v31 = vand.u32 2139095040, %v12561_v59 }
 0x21c   :  { %v2522_v32 = vshll.u32 %v15889_v23, %v2519_v46  ;;  %v2525_v37 = vshll.u32 %v15893_v50, %v2519_v46  ;;  %v2528_v25 = vshll.u32 %v15887_v9, %v2519_v46  ;;  %v2413_v19 = vsel %vm2412_vm11, %v2411_v42, 0 }
 0x21d   :  { %v2523_v27 = vshrl.u32 %v15893_v50, %v2520_v47  ;;  %v2526_v61 = vshrl.u32 %v15887_v9, %v2520_v47  ;;  %v2531_v18 = vshll.u32 %v15888_v51, %v2519_v46  ;;  %v2534_v16 = vshll.u32 %v15891_v48, %v2519_v46 }
 0x21e   :  { %v2521_v54 = vshrl.u32 %v15889_v23, %v2520_v47  ;;  %v2529_v5 = vshrl.u32 %v15888_v51, %v2520_v47  ;;  %v2532_v24 = vshrl.u32 %v15891_v48, %v2520_v47  ;;  %v2535_v62 = vshrl.u32 %v15892_v12, %v2520_v47 }
 0x21f   :  { %v2524_v38 = vor.u32 %v2523_v27, %v2522_v32  ;;  %v2527_v49 = vor.u32 %v2526_v61, %v2525_v37  ;;  %vm2537_vm3 = vcmp.lt.s32.totalorder %v2518_v11, 1  ;;  %vm2538_vm8 = vcmp.lt.s32.totalorder %v2518_v11, 2 }
 0x220   :  { %v2530_v55 = vor.u32 %v2529_v5, %v2528_v25  ;;  %v2533_v42 = vor.u32 %v2532_v24, %v2531_v18  ;;  %v2536_v56 = vor.u32 %v2535_v62, %v2534_v16  ;;  %vm2539_vm5 = vcmp.lt.s32.totalorder %v2518_v11, 3 }
 0x221   :  { %vm2540_vm4 = vcmp.lt.s32.totalorder %v2518_v11, 4  ;;  %v2541_v20 = vsel %vm2537_vm3, %v2521_v54, %v2524_v38  ;;  %v2545_v3 = vsel %vm2537_vm3, %v2524_v38, %v2527_v49  ;;  %v2415_v46 = vand.u32 31, %v2413_v19 }
 0x222   :  { %v2542_v21 = vsel %vm2540_vm4, %v2530_v55, 2102212464  ;;  %v2546_v0 = vsel %vm2540_vm4, %v2533_v42, 920167782  ;;  %v2549_v53 = vsel %vm2537_vm3, %v2527_v49, %v2530_v55  ;;  %v2550_v7 = vsel %vm2540_vm4, %v2536_v56, 1326507024 }
 0x223   :  { %v2543_v30 = vsel %vm2539_vm5, %v2527_v49, %v2542_v21  ;;  %v2547_v4 = vsel %vm2539_vm5, %v2530_v55, %v2546_v0  ;;  %v2551_v15 = vsel %vm2539_vm5, %v2533_v42, %v2550_v7  ;;  %v2416_v47 = vsub.s32 32, %v2415_v46 }
 0x224   :  { %v2548_v32 = vsel %vm2538_vm8, %v2545_v3, %v2547_v4  ;;  %v2552_v37 = vsel %vm2538_vm8, %v2549_v53, %v2551_v15  ;;  %v2414_v25 = vshrl.u32 %v2413_v19, 5  ;;  %v2717_v27 = vshrl.u32 %v2716_v31, 23 }
 0x225   :  { %v12589_v61 = vmul.u32.u64.low %v12572_v10, %v2552_v37  ;;  %v12590_v18 = vmul.u32.u64.high %v12572_v10, %v2552_v37, %v12589_v61  ;;  %v12593_v16 = vmul.u32.u64.low %v12572_v10, %v2548_v32  ;;  %v12594_v54 = vmul.u32.u64.high %v12572_v10, %v2548_v32, %v12593_v16 }
 0x226   :  { %v2544_v21 = vsel %vm2538_vm8, %v2541_v20, %v2543_v30  ;;  %v2418_v7 = vshll.u32 %v15889_v23, %v2415_v46  ;;  %v2419_v0 = vshrl.u32 %v15893_v50, %v2416_v47  ;;  %v2421_v4 = vshll.u32 %v15893_v50, %v2415_v46 }
 0x227   :  { %v2422_v15 = vshrl.u32 %v15887_v9, %v2416_v47  ;;  %v2424_v3 = vshll.u32 %v15887_v9, %v2415_v46  ;;  %v2425_v53 = vshrl.u32 %v15888_v51, %v2416_v47  ;;  %v2427_v31 = vshll.u32 %v15888_v51, %v2415_v46 }
 0x228   :  { %v2420_v19 = vor.u32 %v2419_v0, %v2418_v7  ;;  %v2428_v5 = vshrl.u32 %v15891_v48, %v2416_v47  ;;  %v2430_v11 = vshll.u32 %v15891_v48, %v2415_v46  ;;  %v2431_v30 = vshrl.u32 %v15892_v12, %v2416_v47 }
 0x229   :  { %vm2562_vm14 = vc.u32 %v12590_v18, %v12593_v16  ;;  %v2563_v24 = vadd.s32 1, %v12594_v54  ;;  %v2423_v62 = vor.u32 %v2422_v15, %v2421_v4  ;;  %v2449_v38 = vshll.u32 %v2409_v26, 8 }
 0x22a   :  { %v2560_v49 = vmul.u32 %v12572_v10, %v2544_v21  ;;  %v2426_v55 = vor.u32 %v2425_v53, %v2424_v3  ;;  %v2429_v42 = vor.u32 %v2428_v5, %v2427_v31  ;;  %v2432_v56 = vor.u32 %v2431_v30, %v2430_v11 }
 0x22b   :  { %v2564_v20 = vsel %vm2562_vm14, %v2563_v24, %v12594_v54  ;;  %v2417_v32 = vshrl.u32 %v15889_v23, %v2416_v47  ;;  %vm2433_vm2 = vcmp.lt.s32.totalorder %v2414_v25, 1  ;;  %v9005_v46 = vadd.s32 4294967169, %v2717_v27 }
 0x22c   :  { %v2565_v37 = vadd.s32 %v2564_v20, %v2560_v49  ;;  %vm2435_vm9 = vcmp.lt.s32.totalorder %v2414_v25, 3  ;;  %vm2436_vm6 = vcmp.lt.s32.totalorder %v2414_v25, 4  ;;  %v2441_v61 = vsel %vm2433_vm2, %v2420_v19, %v2423_v62 }
 0x22d   :  { %vm2299_vm12 = vcmp.lt.s32.totalorder %v12033_v52, 0  ;;  %v2438_v7 = vsel %vm2436_vm6, %v2426_v55, 2102212464  ;;  %v2442_v0 = vsel %vm2436_vm6, %v2429_v42, 920167782  ;;  %v2445_v26 = vsel %vm2433_vm2, %v2423_v62, %v2426_v55 }
 0x22e   :  { %v2446_v4 = vsel %vm2436_vm6, %v2432_v56, 1326507024  ;;  %v2566_v10 = vadd.s32 536870912, %v2565_v37  ;;  %vm2434_vm13 = vcmp.lt.s32.totalorder %v2414_v25, 2  ;;  %v2443_v21 = vsel %vm2435_vm9, %v2426_v55, %v2442_v0  ;;  %v16059_v56 = vld [vmem:[#allocation13_spill] sm:$0xff] }
 0x22f   :  { %v2447_v54 = vsel %vm2435_vm9, %v2429_v42, %v2446_v4  ;;  %v2437_v15 = vsel %vm2433_vm2, %v2417_v32, %v2420_v19  ;;  %v2444_v47 = vsel %vm2434_vm13, %v2441_v61, %v2443_v21  ;;  %v2723_v3 = vadd.s32 1, %v9005_v46 }
 0x230   :  { %v2448_v27 = vsel %vm2434_vm13, %v2445_v26, %v2447_v54  ;;  %v12619_v53 = vshrl.u32 %v2566_v10, 30  ;;  %v2439_v31 = vsel %vm2435_vm9, %v2423_v62, %v2438_v7  ;;  %vm8988_vm11 = vcmp.lt.s32.totalorder %v12569_v1, 0 }
 0x231   :  { %v12622_v5 = vmul.u32.u64.low %v2449_v38, %v2448_v27  ;;  %v12623_v11 = vmul.u32.u64.high %v2449_v38, %v2448_v27, %v12622_v5  ;;  %v12626_v30 = vmul.u32.u64.low %v2449_v38, %v2444_v47  ;;  %v12627_v24 = vmul.u32.u64.high %v2449_v38, %v2444_v47, %v12626_v30 }
 0x232   :  { %vm2724_vm3 = vcmp.gt.s32.totalorder %v2723_v3, 0  ;;  %v16057_v19 = vand.u32 2147483647, %v12546_v33  ;;  %v16058_v49 = vcvt.s32.f32 %v12544_v6  ;;  %v2383_v42 = vsub.s32 4, %v12273_v13 }
 0x233   :  { %v144_v62 = vmul.f32 3.1415927, %v16059_v56  ;;  %v2725_v20 = vsel %vm2724_vm3, %v2723_v3, 0  ;;  %v12639_v32 = vadd.s32 3, %v12538_v40  ;;  %v2377_v46 = vand.u32 2147483647, %v12567_v60 }
 0x234   :  { %v12634_v55 = vmul.f32 %v16058_v49, %v16057_v19  ;;  %v2440_v61 = vsel %vm2434_vm13, %v2437_v15, %v2439_v31  ;;  %v2727_v7 = vand.u32 31, %v2725_v20  ;;  %v12644_v0 = vsel %vm8988_vm11, 0, %v12569_v1  ;;  %v579_v1 = vpop.permute.xlu0 %578 }
 0x235   :  { %v2568_v6 = vshll.u32 %v12619_v53, 30  ;;  %vm2458_vm8 = vc.u32 %v12623_v11, %v12626_v30  ;;  %v15666_v33 = vand.u32 2147483647, %v12561_v59  ;;  %v12654_v26 = vsel %vm12263_vm15, %v11854_v28, %v12556_v8 }
 0x236   :  { %v2379_v60 = vcvt.s32.f32 %v12565_v34  ;;  %v2459_v25 = vadd.s32 1, %v12627_v24  ;;  %v2728_v4 = vsub.s32 32, %v2727_v7  ;;  %v12662_v21 = vsel %vm2299_vm12, %v2383_v42, %v12273_v13 }
 0x237   :  { %v657_v54 = vsel %vm15802_vm0, %v144_v62, %v12369_v29  ;;  %v2456_v15 = vmul.u32 %v2449_v38, %v2440_v61  ;;  %v2269_v8 = vsub.s32 4294967266, %v12644_v0  ;;  %v12672_v27 = vsub.s32 %v2565_v37, %v2568_v6 }
 0x238   :  { %v12666_v43 = vmul.f32 %v2379_v60, %v2377_v46  ;;  %v690_v34 = vsel %vm671_vm1, %v657_v54, %v12445_v44  ;;  %v2460_v47 = vsel %vm2458_vm8, %v2459_v25, %v12627_v24  ;;  %v2720_v13 = vand.u32 8388607, %v15666_v33 }
 0x239   :  { %v2461_v3 = vadd.s32 %v2460_v47, %v2456_v15  ;;  %vm16060_vm15 = vcmask 72704   ;;  %vm2195_vm5 = vcmp.lt.s32.totalorder %v12160_v14, 0  ;;  %v12680_v29 = vshrl.u32 %v2725_v20, 5 }
 0x23a   :  { %v12677_v31 = vsel %vm16060_vm15, %v690_v34, %v579_v1  ;;  %v2731_v38 = vshrl.u32 %v15893_v50, %v2728_v4  ;;  %v2734_v5 = vshrl.u32 %v15887_v9, %v2728_v4  ;;  %v2737_v44 = vshrl.u32 %v15888_v51, %v2728_v4 }
 0x23b   :  { %16061 = vst [vmem:[#allocation47_spill] sm:$0xff] %v12677_v31  ;;  %v2730_v37 = vshll.u32 %v15889_v23, %v2727_v7  ;;  %v2733_v24 = vshll.u32 %v15893_v50, %v2727_v7  ;;  %v2739_v19 = vshll.u32 %v15888_v51, %v2727_v7  ;;  %v2740_v49 = vshrl.u32 %v15891_v48, %v2728_v4 }
 0x23c   :  { %v2462_v42 = vadd.s32 536870912, %v2461_v3  ;;  %v2736_v56 = vshll.u32 %v15887_v9, %v2727_v7  ;;  %v2742_v62 = vshll.u32 %v15891_v48, %v2727_v7  ;;  %v2743_v20 = vshrl.u32 %v15892_v12, %v2728_v4 }
 0x23d   :  { %v2270_v46 = vadd.s32 127, %v2269_v8  ;;  %v2279_v61 = vsub.s32 4, %v12401_v45  ;;  %v2571_v6 = vsub.s32 0, %v12672_v27  ;;  %v2741_v60 = vor.u32 %v2740_v49, %v2739_v19 }
 0x23e   :  { %v2732_v25 = vor.u32 %v2731_v38, %v2730_v37  ;;  %v2735_v1 = vor.u32 %v2734_v5, %v2733_v24  ;;  %v2738_v54 = vor.u32 %v2737_v44, %v2736_v56  ;;  %v2744_v15 = vor.u32 %v2743_v20, %v2742_v62 }
 0x23f   :  { %v2265_v34 = vsub.s32 32, %v12644_v0  ;;  %v2721_v47 = vor.u32 8388608, %v2720_v13  ;;  %vm2748_vm4 = vcmp.lt.s32.totalorder %v12680_v29, 4  ;;  %v2612_v33 = vand.u32 2139095040, %v12677_v31 }
 0x240   :  { %v16062_v7 = vand.u32 2147483647, %v12033_v52  ;;  %v2381_v10 = vxor.u32 2147483648, %v12666_v43  ;;  %v16065_v38 = vand.u32 2147483647, %v12160_v14  ;;  %v2249_v13 = vadd.s32 %v12320_v57, %v12332_v39 }
 0x241   :  { %v12712_v44 = vshrl.u32 %v2462_v42, 30  ;;  %v2754_v37 = vsel %vm2748_vm4, %v2741_v60, 920167782  ;;  %v2271_v24 = vshll.u32 %v2270_v46, 23  ;;  %v8998_v19 = vmin.u32 %v2571_v6, %v12672_v27 }
 0x242   :  { %vm12699_vm14 = vcmp.le.f32.partialorder %v16062_v7, 0.7853982  ;;  %vm12706_vm2 = vcmp.le.f32.partialorder %v16065_v38, 0.7853982  ;;  %vm2745_vm9 = vcmp.lt.s32.totalorder %v12680_v29, 1  ;;  %vm2747_vm6 = vcmp.lt.s32.totalorder %v12680_v29, 3 }
 0x243   :  { %v2753_v49 = vsel %vm2745_vm9, %v2732_v25, %v2735_v1  ;;  %v2755_v56 = vsel %vm2747_vm6, %v2738_v54, %v2754_v37  ;;  %v2757_v57 = vsel %vm2745_vm9, %v2735_v1, %v2738_v54  ;;  %v2758_v39 = vsel %vm2748_vm4, %v2744_v15, 1326507024 }
 0x244   :  { %v2267_v42 = vshrl.u32 %v2249_v13, %v2265_v34  ;;  %v2280_v62 = vsel %vm2195_vm5, %v2279_v61, %v12401_v45  ;;  %v2761_v20 = vshll.u32 %v2721_v47, 8  ;;  %v2613_v46 = vshrl.u32 %v2612_v33, 23 }
 0x245   :  { %v2464_v6 = vshll.u32 %v12712_v44, 30  ;;  %vm2746_vm13 = vcmp.lt.s32.totalorder %v12680_v29, 2  ;;  %v2750_v7 = vsel %vm2748_vm4, %v2738_v54, 2102212464  ;;  %v2759_v38 = vsel %vm2747_vm6, %v2741_v60, %v2758_v39 }
 0x246   :  { %v2266_v15 = vshll.u32 %v12464_v17, %v12644_v0  ;;  %v2729_v34 = vshrl.u32 %v15889_v23, %v2728_v4  ;;  %v2756_v45 = vsel %vm2746_vm13, %v2753_v49, %v2755_v56  ;;  %v2760_v33 = vsel %vm2746_vm13, %v2757_v57, %v2759_v38 }
 0x247   :  { %v2272_v61 = vor.u32 4788187, %v2271_v24  ;;  %v2573_v47 = vclz %v8998_v19  ;;  %v12743_v13 = vmul.u32.u64.low %v2761_v20, %v2760_v33  ;;  %v12744_v37 = vmul.u32.u64.high %v2761_v20, %v2760_v33, %v12743_v13 }
 0x248   :  { %v16068_v54 = vxor.u32 2147483648, %v12634_v55  ;;  %v2749_v17 = vsel %vm2745_vm9, %v2729_v34, %v2732_v25  ;;  %v2751_v0 = vsel %vm2747_vm6, %v2735_v1, %v2750_v7  ;;  %v9001_v4 = vadd.s32 4294967169, %v2613_v46 }
 0x249   :  { %v2268_v49 = vor.u32 %v2267_v42, %v2266_v15  ;;  %v12755_v56 = vsub.s32 %v2461_v3, %v2464_v6  ;;  %v12757_v24 = vmul.u32.u64.low %v2761_v20, %v2756_v45  ;;  %v12758_v19 = vmul.u32.u64.high %v2761_v20, %v2756_v45, %v12757_v24 }
 0x24a   :  { %v2070_v60 = vsel %vm1987_vm7, %v16068_v54, %v12634_v55  ;;  %9867 = vcosq.f32 %v12654_v26  ;;  %v2386_v55 = vsel %vm12699_vm14, 0, %v12662_v21  ;;  %v2282_v25 = vsel %vm12706_vm2, 0, %v2280_v62 }
 0x24b   :  { %v2619_v57 = vadd.s32 1, %v9001_v4  ;;  %v2382_v1 = vsel %vm2299_vm12, %v2381_v10, %v12666_v43  ;;  %v2273_v3 = vand.u32 2147483647, %v2272_v61  ;;  %v8999_v39 = vadd.s32 4294967294, %v2573_v47 }
 0x24c   :  { %v2752_v42 = vsel %vm2746_vm13, %v2749_v17, %v2751_v0  ;;  %9869 = vsinq.f32 %v12654_v26  ;;  %v2073_v46 = vsel %vm12482_vm10, %v11897_v36, %v2070_v60  ;;  %vm2770_vm7 = vc.u32 %v12744_v37, %v12757_v24  ;;  %v16099_v36 = vld [vmem:[#allocation60_spill] sm:$0xff] }
 0x24d   :  { %vm2620_vm11 = vcmp.gt.s32.totalorder %v2619_v57, 0  ;;  %v2275_v21 = vcvt.s32.f32 %v2268_v49  ;;  %v2467_v62 = vsub.s32 0, %v12755_v56  ;;  %v2771_v10 = vadd.s32 1, %v12758_v19 }
 0x24e   :  { %v2621_v43 = vsel %vm2620_vm11, %v2619_v57, 0  ;;  %v2385_v29 = vsel %vm12699_vm14, %v12033_v52, %v2382_v1  ;;  %v2390_v6 = vadd.s32 3, %v2386_v55  ;;  %v2286_v26 = vadd.s32 3, %v2282_v25 }
 0x24f   :  { %v2768_v7 = vmul.u32 %v2761_v20, %v2752_v42  ;;  %v2276_v38 = vmul.f32 %v2275_v21, %v2273_v3  ;;  %vm9000_vm12 = vcmp.lt.s32.totalorder %v8999_v39, 0  ;;  %v2772_v58 = vsel %vm2770_vm7, %v2771_v10, %v12758_v19 }
 0x250   :  { %v2623_v15 = vand.u32 31, %v2621_v43  ;;  %9871 = vcosq.f32 %v2073_v46  ;;  %v12785_v34 = vand.u32 3, %v12538_v40  ;;  %v15667_v33 = vand.u32 2147483647, %v12677_v31 }
 0x251   :  { %v12787_v45 = vadd.s32 %v2772_v58, %v2768_v7  ;;  %9873 = vsinq.f32 %v2073_v46  ;;  %v12791_v8 = vand.u32 3, %v12639_v32  ;;  %v8994_v61 = vmin.u32 %v2467_v62, %v12755_v56 }
 0x252   :  { %16069 = vst [vmem:[#allocation44_spill] sm:$0xff] %v12785_v34  ;;  %v2624_v20 = vsub.s32 32, %v2623_v15  ;;  %9875 = vcosq.f32 %v2385_v29  ;;  %v12794_v47 = vand.u32 3, %v2390_v6  ;;  %v12796_v13 = vand.u32 3, %v2386_v55  ;;  %v16084_v34 = vld [vmem:[#allocation27_spill] sm:$0xff] }
 0x253   :  { %16070 = vst [vmem:[#allocation37_spill] sm:$0xff] %v12791_v8  ;;  %v12798_v54 = vsel %vm9000_vm12, 0, %v8999_v39  ;;  %9877 = vsinq.f32 %v2385_v29  ;;  %v2277_v40 = vxor.u32 2147483648, %v2276_v38  ;;  %v12800_v60 = vand.u32 3, %v2286_v26  ;;  %v12828_v8 = vpop.permute.xlu1 %328 }
 0x254   :  { %16071 = vst [vmem:[#allocation46_spill] sm:$0xff] %v12794_v47  ;;  %16072 = vst [vmem:[#allocation24_spill] sm:$0xff] %v12796_v13  ;;  %v12802_v17 = vand.u32 3, %v2282_v25  ;;  %v12804_v0 = vpop.eup %9867  ;;  %v2774_v32 = vadd.s32 536870912, %v12787_v45  ;;  %v2616_v4 = vand.u32 8388607, %v15667_v33  ;;  %v2627_v49 = vshrl.u32 %v15893_v50, %v2624_v20 }
 0x255   :  { %16073 = vst [vmem:[#allocation3_spill] sm:$0xff] %v12800_v60  ;;  %16075 = vst [vmem:[#allocation12_spill] sm:$0xff] %v12804_v0  ;;  %v2630_v19 = vshrl.u32 %v15887_v9, %v2624_v20  ;;  %v2577_v55 = vsub.s32 32, %v12798_v54  ;;  %v2581_v57 = vsub.s32 4294967266, %v12798_v54  ;;  %v2469_v1 = vclz %v8994_v61 }
 0x256   :  { %16074 = vst [vmem:[#allocation34_spill] sm:$0xff] %v12802_v17  ;;  %v2633_v3 = vshrl.u32 %v15888_v51, %v2624_v20  ;;  %v12814_v25 = vpop.eup %9869  ;;  %v2626_v39 = vshll.u32 %v15889_v23, %v2623_v15  ;;  %v2629_v42 = vshll.u32 %v15893_v50, %v2623_v15  ;;  %v2632_v46 = vshll.u32 %v15887_v9, %v2623_v15 }
 0x257   :  { %16076 = vst [vmem:[#allocation13_spill] sm:$0xff] %v12814_v25  ;;  %v2636_v21 = vshrl.u32 %v15891_v48, %v2624_v20  ;;  %v2622_v62 = vshrl.u32 %v2621_v43, 5  ;;  %v2635_v10 = vshll.u32 %v15888_v51, %v2623_v15  ;;  %v2638_v29 = vshll.u32 %v15891_v48, %v2623_v15 }
 0x258   :  { %v2639_v6 = vshrl.u32 %v15892_v12, %v2624_v20  ;;  %v12823_v26 = vshrl.u32 %v2774_v32, 30  ;;  %v2628_v7 = vor.u32 %v2627_v49, %v2626_v39  ;;  %v2631_v58 = vor.u32 %v2630_v19, %v2629_v42 }
 0x259   :  { %v2634_v61 = vor.u32 %v2633_v3, %v2632_v46  ;;  %vm2507_vm10 = vcmp.lt.s32.totalorder %v12503_v22, 0  ;;  %v2561_v33 = vadd.s32 %v12593_v16, %v12590_v18  ;;  %v2637_v47 = vor.u32 %v2636_v21, %v2635_v10  ;;  %v12837_v18 = vpop.permute.xlu0 %326 }
 0x25a   :  { %v2640_v60 = vor.u32 %v2639_v6, %v2638_v29  ;;  %v12830_v43 = vpop.eup %9871  ;;  %v2278_v15 = vsel %vm2195_vm5, %v2277_v40, %v2276_v38  ;;  %v2591_v32 = vsub.s32 4, %v12619_v53  ;;  %v8995_v13 = vadd.s32 4294967294, %v2469_v1 }
 0x25b   :  { %16077 = vst [vmem:[#allocation76_spill] sm:$0xff] %v12830_v43  ;;  %v2617_v49 = vor.u32 8388608, %v2616_v4  ;;  %v12835_v19 = vpop.eup %9873  ;;  %v2579_v3 = vshrl.u32 %v2561_v33, %v2577_v55  ;;  %v2582_v39 = vadd.s32 127, %v2581_v57  ;;  %vm2641_vm3 = vcmp.lt.s32.totalorder %v2622_v62, 1 }
 0x25c   :  { %16078 = vst [vmem:[#allocation77_spill] sm:$0xff] %v12835_v19  ;;  %vm2644_vm8 = vcmp.lt.s32.totalorder %v2622_v62, 4  ;;  %v12839_v16 = vpop.eup %9875  ;;  %v2776_v42 = vshll.u32 %v12823_v26, 30  ;;  %v2625_v46 = vshrl.u32 %v15889_v23, %v2624_v20  ;;  %v2649_v38 = vsel %vm2641_vm3, %v2628_v7, %v2631_v58 }
 0x25d   :  { %16079 = vst [vmem:[#allocation78_spill] sm:$0xff] %v12839_v16  ;;  %v2646_v21 = vsel %vm2644_vm8, %v2634_v61, 2102212464  ;;  %v12844_v40 = vpop.eup %9877  ;;  %vm2643_vm15 = vcmp.lt.s32.totalorder %v2622_v62, 3  ;;  %v2650_v4 = vsel %vm2644_vm8, %v2637_v47, 920167782  ;;  %v2653_v33 = vsel %vm2641_vm3, %v2631_v58, %v2634_v61 }
 0x25e   :  { %16080 = vst [vmem:[#allocation79_spill] sm:$0xff] %v12844_v40  ;;  %v2654_v55 = vsel %vm2644_vm8, %v2640_v60, 1326507024  ;;  %v16081_v57 = vand.u32 2147483647, %v12503_v22  ;;  %vm8996_vm4 = vcmp.lt.s32.totalorder %v8995_v13, 0  ;;  %v2651_v10 = vsel %vm2643_vm15, %v2634_v61, %v2650_v4  ;;  %v12855_v40 = vpop.permute.xlu1 %332 }
 0x25f   :  { %vm2642_vm14 = vcmp.lt.s32.totalorder %v2622_v62, 2  ;;  %v2657_v20 = vshll.u32 %v2617_v49, 8  ;;  %v2645_v29 = vsel %vm2641_vm3, %v2625_v46, %v2628_v7  ;;  %v2647_v6 = vsel %vm2643_vm15, %v2631_v58, %v2646_v21  ;;  %v16085_v49 = vld [vmem:[#allocation58_spill] sm:$0xff]  ;;  %v16088_v62 = vld [vmem:[#allocation53_spill] sm:$0xff] }
 0x260   :  { %vm12849_vm5 = vcmp.le.f32.partialorder %v16081_v57, 0.7853982  ;;  %v2652_v17 = vsel %vm2642_vm14, %v2649_v38, %v2651_v10  ;;  %v2655_v16 = vsel %vm2643_vm15, %v2637_v47, %v2654_v55  ;;  %v12858_v60 = vsub.s32 %v12787_v45, %v2776_v42  ;;  %v12871_v47 = vpop.permute.xlu0 %330  ;;  %v16086_v42 = vld [vmem:[#allocation6_spill] sm:$0xff] }
 0x261   :  { %v2656_v57 = vsel %vm2642_vm14, %v2653_v33, %v2655_v16  ;;  %v12861_v52 = vmul.u32.u64.low %v2657_v20, %v2652_v17  ;;  %v12862_v28 = vmul.u32.u64.high %v2657_v20, %v2652_v17, %v12861_v52  ;;  %vm1245_vm9 = vweird.f32 %v16084_v34  ;;  %v16089_v33 = vld [vmem:[#allocation55_spill] sm:$0xff] }
 0x262   :  { %v2578_v7 = vshll.u32 %v12672_v27, %v12798_v54  ;;  %v12868_v58 = vmul.u32.u64.low %v2657_v20, %v2656_v57  ;;  %v12869_v61 = vmul.u32.u64.high %v2657_v20, %v2656_v57, %v12868_v58  ;;  %v15682_v46 = vxor.u32 2147483648, %v16085_v49  ;;  %v16087_v54 = vld [vmem:[#allocation26_spill] sm:$0xff]  ;;  %v16092_v57 = vld [vmem:[#allocation4_spill] sm:$0xff] }
 0x263   :  { %v12877_v45 = vsel %vm12706_vm2, %v12160_v14, %v2278_v15  ;;  %v2592_v17 = vsel %vm2507_vm10, %v2591_v32, %v12619_v53  ;;  %v2648_v16 = vsel %vm2642_vm14, %v2645_v29, %v2647_v6  ;;  %v15681_v27 = vxor.u32 2147483648, %v16086_v42 }
 0x264   :  { %vm15766_vm6 = vweird.f32 %v16087_v54  ;;  %v12885_v21 = vor.u32 %v2579_v3, %v2578_v7  ;;  %v2583_v38 = vshll.u32 %v2582_v39, 23  ;;  %v12889_v4 = vadd.s32 %v12626_v30, %v12623_v11  ;;  %v12904_v30 = vpop.permute.xlu1 %456  ;;  %v16090_v3 = vld [vmem:[#allocation52_spill] sm:$0xff]  ;;  %v12917_v7 = vpop.permute.xlu0 %454  ;;  %v16102_v54 = vld [vmem:[#allocation62_spill] sm:$0xff] }
 0x265   :  { %v12892_v5 = vsel %vm8996_vm4, 0, %v8995_v13  ;;  %v2779_v15 = vsub.s32 0, %v12858_v60  ;;  %v2667_v53 = vadd.s32 1, %v12862_v28  ;;  %v15680_v32 = vxor.u32 2147483648, %v16088_v62 }
 0x266   :  { %vm4572_vm2 = vcmp.eq.s32.totalorder %v16089_v33, 0  ;;  %v2664_v55 = vmul.u32 %v2657_v20, %v2648_v16  ;;  %vm2666_vm13 = vc.u32 %v12869_v61, %v12861_v52  ;;  %vm4575_vm7 = vcmp.eq.s32.totalorder %v16089_v33, 2  ;;  %v16096_v16 = vld [vmem:[#allocation14_spill] sm:$0xff] }
 0x267   :  { %v4574_v11 = vsel %vm4572_vm2, %v16086_v42, %v15682_v46  ;;  %v2668_v13 = vsel %vm2666_vm13, %v2667_v53, %v12862_v28  ;;  %v15690_v39 = vxor.u32 2147483648, %v16090_v3  ;;  %vm4571_vm11 = vcmp.lt.s32.totalorder %v16089_v33, 2  ;;  %v16093_v33 = vld [vmem:[#allocation31_spill] sm:$0xff] }
 0x268   :  { %v4577_v10 = vsel %vm4575_vm7, %v15681_v27, %v16085_v49  ;;  %v12914_v20 = vsel %vm12849_vm5, 0, %v2592_v17  ;;  %v2669_v29 = vadd.s32 %v2668_v13, %v2664_v55  ;;  %vm4675_vm12 = vcmp.eq.s32.totalorder %v16092_v57, 0  ;;  %v16095_v27 = vld [vmem:[#allocation30_spill] sm:$0xff]  ;;  %v16097_v49 = vld [vmem:[#allocation64_spill] sm:$0xff]  ;;  %v12942_v14 = vpop.permute.xlu1 %460 }
 0x269   :  { %16091 = vst [vmem:[#allocation55_spill] sm:$0xff] %v12914_v20  ;;  %v4578_v6 = vsel %vm4571_vm11, %v4574_v11, %v4577_v10  ;;  %v12919_v58 = vor.u32 4788187, %v2583_v38  ;;  %v2477_v28 = vsub.s32 4294967266, %v12892_v5  ;;  %v4677_v53 = vsel %vm4675_vm12, %v16090_v3, %v15680_v32  ;;  %v16094_v11 = vld [vmem:[#allocation65_spill] sm:$0xff]  ;;  %v16100_v3 = vld [vmem:[#allocation15_spill] sm:$0xff] }
 0x26a   :  { %vm15734_vm3 = vweird.f32 %v16093_v33  ;;  %v2670_v55 = vadd.s32 536870912, %v2669_v29  ;;  %vm4678_vm8 = vcmp.eq.s32.totalorder %v16092_v57, 2  ;;  %v9006_v38 = vmin.u32 %v2779_v15, %v12858_v60 }
 0x26b   :  { %v4579_v10 = vsel %vm1245_vm9, nan, %v4578_v6  ;;  %vm4674_vm15 = vcmp.lt.s32.totalorder %v16092_v57, 2  ;;  %v4680_v32 = vsel %vm4678_vm8, %v15690_v39, %v16088_v62  ;;  %vm15765_vm4 = vweird.f32 %v16095_v27  ;;  %v16098_v57 = vld [vmem:[#allocation63_spill] sm:$0xff] }
 0x26c   :  { %v12938_v46 = vshrl.u32 %v2670_v55, 30  ;;  %v147_v17 = vmul.f32 3.1415927, %v16096_v16  ;;  %v4681_v42 = vsel %vm4674_vm15, %v4677_v53, %v4680_v32  ;;  %v2478_v15 = vadd.s32 127, %v2477_v28  ;;  %v12953_v53 = vpop.permute.xlu0 %458 }
 0x26d   :  { %v4682_v6 = vsel %vm15766_vm6, nan, %v4681_v42  ;;  %vm4778_vm14 = vcmp.eq.s32.totalorder %v16099_v36, 0  ;;  %v146_v55 = vmul.f32 3.1415927, %v16100_v3  ;;  %v16101_v16 = vxor.u32 2147483648, %v16094_v11 }
 0x26e   :  { %v2672_v39 = vshll.u32 %v12938_v46, 30  ;;  %v9730_v62 = vpack.i.bf16 %v4682_v6, %v4579_v10  ;;  %v2473_v28 = vsub.s32 32, %v12892_v5  ;;  %v2781_v13 = vclz %v9006_v38  ;;  %v16104_v6 = vld [vmem:[#allocation56_spill] sm:$0xff] }
 0x26f   :  { %v4780_v32 = vsel %vm4778_vm14, %v16097_v49, %v16101_v16  ;;  %vm4781_vm2 = vcmp.eq.s32.totalorder %v16099_v36, 2  ;;  %vm4777_vm13 = vcmp.lt.s32.totalorder %v16099_v36, 2  ;;  %v16103_v3 = vxor.u32 2147483648, %v16097_v49 }
 0x270   :  { %v12958_v34 = vsub.s32 %v2669_v29, %v2672_v39  ;;  %9731 = vrot.lane.b32.xlu0 %v9730_v62, %s10084_s0  ;;  %vm4881_vm7 = vcmp.eq.s32.totalorder %v16104_v6, 0  ;;  %v2585_v16 = vand.u32 2147483647, %v12919_v58  ;;  %vm2403_vm11 = vcmp.lt.s32.totalorder %v12509_v35, 0 }
 0x271   :  { %v4783_v10 = vsel %vm4781_vm2, %v16103_v3, %v16094_v11  ;;  %v2479_v38 = vshll.u32 %v2478_v15, 23  ;;  %v16105_v0 = vxor.u32 2147483648, %v16098_v57  ;;  %v660_v36 = vsel %vm15802_vm0, %v147_v17, %v12828_v8  ;;  %v585_v3 = vpop.permute.xlu1 %584 }
 0x272   :  { %v4784_v42 = vsel %vm4777_vm13, %v4780_v32, %v4783_v10  ;;  %v2675_v62 = vsub.s32 0, %v12958_v34  ;;  %v659_v29 = vsel %vm15802_vm0, %v146_v55, %v12837_v18  ;;  %vm4884_vm12 = vcmp.eq.s32.totalorder %v16104_v6, 2  ;;  %v583_v55 = vpop.permute.xlu0 %582 }
 0x273   :  { %v4883_v39 = vsel %vm4881_vm7, %v16102_v54, %v16105_v0  ;;  %v2475_v58 = vshrl.u32 %v12889_v4, %v2473_v28  ;;  %v4785_v15 = vsel %vm15734_vm3, nan, %v4784_v42  ;;  %vm4880_vm8 = vcmp.lt.s32.totalorder %v16104_v6, 2 }
 0x274   :  { %v16106_v0 = vxor.u32 2147483648, %v16102_v54  ;;  %v9007_v10 = vadd.s32 4294967294, %v2781_v13  ;;  %v9002_v8 = vmin.u32 %v2675_v62, %v12958_v34  ;;  %v693_v18 = vsel %vm671_vm1, %v660_v36, %v12904_v30 }
 0x275   :  { %v2474_v4 = vshll.u32 %v12755_v56, %v12892_v5  ;;  %v2480_v28 = vor.u32 4788187, %v2479_v38  ;;  %vm16107_vm15 = vcmask 72704   ;;  %v692_v13 = vsel %vm671_vm1, %v659_v29, %v12917_v7 }
 0x276   :  { %v4886_v32 = vsel %vm4884_vm12, %v16106_v0, %v16098_v57  ;;  %v12992_v6 = vsel %vm16107_vm15, %v693_v18, %v585_v3  ;;  %v2677_v33 = vclz %v9002_v8  ;;  %9879 = vcosq.f32 %v12877_v45  ;;  %vm16109_vm14 = vmmov %vm16107_vm15 }
 0x277   :  { %v4887_v17 = vsel %vm4880_vm8, %v4883_v39, %v4886_v32  ;;  %16108 = vst [vmem:[#allocation4_spill] sm:$0xff] %v12992_v6  ;;  %v15697_v62 = vand.u32 2147483647, %v12992_v6  ;;  %v2476_v30 = vor.u32 %v2475_v58, %v2474_v4  ;;  %v2924_v39 = vand.u32 2139095040, %v12992_v6  ;;  %vm16115_vm8 = vmmov %vm16109_vm14 }
 0x278   :  { %v4888_v42 = vsel %vm15765_vm4, nan, %v4887_v17  ;;  %v13000_v56 = vsel %vm16109_vm14, %v692_v13, %v583_v55  ;;  %9881 = vsinq.f32 %v12877_v45  ;;  %v16111_v5 = vcvt.s32.f32 %v12885_v21  ;;  %v16114_v21 = vld [vmem:[#allocation16_spill] sm:$0xff] }
 0x279   :  { %v9735_v0 = vpack.i.bf16 %v4888_v42, %v4785_v15  ;;  %16110 = vst [vmem:[#allocation14_spill] sm:$0xff] %v13000_v56  ;;  %vm2715_vm2 = vcmp.lt.s32.totalorder %v12561_v59, 0  ;;  %vm9008_vm13 = vcmp.lt.s32.totalorder %v9007_v10, 0  ;;  %v9003_v36 = vadd.s32 4294967294, %v2677_v33 }
 0x27a   :  { %v2588_v38 = vmul.f32 %v16111_v5, %v2585_v16  ;;  %v13008_v7 = vand.u32 3, %v12914_v20  ;;  %v2481_v29 = vand.u32 2147483647, %v2480_v28  ;;  %v2925_v3 = vshrl.u32 %v2924_v39, 23  ;;  %v589_v5 = vpop.permute.xlu1 %588 }
 0x27b   :  { %9736 = vrot.lane.b32.xlu1 %v9735_v0, %s10084_s0  ;;  %v2820_v58 = vand.u32 2139095040, %v13000_v56  ;;  %v16113_v15 = vsub.s32 4, %v12712_v44  ;;  %vm9004_vm7 = vcmp.lt.s32.totalorder %v9003_v36, 0  ;;  %v149_v16 = vmul.f32 3.1415927, %v16114_v21 }
 0x27c   :  { %16112 = vst [vmem:[#allocation60_spill] sm:$0xff] %v13008_v7  ;;  %v2928_v33 = vand.u32 8388607, %v15697_v62  ;;  %v2483_v32 = vcvt.s32.f32 %v2476_v30  ;;  %v13021_v8 = vsel %vm9008_vm13, 0, %v9007_v10  ;;  %v9013_v18 = vadd.s32 4294967169, %v2925_v3 }
 0x27d   :  { %v13016_v45 = vsel %vm2403_vm11, %v16113_v15, %v12712_v44  ;;  %v2821_v17 = vshrl.u32 %v2820_v58, 23  ;;  %v2589_v55 = vxor.u32 2147483648, %v2588_v38  ;;  %v2769_v4 = vadd.s32 %v12757_v24, %v12744_v37 }
 0x27e   :  { %v13025_v28 = vsel %vm9004_vm7, 0, %v9003_v36  ;;  %v15696_v44 = vand.u32 2147483647, %v13000_v56  ;;  %v13028_v42 = vmul.f32 %v2483_v32, %v2481_v29  ;;  %v2799_v0 = vsub.s32 4, %v12823_v26 }
 0x27f   :  { %v2931_v13 = vadd.s32 1, %v9013_v18  ;;  %v9009_v39 = vadd.s32 4294967169, %v2821_v17  ;;  %v2785_v10 = vsub.s32 32, %v13021_v8  ;;  %v2789_v30 = vsub.s32 4294967266, %v13021_v8 }
 0x280   :  { %v662_v3 = vsel %vm15802_vm0, %v149_v16, %v12855_v40  ;;  %v2929_v58 = vor.u32 8388608, %v2928_v33  ;;  %v2685_v37 = vsub.s32 4294967266, %v13025_v28  ;;  %v13040_v29 = vsel %vm2507_vm10, %v2589_v55, %v2588_v38  ;;  %v13047_v40 = vpop.eup %9879 }
 0x281   :  { %v695_v24 = vsel %vm671_vm1, %v662_v3, %v12942_v14  ;;  %vm2932_vm12 = vcmp.gt.s32.totalorder %v2931_v13, 0  ;;  %v2827_v36 = vadd.s32 1, %v9009_v39  ;;  %v2824_v21 = vand.u32 8388607, %v15696_v44  ;;  %16117 = vst [vmem:[#allocation56_spill] sm:$0xff] %v13047_v40 }
 0x282   :  { %v2933_v15 = vsel %vm2932_vm12, %v2931_v13, 0  ;;  %v13045_v32 = vsel %vm16115_vm8, %v695_v24, %v589_v5  ;;  %v13053_v14 = vsel %vm2715_vm2, %v2799_v0, %v12823_v26  ;;  %v13055_v38 = vpop.eup %9881  ;;  %v2786_v18 = vshll.u32 %v12858_v60, %v13021_v8 }
 0x283   :  { %16116 = vst [vmem:[#allocation15_spill] sm:$0xff] %v13045_v32  ;;  %v2935_v33 = vand.u32 31, %v2933_v15  ;;  %vm2828_vm15 = vcmp.gt.s32.totalorder %v2827_v36, 0  ;;  %16118 = vst [vmem:[#allocation16_spill] sm:$0xff] %v13055_v38  ;;  %v2787_v17 = vshrl.u32 %v2769_v4, %v2785_v10  ;;  %v13059_v55 = vadd.s32 127, %v2789_v30 }
 0x284   :  { %v13061_v13 = vshll.u32 %v2929_v58, 8  ;;  %v13063_v39 = vadd.s32 127, %v2685_v37  ;;  %v2934_v5 = vshrl.u32 %v2933_v15, 5  ;;  %v3132_v24 = vand.u32 2139095040, %v13045_v32 }
 0x285   :  { %v2936_v3 = vsub.s32 32, %v2935_v33  ;;  %v2938_v26 = vshll.u32 %v15889_v23, %v2935_v33  ;;  %v2941_v0 = vshll.u32 %v15893_v50, %v2935_v33  ;;  %v2825_v44 = vor.u32 8388608, %v2824_v21 }
 0x286   :  { %v2829_v62 = vsel %vm2828_vm15, %v2827_v36, 0  ;;  %v2944_v8 = vshll.u32 %v15887_v9, %v2935_v33  ;;  %v2947_v10 = vshll.u32 %v15888_v51, %v2935_v33  ;;  %v2950_v58 = vshll.u32 %v15891_v48, %v2935_v33 }
 0x287   :  { %v2939_v16 = vshrl.u32 %v15893_v50, %v2936_v3  ;;  %v2942_v60 = vshrl.u32 %v15887_v9, %v2936_v3  ;;  %v2945_v4 = vshrl.u32 %v15888_v51, %v2936_v3  ;;  %v2948_v30 = vshrl.u32 %v15891_v48, %v2936_v3 }
 0x288   :  { %v2951_v37 = vshrl.u32 %v15892_v12, %v2936_v3  ;;  %vm2953_vm10 = vcmp.lt.s32.totalorder %v2934_v5, 1  ;;  %v2937_v36 = vshrl.u32 %v15889_v23, %v2936_v3  ;;  %vm2956_vm14 = vcmp.lt.s32.totalorder %v2934_v5, 4 }
 0x289   :  { %v2940_v15 = vor.u32 %v2939_v16, %v2938_v26  ;;  %v2943_v20 = vor.u32 %v2942_v60, %v2941_v0  ;;  %v2946_v21 = vor.u32 %v2945_v4, %v2944_v8  ;;  %v2949_v27 = vor.u32 %v2948_v30, %v2947_v10  ;;  %v16119_v0 = vld [vmem:[#allocation17_spill] sm:$0xff] }
 0x28a   :  { %v2952_v49 = vor.u32 %v2951_v37, %v2950_v58  ;;  %vm2955_vm13 = vcmp.lt.s32.totalorder %v2934_v5, 3  ;;  %vm2954_vm7 = vcmp.lt.s32.totalorder %v2934_v5, 2  ;;  %v3133_v16 = vshrl.u32 %v3132_v24, 23 }
 0x28b   :  { %v2958_v11 = vsel %vm2956_vm14, %v2946_v21, 2102212464  ;;  %v2961_v54 = vsel %vm2953_vm10, %v2940_v15, %v2943_v20  ;;  %v2965_v57 = vsel %vm2953_vm10, %v2943_v20, %v2946_v21  ;;  %v2957_v7 = vsel %vm2953_vm10, %v2937_v36, %v2940_v15 }
 0x28c   :  { %v2959_v40 = vsel %vm2955_vm13, %v2943_v20, %v2958_v11  ;;  %v2962_v38 = vsel %vm2956_vm14, %v2949_v27, 920167782  ;;  %v2966_v25 = vsel %vm2956_vm14, %v2952_v49, 1326507024  ;;  %v13077_v26 = vor.u32 %v2787_v17, %v2786_v18 }
 0x28d   :  { %v2963_v33 = vsel %vm2955_vm13, %v2946_v21, %v2962_v38  ;;  %v2967_v43 = vsel %vm2955_vm13, %v2949_v27, %v2966_v25  ;;  %v13080_v60 = vmul.f32 3.1415927, %v16119_v0  ;;  %v2960_v4 = vsel %vm2954_vm7, %v2957_v7, %v2959_v40 }
 0x28e   :  { %v2964_v3 = vsel %vm2954_vm7, %v2961_v54, %v2963_v33  ;;  %v2968_v8 = vsel %vm2954_vm7, %v2965_v57, %v2967_v43  ;;  %v13086_v58 = vshrl.u32 %v2829_v62, 5  ;;  %v2791_v49 = vshll.u32 %v13059_v55, 23 }
 0x28f   :  { %v13083_v10 = vmul.u32.u64.low %v13061_v13, %v2968_v8  ;;  %v13084_v30 = vmul.u32.u64.high %v13061_v13, %v2968_v8, %v13083_v10  ;;  %v13090_v20 = vmul.u32.u64.low %v13061_v13, %v2964_v3  ;;  %v13091_v25 = vmul.u32.u64.high %v13061_v13, %v2964_v3, %v13090_v20 }
 0x290   :  { %v2831_v27 = vand.u32 31, %v2829_v62  ;;  %v13096_v43 = vshll.u32 %v2825_v44, 8  ;;  %v9021_v57 = vadd.s32 4294967169, %v3133_v16  ;;  %v2976_v7 = vmul.u32 %v13061_v13, %v2960_v4 }
 0x291   :  { %vm2849_vm12 = vcmp.lt.s32.totalorder %v13086_v58, 1  ;;  %vm2851_vm8 = vcmp.lt.s32.totalorder %v13086_v58, 3  ;;  %vm2978_vm15 = vc.u32 %v13084_v30, %v13090_v20  ;;  %v2979_v44 = vadd.s32 1, %v13091_v25 }
 0x292   :  { %v2832_v40 = vsub.s32 32, %v2831_v27  ;;  %v2834_v38 = vshll.u32 %v15889_v23, %v2831_v27  ;;  %v2837_v62 = vshll.u32 %v15893_v50, %v2831_v27  ;;  %v2840_v18 = vshll.u32 %v15887_v9, %v2831_v27 }
 0x293   :  { %v2843_v13 = vshll.u32 %v15888_v51, %v2831_v27  ;;  %v16120_v5 = vand.u32 2147483647, %v12509_v35  ;;  %v2846_v21 = vshll.u32 %v15891_v48, %v2831_v27  ;;  %v16123_v33 = vand.u32 2147483647, %v12561_v59 }
 0x294   :  { %v2835_v17 = vshrl.u32 %v15893_v50, %v2832_v40  ;;  %v2838_v55 = vshrl.u32 %v15887_v9, %v2832_v40  ;;  %v2841_v37 = vshrl.u32 %v15888_v51, %v2832_v40  ;;  %v2844_v15 = vshrl.u32 %v15891_v48, %v2832_v40 }
 0x295   :  { %vm13112_vm10 = vcmp.le.f32.partialorder %v16120_v5, 0.7853982  ;;  %v2847_v36 = vshrl.u32 %v15892_v12, %v2832_v40  ;;  %vm13122_vm14 = vcmp.le.f32.partialorder %v16123_v33, 0.7853982  ;;  %v2980_v0 = vsel %vm2978_vm15, %v2979_v44, %v13091_v25 }
 0x296   :  { %v2836_v3 = vor.u32 %v2835_v17, %v2834_v38  ;;  %v2839_v8 = vor.u32 %v2838_v55, %v2837_v62  ;;  %v3139_v4 = vadd.s32 1, %v9021_v57  ;;  %v2981_v10 = vadd.s32 %v2980_v0, %v2976_v7 }
 0x297   :  { %v2842_v5 = vor.u32 %v2841_v37, %v2840_v18  ;;  %v2845_v54 = vor.u32 %v2844_v15, %v2843_v13  ;;  %v2848_v11 = vor.u32 %v2847_v36, %v2846_v21  ;;  %v2833_v19 = vshrl.u32 %v15889_v23, %v2832_v40 }
 0x298   :  { %vm2852_vm13 = vcmp.lt.s32.totalorder %v13086_v58, 4  ;;  %v2857_v27 = vsel %vm2849_vm12, %v2836_v3, %v2839_v8  ;;  %vm3140_vm7 = vcmp.gt.s32.totalorder %v3139_v4, 0  ;;  %v2982_v33 = vadd.s32 536870912, %v2981_v10 }
 0x299   :  { %v2854_v63 = vsel %vm2852_vm13, %v2842_v5, 2102212464  ;;  %v2858_v41 = vsel %vm2852_vm13, %v2845_v54, 920167782  ;;  %v2861_v25 = vsel %vm2849_vm12, %v2839_v8, %v2842_v5  ;;  %vm2850_vm15 = vcmp.lt.s32.totalorder %v13086_v58, 2 }
 0x29a   :  { %v2853_v57 = vsel %vm2849_vm12, %v2833_v19, %v2836_v3  ;;  %v2859_v7 = vsel %vm2851_vm8, %v2842_v5, %v2858_v41  ;;  %v2862_v40 = vsel %vm2852_vm13, %v2848_v11, 1326507024  ;;  %v13138_v38 = vshrl.u32 %v2982_v33, 30 }
 0x29b   :  { %v2860_v62 = vsel %vm2850_vm15, %v2857_v27, %v2859_v7  ;;  %v2863_v18 = vsel %vm2851_vm8, %v2845_v54, %v2862_v40  ;;  %v3141_v44 = vsel %vm3140_vm7, %v3139_v4, 0  ;;  %v2855_v17 = vsel %vm2851_vm8, %v2839_v8, %v2854_v63 }
 0x29c   :  { %v2864_v55 = vsel %vm2850_vm15, %v2861_v25, %v2863_v18  ;;  %v13149_v19 = vmul.u32.u64.low %v13096_v43, %v2860_v62  ;;  %v13150_v13 = vmul.u32.u64.high %v13096_v43, %v2860_v62, %v13149_v19  ;;  %v2792_v41 = vor.u32 4788187, %v2791_v49 }
 0x29d   :  { %v2984_v11 = vshll.u32 %v13138_v38, 30  ;;  %v13155_v37 = vmul.u32.u64.low %v13096_v43, %v2864_v55  ;;  %v13156_v15 = vmul.u32.u64.high %v13096_v43, %v2864_v55, %v13155_v37  ;;  %v13162_v63 = vsel %vm12849_vm5, %v12503_v22, %v13040_v29 }
 0x29e   :  { %v13167_v54 = vsel %vm13112_vm10, 0, %v13016_v45  ;;  %v2665_v49 = vadd.s32 %v12861_v52, %v12869_v61  ;;  %v3143_v21 = vand.u32 31, %v3141_v44  ;;  %v16127_v36 = vxor.u32 2147483648, %v13028_v42 }
 0x29f   :  { %16126 = vst [vmem:[#allocation17_spill] sm:$0xff] %v13167_v54  ;;  %v13179_v1 = vsel %vm13122_vm14, 0, %v13053_v14  ;;  %v13181_v29 = vsub.s32 %v2981_v10, %v2984_v11  ;;  %v2856_v45 = vsel %vm2850_vm15, %v2853_v57, %v2855_v17  ;;  %v16129_v3 = vsub.s32 32, %v13025_v28 }
 0x2a0   :  { %v2486_v0 = vsel %vm2403_vm11, %v16127_v36, %v13028_v42  ;;  %16128 = vst [vmem:[#allocation80_spill] sm:$0xff] %v13179_v1  ;;  %v16130_v61 = vshll.u32 %v13063_v39, 23  ;;  %v2875_v4 = vadd.s32 1, %v13150_v13  ;;  %v3144_v5 = vsub.s32 32, %v3143_v21  ;;  %v587_v36 = vpop.permute.xlu0 %586 }
 0x2a1   :  { %v2683_v52 = vshrl.u32 %v2665_v49, %v16129_v3  ;;  %v2793_v42 = vand.u32 2147483647, %v2792_v41  ;;  %v2795_v27 = vcvt.s32.f32 %v13077_v26  ;;  %v661_v14 = vsel %vm15802_vm0, %v13080_v60, %v12871_v47 }
 0x2a2   :  { %v2688_v8 = vor.u32 4788187, %v16130_v61  ;;  %v2987_v10 = vsub.s32 0, %v13181_v29  ;;  %v2682_v58 = vshll.u32 %v12958_v34, %v13025_v28  ;;  %v2872_v33 = vmul.u32 %v13096_v43, %v2856_v45 }
 0x2a3   :  { %vm2874_vm5 = vc.u32 %v13156_v15, %v13149_v19  ;;  %v15713_v39 = vand.u32 2147483647, %v13045_v32  ;;  %v2695_v25 = vsub.s32 4, %v12938_v46  ;;  %v694_v26 = vsel %vm671_vm1, %v661_v14, %v12953_v53 }
 0x2a4   :  { %v9014_v57 = vmin.u32 %v2987_v10, %v13181_v29  ;;  %v2876_v47 = vsel %vm2874_vm5, %v2875_v4, %v13150_v13  ;;  %vm2611_vm11 = vcmp.lt.s32.totalorder %v12677_v31, 0  ;;  %v2684_v60 = vor.u32 %v2683_v52, %v2682_v58 }
 0x2a5   :  { %v2689_v34 = vand.u32 2147483647, %v2688_v8  ;;  %v2877_v28 = vadd.s32 %v2876_v47, %v2872_v33  ;;  %v3147_v43 = vshrl.u32 %v15893_v50, %v3144_v5  ;;  %v3150_v40 = vshrl.u32 %v15887_v9, %v3144_v5 }
 0x2a6   :  { %v2989_v7 = vclz %v9014_v57  ;;  %v3153_v62 = vshrl.u32 %v15888_v51, %v3144_v5  ;;  %v3156_v18 = vshrl.u32 %v15891_v48, %v3144_v5  ;;  %v3136_v53 = vand.u32 8388607, %v15713_v39 }
 0x2a7   :  { %v2878_v17 = vadd.s32 536870912, %v2877_v28  ;;  %v13213_v55 = vshrl.u32 %v3141_v44, 5  ;;  %v3155_v13 = vshll.u32 %v15888_v51, %v3143_v21  ;;  %v3146_v41 = vshll.u32 %v15889_v23, %v3143_v21 }
 0x2a8   :  { %v3149_v11 = vshll.u32 %v15893_v50, %v3143_v21  ;;  %v3152_v37 = vshll.u32 %v15887_v9, %v3143_v21  ;;  %v3159_v49 = vshrl.u32 %v15892_v12, %v3144_v5  ;;  %v2691_v45 = vcvt.s32.f32 %v2684_v60 }
 0x2a9   :  { %v9015_v3 = vadd.s32 4294967294, %v2989_v7  ;;  %v13220_v52 = vshrl.u32 %v2878_v17, 30  ;;  %v3157_v61 = vor.u32 %v3156_v18, %v3155_v13  ;;  %v3148_v8 = vor.u32 %v3147_v43, %v3146_v41 }
 0x2aa   :  { %v3151_v4 = vor.u32 %v3150_v40, %v3149_v11  ;;  %v3154_v44 = vor.u32 %v3153_v62, %v3152_v37  ;;  %v3158_v14 = vshll.u32 %v15891_v48, %v3143_v21  ;;  %v2489_v10 = vsel %vm13112_vm10, %v12509_v35, %v2486_v0 }
 0x2ab   :  { %v2796_v58 = vmul.f32 %v2795_v27, %v2793_v42  ;;  %v2880_v33 = vshll.u32 %v13220_v52, 30  ;;  %vm16131_vm12 = vcmask 72704   ;;  %v2692_v47 = vmul.f32 %v2691_v45, %v2689_v34 }
 0x2ac   :  { %v13228_v57 = vsel %vm16131_vm12, %v694_v26, %v587_v36  ;;  %v3137_v60 = vor.u32 8388608, %v3136_v53  ;;  %v3160_v7 = vor.u32 %v3159_v49, %v3158_v14  ;;  %vm3164_vm8 = vcmp.lt.s32.totalorder %v13213_v55, 4 }
 0x2ad   :  { %16132 = vst [vmem:[#allocation81_spill] sm:$0xff] %v13228_v57  ;;  %v16133_v43 = vand.u32 2147483647, %v12677_v31  ;;  %vm9016_vm7 = vcmp.lt.s32.totalorder %v9015_v3, 0  ;;  %vm3161_vm10 = vcmp.lt.s32.totalorder %v13213_v55, 1  ;;  %vm3163_vm15 = vcmp.lt.s32.totalorder %v13213_v55, 3 }
 0x2ae   :  { %v3170_v24 = vsel %vm3164_vm8, %v3157_v61, 920167782  ;;  %v2696_v21 = vsel %vm2611_vm11, %v2695_v25, %v12938_v46  ;;  %v3169_v0 = vsel %vm3161_vm10, %v3148_v8, %v3151_v4  ;;  %v3028_v27 = vand.u32 2139095040, %v13228_v57 }
 0x2af   :  { %vm13233_vm13 = vcmp.le.f32.partialorder %v16133_v43, 0.7853982  ;;  %v3171_v42 = vsel %vm3163_vm15, %v3154_v44, %v3170_v24  ;;  %v2797_v26 = vxor.u32 2147483648, %v2796_v58  ;;  %v13249_v34 = vsub.s32 %v2877_v28, %v2880_v33 }
 0x2b0   :  { %v3166_v62 = vsel %vm3164_vm8, %v3154_v44, 2102212464  ;;  %v3173_v18 = vsel %vm3161_vm10, %v3151_v4, %v3154_v44  ;;  %v13255_v17 = vsel %vm9016_vm7, 0, %v9015_v3  ;;  %v3145_v46 = vshrl.u32 %v15889_v23, %v3144_v5 }
 0x2b1   :  { %vm3162_vm5 = vcmp.lt.s32.totalorder %v13213_v55, 2  ;;  %v3174_v25 = vsel %vm3164_vm8, %v3160_v7, 1326507024  ;;  %v2693_v53 = vxor.u32 2147483648, %v2692_v47  ;;  %v3177_v41 = vshll.u32 %v3137_v60, 8 }
 0x2b2   :  { %v3172_v28 = vsel %vm3162_vm5, %v3169_v0, %v3171_v42  ;;  %v3175_v13 = vsel %vm3163_vm15, %v3157_v61, %v3174_v25  ;;  %v3165_v11 = vsel %vm3161_vm10, %v3145_v46, %v3148_v8  ;;  %v3167_v37 = vsel %vm3163_vm15, %v3151_v4, %v3166_v62 }
 0x2b3   :  { %v3176_v5 = vsel %vm3162_vm5, %v3173_v18, %v3175_v13  ;;  %v3029_v49 = vshrl.u32 %v3028_v27, 23  ;;  %v2997_v36 = vsub.s32 4294967266, %v13255_v17  ;;  %v2883_v45 = vsub.s32 0, %v13249_v34 }
 0x2b4   :  { %v13273_v3 = vmul.u32.u64.low %v3177_v41, %v3176_v5  ;;  %v13274_v44 = vmul.u32.u64.high %v3177_v41, %v3176_v5, %v13273_v3  ;;  %9883 = vcosq.f32 %v13162_v63  ;;  %v13283_v4 = vand.u32 3, %v13167_v54 }
 0x2b5   :  { %v13277_v61 = vmul.u32.u64.low %v3177_v41, %v3172_v28  ;;  %v13278_v14 = vmul.u32.u64.high %v3177_v41, %v3172_v28, %v13277_v61  ;;  %v9017_v8 = vadd.s32 4294967169, %v3029_v49  ;;  %9885 = vsinq.f32 %v13162_v63 }
 0x2b6   :  { %v2798_v33 = vsel %vm2715_vm2, %v2797_v26, %v2796_v58  ;;  %v13288_v60 = vand.u32 3, %v13179_v1  ;;  %9887 = vcosq.f32 %v2489_v10  ;;  %v13292_v7 = vsel %vm13233_vm13, 0, %v2696_v21 }
 0x2b7   :  { %16137 = vst [vmem:[#allocation83_spill] sm:$0xff] %v13292_v7  ;;  %v3168_v43 = vsel %vm3162_vm5, %v3165_v11, %v3167_v37  ;;  %v3035_v24 = vadd.s32 1, %v9017_v8  ;;  %v2694_v63 = vsel %vm2611_vm11, %v2693_v53, %v2692_v47  ;;  %v2998_v0 = vadd.s32 127, %v2997_v36 }
 0x2b8   :  { %16136 = vst [vmem:[#allocation82_spill] sm:$0xff] %v13288_v60  ;;  %v9010_v42 = vmin.u32 %v2883_v45, %v13249_v34  ;;  %vm3186_vm2 = vc.u32 %v13274_v44, %v13277_v61  ;;  %9889 = vsinq.f32 %v2489_v10  ;;  %v2801_v58 = vsel %vm13122_vm14, %v12561_v59, %v2798_v33  ;;  %v16158_v60 = vld [vmem:[#allocation71_spill] sm:$0xff] }
 0x2b9   :  { %v3187_v21 = vadd.s32 1, %v13278_v14  ;;  %vm3036_vm12 = vcmp.gt.s32.totalorder %v3035_v24, 0  ;;  %v13306_v55 = vand.u32 3, %v13292_v7  ;;  %v3184_v27 = vmul.u32 %v3177_v41, %v3168_v43 }
 0x2ba   :  { %v15712_v47 = vand.u32 2147483647, %v13228_v57  ;;  %v3037_v26 = vsel %vm3036_vm12, %v3035_v24, 0  ;;  %v2697_v62 = vsel %vm13233_vm13, %v12677_v31, %v2694_v63  ;;  %v2993_v10 = vsub.s32 32, %v13255_v17 }
 0x2bb   :  { %16138 = vst [vmem:[#allocation84_spill] sm:$0xff] %v13306_v55  ;;  %v3188_v18 = vsel %vm3186_vm2, %v3187_v21, %v13278_v14  ;;  %v3039_v16 = vand.u32 31, %v3037_v26  ;;  %9891 = vcosq.f32 %v2801_v58  ;;  %v2999_v46 = vshll.u32 %v2998_v0, 23 }
 0x2bc   :  { %v2885_v25 = vclz %v9010_v42  ;;  %v3189_v53 = vadd.s32 %v3188_v18, %v3184_v27  ;;  %9893 = vsinq.f32 %v2801_v58  ;;  %vm2923_vm14 = vcmp.lt.s32.totalorder %v12992_v6, 0 }
 0x2bd   :  { %v2977_v28 = vadd.s32 %v13090_v20, %v13084_v30  ;;  %v3040_v13 = vsub.s32 32, %v3039_v16  ;;  %9895 = vcosq.f32 %v2697_v62  ;;  %v3007_v40 = vsub.s32 4, %v13138_v38 }
 0x2be   :  { %v3190_v41 = vadd.s32 536870912, %v3189_v53  ;;  %v3032_v11 = vand.u32 8388607, %v15712_v47  ;;  %v13320_v37 = vpop.eup %9883  ;;  %v2994_v5 = vshll.u32 %v13181_v29, %v13255_v17  ;;  %v13328_v30 = vor.u32 4788187, %v2999_v46 }
 0x2bf   :  { %16139 = vst [vmem:[#allocation85_spill] sm:$0xff] %v13320_v37  ;;  %v2995_v49 = vshrl.u32 %v2977_v28, %v2993_v10  ;;  %v3043_v36 = vshrl.u32 %v15893_v50, %v3040_v13  ;;  %v3046_v45 = vshrl.u32 %v15887_v9, %v3040_v13  ;;  %v13326_v3 = vpop.eup %9885  ;;  %v9011_v20 = vadd.s32 4294967294, %v2885_v25 }
 0x2c0   :  { %16140 = vst [vmem:[#allocation86_spill] sm:$0xff] %v13326_v3  ;;  %v13330_v14 = vshrl.u32 %v3190_v41, 30  ;;  %v3049_v8 = vshrl.u32 %v15888_v51, %v3040_v13  ;;  %v13333_v33 = vpop.eup %9887  ;;  %v3042_v43 = vshll.u32 %v15889_v23, %v3039_v16  ;;  %v3045_v29 = vshll.u32 %v15893_v50, %v3039_v16 }
 0x2c1   :  { %16141 = vst [vmem:[#allocation87_spill] sm:$0xff] %v13333_v33  ;;  %v3051_v17 = vshll.u32 %v15888_v51, %v3039_v16  ;;  %v3052_v24 = vshrl.u32 %v15891_v48, %v3040_v13  ;;  %v3033_v0 = vor.u32 8388608, %v3032_v11  ;;  %v3038_v42 = vshrl.u32 %v3037_v26, 5 }
 0x2c2   :  { %v3192_v63 = vshll.u32 %v13330_v14, 30  ;;  %v3048_v58 = vshll.u32 %v15887_v9, %v3039_v16  ;;  %v13341_v21 = vpop.eup %9889  ;;  %v16143_v27 = vand.u32 2147483647, %v12992_v6  ;;  %v3044_v18 = vor.u32 %v3043_v36, %v3042_v43 }
 0x2c3   :  { %16142 = vst [vmem:[#allocation88_spill] sm:$0xff] %v13341_v21  ;;  %v3047_v46 = vor.u32 %v3046_v45, %v3045_v29  ;;  %v3053_v25 = vor.u32 %v3052_v24, %v3051_v17  ;;  %v3055_v28 = vshrl.u32 %v15892_v12, %v3040_v13  ;;  %9897 = vsinq.f32 %v2697_v62 }
 0x2c4   :  { %vm13345_vm11 = vcmp.le.f32.partialorder %v16143_v27, 0.7853982  ;;  %v13350_v41 = vsub.s32 %v3189_v53, %v3192_v63  ;;  %v3050_v11 = vor.u32 %v3049_v8, %v3048_v58  ;;  %v3054_v26 = vshll.u32 %v15891_v48, %v3039_v16  ;;  %v13361_v53 = vpop.permute.xlu1 %336  ;;  %v13373_v63 = vpop.permute.xlu0 %334 }
 0x2c5   :  { %v2996_v47 = vor.u32 %v2995_v49, %v2994_v5  ;;  %v3008_v39 = vsel %vm2923_vm14, %v3007_v40, %v13138_v38  ;;  %vm2819_vm8 = vcmp.lt.s32.totalorder %v13000_v56, 0  ;;  %vm9012_vm13 = vcmp.lt.s32.totalorder %v9011_v20, 0  ;;  %v13358_v45 = vpop.eup %9891 }
 0x2c6   :  { %v2903_v36 = vsub.s32 4, %v13220_v52  ;;  %16146 = vst [vmem:[#allocation89_spill] sm:$0xff] %v13358_v45  ;;  %v3195_v43 = vsub.s32 0, %v13350_v41  ;;  %v3056_v62 = vor.u32 %v3055_v28, %v3054_v26  ;;  %vm3057_vm7 = vcmp.lt.s32.totalorder %v3038_v42, 1  ;;  %v13363_v16 = vpop.eup %9893 }
 0x2c7   :  { %vm3060_vm10 = vcmp.lt.s32.totalorder %v3038_v42, 4  ;;  %16147 = vst [vmem:[#allocation90_spill] sm:$0xff] %v13363_v16  ;;  %v3001_v5 = vand.u32 2147483647, %v13328_v30  ;;  %v3065_v38 = vsel %vm3057_vm7, %v3044_v18, %v3047_v46  ;;  %v3073_v49 = vshll.u32 %v3033_v0, 8  ;;  %v13368_v8 = vpop.eup %9895 }
 0x2c8   :  { %v3066_v40 = vsel %vm3060_vm10, %v3053_v25, 920167782  ;;  %16148 = vst [vmem:[#allocation91_spill] sm:$0xff] %v13368_v8  ;;  %v9022_v29 = vmin.u32 %v3195_v43, %v13350_v41  ;;  %v3041_v17 = vshrl.u32 %v15889_v23, %v3040_v13  ;;  %vm3059_vm15 = vcmp.lt.s32.totalorder %v3038_v42, 3  ;;  %v16166_v8 = vld [vmem:[#allocation48_spill] sm:$0xff] }
 0x2c9   :  { %v3062_v24 = vsel %vm3060_vm10, %v3050_v11, 2102212464  ;;  %v13376_v58 = vsel %vm9012_vm13, 0, %v9011_v20  ;;  %vm3058_vm5 = vcmp.lt.s32.totalorder %v3038_v42, 2  ;;  %v3067_v30 = vsel %vm3059_vm15, %v3050_v11, %v3066_v40  ;;  %v16155_v42 = vld [vmem:[#allocation73_spill] sm:$0xff] }
 0x2ca   :  { %v3069_v27 = vsel %vm3057_vm7, %v3047_v46, %v3050_v11  ;;  %v3197_v28 = vclz %v9022_v29  ;;  %v3061_v0 = vsel %vm3057_vm7, %v3041_v17, %v3044_v18  ;;  %v3068_v26 = vsel %vm3058_vm5, %v3065_v38, %v3067_v30  ;;  %v13392_v18 = vpop.permute.xlu1 %340 }
 0x2cb   :  { %v3070_v43 = vsel %vm3060_vm10, %v3056_v62, 1326507024  ;;  %v3063_v13 = vsel %vm3059_vm15, %v3047_v46, %v3062_v24  ;;  %v13382_v7 = vmul.u32.u64.low %v3073_v49, %v3068_v26  ;;  %v13383_v54 = vmul.u32.u64.high %v3073_v49, %v3068_v26, %v13382_v7  ;;  %v16151_v24 = vld [vmem:[#allocation20_spill] sm:$0xff] }
 0x2cc   :  { %v3071_v1 = vsel %vm3059_vm15, %v3053_v25, %v3070_v43  ;;  %v13388_v20 = vsel %vm13345_vm11, 0, %v3008_v39  ;;  %v2893_v40 = vsub.s32 4294967266, %v13376_v58  ;;  %v9023_v11 = vadd.s32 4294967294, %v3197_v28 }
 0x2cd   :  { %16149 = vst [vmem:[#allocation92_spill] sm:$0xff] %v13388_v20  ;;  %v3072_v29 = vsel %vm3058_vm5, %v3069_v27, %v3071_v1  ;;  %vm15733_vm2 = vweird.f32 %v11408_v2  ;;  %v3003_v62 = vcvt.s32.f32 %v2996_v47  ;;  %v2873_v46 = vadd.s32 %v13149_v19, %v13156_v15  ;;  %v13400_v17 = vpop.eup %9897  ;;  %v13411_v27 = vpop.permute.xlu0 %338  ;;  %v16152_v47 = vld [vmem:[#allocation74_spill] sm:$0xff] }
 0x2ce   :  { %v13397_v25 = vmul.u32.u64.low %v3073_v49, %v3072_v29  ;;  %v13398_v38 = vmul.u32.u64.high %v3073_v49, %v3072_v29, %v13397_v25  ;;  %16150 = vst [vmem:[#allocation93_spill] sm:$0xff] %v13400_v17  ;;  %v13405_v39 = vsel %vm2819_vm8, %v2903_v36, %v13220_v52  ;;  %v3064_v1 = vsel %vm3058_vm5, %v3061_v0, %v3063_v13  ;;  %v16153_v19 = vld [vmem:[#allocation42_spill] sm:$0xff]  ;;  %v16154_v52 = vld [vmem:[#allocation21_spill] sm:$0xff]  ;;  %v16156_v13 = vld [vmem:[#allocation72_spill] sm:$0xff] }
 0x2cf   :  { %v13409_v30 = vmul.f32 3.1415927, %v16151_v24  ;;  %vm15728_vm12 = vweird.f32 %v16153_v19  ;;  %v3004_v15 = vmul.f32 %v3003_v62, %v3001_v5  ;;  %v2889_v26 = vsub.s32 32, %v13376_v58  ;;  %v16157_v5 = vld [vmem:[#allocation8_spill] sm:$0xff]  ;;  %v13434_v25 = vpop.permute.xlu1 %464 }
 0x2d0   :  { %vm9024_vm13 = vcmp.lt.s32.totalorder %v9023_v11, 0  ;;  %v3083_v43 = vadd.s32 1, %v13383_v54  ;;  %v2894_v29 = vadd.s32 127, %v2893_v40  ;;  %v13418_v36 = vmul.f32 3.1415927, %v16154_v52  ;;  %v16172_v19 = vld [vmem:[#allocation28_spill] sm:$0xff] }
 0x2d1   :  { %v3185_v24 = vadd.s32 %v13277_v61, %v13274_v44  ;;  %v3080_v28 = vmul.u32 %v3073_v49, %v3064_v1  ;;  %vm3082_vm7 = vc.u32 %v13398_v38, %v13382_v7  ;;  %vm4984_vm10 = vcmp.eq.s32.totalorder %v16157_v5, 0  ;;  %v16160_v61 = vld [vmem:[#allocation66_spill] sm:$0xff] }
 0x2d2   :  { %v13427_v62 = vsel %vm9024_vm13, 0, %v9023_v11  ;;  %v3084_v40 = vsel %vm3082_vm7, %v3083_v43, %v13383_v54  ;;  %v15726_v52 = vxor.u32 2147483648, %v16158_v60  ;;  %v16159_v55 = vxor.u32 2147483648, %v16152_v47 }
 0x2d3   :  { %v2891_v45 = vshrl.u32 %v2873_v46, %v2889_v26  ;;  %v3085_v44 = vadd.s32 %v3084_v40, %v3080_v28  ;;  %vm4987_vm15 = vcmp.eq.s32.totalorder %v16157_v5, 2  ;;  %vm5087_vm5 = vcmp.eq.s32.totalorder %v16160_v61, 0  ;;  %v16163_v40 = vld [vmem:[#allocation5_spill] sm:$0xff] }
 0x2d4   :  { %v4986_v0 = vsel %vm4984_vm10, %v16155_v42, %v16159_v55  ;;  %v2895_v49 = vshll.u32 %v2894_v29, 23  ;;  %vm4983_vm13 = vcmp.lt.s32.totalorder %v16157_v5, 2  ;;  %v16161_v54 = vxor.u32 2147483648, %v16155_v42  ;;  %v13445_v55 = vpop.permute.xlu0 %462 }
 0x2d5   :  { %v16162_v1 = vxor.u32 2147483648, %v16156_v13  ;;  %v3205_v46 = vsub.s32 4294967266, %v13427_v62  ;;  %v3086_v28 = vadd.s32 536870912, %v3085_v44  ;;  %vm5090_vm7 = vcmp.eq.s32.totalorder %v16160_v61, 2 }
 0x2d6   :  { %v4989_v11 = vsel %vm4987_vm15, %v16161_v54, %v16152_v47  ;;  %vm15760_vm10 = vweird.f32 %v16163_v40  ;;  %v2890_v29 = vshll.u32 %v13249_v34, %v13376_v58  ;;  %vm5086_vm15 = vcmp.lt.s32.totalorder %v16160_v61, 2  ;;  %v16165_v47 = vld [vmem:[#allocation32_spill] sm:$0xff]  ;;  %v13465_v61 = vpop.permute.xlu1 %468 }
 0x2d7   :  { %v5089_v43 = vsel %vm5087_vm5, %v16158_v60, %v16162_v1  ;;  %v4990_v26 = vsel %vm4983_vm13, %v4986_v0, %v4989_v11  ;;  %v5092_v54 = vsel %vm5090_vm7, %v15726_v52, %v16156_v13  ;;  %v13458_v1 = vshrl.u32 %v3086_v28, 30  ;;  %v16164_v0 = vld [vmem:[#allocation33_spill] sm:$0xff]  ;;  %v16170_v11 = vld [vmem:[#allocation10_spill] sm:$0xff] }
 0x2d8   :  { %v4991_v5 = vsel %vm15733_vm2, nan, %v4990_v26  ;;  %v5093_v42 = vsel %vm5086_vm15, %v5089_v43, %v5092_v54  ;;  %vm15762_vm5 = vweird.f32 %v16166_v8  ;;  %v3005_v17 = vxor.u32 2147483648, %v3004_v15 }
 0x2d9   :  { %v2892_v34 = vor.u32 %v2891_v45, %v2890_v29  ;;  %v2896_v58 = vor.u32 4788187, %v2895_v49  ;;  %v5094_v26 = vsel %vm15728_vm12, nan, %v5093_v42  ;;  %v3201_v60 = vsub.s32 32, %v13427_v62  ;;  %v16171_v49 = vld [vmem:[#allocation75_spill] sm:$0xff]  ;;  %v13479_v42 = vpop.permute.xlu0 %466 }
 0x2da   :  { %v3206_v52 = vadd.s32 127, %v3205_v46  ;;  %v3088_v28 = vshll.u32 %v13458_v1, 30  ;;  %v9740_v43 = vpack.i.bf16 %v5094_v26, %v4991_v5  ;;  %v16167_v54 = vand.u32 2147483647, %v13000_v56 }
 0x2db   :  { %vm5190_vm7 = vcmp.eq.s32.totalorder %v16172_v19, 0  ;;  %vm5193_vm15 = vcmp.eq.s32.totalorder %v16172_v19, 2  ;;  %vm5189_vm12 = vcmp.lt.s32.totalorder %v16172_v19, 2  ;;  %v16173_v5 = vxor.u32 2147483648, %v16164_v0 }
 0x2dc   :  { %vm13471_vm13 = vcmp.le.f32.partialorder %v16167_v54, 0.7853982  ;;  %v13481_v46 = vsub.s32 %v3085_v44, %v3088_v28  ;;  %9741 = vrot.lane.b32.xlu0 %v9740_v43, %s10084_s0  ;;  %v16174_v54 = vxor.u32 2147483648, %v16165_v47  ;;  %v3006_v45 = vsel %vm2923_vm14, %v3005_v17, %v3004_v15  ;;  %v16175_v43 = vld [vmem:[#allocation70_spill] sm:$0xff]  ;;  %v593_v15 = vpop.permute.xlu1 %592 }
 0x2dd   :  { %v5192_v26 = vsel %vm5190_vm7, %v16165_v47, %v16173_v5  ;;  %v2897_v13 = vand.u32 2147483647, %v2896_v58  ;;  %v2899_v2 = vcvt.s32.f32 %v2892_v34  ;;  %vm3131_vm2 = vcmp.lt.s32.totalorder %v13045_v32, 0 }
 0x2de   :  { %v5195_v29 = vsel %vm5193_vm15, %v16174_v54, %v16164_v0  ;;  %v3207_v44 = vshll.u32 %v3206_v52, 23  ;;  %v3215_v28 = vsub.s32 4, %v13330_v14  ;;  %v3091_v19 = vsub.s32 0, %v13481_v46 }
 0x2df   :  { %v5196_v59 = vsel %vm5189_vm12, %v5192_v26, %v5195_v29  ;;  %vm5293_vm3 = vcmp.eq.s32.totalorder %v16175_v43, 0  ;;  %v3203_v5 = vshrl.u32 %v3185_v24, %v3201_v60  ;;  %v664_v54 = vsel %vm15802_vm0, %v13409_v30, %v13361_v53  ;;  %v591_v26 = vpop.permute.xlu0 %590 }
 0x2e0   :  { %v16176_v47 = vxor.u32 2147483648, %v16170_v11  ;;  %vm5296_vm14 = vcmp.eq.s32.totalorder %v16175_v43, 2  ;;  %v9018_v52 = vmin.u32 %v3091_v19, %v13481_v46  ;;  %v5197_v34 = vsel %vm15760_vm10, nan, %v5196_v59 }
 0x2e1   :  { %vm5292_vm12 = vcmp.lt.s32.totalorder %v16175_v43, 2  ;;  %v16177_v60 = vxor.u32 2147483648, %v16171_v49  ;;  %v16178_v53 = vand.u32 2147483647, %v13045_v32  ;;  %v663_v58 = vsel %vm15802_vm0, %v13418_v36, %v13373_v63 }
 0x2e2   :  { %v5295_v17 = vsel %vm5293_vm3, %v16171_v49, %v16176_v47  ;;  %v3202_v47 = vshll.u32 %v13350_v41, %v13427_v62  ;;  %v697_v59 = vsel %vm671_vm1, %v664_v54, %v13434_v25  ;;  %v3208_v19 = vor.u32 4788187, %v3207_v44 }
 0x2e3   :  { %v5298_v24 = vsel %vm5296_vm14, %v16177_v60, %v16170_v11  ;;  %vm13513_vm7 = vcmp.le.f32.partialorder %v16178_v53, 0.7853982  ;;  %v3093_v43 = vclz %v9018_v52  ;;  %vm16181_vm3 = vcmask 72704  }
 0x2e4   :  { %v5299_v29 = vsel %vm5292_vm12, %v5295_v17, %v5298_v24  ;;  %v13527_v53 = vsel %vm16181_vm3, %v697_v59, %v593_v15  ;;  %v696_v41 = vsel %vm671_vm1, %v663_v58, %v13445_v55  ;;  %v13536_v36 = vsel %vm13471_vm13, 0, %v13405_v39  ;;  %vm16183_vm15 = vmmov %vm16181_vm3  ;;  %v16184_v55 = vld [vmem:[#allocation22_spill] sm:$0xff] }
 0x2e5   :  { %v5300_v60 = vsel %vm15762_vm5, nan, %v5299_v29  ;;  %v15738_v62 = vand.u32 2147483647, %v13527_v53  ;;  %v3340_v63 = vand.u32 2139095040, %v13527_v53  ;;  %16182 = vst [vmem:[#allocation20_spill] sm:$0xff] %v13536_v36  ;;  %v3204_v25 = vor.u32 %v3203_v5, %v3202_v47  ;;  %vm16188_vm12 = vmmov %vm16181_vm3 }
 0x2e6   :  { %v9745_v40 = vpack.i.bf16 %v5300_v60, %v5197_v34  ;;  %v9019_v44 = vadd.s32 4294967294, %v3093_v43  ;;  %v13539_v54 = vsel %vm16183_vm15, %v696_v41, %v591_v26  ;;  %v3009_v17 = vsel %vm13345_vm11, %v12992_v6, %v3006_v45  ;;  %v597_v60 = vpop.permute.xlu1 %596 }
 0x2e7   :  { %v2900_v15 = vmul.f32 %v2899_v2, %v2897_v13  ;;  %v153_v52 = vmul.f32 3.1415927, %v16184_v55  ;;  %v3341_v34 = vshrl.u32 %v3340_v63, 23  ;;  %v3209_v24 = vand.u32 2147483647, %v3208_v19 }
 0x2e8   :  { %9746 = vrot.lane.b32.xlu1 %v9745_v40, %s10084_s0  ;;  %vm9020_vm14 = vcmp.lt.s32.totalorder %v9019_v44, 0  ;;  %v3344_v39 = vand.u32 8388607, %v15738_v62  ;;  %v3236_v5 = vand.u32 2139095040, %v13539_v54  ;;  %v3216_v47 = vsel %vm3131_vm2, %v3215_v28, %v13330_v14 }
 0x2e9   :  { %v13552_v58 = vsel %vm9020_vm14, 0, %v9019_v44  ;;  %v9029_v10 = vadd.s32 4294967169, %v3341_v34  ;;  %v15737_v2 = vand.u32 2147483647, %v13539_v54  ;;  %9899 = vcosq.f32 %v3009_v17 }
 0x2ea   :  { %v13556_v13 = vand.u32 3, %v13388_v20  ;;  %v13559_v40 = vand.u32 3, %v13536_v36  ;;  %v3211_v45 = vcvt.s32.f32 %v3204_v25  ;;  %9901 = vsinq.f32 %v3009_v17 }
 0x2eb   :  { %v2901_v59 = vxor.u32 2147483648, %v2900_v15  ;;  %v3347_v29 = vadd.s32 1, %v9029_v10  ;;  %v3237_v26 = vshrl.u32 %v3236_v5, 23  ;;  %v13565_v14 = vsel %vm13513_vm7, 0, %v3216_v47 }
 0x2ec   :  { %16185 = vst [vmem:[#allocation21_spill] sm:$0xff] %v13556_v13  ;;  %16186 = vst [vmem:[#allocation8_spill] sm:$0xff] %v13559_v40  ;;  %v13561_v19 = vmul.f32 %v3211_v45, %v3209_v24  ;;  %v3097_v28 = vsub.s32 32, %v13552_v58  ;;  %v3345_v43 = vor.u32 8388608, %v3344_v39  ;;  %v3101_v41 = vsub.s32 4294967266, %v13552_v58 }
 0x2ed   :  { %16187 = vst [vmem:[#allocation66_spill] sm:$0xff] %v13565_v14  ;;  %v666_v63 = vsel %vm15802_vm0, %v153_v52, %v13392_v18  ;;  %vm3348_vm11 = vcmp.gt.s32.totalorder %v3347_v29, 0  ;;  %v13573_v25 = vand.u32 8388607, %v15737_v2  ;;  %v3081_v44 = vadd.s32 %v13382_v7, %v13398_v38 }
 0x2ee   :  { %v699_v17 = vsel %vm671_vm1, %v666_v63, %v13465_v61  ;;  %v3349_v55 = vsel %vm3348_vm11, %v3347_v29, 0  ;;  %v9025_v34 = vadd.s32 4294967169, %v3237_v26  ;;  %v2902_v24 = vsel %vm2819_vm8, %v2901_v59, %v2900_v15 }
 0x2ef   :  { %v3111_v39 = vsub.s32 4, %v13458_v1  ;;  %v3351_v5 = vand.u32 31, %v3349_v55  ;;  %v13583_v18 = vsel %vm16188_vm12, %v699_v17, %v597_v60  ;;  %v3213_v52 = vxor.u32 2147483648, %v13561_v19 }
 0x2f0   :  { %16189 = vst [vmem:[#allocation28_spill] sm:$0xff] %v13583_v18  ;;  %v3098_v47 = vshll.u32 %v13481_v46, %v13552_v58  ;;  %v3099_v7 = vshrl.u32 %v3081_v44, %v3097_v28  ;;  %v13588_v38 = vshll.u32 %v3345_v43, 8  ;;  %v3102_v61 = vadd.s32 127, %v3101_v41 }
 0x2f1   :  { %v3350_v10 = vshrl.u32 %v3349_v55, 5  ;;  %v3352_v45 = vsub.s32 32, %v3351_v5  ;;  %v3241_v29 = vor.u32 8388608, %v13573_v25  ;;  %v3354_v15 = vshll.u32 %v15889_v23, %v3351_v5 }
 0x2f2   :  { %v3357_v59 = vshll.u32 %v15893_v50, %v3351_v5  ;;  %v3243_v26 = vadd.s32 1, %v9025_v34  ;;  %v3548_v60 = vand.u32 2139095040, %v13583_v18  ;;  %v3360_v46 = vshll.u32 %v15887_v9, %v3351_v5 }
 0x2f3   :  { %v3355_v63 = vshrl.u32 %v15893_v50, %v3352_v45  ;;  %v3358_v17 = vshrl.u32 %v15887_v9, %v3352_v45  ;;  %v3361_v58 = vshrl.u32 %v15888_v51, %v3352_v45  ;;  %v13598_v28 = vpop.eup %9899  ;;  %vm3027_vm8 = vcmp.lt.s32.totalorder %v13228_v57, 0 }
 0x2f4   :  { %16190 = vst [vmem:[#allocation70_spill] sm:$0xff] %v13598_v28  ;;  %v3363_v43 = vshll.u32 %v15888_v51, %v3351_v5  ;;  %v3364_v41 = vshrl.u32 %v15891_v48, %v3352_v45  ;;  %v3366_v25 = vshll.u32 %v15891_v48, %v3351_v5  ;;  %v3367_v44 = vshrl.u32 %v15892_v12, %v3352_v45  ;;  %v13605_v55 = vpop.eup %9901 }
 0x2f5   :  { %16191 = vst [vmem:[#allocation22_spill] sm:$0xff] %v13605_v55  ;;  %v3356_v34 = vor.u32 %v3355_v63, %v3354_v15  ;;  %v3359_v2 = vor.u32 %v3358_v17, %v3357_v59  ;;  %v3362_v62 = vor.u32 %v3361_v58, %v3360_v46  ;;  %vm3369_vm3 = vcmp.lt.s32.totalorder %v3350_v10, 1 }
 0x2f6   :  { %v3353_v36 = vshrl.u32 %v15889_v23, %v3352_v45  ;;  %v3365_v20 = vor.u32 %v3364_v41, %v3363_v43  ;;  %v3368_v8 = vor.u32 %v3367_v44, %v3366_v25  ;;  %vm3372_vm15 = vcmp.lt.s32.totalorder %v3350_v10, 4 }
 0x2f7   :  { %vm3371_vm14 = vcmp.lt.s32.totalorder %v3350_v10, 3  ;;  %v3374_v0 = vsel %vm3372_vm15, %v3362_v62, 2102212464  ;;  %v3377_v49 = vsel %vm3369_vm3, %v3356_v34, %v3359_v2  ;;  %v3381_v11 = vsel %vm3369_vm3, %v3359_v2, %v3362_v62 }
 0x2f8   :  { %v3373_v13 = vsel %vm3369_vm3, %v3353_v36, %v3356_v34  ;;  %v3375_v40 = vsel %vm3371_vm14, %v3359_v2, %v3374_v0  ;;  %v3378_v5 = vsel %vm3372_vm15, %v3365_v20, 920167782  ;;  %v3382_v28 = vsel %vm3372_vm15, %v3368_v8, 1326507024 }
 0x2f9   :  { %v13608_v6 = vor.u32 %v3099_v7, %v3098_v47  ;;  %vm3370_vm11 = vcmp.lt.s32.totalorder %v3350_v10, 2  ;;  %v3379_v15 = vsel %vm3371_vm14, %v3362_v62, %v3378_v5  ;;  %v3383_v59 = vsel %vm3371_vm14, %v3365_v20, %v3382_v28 }
 0x2fa   :  { %v3103_v63 = vshll.u32 %v3102_v61, 23  ;;  %v3380_v17 = vsel %vm3370_vm11, %v3377_v49, %v3379_v15  ;;  %v3384_v46 = vsel %vm3370_vm11, %v3381_v11, %v3383_v59  ;;  %v3549_v45 = vshrl.u32 %v3548_v60, 23 }
 0x2fb   :  { %v3376_v58 = vsel %vm3370_vm11, %v3373_v13, %v3375_v40  ;;  %v13611_v43 = vmul.u32.u64.low %v13588_v38, %v3384_v46  ;;  %v13612_v41 = vmul.u32.u64.high %v13588_v38, %v3384_v46, %v13611_v43  ;;  %vm3244_vm12 = vcmp.gt.s32.totalorder %v3243_v26, 0 }
 0x2fc   :  { %v13617_v0 = vsel %vm13471_vm13, %v13000_v56, %v2902_v24  ;;  %v13620_v8 = vmul.u32.u64.low %v13588_v38, %v3380_v17  ;;  %v13621_v36 = vmul.u32.u64.high %v13588_v38, %v3380_v17, %v13620_v8  ;;  %v3245_v20 = vsel %vm3244_vm12, %v3243_v26, 0 }
 0x2fd   :  { %v13627_v11 = vsel %vm3131_vm2, %v3213_v52, %v13561_v19  ;;  %v3112_v49 = vsel %vm3027_vm8, %v3111_v39, %v13458_v1  ;;  %v3247_v62 = vand.u32 31, %v3245_v20  ;;  %v15750_v16 = vand.u32 2147483647, %v13583_v18 }
 0x2fe   :  { %v3104_v2 = vor.u32 4788187, %v3103_v63  ;;  %v3107_v13 = vcvt.s32.f32 %v13608_v6  ;;  %v3392_v40 = vmul.u32 %v13588_v38, %v3376_v58  ;;  %v13635_v24 = vshll.u32 %v3241_v29, 8 }
 0x2ff   :  { %vm3394_vm13 = vc.u32 %v13612_v41, %v13620_v8  ;;  %v3246_v47 = vshrl.u32 %v3245_v20, 5  ;;  %v3248_v19 = vsub.s32 32, %v3247_v62  ;;  %v9037_v52 = vadd.s32 4294967169, %v3549_v45 }
 0x300   :  { %v3395_v7 = vadd.s32 1, %v13621_v36  ;;  %v3250_v1 = vshll.u32 %v15889_v23, %v3247_v62  ;;  %v3253_v39 = vshll.u32 %v15893_v50, %v3247_v62  ;;  %v3256_v61 = vshll.u32 %v15887_v9, %v3247_v62 }
 0x301   :  { %v3251_v6 = vshrl.u32 %v15893_v50, %v3248_v19  ;;  %v3254_v38 = vshrl.u32 %v15887_v9, %v3248_v19  ;;  %v3257_v10 = vshrl.u32 %v15888_v51, %v3248_v19  ;;  %v3259_v29 = vshll.u32 %v15888_v51, %v3247_v62 }
 0x302   :  { %v16192_v26 = vand.u32 2147483647, %v13228_v57  ;;  %v3396_v28 = vsel %vm3394_vm13, %v3395_v7, %v13621_v36  ;;  %v3260_v25 = vshrl.u32 %v15891_v48, %v3248_v19  ;;  %v3262_v44 = vshll.u32 %v15891_v48, %v3247_v62 }
 0x303   :  { %v3263_v34 = vshrl.u32 %v15892_v12, %v3248_v19  ;;  %v3397_v5 = vadd.s32 %v3396_v28, %v3392_v40  ;;  %v3252_v15 = vor.u32 %v3251_v6, %v3250_v1  ;;  %v3255_v59 = vor.u32 %v3254_v38, %v3253_v39 }
 0x304   :  { %vm13649_vm2 = vcmp.le.f32.partialorder %v16192_v26, 0.7853982  ;;  %v3258_v63 = vor.u32 %v3257_v10, %v3256_v61  ;;  %v3249_v17 = vshrl.u32 %v15889_v23, %v3248_v19  ;;  %v3261_v46 = vor.u32 %v3260_v25, %v3259_v29 }
 0x305   :  { %v3264_v45 = vor.u32 %v3263_v34, %v3262_v44  ;;  %v3555_v58 = vadd.s32 1, %v9037_v52  ;;  %v3398_v43 = vadd.s32 536870912, %v3397_v5  ;;  %vm3265_vm3 = vcmp.lt.s32.totalorder %v3246_v47, 1  ;;  %v16196_v34 = vld [vmem:[#allocation23_spill] sm:$0xff] }
 0x306   :  { %vm3267_vm15 = vcmp.lt.s32.totalorder %v3246_v47, 3  ;;  %vm3268_vm14 = vcmp.lt.s32.totalorder %v3246_v47, 4  ;;  %v3273_v20 = vsel %vm3265_vm3, %v3252_v15, %v3255_v59  ;;  %v3277_v62 = vsel %vm3265_vm3, %v3255_v59, %v3258_v63 }
 0x307   :  { %v3270_v36 = vsel %vm3268_vm14, %v3258_v63, 2102212464  ;;  %v3274_v7 = vsel %vm3268_vm14, %v3261_v46, 920167782  ;;  %v13660_v26 = vshrl.u32 %v3398_v43, 30  ;;  %vm3266_vm11 = vcmp.lt.s32.totalorder %v3246_v47, 2 }
 0x308   :  { %v3275_v40 = vsel %vm3267_vm15, %v3258_v63, %v3274_v7  ;;  %v3278_v1 = vsel %vm3268_vm14, %v3264_v45, 1326507024  ;;  %v3105_v19 = vand.u32 2147483647, %v3104_v2  ;;  %vm3556_vm12 = vcmp.gt.s32.totalorder %v3555_v58, 0 }
 0x309   :  { %v3276_v39 = vsel %vm3266_vm11, %v3273_v20, %v3275_v40  ;;  %v3279_v52 = vsel %vm3267_vm15, %v3261_v46, %v3278_v1  ;;  %v3400_v61 = vshll.u32 %v13660_v26, 30  ;;  %v3269_v6 = vsel %vm3265_vm3, %v3249_v17, %v3252_v15 }
 0x30a   :  { %v3271_v38 = vsel %vm3267_vm15, %v3255_v59, %v3270_v36  ;;  %v3280_v10 = vsel %vm3266_vm11, %v3277_v62, %v3279_v52  ;;  %v13674_v25 = vmul.u32.u64.low %v13635_v24, %v3276_v39  ;;  %v13675_v2 = vmul.u32.u64.high %v13635_v24, %v3276_v39, %v13674_v25 }
 0x30b   :  { %v13670_v29 = vmul.u32.u64.low %v13635_v24, %v3280_v10  ;;  %v13671_v28 = vmul.u32.u64.high %v13635_v24, %v3280_v10, %v13670_v29  ;;  %v13680_v44 = vsel %vm13649_vm2, 0, %v3112_v49  ;;  %v152_v63 = vmul.f32 3.1415927, %v16196_v34 }
 0x30c   :  { %16195 = vst [vmem:[#allocation94_spill] sm:$0xff] %v13680_v44  ;;  %v13683_v15 = vsub.s32 %v3397_v5, %v3400_v61  ;;  %v3557_v59 = vsel %vm3556_vm12, %v3555_v58, 0  ;;  %v3108_v17 = vmul.f32 %v3107_v13, %v3105_v19  ;;  %v3272_v46 = vsel %vm3266_vm11, %v3269_v6, %v3271_v38 }
 0x30d   :  { %v3552_v45 = vand.u32 8388607, %v15750_v16  ;;  %v3559_v43 = vand.u32 31, %v3557_v59  ;;  %9903 = vcosq.f32 %v13617_v0  ;;  %v3217_v49 = vsel %vm13513_vm7, %v13045_v32, %v13627_v11 }
 0x30e   :  { %v13694_v36 = vand.u32 3, %v13565_v14  ;;  %v3403_v5 = vsub.s32 0, %v13683_v15  ;;  %9905 = vsinq.f32 %v13617_v0  ;;  %vm3290_vm13 = vc.u32 %v13671_v28, %v13674_v25 }
 0x30f   :  { %v3291_v13 = vadd.s32 1, %v13675_v2  ;;  %v3560_v47 = vsub.s32 32, %v3559_v43  ;;  %v13702_v58 = vand.u32 3, %v13680_v44  ;;  %v665_v30 = vsel %vm15802_vm0, %v152_v63, %v13411_v27 }
 0x310   :  { %16197 = vst [vmem:[#allocation23_spill] sm:$0xff] %v13694_v36  ;;  %v9030_v11 = vmin.u32 %v3403_v5, %v13683_v15  ;;  %v3288_v20 = vmul.u32 %v13635_v24, %v3272_v46  ;;  %9907 = vcosq.f32 %v3217_v49  ;;  %v3109_v7 = vxor.u32 2147483648, %v3108_v17 }
 0x311   :  { %16198 = vst [vmem:[#allocation95_spill] sm:$0xff] %v13702_v58  ;;  %v3292_v0 = vsel %vm3290_vm13, %v3291_v13, %v13675_v2  ;;  %v3553_v62 = vor.u32 8388608, %v3552_v45  ;;  %v3563_v19 = vshrl.u32 %v15893_v50, %v3560_v47  ;;  %v3566_v39 = vshrl.u32 %v15887_v9, %v3560_v47 }
 0x312   :  { %v3405_v40 = vclz %v9030_v11  ;;  %v3293_v1 = vadd.s32 %v3292_v0, %v3288_v20  ;;  %v13711_v52 = vshrl.u32 %v3557_v59, 5  ;;  %v3569_v61 = vshrl.u32 %v15888_v51, %v3560_v47 }
 0x313   :  { %v3571_v27 = vshll.u32 %v15888_v51, %v3559_v43  ;;  %v3572_v6 = vshrl.u32 %v15891_v48, %v3560_v47  ;;  %v3562_v10 = vshll.u32 %v15889_v23, %v3559_v43  ;;  %v3565_v29 = vshll.u32 %v15893_v50, %v3559_v43 }
 0x314   :  { %v9031_v24 = vadd.s32 4294967294, %v3405_v40  ;;  %v3294_v38 = vadd.s32 536870912, %v3293_v1  ;;  %v3568_v2 = vshll.u32 %v15887_v9, %v3559_v43  ;;  %v3574_v63 = vshll.u32 %v15891_v48, %v3559_v43 }
 0x315   :  { %v3573_v34 = vor.u32 %v3572_v6, %v3571_v27  ;;  %v3575_v59 = vshrl.u32 %v15892_v12, %v3560_v47  ;;  %v3564_v45 = vor.u32 %v3563_v19, %v3562_v10  ;;  %v3567_v5 = vor.u32 %v3566_v39, %v3565_v29 }
 0x316   :  { %vm9032_vm7 = vcmp.lt.s32.totalorder %v9031_v24, 0  ;;  %v13721_v46 = vshrl.u32 %v3294_v38, 30  ;;  %v698_v13 = vsel %vm671_vm1, %v665_v30, %v13479_v42  ;;  %v3570_v20 = vor.u32 %v3569_v61, %v3568_v2 }
 0x317   :  { %v3408_v11 = vsel %vm9032_vm7, 0, %v9031_v24  ;;  %v3576_v0 = vor.u32 %v3575_v59, %v3574_v63  ;;  %v13725_v40 = vpop.eup %9903  ;;  %9909 = vsinq.f32 %v3217_v49  ;;  %vm3580_vm3 = vcmp.lt.s32.totalorder %v13711_v52, 4 }
 0x318   :  { %16199 = vst [vmem:[#allocation96_spill] sm:$0xff] %v13725_v40  ;;  %v3413_v16 = vsub.s32 4294967266, %v3408_v11  ;;  %v3296_v27 = vshll.u32 %v13721_v46, 30  ;;  %v13729_v43 = vpop.eup %9905  ;;  %v3110_v19 = vsel %vm3027_vm8, %v3109_v7, %v3108_v17  ;;  %vm3577_vm15 = vcmp.lt.s32.totalorder %v13711_v52, 1 }
 0x319   :  { %16200 = vst [vmem:[#allocation97_spill] sm:$0xff] %v13729_v43  ;;  %v3586_v42 = vsel %vm3580_vm3, %v3573_v34, 920167782  ;;  %v13736_v30 = vshll.u32 %v3553_v62, 8  ;;  %vm3579_vm14 = vcmp.lt.s32.totalorder %v13711_v52, 3  ;;  %v3585_v49 = vsel %vm3577_vm15, %v3564_v45, %v3567_v5 }
 0x31a   :  { %v3414_v39 = vadd.s32 127, %v3413_v16  ;;  %v13738_v61 = vsub.s32 %v3293_v1, %v3296_v27  ;;  %v13743_v6 = vpop.eup %9907  ;;  %v3409_v24 = vsub.s32 32, %v3408_v11  ;;  %v3587_v17 = vsel %vm3579_vm14, %v3570_v20, %v3586_v42  ;;  %v595_v16 = vpop.permute.xlu0 %594 }
 0x31b   :  { %16201 = vst [vmem:[#allocation98_spill] sm:$0xff] %v13743_v6  ;;  %v3589_v7 = vsel %vm3577_vm15, %v3567_v5, %v3570_v20  ;;  %v3590_v62 = vsel %vm3580_vm3, %v3576_v0, 1326507024  ;;  %v3393_v1 = vadd.s32 %v13620_v8, %v13612_v41  ;;  %v3561_v10 = vshrl.u32 %v15889_v23, %v3560_v47 }
 0x31c   :  { %v3299_v38 = vsub.s32 0, %v13738_v61  ;;  %vm3578_vm8 = vcmp.lt.s32.totalorder %v13711_v52, 2  ;;  %v3415_v29 = vshll.u32 %v3414_v39, 23  ;;  %v3582_v2 = vsel %vm3580_vm3, %v3570_v20, 2102212464 }
 0x31d   :  { %v3588_v63 = vsel %vm3578_vm8, %v3585_v49, %v3587_v17  ;;  %v3591_v59 = vsel %vm3579_vm14, %v3573_v34, %v3590_v62  ;;  %v3423_v0 = vsub.s32 4, %v13660_v26  ;;  %vm16202_vm11 = vcmask 72704  }
 0x31e   :  { %v9026_v41 = vmin.u32 %v3299_v38, %v13738_v61  ;;  %v3592_v8 = vsel %vm3578_vm8, %v3589_v7, %v3591_v59  ;;  %v13767_v47 = vsel %vm16202_vm11, %v698_v13, %v595_v16  ;;  %v3411_v27 = vshrl.u32 %v3393_v1, %v3409_v24  ;;  %v13867_v14 = vpop.permute.xlu0 %342 }
 0x31f   :  { %16203 = vst [vmem:[#allocation99_spill] sm:$0xff] %v13767_v47  ;;  %v3581_v20 = vsel %vm3577_vm15, %v3561_v10, %v3564_v45  ;;  %v13772_v42 = vmul.u32.u64.low %v13736_v30, %v3592_v8  ;;  %v13773_v39 = vmul.u32.u64.high %v13736_v30, %v3592_v8, %v13772_v42  ;;  %v3583_v34 = vsel %vm3579_vm14, %v3567_v5, %v3582_v2 }
 0x320   :  { %v3301_v49 = vclz %v9026_v41  ;;  %v13778_v17 = vmul.u32.u64.low %v13736_v30, %v3588_v63  ;;  %v13779_v62 = vmul.u32.u64.high %v13736_v30, %v3588_v63, %v13778_v17  ;;  %v3410_v7 = vshll.u32 %v13683_v15, %v3408_v11 }
 0x321   :  { %v3416_v13 = vor.u32 4788187, %v3415_v29  ;;  %v15751_v24 = vand.u32 2147483647, %v13767_v47  ;;  %v3444_v16 = vand.u32 2139095040, %v13767_v47  ;;  %v13784_v45 = vpop.eup %9909  ;;  %v3113_v1 = vsel %vm13649_vm2, %v13228_v57, %v3110_v19 }
 0x322   :  { %16204 = vst [vmem:[#allocation100_spill] sm:$0xff] %v13784_v45  ;;  %v16205_v38 = vand.u32 2147483647, %v13527_v53  ;;  %vm3339_vm13 = vcmp.lt.s32.totalorder %v13527_v53, 0  ;;  %v9027_v15 = vadd.s32 4294967294, %v3301_v49  ;;  %v3412_v11 = vor.u32 %v3411_v27, %v3410_v7 }
 0x323   :  { %v3424_v10 = vsel %vm3339_vm13, %v3423_v0, %v13660_v26  ;;  %v3584_v29 = vsel %vm3578_vm8, %v3581_v20, %v3583_v34  ;;  %v3445_v2 = vshrl.u32 %v3444_v16, 23  ;;  %v3319_v60 = vsub.s32 4, %v13721_v46  ;;  %v16212_v16 = vld [vmem:[#allocation2_spill] sm:$0xff] }
 0x324   :  { %vm13791_vm12 = vcmp.le.f32.partialorder %v16205_v38, 0.7853982  ;;  %vm9028_vm7 = vcmp.lt.s32.totalorder %v9027_v15, 0  ;;  %vm3602_vm2 = vc.u32 %v13773_v39, %v13778_v17  ;;  %v3603_v19 = vadd.s32 1, %v13779_v62 }
 0x325   :  { %v3417_v63 = vand.u32 2147483647, %v3416_v13  ;;  %v3304_v59 = vsel %vm9028_vm7, 0, %v9027_v15  ;;  %v9033_v41 = vadd.s32 4294967169, %v3445_v2  ;;  %v3448_v8 = vand.u32 8388607, %v15751_v24 }
 0x326   :  { %9911 = vcosq.f32 %v3113_v1  ;;  %v16208_v26 = vand.u32 2147483647, %v13539_v54  ;;  %vm3235_vm15 = vcmp.lt.s32.totalorder %v13539_v54, 0  ;;  %v3600_v0 = vmul.u32 %v13736_v30, %v3584_v29 }
 0x327   :  { %v3419_v27 = vcvt.s32.f32 %v3412_v11  ;;  %v3309_v20 = vsub.s32 4294967266, %v3304_v59  ;;  %v3604_v42 = vsel %vm3602_vm2, %v3603_v19, %v13779_v62  ;;  %v3451_v49 = vadd.s32 1, %v9033_v41  ;;  %v345_v11 = vpop.permute.xlu1 %344  ;;  %v16213_v19 = vld [vmem:[#allocation39_spill] sm:$0xff] }
 0x328   :  { %vm13808_vm3 = vcmp.le.f32.partialorder %v16208_v26, 0.7853982  ;;  %v13817_v34 = vsel %vm13791_vm12, 0, %v3424_v10  ;;  %v3320_v7 = vsel %vm3235_vm15, %v3319_v60, %v13721_v46  ;;  %v3605_v13 = vadd.s32 %v3604_v42, %v3600_v0 }
 0x329   :  { %16211 = vst [vmem:[#allocation101_spill] sm:$0xff] %v13817_v34  ;;  %v155_v38 = vmul.f32 3.1415927, %v16212_v16  ;;  %v13823_v15 = vmul.f32 %v3419_v27, %v3417_v63  ;;  %v3305_v2 = vsub.s32 32, %v3304_v59  ;;  %v3449_v30 = vor.u32 8388608, %v3448_v8 }
 0x32a   :  { %vm3452_vm14 = vcmp.gt.s32.totalorder %v3451_v49, 0  ;;  %9913 = vsinq.f32 %v3113_v1  ;;  %v3606_v62 = vadd.s32 536870912, %v3605_v13  ;;  %v13826_v41 = vmul.f32 3.1415927, %v16213_v19  ;;  %v16217_v19 = vld [vmem:[#allocation76_spill] sm:$0xff] }
 0x32b   :  { %v3453_v29 = vsel %vm3452_vm14, %v3451_v49, 0  ;;  %v13829_v10 = vand.u32 3, %v13817_v34  ;;  %v3289_v46 = vadd.s32 %v13674_v25, %v13671_v28  ;;  %v3310_v60 = vadd.s32 127, %v3309_v20  ;;  %v16216_v20 = vld [vmem:[#allocation77_spill] sm:$0xff] }
 0x32c   :  { %v3455_v26 = vand.u32 31, %v3453_v29  ;;  %v13835_v63 = vsel %vm13808_vm3, 0, %v3320_v7  ;;  %v13838_v8 = vadd.s32 %v13778_v17, %v13773_v39  ;;  %v13840_v1 = vshrl.u32 %v3606_v62, 30 }
 0x32d   :  { %16214 = vst [vmem:[#allocation2_spill] sm:$0xff] %v13829_v10  ;;  %16215 = vst [vmem:[#allocation39_spill] sm:$0xff] %v13835_v63  ;;  %v13843_v0 = vsel %vm15802_vm0, %v155_v38, %v345_v11  ;;  %v3307_v42 = vshrl.u32 %v3289_v46, %v3305_v2  ;;  %v13846_v16 = vshll.u32 %v3449_v30, 8  ;;  %v3306_v28 = vshll.u32 %v13738_v61, %v3304_v59 }
 0x32e   :  { %v3456_v49 = vsub.s32 32, %v3455_v26  ;;  %v3608_v25 = vshll.u32 %v13840_v1, 30  ;;  %v3311_v17 = vshll.u32 %v3310_v60, 23  ;;  %v3458_v30 = vshll.u32 %v15889_v23, %v3455_v26 }
 0x32f   :  { %v3464_v61 = vshll.u32 %v15887_v9, %v3455_v26  ;;  %v13862_v46 = vor.u32 %v3307_v42, %v3306_v28  ;;  %v3454_v27 = vshrl.u32 %v3453_v29, 5  ;;  %v3461_v60 = vshll.u32 %v15893_v50, %v3455_v26 }
 0x330   :  { %v3459_v62 = vshrl.u32 %v15893_v50, %v3456_v49  ;;  %v3462_v38 = vshrl.u32 %v15887_v9, %v3456_v49  ;;  %v3465_v11 = vshrl.u32 %v15888_v51, %v3456_v49  ;;  %v13855_v24 = vpop.eup %9911  ;;  %v13857_v2 = vsub.s32 %v3605_v13, %v3608_v25  ;;  %v16219_v13 = vld [vmem:[#allocation13_spill] sm:$0xff]  ;;  %v13888_v25 = vpop.permute.xlu0 %346 }
 0x331   :  { %16218 = vst [vmem:[#allocation102_spill] sm:$0xff] %v13855_v24  ;;  %v3468_v59 = vshrl.u32 %v15891_v48, %v3456_v49  ;;  %v3467_v39 = vshll.u32 %v15888_v51, %v3455_v26  ;;  %v3470_v58 = vshll.u32 %v15891_v48, %v3455_v26  ;;  %v3471_v42 = vshrl.u32 %v15892_v12, %v3456_v49  ;;  %v16222_v26 = vld [vmem:[#allocation7_spill] sm:$0xff] }
 0x332   :  { %v3611_v7 = vsub.s32 0, %v13857_v2  ;;  %v3460_v44 = vor.u32 %v3459_v62, %v3458_v30  ;;  %v3466_v34 = vor.u32 %v3465_v11, %v3464_v61  ;;  %v3463_v10 = vor.u32 %v3462_v38, %v3461_v60  ;;  %v16221_v62 = vld [vmem:[#allocation12_spill] sm:$0xff]  ;;  %v16224_v24 = vld [vmem:[#allocation59_spill] sm:$0xff] }
 0x333   :  { %v3469_v36 = vor.u32 %v3468_v59, %v3467_v39  ;;  %v13874_v29 = vor.u32 4788187, %v3311_v17  ;;  %v3457_v45 = vshrl.u32 %v15889_v23, %v3456_v49  ;;  %v3315_v30 = vcvt.s32.f32 %v13862_v46  ;;  %v13880_v39 = vpop.permute.xlu1 %348  ;;  %v16223_v11 = vld [vmem:[#allocation44_spill] sm:$0xff] }
 0x334   :  { %v13872_v28 = vpop.eup %9913  ;;  %v9038_v6 = vmin.u32 %v3611_v7, %v13857_v2  ;;  %v3472_v61 = vor.u32 %v3471_v42, %v3470_v58  ;;  %vm3473_vm8 = vcmp.lt.s32.totalorder %v3454_v27, 1  ;;  %vm3476_vm11 = vcmp.lt.s32.totalorder %v3454_v27, 4 }
 0x335   :  { %16220 = vst [vmem:[#allocation103_spill] sm:$0xff] %v13872_v28  ;;  %vm15777_vm7 = vweird.f32 %v16222_v26  ;;  %vm3475_vm2 = vcmp.lt.s32.totalorder %v3454_v27, 3  ;;  %v3477_v59 = vsel %vm3473_vm8, %v3457_v45, %v3460_v44  ;;  %v3478_v17 = vsel %vm3476_vm11, %v3466_v34, 2102212464 }
 0x336   :  { %v3613_v38 = vclz %v9038_v6  ;;  %v3479_v7 = vsel %vm3475_vm2, %v3463_v10, %v3478_v17  ;;  %v3481_v60 = vsel %vm3473_vm8, %v3460_v44, %v3463_v10  ;;  %v3482_v49 = vsel %vm3476_vm11, %v3469_v36, 920167782 }
 0x337   :  { %vm5395_vm14 = vcmp.lt.s32.totalorder %v16223_v11, 2  ;;  %vm3474_vm10 = vcmp.lt.s32.totalorder %v3454_v27, 2  ;;  %v3483_v58 = vsel %vm3475_vm2, %v3466_v34, %v3482_v49  ;;  %v3485_v42 = vsel %vm3473_vm8, %v3463_v10, %v3466_v34 }
 0x338   :  { %v9039_v46 = vadd.s32 4294967294, %v3613_v38  ;;  %vm15776_vm5 = vweird.f32 %v16224_v24  ;;  %v3480_v6 = vsel %vm3474_vm10, %v3477_v59, %v3479_v7  ;;  %v3484_v45 = vsel %vm3474_vm10, %v3481_v60, %v3483_v58  ;;  %v13903_v59 = vpop.permute.xlu1 %472 }
 0x339   :  { %v3486_v32 = vsel %vm3476_vm11, %v3472_v61, 1326507024  ;;  %vm5396_vm4 = vcmp.eq.s32.totalorder %v16223_v11, 0  ;;  %v13895_v17 = vmul.u32.u64.low %v13846_v16, %v3484_v45  ;;  %v13896_v38 = vmul.u32.u64.high %v13846_v16, %v3484_v45, %v13895_v17  ;;  %v16227_v45 = vld [vmem:[#allocation9_spill] sm:$0xff] }
 0x33a   :  { %vm9040_vm6 = vcmp.lt.s32.totalorder %v9039_v46, 0  ;;  %v3487_v44 = vsel %vm3475_vm2, %v3469_v36, %v3486_v32  ;;  %v16225_v10 = vxor.u32 2147483648, %v16216_v20  ;;  %vm5399_vm8 = vcmp.eq.s32.totalorder %v16223_v11, 2 }
 0x33b   :  { %v3616_v49 = vsel %vm9040_vm6, 0, %v9039_v46  ;;  %v3488_v34 = vsel %vm3474_vm10, %v3485_v42, %v3487_v44  ;;  %v3313_v61 = vand.u32 2147483647, %v13874_v29  ;;  %v16226_v32 = vxor.u32 2147483648, %v16217_v19 }
 0x33c   :  { %v5398_v28 = vsel %vm5396_vm4, %v16217_v19, %v16225_v10  ;;  %v3617_v7 = vsub.s32 32, %v3616_v49  ;;  %v3621_v27 = vsub.s32 4294967266, %v3616_v49  ;;  %v3496_v58 = vmul.u32 %v13846_v16, %v3480_v6  ;;  %v13920_v19 = vpop.permute.xlu0 %470 }
 0x33d   :  { %v5401_v36 = vsel %vm5399_vm8, %v16226_v32, %v16216_v20  ;;  %v13910_v60 = vmul.u32.u64.low %v13846_v16, %v3488_v34  ;;  %v13911_v46 = vmul.u32.u64.high %v13846_v16, %v3488_v34, %v13910_v60  ;;  %vm2285_vm6 = vweird.f32 %v16227_v45  ;;  %v16228_v32 = vld [vmem:[#allocation51_spill] sm:$0xff]  ;;  %v16229_v16 = vld [vmem:[#allocation68_spill] sm:$0xff]  ;;  %v16235_v20 = vld [vmem:[#allocation78_spill] sm:$0xff] }
 0x33e   :  { %v5402_v42 = vsel %vm5395_vm14, %v5398_v28, %v5401_v36  ;;  %v3618_v44 = vshll.u32 %v13857_v2, %v3616_v49  ;;  %v3619_v29 = vshrl.u32 %v13838_v8, %v3617_v7  ;;  %v3622_v10 = vadd.s32 127, %v3621_v27  ;;  %v16232_v27 = vld [vmem:[#allocation16_spill] sm:$0xff]  ;;  %v16236_v36 = vld [vmem:[#allocation34_spill] sm:$0xff] }
 0x33f   :  { %v3499_v57 = vadd.s32 1, %v13896_v38  ;;  %v5403_v34 = vsel %vm15777_vm7, nan, %v5402_v42  ;;  %vm5498_vm4 = vcmp.lt.s32.totalorder %v16228_v32, 2  ;;  %vm5499_vm10 = vcmp.eq.s32.totalorder %v16228_v32, 0  ;;  %v16233_v60 = vld [vmem:[#allocation56_spill] sm:$0xff] }
 0x340   :  { %vm5502_vm11 = vcmp.eq.s32.totalorder %v16228_v32, 2  ;;  %vm2389_vm2 = vweird.f32 %v16229_v16  ;;  %v3620_v28 = vor.u32 %v3619_v29, %v3618_v44  ;;  %v3623_v2 = vshll.u32 %v3622_v10, 23  ;;  %v13938_v32 = vpop.permute.xlu1 %476  ;;  %v13947_v42 = vpop.permute.xlu0 %474 }
 0x341   :  { %v16230_v8 = vxor.u32 2147483648, %v16219_v13  ;;  %v16231_v6 = vxor.u32 2147483648, %v16221_v62  ;;  %vm3498_vm14 = vc.u32 %v13911_v46, %v13895_v17  ;;  %v3316_v44 = vmul.f32 %v3315_v30, %v3313_v61 }
 0x342   :  { %v3624_v29 = vor.u32 4788187, %v3623_v2  ;;  %v3500_v10 = vsel %vm3498_vm14, %v3499_v57, %v13896_v38  ;;  %v15779_v55 = vxor.u32 2147483648, %v16235_v20  ;;  %vm5602_vm8 = vcmp.eq.s32.totalorder %v16236_v36, 0 }
 0x343   :  { %v5501_v11 = vsel %vm5499_vm10, %v16221_v62, %v16230_v8  ;;  %v5504_v49 = vsel %vm5502_vm11, %v16231_v6, %v16219_v13  ;;  %v3501_v26 = vadd.s32 %v3500_v10, %v3496_v58  ;;  %v16234_v6 = vld [vmem:[#allocation79_spill] sm:$0xff]  ;;  %vm3547_vm10 = vcmp.lt.s32.totalorder %v13583_v18, 0 }
 0x344   :  { %v5505_v7 = vsel %vm5498_vm4, %v5501_v11, %v5504_v49  ;;  %v15778_v13 = vxor.u32 2147483648, %v16234_v6  ;;  %v3625_v11 = vand.u32 2147483647, %v3624_v29  ;;  %v3627_v49 = vcvt.s32.f32 %v3620_v28  ;;  %v16239_v28 = vld [vmem:[#allocation24_spill] sm:$0xff]  ;;  %v601_v29 = vpop.permute.xlu1 %600 }
 0x345   :  { %v5506_v8 = vsel %vm15776_vm5, nan, %v5505_v7  ;;  %vm5605_vm4 = vcmp.eq.s32.totalorder %v16236_v36, 2  ;;  %v3502_v57 = vadd.s32 536870912, %v3501_v26  ;;  %vm5601_vm11 = vcmp.lt.s32.totalorder %v16236_v36, 2 }
 0x346   :  { %v9750_v62 = vpack.i.bf16 %v5506_v8, %v5403_v34  ;;  %v16237_v30 = vxor.u32 2147483648, %v16232_v27  ;;  %v16238_v61 = vxor.u32 2147483648, %v16233_v60  ;;  %vm5704_vm14 = vcmp.lt.s32.totalorder %v16239_v28, 2 }
 0x347   :  { %vm5705_vm5 = vcmp.eq.s32.totalorder %v16239_v28, 0  ;;  %vm5708_vm7 = vcmp.eq.s32.totalorder %v16239_v28, 2  ;;  %v3503_v2 = vshrl.u32 %v3502_v57, 30  ;;  %v16240_v10 = vxor.u32 2147483648, %v13823_v15  ;;  %v16244_v28 = vld [vmem:[#allocation40_spill] sm:$0xff] }
 0x348   :  { %9751 = vrot.lane.b32.xlu0 %v9750_v62, %s10084_s0  ;;  %v5604_v38 = vsel %vm5602_vm8, %v16233_v60, %v16237_v30  ;;  %v5607_v58 = vsel %vm5605_vm4, %v16238_v61, %v16232_v27  ;;  %v5707_v7 = vsel %vm5705_vm5, %v16235_v20, %v15778_v13  ;;  %v5710_v36 = vsel %vm5708_vm7, %v15779_v55, %v16234_v6 }
 0x349   :  { %v5608_v34 = vsel %vm5601_vm11, %v5604_v38, %v5607_v58  ;;  %v3422_v8 = vsel %vm3339_vm13, %v16240_v10, %v13823_v15  ;;  %v3317_v30 = vxor.u32 2147483648, %v3316_v44  ;;  %v3628_v57 = vmul.f32 %v3627_v49, %v3625_v11 }
 0x34a   :  { %v5609_v62 = vsel %vm2285_vm6, nan, %v5608_v34  ;;  %v5711_v38 = vsel %vm5704_vm14, %v5707_v7, %v5710_v36  ;;  %v16241_v61 = vand.u32 2147483647, %v13583_v18  ;;  %v3504_v34 = vshll.u32 %v3503_v2, 30  ;;  %v599_v36 = vpop.permute.xlu0 %598 }
 0x34b   :  { %v157_v13 = vmul.f32 3.1415927, %v16244_v28  ;;  %v701_v55 = vsel %vm671_vm1, %v13843_v0, %v13903_v59  ;;  %v5712_v45 = vsel %vm2389_vm2, nan, %v5711_v38  ;;  %v13987_v15 = vand.u32 3, %v13835_v63 }
 0x34c   :  { %vm13976_vm8 = vcmp.le.f32.partialorder %v16241_v61, 0.7853982  ;;  %v3631_v11 = vsub.s32 4, %v13840_v1  ;;  %v9755_v49 = vpack.i.bf16 %v5712_v45, %v5609_v62  ;;  %vm16246_vm5 = vcmask 72704   ;;  %v605_v61 = vpop.permute.xlu1 %604 }
 0x34d   :  { %16245 = vst [vmem:[#allocation44_spill] sm:$0xff] %v13987_v15  ;;  %v13991_v7 = vsel %vm16246_vm5, %v701_v55, %v601_v29  ;;  %v3425_v10 = vsel %vm13791_vm12, %v13527_v53, %v3422_v8  ;;  %vm3443_vm13 = vcmp.lt.s32.totalorder %v13767_v47, 0  ;;  %v13997_v0 = vsub.s32 %v3501_v26, %v3504_v34  ;;  %v16247_v8 = vld [vmem:[#allocation41_spill] sm:$0xff]  ;;  %vm16248_vm12 = vmmov %vm16246_vm5 }
 0x34e   :  { %v667_v59 = vsel %vm15802_vm0, %v13826_v41, %v13867_v14  ;;  %v15782_v38 = vand.u32 2147483647, %v13991_v7  ;;  %v3318_v45 = vsel %vm3235_vm15, %v3317_v30, %v3316_v44  ;;  %v3629_v55 = vxor.u32 2147483648, %v3628_v57  ;;  %9756 = vrot.lane.b32.xlu1 %v9755_v49, %s10084_s0  ;;  %vm16249_vm15 = vmmov %vm16246_vm5 }
 0x34f   :  { %v700_v5 = vsel %vm671_vm1, %v667_v59, %v13920_v19  ;;  %v3756_v62 = vand.u32 2139095040, %v13991_v7  ;;  %v3507_v26 = vsub.s32 0, %v13997_v0  ;;  %v670_v29 = vsel %vm15802_vm0, %v157_v13, %v13880_v39 }
 0x350   :  { %v14013_v14 = vmul.f32 3.1415927, %v16247_v8  ;;  %v14016_v41 = vsel %vm16248_vm12, %v700_v5, %v599_v36  ;;  %9915 = vcosq.f32 %v3425_v10  ;;  %v3632_v44 = vsel %vm3547_vm10, %v3631_v11, %v13840_v1 }
 0x351   :  { %v3757_v30 = vshrl.u32 %v3756_v62, 23  ;;  %v3760_v19 = vand.u32 8388607, %v15782_v38  ;;  %v14026_v13 = vsel %vm13808_vm3, %v13539_v54, %v3318_v45  ;;  %v9034_v39 = vmin.u32 %v3507_v26, %v13997_v0 }
 0x352   :  { %v3527_v34 = vsub.s32 4, %v3503_v2  ;;  %v703_v28 = vsel %vm671_vm1, %v670_v29, %v13938_v32  ;;  %v3630_v49 = vsel %vm3547_vm10, %v3629_v55, %v3628_v57  ;;  %v15781_v11 = vand.u32 2147483647, %v14016_v41 }
 0x353   :  { %v9045_v1 = vadd.s32 4294967169, %v3757_v30  ;;  %v3652_v36 = vand.u32 2139095040, %v14016_v41  ;;  %9917 = vsinq.f32 %v3425_v10  ;;  %v3509_v59 = vclz %v9034_v39 }
 0x354   :  { %v3761_v5 = vor.u32 8388608, %v3760_v19  ;;  %v14036_v52 = vsel %vm16249_vm15, %v703_v28, %v605_v61  ;;  %9919 = vcosq.f32 %v14026_v13  ;;  %v14041_v45 = vsel %vm13976_vm8, 0, %v3632_v44 }
 0x355   :  { %16250 = vst [vmem:[#allocation51_spill] sm:$0xff] %v14041_v45  ;;  %v3763_v32 = vadd.s32 1, %v9045_v1  ;;  %v3653_v62 = vshrl.u32 %v3652_v36, 23  ;;  %v14046_v57 = vsel %vm13976_vm8, %v13583_v18, %v3630_v49  ;;  %v3497_v10 = vadd.s32 %v13895_v17, %v13911_v46 }
 0x356   :  { %v9035_v55 = vadd.s32 4294967294, %v3509_v59  ;;  %v3964_v26 = vand.u32 2139095040, %v14036_v52  ;;  %v14053_v29 = vsel %vm3443_vm13, %v3527_v34, %v3503_v2  ;;  %v14057_v44 = vand.u32 8388607, %v15781_v11 }
 0x357   :  { %vm3764_vm3 = vcmp.gt.s32.totalorder %v3763_v32, 0  ;;  %v9041_v8 = vadd.s32 4294967169, %v3653_v62  ;;  %v14059_v30 = vshll.u32 %v3761_v5, 8  ;;  %v16253_v27 = vand.u32 2147483647, %v13767_v47 }
 0x358   :  { %vm9036_vm7 = vcmp.lt.s32.totalorder %v9035_v55, 0  ;;  %v3765_v58 = vsel %vm3764_vm3, %v3763_v32, 0  ;;  %v3965_v39 = vshrl.u32 %v3964_v26, 23  ;;  %9921 = vsinq.f32 %v14026_v13 }
 0x359   :  { %v3512_v17 = vsel %vm9036_vm7, 0, %v9035_v55  ;;  %v3766_v46 = vshrl.u32 %v3765_v58, 5  ;;  %v3767_v61 = vand.u32 31, %v3765_v58  ;;  %v3659_v49 = vadd.s32 1, %v9041_v8 }
 0x35a   :  { %v3513_v28 = vsub.s32 32, %v3512_v17  ;;  %v3514_v2 = vshll.u32 %v13997_v0, %v3512_v17  ;;  %v3517_v34 = vsub.s32 4294967266, %v3512_v17  ;;  %v14063_v1 = vpop.eup %9915  ;;  %vm14082_vm10 = vcmp.le.f32.partialorder %v16253_v27, 0.7853982 }
 0x35b   :  { %16251 = vst [vmem:[#allocation34_spill] sm:$0xff] %v14063_v1  ;;  %v3768_v36 = vsub.s32 32, %v3767_v61  ;;  %v3770_v59 = vshll.u32 %v15889_v23, %v3767_v61  ;;  %v3773_v32 = vshll.u32 %v15893_v50, %v3767_v61  ;;  %v3776_v5 = vshll.u32 %v15887_v9, %v3767_v61 }
 0x35c   :  { %v3515_v62 = vshrl.u32 %v3497_v10, %v3513_v28  ;;  %v3518_v11 = vadd.s32 127, %v3517_v34  ;;  %v3779_v55 = vshll.u32 %v15888_v51, %v3767_v61  ;;  %v3782_v26 = vshll.u32 %v15891_v48, %v3767_v61 }
 0x35d   :  { %v3769_v58 = vshrl.u32 %v15889_v23, %v3768_v36  ;;  %v3771_v0 = vshrl.u32 %v15893_v50, %v3768_v36  ;;  %v3774_v8 = vshrl.u32 %v15887_v9, %v3768_v36  ;;  %v3777_v17 = vshrl.u32 %v15888_v51, %v3768_v36  ;;  %v14074_v38 = vpop.eup %9917 }
 0x35e   :  { %16252 = vst [vmem:[#allocation24_spill] sm:$0xff] %v14074_v38  ;;  %v3516_v19 = vor.u32 %v3515_v62, %v3514_v2  ;;  %v3519_v63 = vshll.u32 %v3518_v11, 23  ;;  %v3780_v16 = vshrl.u32 %v15891_v48, %v3768_v36  ;;  %v3783_v10 = vshrl.u32 %v15892_v12, %v3768_v36  ;;  %v14078_v28 = vpop.eup %9919 }
 0x35f   :  { %v3772_v34 = vor.u32 %v3771_v0, %v3770_v59  ;;  %v3775_v61 = vor.u32 %v3774_v8, %v3773_v32  ;;  %v3778_v60 = vor.u32 %v3777_v17, %v3776_v5  ;;  %vm3785_vm4 = vcmp.lt.s32.totalorder %v3766_v46, 1 }
 0x360   :  { %v3520_v6 = vor.u32 4788187, %v3519_v63  ;;  %v3523_v24 = vcvt.s32.f32 %v3516_v19  ;;  %v3781_v2 = vor.u32 %v3780_v16, %v3779_v55  ;;  %v3784_v11 = vor.u32 %v3783_v10, %v3782_v26 }
 0x361   :  { %vm3786_vm11 = vcmp.lt.s32.totalorder %v3766_v46, 2  ;;  %vm3787_vm14 = vcmp.lt.s32.totalorder %v3766_v46, 3  ;;  %vm3788_vm8 = vcmp.lt.s32.totalorder %v3766_v46, 4  ;;  %v3789_v36 = vsel %vm3785_vm4, %v3769_v58, %v3772_v34 }
 0x362   :  { %v3521_v62 = vand.u32 2147483647, %v3520_v6  ;;  %v3790_v59 = vsel %vm3788_vm8, %v3778_v60, 2102212464  ;;  %v3793_v32 = vsel %vm3785_vm4, %v3772_v34, %v3775_v61  ;;  %v3794_v5 = vsel %vm3788_vm8, %v3781_v2, 920167782 }
 0x363   :  { %v3791_v0 = vsel %vm3787_vm14, %v3775_v61, %v3790_v59  ;;  %v3795_v8 = vsel %vm3787_vm14, %v3778_v60, %v3794_v5  ;;  %v3797_v27 = vsel %vm3785_vm4, %v3775_v61, %v3778_v60  ;;  %v3798_v17 = vsel %vm3788_vm8, %v3784_v11, 1326507024 }
 0x364   :  { %v3796_v63 = vsel %vm3786_vm11, %v3793_v32, %v3795_v8  ;;  %v3799_v19 = vsel %vm3787_vm14, %v3781_v2, %v3798_v17  ;;  %v3657_v16 = vor.u32 8388608, %v14057_v44  ;;  %v16256_v55 = vand.u32 2147483647, %v14036_v52 }
 0x365   :  { %v3524_v58 = vmul.f32 %v3523_v24, %v3521_v62  ;;  %v3800_v6 = vsel %vm3786_vm11, %v3797_v27, %v3799_v19  ;;  %v14097_v10 = vmul.u32.u64.low %v14059_v30, %v3796_v63  ;;  %v14098_v34 = vmul.u32.u64.high %v14059_v30, %v3796_v63, %v14097_v10 }
 0x366   :  { %v14093_v26 = vand.u32 8388607, %v16256_v55  ;;  %v3792_v60 = vsel %vm3786_vm11, %v3789_v36, %v3791_v0  ;;  %v14103_v61 = vmul.u32.u64.low %v14059_v30, %v3800_v6  ;;  %v14104_v11 = vmul.u32.u64.high %v14059_v30, %v3800_v6, %v14103_v61 }
 0x367   :  { %vm3660_vm5 = vcmp.gt.s32.totalorder %v3659_v49, 0  ;;  %v669_v24 = vsel %vm15802_vm0, %v14013_v14, %v13888_v25  ;;  %v9053_v2 = vadd.s32 4294967169, %v3965_v39  ;;  %9923 = vcosq.f32 %v14046_v57 }
 0x368   :  { %v3661_v44 = vsel %vm3660_vm5, %v3659_v49, 0  ;;  %v14112_v62 = vand.u32 3, %v14041_v45  ;;  %v14116_v46 = vsel %vm671_vm1, %v669_v24, %v13947_v42  ;;  %v14121_v13 = vsel %vm14082_vm10, 0, %v14053_v29 }
 0x369   :  { %v3663_v36 = vand.u32 31, %v3661_v44  ;;  %v3808_v59 = vmul.u32 %v14059_v30, %v3792_v60  ;;  %v3811_v25 = vadd.s32 1, %v14098_v34  ;;  %v14125_v14 = vshll.u32 %v3657_v16, 8 }
 0x36a   :  { %16257 = vst [vmem:[#allocation40_spill] sm:$0xff] %v14112_v62  ;;  %v3525_v39 = vxor.u32 2147483648, %v3524_v58  ;;  %vm3810_vm12 = vc.u32 %v14104_v11, %v14097_v10  ;;  %v3969_v42 = vor.u32 8388608, %v14093_v26  ;;  %v3662_v5 = vshrl.u32 %v3661_v44, 5 }
 0x36b   :  { %v3664_v49 = vsub.s32 32, %v3663_v36  ;;  %v3812_v32 = vsel %vm3810_vm12, %v3811_v25, %v14098_v34  ;;  %v3666_v0 = vshll.u32 %v15889_v23, %v3663_v36  ;;  %v3971_v29 = vadd.s32 1, %v9053_v2 }
 0x36c   :  { %v3813_v8 = vadd.s32 %v3812_v32, %v3808_v59  ;;  %v3669_v27 = vshll.u32 %v15893_v50, %v3663_v36  ;;  %v3672_v63 = vshll.u32 %v15887_v9, %v3663_v36  ;;  %v3675_v16 = vshll.u32 %v15888_v51, %v3663_v36  ;;  %v14144_v32 = vpop.eup %9921 }
 0x36d   :  { %v3667_v30 = vshrl.u32 %v15893_v50, %v3664_v49  ;;  %v3670_v17 = vshrl.u32 %v15887_v9, %v3664_v49  ;;  %v3673_v19 = vshrl.u32 %v15888_v51, %v3664_v49  ;;  %v3676_v55 = vshrl.u32 %v15891_v48, %v3664_v49 }
 0x36e   :  { %v3526_v26 = vsel %vm3443_vm13, %v3525_v39, %v3524_v58  ;;  %v3814_v6 = vadd.s32 536870912, %v3813_v8  ;;  %v3678_v44 = vshll.u32 %v15891_v48, %v3663_v36  ;;  %v3679_v2 = vshrl.u32 %v15892_v12, %v3664_v49 }
 0x36f   :  { %v3668_v34 = vor.u32 %v3667_v30, %v3666_v0  ;;  %v3671_v60 = vor.u32 %v3670_v17, %v3669_v27  ;;  %v3674_v61 = vor.u32 %v3673_v19, %v3672_v63  ;;  %v3677_v24 = vor.u32 %v3676_v55, %v3675_v16 }
 0x370   :  { %v3815_v59 = vshrl.u32 %v3814_v6, 30  ;;  %v3665_v25 = vshrl.u32 %v15889_v23, %v3664_v49  ;;  %vm3681_vm1 = vcmp.lt.s32.totalorder %v3662_v5, 1  ;;  %vm3972_vm15 = vcmp.gt.s32.totalorder %v3971_v29, 0 }
 0x371   :  { %v3680_v45 = vor.u32 %v3679_v2, %v3678_v44  ;;  %vm3682_vm3 = vcmp.lt.s32.totalorder %v3662_v5, 2  ;;  %vm3684_vm7 = vcmp.lt.s32.totalorder %v3662_v5, 4  ;;  %v3689_v58 = vsel %vm3681_vm1, %v3668_v34, %v3671_v60  ;;  %v14147_v39 = vpop.eup %9923 }
 0x372   :  { %16258 = vst [vmem:[#allocation41_spill] sm:$0xff] %v14147_v39  ;;  %v3816_v0 = vshll.u32 %v3815_v59, 30  ;;  %vm3683_vm13 = vcmp.lt.s32.totalorder %v3662_v5, 3  ;;  %v3686_v30 = vsel %vm3684_vm7, %v3674_v61, 2102212464  ;;  %v3839_v27 = vsub.s32 4, %v3815_v59 }
 0x373   :  { %v3690_v36 = vsel %vm3684_vm7, %v3677_v24, 920167782  ;;  %v3693_v63 = vsel %vm3681_vm1, %v3671_v60, %v3674_v61  ;;  %v3694_v49 = vsel %vm3684_vm7, %v3680_v45, 1326507024  ;;  %v3685_v16 = vsel %vm3681_vm1, %v3665_v25, %v3668_v34  ;;  %v603_v34 = vpop.permute.xlu0 %602 }
 0x374   :  { %v3691_v17 = vsel %vm3683_vm13, %v3674_v61, %v3690_v36  ;;  %v14150_v19 = vsub.s32 %v3813_v8, %v3816_v0  ;;  %v3695_v6 = vsel %vm3683_vm13, %v3677_v24, %v3694_v49  ;;  %v3687_v44 = vsel %vm3683_vm13, %v3671_v60, %v3686_v30 }
 0x375   :  { %v3692_v55 = vsel %vm3682_vm3, %v3689_v58, %v3691_v17  ;;  %v3696_v2 = vsel %vm3682_vm3, %v3693_v63, %v3695_v6  ;;  %9925 = vsinq.f32 %v14046_v57  ;;  %v14164_v45 = vsel %vm14082_vm10, %v13767_v47, %v3526_v26 }
 0x376   :  { %v14156_v62 = vmul.u32.u64.low %v14125_v14, %v3692_v55  ;;  %v14157_v39 = vmul.u32.u64.high %v14125_v14, %v3692_v55, %v14156_v62  ;;  %vm3755_vm4 = vcmp.lt.s32.totalorder %v13991_v7, 0  ;;  %v3819_v8 = vsub.s32 0, %v14150_v19 }
 0x377   :  { %v3840_v60 = vsel %vm3755_vm4, %v3839_v27, %v3815_v59  ;;  %v14171_v61 = vmul.u32.u64.low %v14125_v14, %v3696_v2  ;;  %v14172_v24 = vmul.u32.u64.high %v14125_v14, %v3696_v2, %v14171_v61  ;;  %v3973_v25 = vsel %vm3972_vm15, %v3971_v29, 0 }
 0x378   :  { %v16259_v57 = vand.u32 2147483647, %v13991_v7  ;;  %v9046_v26 = vmin.u32 %v3819_v8, %v14150_v19  ;;  %v3688_v58 = vsel %vm3682_vm3, %v3685_v16, %v3687_v44  ;;  %v3975_v0 = vand.u32 31, %v3973_v25 }
 0x379   :  { %9927 = vcosq.f32 %v14164_v45  ;;  %v3707_v59 = vadd.s32 1, %v14157_v39  ;;  %v14185_v30 = vshll.u32 %v3969_v42, 8  ;;  %vm16262_vm10 = vcmask 72704  }
 0x37a   :  { %vm14177_vm11 = vcmp.le.f32.partialorder %v16259_v57, 0.7853982  ;;  %v14189_v29 = vsel %vm16262_vm10, %v14116_v46, %v603_v34  ;;  %v3809_v36 = vadd.s32 %v14097_v10, %v14104_v11  ;;  %v3821_v27 = vclz %v9046_v26 }
 0x37b   :  { %v14195_v17 = vsel %vm14177_vm11, 0, %v3840_v60  ;;  %v3976_v5 = vsub.s32 32, %v3975_v0  ;;  %v3704_v63 = vmul.u32 %v14125_v14, %v3688_v58  ;;  %vm3706_vm14 = vc.u32 %v14172_v24, %v14156_v62 }
 0x37c   :  { %v14200_v42 = vshrl.u32 %v3973_v25, 5  ;;  %v3978_v49 = vshll.u32 %v15889_v23, %v3975_v0  ;;  %v9047_v46 = vadd.s32 4294967294, %v3821_v27  ;;  %v3708_v16 = vsel %vm3706_vm14, %v3707_v59, %v14157_v39 }
 0x37d   :  { %v3979_v10 = vshrl.u32 %v15893_v50, %v3976_v5  ;;  %v3981_v11 = vshll.u32 %v15893_v50, %v3975_v0  ;;  %vm3651_vm8 = vcmp.lt.s32.totalorder %v14016_v41, 0  ;;  %v3709_v55 = vadd.s32 %v3708_v16, %v3704_v63 }
 0x37e   :  { %v3982_v6 = vshrl.u32 %v15887_v9, %v3976_v5  ;;  %v3985_v14 = vshrl.u32 %v15888_v51, %v3976_v5  ;;  %v3988_v44 = vshrl.u32 %v15891_v48, %v3976_v5  ;;  %vm9048_vm5 = vcmp.lt.s32.totalorder %v9047_v46, 0 }
 0x37f   :  { %v3984_v2 = vshll.u32 %v15887_v9, %v3975_v0  ;;  %v3987_v8 = vshll.u32 %v15888_v51, %v3975_v0  ;;  %v3991_v39 = vshrl.u32 %v15892_v12, %v3976_v5  ;;  %v3824_v34 = vsel %vm9048_vm5, 0, %v9047_v46  ;;  %v14214_v57 = vpop.eup %9925 }
 0x380   :  { %v3710_v60 = vadd.s32 536870912, %v3709_v55  ;;  %v3980_v61 = vor.u32 %v3979_v10, %v3978_v49  ;;  %v3990_v25 = vshll.u32 %v15891_v48, %v3975_v0  ;;  %16263 = vst [vmem:[#allocation104_spill] sm:$0xff] %v14214_v57  ;;  %v3825_v26 = vsub.s32 32, %v3824_v34 }
 0x381   :  { %v3829_v58 = vsub.s32 4294967266, %v3824_v34  ;;  %v16264_v59 = vand.u32 2147483647, %v14016_v41  ;;  %v3983_v63 = vor.u32 %v3982_v6, %v3981_v11  ;;  %v3986_v16 = vor.u32 %v3985_v14, %v3984_v2 }
 0x382   :  { %v3711_v18 = vshrl.u32 %v3710_v60, 30  ;;  %v3989_v15 = vor.u32 %v3988_v44, %v3987_v8  ;;  %v15801_v46 = vand.u32 2147483647, %v14189_v29  ;;  %v3860_v49 = vand.u32 2139095040, %v14189_v29 }
 0x383   :  { %vm14218_vm12 = vcmp.le.f32.partialorder %v16264_v59, 0.7853982  ;;  %v3826_v0 = vshll.u32 %v14150_v19, %v3824_v34  ;;  %v3827_v10 = vshrl.u32 %v3809_v36, %v3825_v26  ;;  %v3830_v57 = vadd.s32 127, %v3829_v58  ;;  %v14225_v38 = vpop.eup %9927 }
 0x384   :  { %v3992_v1 = vor.u32 %v3991_v39, %v3990_v25  ;;  %v3712_v47 = vshll.u32 %v3711_v18, 30  ;;  %v3735_v59 = vsub.s32 4, %v3711_v18  ;;  %vm3993_vm1 = vcmp.lt.s32.totalorder %v14200_v42, 1 }
 0x385   :  { %vm3996_vm15 = vcmp.lt.s32.totalorder %v14200_v42, 4  ;;  %v3828_v11 = vor.u32 %v3827_v10, %v3826_v0  ;;  %v3831_v6 = vshll.u32 %v3830_v57, 23  ;;  %v4001_v44 = vsel %vm3993_vm1, %v3980_v61, %v3983_v63 }
 0x386   :  { %v3998_v14 = vsel %vm3996_vm15, %v3986_v16, 2102212464  ;;  %v14233_v19 = vsub.s32 %v3709_v55, %v3712_v47  ;;  %v3977_v36 = vshrl.u32 %v15889_v23, %v3976_v5  ;;  %vm3995_vm3 = vcmp.lt.s32.totalorder %v14200_v42, 3 }
 0x387   :  { %v4002_v2 = vsel %vm3996_vm15, %v3989_v15, 920167782  ;;  %v3832_v8 = vor.u32 4788187, %v3831_v6  ;;  %v3736_v39 = vsel %vm3651_vm8, %v3735_v59, %v3711_v18  ;;  %vm3994_vm7 = vcmp.lt.s32.totalorder %v14200_v42, 2 }
 0x388   :  { %v4003_v34 = vsel %vm3995_vm3, %v3986_v16, %v4002_v2  ;;  %v3715_v60 = vsub.s32 0, %v14233_v19  ;;  %v3997_v47 = vsel %vm3993_vm1, %v3977_v36, %v3980_v61  ;;  %v3999_v5 = vsel %vm3995_vm3, %v3983_v63, %v3998_v14 }
 0x389   :  { %v4004_v55 = vsel %vm3994_vm7, %v4001_v44, %v4003_v34  ;;  %v3833_v25 = vand.u32 2147483647, %v3832_v8  ;;  %v3835_v57 = vcvt.s32.f32 %v3828_v11  ;;  %v4005_v18 = vsel %vm3993_vm1, %v3983_v63, %v3986_v16 }
 0x38a   :  { %v4006_v26 = vsel %vm3996_vm15, %v3992_v1, 1326507024  ;;  %v9042_v58 = vmin.u32 %v3715_v60, %v14233_v19  ;;  %v14258_v0 = vsel %vm14218_vm12, 0, %v3736_v39  ;;  %v3861_v10 = vshrl.u32 %v3860_v49, 23 }
 0x38b   :  { %v4007_v61 = vsel %vm3995_vm3, %v3989_v15, %v4006_v26  ;;  %v3836_v59 = vmul.f32 %v3835_v57, %v3833_v25  ;;  %v14265_v6 = vmul.u32.u64.low %v14185_v30, %v4004_v55  ;;  %v14266_v63 = vmul.u32.u64.high %v14185_v30, %v4004_v55, %v14265_v6 }
 0x38c   :  { %v4008_v11 = vsel %vm3994_vm7, %v4005_v18, %v4007_v61  ;;  %v3717_v16 = vclz %v9042_v58  ;;  %v9049_v44 = vadd.s32 4294967169, %v3861_v10  ;;  %9929 = vsinq.f32 %v14164_v45 }
 0x38d   :  { %v14269_v1 = vmul.u32.u64.low %v14185_v30, %v4008_v11  ;;  %v14270_v14 = vmul.u32.u64.high %v14185_v30, %v4008_v11, %v14269_v1  ;;  %v14274_v36 = vand.u32 3, %v14121_v13  ;;  %v3837_v15 = vxor.u32 2147483648, %v3836_v59 }
 0x38e   :  { %v4000_v49 = vsel %vm3994_vm7, %v3997_v47, %v3999_v5  ;;  %v14279_v2 = vand.u32 3, %v14195_v17  ;;  %v9043_v8 = vadd.s32 4294967294, %v3717_v16  ;;  %v3864_v39 = vand.u32 8388607, %v15801_v46 }
 0x38f   :  { %v3867_v34 = vadd.s32 1, %v9049_v44  ;;  %v3838_v60 = vsel %vm3755_vm4, %v3837_v15, %v3836_v59  ;;  %v3705_v45 = vadd.s32 %v14156_v62, %v14172_v24  ;;  %v14288_v55 = vand.u32 3, %v14258_v0 }
 0x390   :  { %v4019_v42 = vadd.s32 1, %v14266_v63  ;;  %v3841_v47 = vsel %vm14177_vm11, %v13991_v7, %v3838_v60  ;;  %vm9044_vm13 = vcmp.lt.s32.totalorder %v9043_v8, 0  ;;  %v4016_v5 = vmul.u32 %v14185_v30, %v4000_v49 }
 0x391   :  { %vm4018_vm10 = vc.u32 %v14270_v14, %v14265_v6  ;;  %v3720_v25 = vsel %vm9044_vm13, 0, %v9043_v8  ;;  %vm3868_vm4 = vcmp.gt.s32.totalorder %v3867_v34, 0  ;;  %v15811_v62 = vxor.u32 2147483648, %v13341_v21 }
 0x392   :  { %v4020_v57 = vsel %vm4018_vm10, %v4019_v42, %v14266_v63  ;;  %v3721_v24 = vsub.s32 32, %v3720_v25  ;;  %v3725_v18 = vsub.s32 4294967266, %v3720_v25  ;;  %vm3963_vm14 = vcmp.lt.s32.totalorder %v14036_v52, 0 }
 0x393   :  { %v3865_v26 = vor.u32 8388608, %v3864_v39  ;;  %v15807_v58 = vxor.u32 2147483648, %v13333_v33  ;;  %9931 = vcosq.f32 %v3841_v47  ;;  %v4021_v20 = vadd.s32 %v4020_v57, %v4016_v5 }
 0x394   :  { %v3869_v61 = vsel %vm3868_vm4, %v3867_v34, 0  ;;  %v3722_v10 = vshll.u32 %v14233_v19, %v3720_v25  ;;  %v3723_v59 = vshrl.u32 %v3705_v45, %v3721_v24  ;;  %v3726_v11 = vadd.s32 127, %v3725_v18 }
 0x395   :  { %v16267_v63 = vand.u32 2147483647, %v14036_v52  ;;  %v3871_v1 = vand.u32 31, %v3869_v61  ;;  %9933 = vsinq.f32 %v3841_v47  ;;  %v14309_v44 = vadd.s32 %v14265_v6, %v14270_v14 }
 0x396   :  { %v4022_v15 = vadd.s32 536870912, %v4021_v20  ;;  %v3724_v8 = vor.u32 %v3723_v59, %v3722_v10  ;;  %v3727_v39 = vshll.u32 %v3726_v11, 23  ;;  %v14312_v19 = vshll.u32 %v3865_v26, 8  ;;  %v14314_v60 = vpop.eup %9929 }
 0x397   :  { %vm14304_vm11 = vcmp.le.f32.partialorder %v16267_v63, 0.7853982  ;;  %v3872_v34 = vsub.s32 32, %v3871_v1  ;;  %v14316_v42 = vshrl.u32 %v3869_v61, 5  ;;  %v3874_v5 = vshll.u32 %v15889_v23, %v3871_v1 }
 0x398   :  { %v4023_v45 = vshrl.u32 %v4022_v15, 30  ;;  %v3877_v47 = vshll.u32 %v15893_v50, %v3871_v1  ;;  %v3728_v25 = vor.u32 4788187, %v3727_v39  ;;  %v3880_v14 = vshll.u32 %v15887_v9, %v3871_v1 }
 0x399   :  { %v3875_v6 = vshrl.u32 %v15893_v50, %v3872_v34  ;;  %v3883_v57 = vshll.u32 %v15888_v51, %v3871_v1  ;;  %v3878_v26 = vshrl.u32 %v15887_v9, %v3872_v34  ;;  %v3881_v10 = vshrl.u32 %v15888_v51, %v3872_v34 }
 0x39a   :  { %v4024_v24 = vshll.u32 %v4023_v45, 30  ;;  %v4047_v18 = vsub.s32 4, %v4023_v45  ;;  %v3729_v59 = vand.u32 2147483647, %v3728_v25  ;;  %v3731_v61 = vcvt.s32.f32 %v3724_v8 }
 0x39b   :  { %v3876_v11 = vor.u32 %v3875_v6, %v3874_v5  ;;  %v3884_v63 = vshrl.u32 %v15891_v48, %v3872_v34  ;;  %v3879_v39 = vor.u32 %v3878_v26, %v3877_v47  ;;  %v3886_v46 = vshll.u32 %v15891_v48, %v3871_v1 }
 0x39c   :  { %v14326_v15 = vsub.s32 %v4021_v20, %v4024_v24  ;;  %v4048_v50 = vsel %vm3963_vm14, %v4047_v18, %v4023_v45  ;;  %vm5808_vm5 = vcmp.eq.s32.totalorder %v13283_v4, 0  ;;  %v3732_v49 = vmul.f32 %v3731_v61, %v3729_v59 }
 0x39d   :  { %v3882_v30 = vor.u32 %v3881_v10, %v3880_v14  ;;  %v3885_v9 = vor.u32 %v3884_v63, %v3883_v57  ;;  %v3887_v51 = vshrl.u32 %v15892_v12, %v3872_v34  ;;  %v14333_v25 = vpop.eup %9931  ;;  %v14338_v20 = vsel %vm14304_vm11, 0, %v4048_v50  ;;  %v16270_v10 = vld [vmem:[#allocation60_spill] sm:$0xff] }
 0x39e   :  { %v4027_v8 = vsub.s32 0, %v14326_v15  ;;  %v3873_v45 = vshrl.u32 %v15889_v23, %v3872_v34  ;;  %vm5807_vm1 = vcmp.lt.s32.totalorder %v13283_v4, 2  ;;  %vm5811_vm15 = vcmp.eq.s32.totalorder %v13283_v4, 2  ;;  %v16272_v4 = vld [vmem:[#allocation49_spill] sm:$0xff] }
 0x39f   :  { %v3733_v48 = vxor.u32 2147483648, %v3732_v49  ;;  %v3888_v1 = vor.u32 %v3887_v51, %v3886_v46  ;;  %vm3889_vm3 = vcmp.lt.s32.totalorder %v14316_v42, 1  ;;  %vm3890_vm7 = vcmp.lt.s32.totalorder %v14316_v42, 2  ;;  %v14345_v12 = vpop.eup %9933 }
 0x3a0   :  { %vm15812_vm13 = vweird.f32 %v12509_v35  ;;  %v9054_v5 = vmin.u32 %v4027_v8, %v14326_v15  ;;  %vm3891_vm10 = vcmp.lt.s32.totalorder %v14316_v42, 3  ;;  %vm3892_vm4 = vcmp.lt.s32.totalorder %v14316_v42, 4 }
 0x3a1   :  { %v3893_v23 = vsel %vm3889_vm3, %v3873_v45, %v3876_v11  ;;  %v3734_v46 = vsel %vm3651_vm8, %v3733_v48, %v3732_v49  ;;  %v3894_v34 = vsel %vm3892_vm4, %v3882_v30, 2102212464  ;;  %v3897_v47 = vsel %vm3889_vm3, %v3876_v11, %v3879_v39 }
 0x3a2   :  { %v3898_v6 = vsel %vm3892_vm4, %v3885_v9, 920167782  ;;  %v14364_v14 = vsel %vm14218_vm12, %v14016_v41, %v3734_v46  ;;  %v4029_v57 = vclz %v9054_v5  ;;  %v3895_v24 = vsel %vm3891_vm10, %v3879_v39, %v3894_v34 }
 0x3a3   :  { %v3899_v49 = vsel %vm3891_vm10, %v3882_v30, %v3898_v6  ;;  %vm15803_vm8 = vweird.f32 %v12503_v22  ;;  %v3896_v18 = vsel %vm3890_vm7, %v3893_v23, %v3895_v24  ;;  %v3901_v27 = vsel %vm3889_vm3, %v3879_v39, %v3882_v30 }
 0x3a4   :  { %v3900_v26 = vsel %vm3890_vm7, %v3897_v47, %v3899_v49  ;;  %vm5910_vm12 = vcmp.lt.s32.totalorder %v16270_v10, 2  ;;  %9935 = vcosq.f32 %v14364_v14  ;;  %v9055_v59 = vadd.s32 4294967294, %v4029_v57 }
 0x3a5   :  { %v14380_v61 = vand.u32 3, %v14338_v20  ;;  %v3902_v11 = vsel %vm3892_vm4, %v3888_v1, 1326507024  ;;  %v14387_v50 = vmul.u32.u64.low %v14312_v19, %v3900_v26  ;;  %v14388_v51 = vmul.u32.u64.high %v14312_v19, %v3900_v26, %v14387_v50 }
 0x3a6   :  { %v3903_v63 = vsel %vm3891_vm10, %v3885_v9, %v3902_v11  ;;  %v5810_v30 = vsel %vm5808_vm5, %v13333_v33, %v15811_v62  ;;  %vm9056_vm3 = vcmp.lt.s32.totalorder %v9055_v59, 0  ;;  %v3912_v8 = vmul.u32 %v14312_v19, %v3896_v18  ;;  %v16274_v18 = vld [vmem:[#allocation93_spill] sm:$0xff]  ;;  %v16294_v62 = vld [vmem:[#allocation15_spill] sm:$0xff] }
 0x3a7   :  { %v3904_v39 = vsel %vm3890_vm7, %v3901_v27, %v3903_v63  ;;  %v5813_v9 = vsel %vm5811_vm15, %v15807_v58, %v13341_v21  ;;  %v4032_v45 = vsel %vm9056_vm3, 0, %v9055_v59  ;;  %vm15809_vm5 = vweird.f32 %v12677_v31  ;;  %v16275_v59 = vld [vmem:[#allocation91_spill] sm:$0xff]  ;;  %v16276_v63 = vld [vmem:[#allocation90_spill] sm:$0xff] }
 0x3a8   :  { %v14405_v48 = vmul.u32.u64.low %v14312_v19, %v3904_v39  ;;  %v14406_v1 = vmul.u32.u64.high %v14312_v19, %v3904_v39, %v14405_v48  ;;  %v5814_v5 = vsel %vm5807_vm1, %v5810_v30, %v5813_v9  ;;  %v4033_v42 = vsub.s32 32, %v4032_v45  ;;  %v16298_v31 = vld [vmem:[#allocation95_spill] sm:$0xff] }
 0x3a9   :  { %v4034_v23 = vshll.u32 %v14326_v15, %v4032_v45  ;;  %v4037_v46 = vsub.s32 4294967266, %v4032_v45  ;;  %vm5911_vm7 = vcmp.eq.s32.totalorder %v16270_v10, 0  ;;  %v3915_v34 = vadd.s32 1, %v14388_v51 }
 0x3aa   :  { %v5815_v47 = vsel %vm15812_vm13, nan, %v5814_v5  ;;  %v16271_v6 = vxor.u32 2147483648, %v13326_v3  ;;  %vm5914_vm15 = vcmp.eq.s32.totalorder %v16270_v10, 2  ;;  %vm15810_vm1 = vweird.f32 %v16272_v4 }
 0x3ab   :  { %v4035_v57 = vshrl.u32 %v14309_v44, %v4033_v42  ;;  %v4038_v24 = vadd.s32 127, %v4037_v46  ;;  %v16273_v15 = vxor.u32 2147483648, %v13320_v37  ;;  %v15805_v26 = vxor.u32 2147483648, %v16274_v18  ;;  %v16280_v46 = vld [vmem:[#allocation89_spill] sm:$0xff] }
 0x3ac   :  { %v5913_v19 = vsel %vm5911_vm7, %v13320_v37, %v16271_v6  ;;  %vm3914_vm10 = vc.u32 %v14406_v1, %v14387_v50  ;;  %v15804_v11 = vxor.u32 2147483648, %v16275_v59  ;;  %v15806_v30 = vxor.u32 2147483648, %v16276_v63 }
 0x3ad   :  { %v5916_v49 = vsel %vm5914_vm15, %v16273_v15, %v13326_v3  ;;  %v4036_v39 = vor.u32 %v4035_v57, %v4034_v23  ;;  %v4039_v9 = vshll.u32 %v4038_v24, 23  ;;  %vm3859_vm4 = vcmp.lt.s32.totalorder %v14189_v29, 0  ;;  %v9722_v15 = vpop.permute.xlu0 %9721 }
 0x3ae   :  { %v5917_v27 = vsel %vm5910_vm12, %v5913_v19, %v5916_v49  ;;  %v3916_v44 = vsel %vm3914_vm10, %v3915_v34, %v14388_v51  ;;  %v16277_v48 = vand.u32 2147483647, %v14189_v29  ;;  %v15808_v6 = vxor.u32 2147483648, %v16280_v46  ;;  %v16281_v19 = vld [vmem:[#allocation84_spill] sm:$0xff]  ;;  %v14444_v23 = vpop.eup %9935 }
 0x3af   :  { %v5918_v45 = vsel %vm15803_vm8, nan, %v5917_v27  ;;  %v3917_v10 = vadd.s32 %v3916_v44, %v3912_v8  ;;  %vm6013_vm12 = vcmp.lt.s32.totalorder %v16281_v19, 2  ;;  %v4040_v57 = vor.u32 4788187, %v4039_v9 }
 0x3b0   :  { %vm14438_vm3 = vcmp.le.f32.partialorder %v16277_v48, 0.7853982  ;;  %v9760_v42 = vpack.i.bf16 %v5918_v45, %v5815_v47  ;;  %v4043_v24 = vcvt.s32.f32 %v4036_v39  ;;  %vm6014_vm7 = vcmp.eq.s32.totalorder %v16281_v19, 0  ;;  %v16282_v47 = vld [vmem:[#allocation82_spill] sm:$0xff]  ;;  %v9727_v48 = vpop.permute.xlu1 %9726 }
 0x3b1   :  { %vm6017_vm15 = vcmp.eq.s32.totalorder %v16281_v19, 2  ;;  %v3918_v51 = vadd.s32 536870912, %v3917_v10  ;;  %v6016_v8 = vsel %vm6014_vm7, %v16275_v59, %v15805_v26  ;;  %vm6116_vm10 = vcmp.lt.s32.totalorder %v16282_v47, 2  ;;  %v16283_v26 = vld [vmem:[#allocation19_spill] sm:$0xff] }
 0x3b2   :  { %9761 = vrot.lane.b32.xlu0 %v9760_v42, %s10084_s0  ;;  %v6019_v34 = vsel %vm6017_vm15, %v15804_v11, %v16274_v18  ;;  %v4041_v49 = vand.u32 2147483647, %v4040_v57  ;;  %vm6117_vm0 = vcmp.eq.s32.totalorder %v16282_v47, 0  ;;  %vm6120_vm8 = vcmp.eq.s32.totalorder %v16282_v47, 2 }
 0x3b3   :  { %v6020_v27 = vsel %vm6013_vm12, %v6016_v8, %v6019_v34  ;;  %v3919_v39 = vshrl.u32 %v3918_v51, 30  ;;  %v6119_v44 = vsel %vm6117_vm0, %v16280_v46, %v15806_v30  ;;  %v6122_v45 = vsel %vm6120_vm8, %v15808_v6, %v16276_v63  ;;  %v16345_v63 = vld [vmem:[#allocation67_spill] sm:$0xff] }
 0x3b4   :  { %v6021_v9 = vsel %vm15809_vm5, nan, %v6020_v27  ;;  %v4044_v42 = vmul.f32 %v4043_v24, %v4041_v49  ;;  %v6123_v19 = vsel %vm6116_vm10, %v6119_v44, %v6122_v45  ;;  %vm7489_vm12 = vcmask 97280   ;;  %v16284_v49 = vld [vmem:[#allocation36_spill] sm:$0xff] }
 0x3b5   :  { %v9724_v57 = vunpack.i.h.bf16 %v9722_v15  ;;  %v3920_v8 = vshll.u32 %v3919_v39, 30  ;;  %v3943_v34 = vsub.s32 4, %v3919_v39  ;;  %v6124_v51 = vsel %vm15810_vm1, nan, %v6123_v19 }
 0x3b6   :  { %v9723_v47 = vunpack.i.l.bf16 %v9722_v15  ;;  %v4045_v27 = vxor.u32 2147483648, %v4044_v42  ;;  %v9765_v11 = vpack.i.bf16 %v6124_v51, %v6021_v9  ;;  %v9729_v58 = vunpack.i.h.bf16 %v9727_v48  ;;  %v16285_v15 = vld [vmem:[#allocation4_spill] sm:$0xff] }
 0x3b7   :  { %v14470_v30 = vsel %vm7489_vm12, %v16283_v26, %v9724_v57  ;;  %vm15852_vm0 = vweird.f32 %v13000_v56  ;;  %v14473_v6 = vsub.s32 %v3917_v10, %v3920_v8  ;;  %v3944_v24 = vsel %vm3859_vm4, %v3943_v34, %v3919_v39  ;;  %v16286_v39 = vld [vmem:[#allocation38_spill] sm:$0xff] }
 0x3b8   :  { %v14479_v44 = vsel %vm7489_vm12, %v16284_v49, %v9723_v47  ;;  %v9728_v45 = vunpack.i.l.bf16 %v9727_v48  ;;  %vm15837_vm8 = vweird.f32 %v16285_v15  ;;  %v4046_v9 = vsel %vm3963_vm14, %v4045_v27, %v4044_v42  ;;  %9766 = vrot.lane.b32.xlu1 %v9765_v11, %s10084_s0  ;;  %v16287_v11 = vld [vmem:[#allocation18_spill] sm:$0xff]  ;;  %v16291_v49 = vld [vmem:[#allocation81_spill] sm:$0xff] }
 0x3b9   :  { %v14486_v26 = vsel %vm14438_vm3, 0, %v3944_v24  ;;  %v14493_v19 = vsel %vm7489_vm12, %v16286_v39, %v9729_v58  ;;  %9937 = vsinq.f32 %v14364_v14  ;;  %v4049_v48 = vsel %vm14304_vm11, %v14036_v52, %v4046_v9  ;;  %v16289_v47 = vld [vmem:[#allocation70_spill] sm:$0xff]  ;;  %v16290_v24 = vld [vmem:[#allocation8_spill] sm:$0xff]  ;;  %v16292_v39 = vld [vmem:[#allocation21_spill] sm:$0xff] }
 0x3ba   :  { %v3913_v42 = vadd.s32 %v14387_v50, %v14406_v1  ;;  %v3923_v57 = vsub.s32 0, %v14473_v6  ;;  %9939 = vcosq.f32 %v4049_v48  ;;  %v14504_v8 = vsel %vm7489_vm12, %v16287_v11, %v9728_v45  ;;  %v16288_v1 = vld [vmem:[#allocation22_spill] sm:$0xff] }
 0x3bb   :  { %v15813_v34 = vxor.u32 2147483648, %v13729_v43  ;;  %v15814_v58 = vxor.u32 2147483648, %v13725_v40  ;;  %9941 = vsinq.f32 %v4049_v48  ;;  %v14510_v16 = vand.u32 3, %v14486_v26  ;;  %v16304_v56 = vld [vmem:[#allocation54_spill] sm:$0xff] }
 0x3bc   :  { %v9050_v14 = vmin.u32 %v3923_v57, %v14473_v6  ;;  %v15820_v51 = vxor.u32 2147483648, %v16288_v1  ;;  %v15822_v27 = vxor.u32 2147483648, %v16289_v47  ;;  %vm6219_vm14 = vcmp.lt.s32.totalorder %v16290_v24, 2  ;;  %v16293_v57 = vld [vmem:[#allocation103_spill] sm:$0xff] }
 0x3bd   :  { %vm6220_vm11 = vcmp.eq.s32.totalorder %v16290_v24, 0  ;;  %vm15832_vm7 = vweird.f32 %v16291_v49  ;;  %vm6223_vm15 = vcmp.eq.s32.totalorder %v16290_v24, 2  ;;  %vm6322_vm10 = vcmp.lt.s32.totalorder %v16292_v39, 2 }
 0x3be   :  { %v3925_v45 = vclz %v9050_v14  ;;  %v6222_v9 = vsel %vm6220_vm11, %v13725_v40, %v15813_v34  ;;  %v6225_v48 = vsel %vm6223_vm15, %v15814_v58, %v13729_v43  ;;  %vm6323_vm5 = vcmp.eq.s32.totalorder %v16292_v39, 0  ;;  %v16295_v40 = vld [vmem:[#allocation102_spill] sm:$0xff]  ;;  %v16296_v43 = vld [vmem:[#allocation100_spill] sm:$0xff] }
 0x3bf   :  { %vm6326_vm1 = vcmp.eq.s32.totalorder %v16292_v39, 2  ;;  %vm3221_vm13 = vweird.f32 %v16294_v62  ;;  %v6226_v50 = vsel %vm6219_vm14, %v6222_v9, %v6225_v48  ;;  %v6325_v24 = vsel %vm6323_vm5, %v16289_v47, %v15820_v51  ;;  %v16297_v9 = vld [vmem:[#allocation98_spill] sm:$0xff]  ;;  %v9732_v47 = vpop.permute.xlu0 %9731 }
 0x3c0   :  { %v9051_v14 = vadd.s32 4294967294, %v3925_v45  ;;  %v6328_v34 = vsel %vm6326_vm1, %v15822_v27, %v16288_v1  ;;  %v6227_v58 = vsel %vm15852_vm0, nan, %v6226_v50  ;;  %vm6425_vm5 = vcmp.lt.s32.totalorder %v16298_v31, 2 }
 0x3c1   :  { %v6329_v10 = vsel %vm6322_vm10, %v6325_v24, %v6328_v34  ;;  %vm6426_vm1 = vcmp.eq.s32.totalorder %v16298_v31, 0  ;;  %vm6429_vm14 = vcmp.eq.s32.totalorder %v16298_v31, 2  ;;  %v16299_v11 = vxor.u32 2147483648, %v16293_v57  ;;  %v16305_v31 = vld [vmem:[#allocation58_spill] sm:$0xff] }
 0x3c2   :  { %vm9052_vm11 = vcmp.lt.s32.totalorder %v9051_v14, 0  ;;  %v6330_v45 = vsel %vm15837_vm8, nan, %v6329_v10  ;;  %v16302_v15 = vxor.u32 2147483648, %v16296_v43 }
 0x3c3   :  { %v3928_v51 = vsel %vm9052_vm11, 0, %v9051_v14  ;;  %v9770_v4 = vpack.i.bf16 %v6330_v45, %v6227_v58  ;;  %v14547_v50 = vpop.eup %9937  ;;  %v6428_v10 = vsel %vm6426_vm1, %v16295_v40, %v16299_v11  ;;  %v16300_v58 = vxor.u32 2147483648, %v16295_v40  ;;  %v16301_v45 = vld [vmem:[#allocation23_spill] sm:$0xff] }
 0x3c4   :  { %v3929_v34 = vsub.s32 32, %v3928_v51  ;;  %v3930_v24 = vshll.u32 %v14473_v6, %v3928_v51  ;;  %v3933_v27 = vsub.s32 4294967266, %v3928_v51  ;;  %v14553_v39 = vpop.eup %9939  ;;  %vm6528_vm15 = vcmp.lt.s32.totalorder %v16301_v45, 2 }
 0x3c5   :  { %9771 = vrot.lane.b32.xlu0 %v9770_v4, %s10084_s0  ;;  %v6431_v14 = vsel %vm6429_vm14, %v16300_v58, %v16293_v57  ;;  %vm6529_vm10 = vcmp.eq.s32.totalorder %v16301_v45, 0  ;;  %vm6532_vm11 = vcmp.eq.s32.totalorder %v16301_v45, 2  ;;  %v14562_v6 = vpop.eup %9941  ;;  %v16303_v40 = vxor.u32 2147483648, %v16297_v9 }
 0x3c6   :  { %v3931_v51 = vshrl.u32 %v3913_v42, %v3929_v34  ;;  %v3934_v48 = vadd.s32 127, %v3933_v27  ;;  %v6432_v11 = vsel %vm6425_vm5, %v6428_v10, %v6431_v14  ;;  %v6531_v4 = vsel %vm6529_vm10, %v16297_v9, %v16302_v15  ;;  %v16307_v14 = vld [vmem:[#allocation6_spill] sm:$0xff] }
 0x3c7   :  { %v6433_v58 = vsel %vm15832_vm7, nan, %v6432_v11  ;;  %v6534_v57 = vsel %vm6532_vm11, %v16303_v40, %v16296_v43  ;;  %vm1248_vm1 = vcmp.lt.s32.totalorder %v16304_v56, 2  ;;  %vm1249_vm14 = vcmp.eq.s32.totalorder %v16304_v56, 0  ;;  %v16308_v11 = vld [vmem:[#allocation50_spill] sm:$0xff] }
 0x3c8   :  { %v3932_v42 = vor.u32 %v3931_v51, %v3930_v24  ;;  %v3935_v27 = vshll.u32 %v3934_v48, 23  ;;  %v6535_v34 = vsel %vm6528_vm15, %v6531_v4, %v6534_v57  ;;  %v16306_v10 = vxor.u32 2147483648, %v16305_v31  ;;  %v16310_v51 = vld [vmem:[#allocation53_spill] sm:$0xff] }
 0x3c9   :  { %v6536_v15 = vsel %vm3221_vm13, nan, %v6535_v34  ;;  %vm1252_vm5 = vcmp.eq.s32.totalorder %v16304_v56, 2  ;;  %vm1352_vm10 = vcmp.lt.s32.totalorder %v16308_v11, 2  ;;  %vm1353_vm11 = vcmp.eq.s32.totalorder %v16308_v11, 0 }
 0x3ca   :  { %v1251_v45 = vsel %vm1249_vm14, %v16307_v14, %v16306_v10  ;;  %v3936_v40 = vor.u32 4788187, %v3935_v27  ;;  %v3939_v49 = vcvt.s32.f32 %v3932_v42  ;;  %v9775_v1 = vpack.i.bf16 %v6536_v15, %v6433_v58  ;;  %v16312_v10 = vld [vmem:[#allocation52_spill] sm:$0xff]  ;;  %v16315_v15 = vld [vmem:[#allocation61_spill] sm:$0xff] }
 0x3cb   :  { %v16309_v57 = vxor.u32 2147483648, %v16307_v14  ;;  %v16311_v4 = vxor.u32 2147483648, %v16310_v51  ;;  %vm1356_vm15 = vcmp.eq.s32.totalorder %v16308_v11, 2  ;;  %v9734_v34 = vunpack.i.h.bf16 %v9732_v47 }
 0x3cc   :  { %v3937_v56 = vand.u32 2147483647, %v3936_v40  ;;  %9776 = vrot.lane.b32.xlu1 %v9775_v1, %s10084_s0  ;;  %v16314_v58 = vxor.u32 2147483648, %v16312_v10  ;;  %v9733_v14 = vunpack.i.l.bf16 %v9732_v47  ;;  %vm1457_vm14 = vcmp.eq.s32.totalorder %v16315_v15, 0  ;;  %v16316_v1 = vld [vmem:[#allocation26_spill] sm:$0xff] }
 0x3cd   :  { %v1254_v48 = vsel %vm1252_vm5, %v16309_v57, %v16305_v31  ;;  %v1355_v59 = vsel %vm1353_vm11, %v16312_v10, %v16311_v4  ;;  %v9737_v31 = vpop.permute.xlu1 %9736  ;;  %vm1460_vm5 = vcmp.eq.s32.totalorder %v16315_v15, 2  ;;  %vm16317_vm11 = vweird.f32 %v16316_v1  ;;  %v16321_v4 = vld [vmem:[#allocation62_spill] sm:$0xff] }
 0x3ce   :  { %v1255_v24 = vsel %vm1248_vm1, %v1251_v45, %v1254_v48  ;;  %v1358_v42 = vsel %vm1356_vm15, %v16314_v58, %v16310_v51  ;;  %vm1456_vm1 = vcmp.lt.s32.totalorder %v16315_v15, 2  ;;  %v3940_v40 = vmul.f32 %v3939_v49, %v3937_v56  ;;  %v16318_v48 = vld [vmem:[#allocation57_spill] sm:$0xff] }
 0x3cf   :  { %v1256_v27 = vsel %vm1245_vm9, nan, %v1255_v24  ;;  %v1359_v45 = vsel %vm1352_vm10, %v1355_v59, %v1358_v42  ;;  %vm1560_vm9 = vcmp.lt.s32.totalorder %v16318_v48, 2  ;;  %vm1561_vm10 = vcmp.eq.s32.totalorder %v16318_v48, 0  ;;  %v16319_v24 = vld [vmem:[#allocation63_spill] sm:$0xff]  ;;  %v16323_v42 = vld [vmem:[#allocation65_spill] sm:$0xff] }
 0x3d0   :  { %v1360_v18 = vsel %vm16317_vm11, nan, %v1359_v45  ;;  %v14605_v57 = vsel %vm7489_vm12, %v1256_v27, %v9733_v14  ;;  %vm1564_vm15 = vcmp.eq.s32.totalorder %v16318_v48, 2  ;;  %v9739_v59 = vunpack.i.h.bf16 %v9737_v31  ;;  %v16325_v45 = vld [vmem:[#allocation64_spill] sm:$0xff]  ;;  %v16338_v49 = vld [vmem:[#allocation41_spill] sm:$0xff] }
 0x3d1   :  { %v14609_v47 = vsel %vm7489_vm12, %v1360_v18, %v9734_v34  ;;  %vm3325_vm7 = vweird.f32 %v13539_v54  ;;  %v3941_v11 = vxor.u32 2147483648, %v3940_v40  ;;  %v16320_v51 = vxor.u32 2147483648, %v16319_v24 }
 0x3d2   :  { %v16322_v56 = vxor.u32 2147483648, %v16321_v4  ;;  %vm3429_vm11 = vweird.f32 %v13527_v53  ;;  %v9738_v58 = vunpack.i.l.bf16 %v9737_v31  ;;  %v16324_v14 = vxor.u32 2147483648, %v16323_v42 }
 0x3d3   :  { %v1563_v10 = vsel %vm1561_vm10, %v16321_v4, %v16320_v51  ;;  %v16326_v18 = vxor.u32 2147483648, %v16325_v45  ;;  %v3942_v51 = vsel %vm3859_vm4, %v3941_v11, %v3940_v40  ;;  %v15834_v40 = vxor.u32 2147483648, %v14078_v28  ;;  %v16331_v11 = vld [vmem:[#allocation99_spill] sm:$0xff] }
 0x3d4   :  { %v1566_v34 = vsel %vm1564_vm15, %v16322_v56, %v16319_v24  ;;  %v1459_v1 = vsel %vm1457_vm14, %v16325_v45, %v16324_v14  ;;  %v16327_v24 = vld [vmem:[#allocation30_spill] sm:$0xff]  ;;  %v3945_v56 = vsel %vm14438_vm3, %v14189_v29, %v3942_v51  ;;  %v16329_v14 = vld [vmem:[#allocation31_spill] sm:$0xff]  ;;  %vm15853_vm4 = vweird.f32 %v16331_v11 }
 0x3d5   :  { %v1567_v27 = vsel %vm1560_vm9, %v1563_v10, %v1566_v34  ;;  %v1462_v48 = vsel %vm1460_vm5, %v16326_v18, %v16323_v42  ;;  %vm16328_vm10 = vweird.f32 %v16327_v24  ;;  %v15833_v10 = vxor.u32 2147483648, %v14144_v32 }
 0x3d6   :  { %v1568_v4 = vsel %vm16328_vm10, nan, %v1567_v27  ;;  %v1463_v31 = vsel %vm1456_vm1, %v1459_v1, %v1462_v48  ;;  %vm16330_vm14 = vweird.f32 %v16329_v14  ;;  %9943 = vcosq.f32 %v3945_v56  ;;  %v16332_v27 = vld [vmem:[#allocation24_spill] sm:$0xff]  ;;  %v16333_v1 = vld [vmem:[#allocation34_spill] sm:$0xff] }
 0x3d7   :  { %v14644_v34 = vsel %vm7489_vm12, %v1568_v4, %v9739_v59  ;;  %v1464_v42 = vsel %vm16330_vm14, nan, %v1463_v31  ;;  %v15841_v45 = vxor.u32 2147483648, %v16332_v27  ;;  %v15836_v18 = vxor.u32 2147483648, %v16333_v1  ;;  %v16334_v59 = vld [vmem:[#allocation44_spill] sm:$0xff] }
 0x3d8   :  { %v14651_v15 = vsel %vm7489_vm12, %v1464_v42, %v9738_v58  ;;  %9945 = vsinq.f32 %v3945_v56  ;;  %vm6631_vm3 = vcmp.lt.s32.totalorder %v16334_v59, 2  ;;  %vm6632_vm1 = vcmp.eq.s32.totalorder %v16334_v59, 0  ;;  %v16335_v48 = vld [vmem:[#allocation28_spill] sm:$0xff]  ;;  %v16336_v58 = vld [vmem:[#allocation2_spill] sm:$0xff] }
 0x3d9   :  { %vm15857_vm5 = vweird.f32 %v16335_v48  ;;  %v6634_v51 = vsel %vm6632_vm1, %v14078_v28, %v15833_v10  ;;  %vm6635_vm9 = vcmp.eq.s32.totalorder %v16334_v59, 2  ;;  %vm6734_vm15 = vcmp.lt.s32.totalorder %v16336_v58, 2  ;;  %v16337_v59 = vld [vmem:[#allocation104_spill] sm:$0xff] }
 0x3da   :  { %vm6735_vm10 = vcmp.eq.s32.totalorder %v16336_v58, 0  ;;  %v6637_v24 = vsel %vm6635_vm9, %v15834_v40, %v14144_v32  ;;  %vm6738_vm14 = vcmp.eq.s32.totalorder %v16336_v58, 2  ;;  %v15839_v31 = vxor.u32 2147483648, %v14314_v60 }
 0x3db   :  { %v6737_v4 = vsel %vm6735_vm10, %v16333_v1, %v15841_v45  ;;  %v6638_v56 = vsel %vm6631_vm3, %v6634_v51, %v6637_v24  ;;  %v6740_v14 = vsel %vm6738_vm14, %v15836_v18, %v16332_v27  ;;  %v15838_v42 = vxor.u32 2147483648, %v14225_v38  ;;  %v16339_v51 = vld [vmem:[#allocation40_spill] sm:$0xff] }
 0x3dc   :  { %v15840_v10 = vxor.u32 2147483648, %v16337_v59  ;;  %v6639_v40 = vsel %vm3325_vm7, nan, %v6638_v56  ;;  %v6741_v5 = vsel %vm6734_vm15, %v6737_v4, %v6740_v14  ;;  %v15843_v46 = vxor.u32 2147483648, %v16338_v49 }
 0x3dd   :  { %vm6837_vm1 = vcmp.lt.s32.totalorder %v14274_v36, 2  ;;  %v6742_v58 = vsel %vm3429_vm11, nan, %v6741_v5  ;;  %vm6838_vm3 = vcmp.eq.s32.totalorder %v14274_v36, 0  ;;  %vm6841_vm9 = vcmp.eq.s32.totalorder %v14274_v36, 2  ;;  %v9800_v5 = vld [vmem:[%s15531_s2] sm:$0xff]  }
 0x3de   :  { %vm6940_vm10 = vcmp.lt.s32.totalorder %v16339_v51, 2  ;;  %v9780_v24 = vpack.i.bf16 %v6742_v58, %v6639_v40  ;;  %v6840_v18 = vsel %vm6838_vm3, %v14225_v38, %v15839_v31  ;;  %v6843_v4 = vsel %vm6841_vm9, %v15838_v42, %v14314_v60  ;;  %v16340_v40 = vld [vmem:[#allocation69_spill] sm:$0xff]  ;;  %9410 = vmatprep.subr.bf16.mxu0 %v9800_v5  ;;  %v16341_v42 = vld [vmem:[#allocation74_spill] sm:$0xff] }
 0x3df   :  { %vm6941_vm15 = vcmp.eq.s32.totalorder %v16339_v51, 0  ;;  %v6844_v56 = vsel %vm6837_vm1, %v6840_v18, %v6843_v4  ;;  %vm6944_vm14 = vcmp.eq.s32.totalorder %v16339_v51, 2  ;;  %vm1664_vm8 = vcmp.lt.s32.totalorder %v16340_v40, 2  ;;  %9411 = vmatpush3.bf16.msra.mxu0 %v9800_v5 }
 0x3e0   :  { %v6943_v36 = vsel %vm6941_vm15, %v16338_v49, %v15840_v10  ;;  %9781 = vrot.lane.b32.xlu0 %v9780_v24, %s10084_s0  ;;  %v6845_v14 = vsel %vm15853_vm4, nan, %v6844_v56  ;;  %v6946_v58 = vsel %vm6944_vm14, %v15843_v46, %v16337_v59  ;;  %vm1665_vm3 = vcmp.eq.s32.totalorder %v16340_v40, 0  ;;  %v14711_v18 = vpop.eup %9943  ;;  %v16343_v24 = vld [vmem:[#allocation73_spill] sm:$0xff]  ;;  %v9742_v46 = vpop.permute.xlu0 %9741 }
 0x3e1   :  { %vm1668_vm1 = vcmp.eq.s32.totalorder %v16340_v40, 2  ;;  %v6947_v4 = vsel %vm6940_vm10, %v6943_v36, %v6946_v58  ;;  %v16342_v31 = vxor.u32 2147483648, %v16341_v42  ;;  %v16344_v56 = vxor.u32 2147483648, %v16343_v24  ;;  %v16346_v36 = vld [vmem:[#allocation43_spill] sm:$0xff]  ;;  %v16348_v58 = vld [vmem:[#allocation72_spill] sm:$0xff] }
 0x3e2   :  { %vm1768_vm9 = vcmp.lt.s32.totalorder %v16345_v63, 2  ;;  %v14722_v22 = vpop.eup %9945  ;;  %v6948_v35 = vsel %vm15857_vm5, nan, %v6947_v4  ;;  %vm1769_vm10 = vcmp.eq.s32.totalorder %v16345_v63, 0  ;;  %vm1772_vm15 = vcmp.eq.s32.totalorder %v16345_v63, 2 }
 0x3e3   :  { %v1667_v10 = vsel %vm1665_vm3, %v16343_v24, %v16342_v31  ;;  %v1670_v45 = vsel %vm1668_vm1, %v16344_v56, %v16341_v42  ;;  %v9785_v31 = vpack.i.bf16 %v6948_v35, %v6845_v14  ;;  %vm16347_vm14 = vweird.f32 %v16346_v36  ;;  %v16350_v56 = vld [vmem:[#allocation71_spill] sm:$0xff]  ;;  %v16353_v35 = vld [vmem:[#allocation42_spill] sm:$0xff]  ;;  %v16355_v14 = vld [vmem:[#allocation45_spill] sm:$0xff] }
 0x3e4   :  { %v1671_v51 = vsel %vm1664_vm8, %v1667_v10, %v1670_v45  ;;  %v16349_v24 = vxor.u32 2147483648, %v16348_v58  ;;  %v16351_v37 = vxor.u32 2147483648, %v16350_v56  ;;  %v9744_v33 = vunpack.i.h.bf16 %v9742_v46  ;;  %v16352_v10 = vld [vmem:[#allocation35_spill] sm:$0xff]  ;;  %v9747_v45 = vpop.permute.xlu1 %9746 }
 0x3e5   :  { %v1672_v42 = vsel %vm16347_vm14, nan, %v1671_v51  ;;  %v9743_v40 = vunpack.i.l.bf16 %v9742_v46  ;;  %vm1872_vm8 = vcmp.lt.s32.totalorder %v16352_v10, 2  ;;  %vm3741_vm3 = vweird.f32 %v14016_v41  ;;  %9786 = vrot.lane.b32.xlu1 %v9785_v31, %s10084_s0  ;;  %v16356_v51 = vld [vmem:[#allocation10_spill] sm:$0xff]  ;;  %v16358_v36 = vld [vmem:[#allocation75_spill] sm:$0xff]  ;;  %v16364_v46 = vld [vmem:[#allocation48_spill] sm:$0xff] }
 0x3e6   :  { %v1771_v5 = vsel %vm1769_vm10, %v16350_v56, %v16349_v24  ;;  %v1774_v3 = vsel %vm1772_vm15, %v16351_v37, %v16348_v58  ;;  %vm16354_vm1 = vweird.f32 %v16353_v35  ;;  %vm1873_vm14 = vcmp.eq.s32.totalorder %v16352_v10, 0  ;;  %v16362_v35 = vld [vmem:[#allocation32_spill] sm:$0xff] }
 0x3e7   :  { %v1775_v4 = vsel %vm1768_vm9, %v1771_v5, %v1774_v3  ;;  %vm1876_vm10 = vcmp.eq.s32.totalorder %v16352_v10, 2  ;;  %vm1976_vm0 = vcmp.lt.s32.totalorder %v16355_v14, 2  ;;  %v14750_v3 = vsel %vm7489_vm12, %v1672_v42, %v9743_v40 }
 0x3e8   :  { %v1776_v63 = vsel %vm16354_vm1, nan, %v1775_v4  ;;  %vm1977_vm9 = vcmp.eq.s32.totalorder %v16355_v14, 0  ;;  %vm1980_vm15 = vcmp.eq.s32.totalorder %v16355_v14, 2  ;;  %vm15858_vm4 = vweird.f32 %v13991_v7  ;;  %v16360_v4 = vld [vmem:[#allocation33_spill] sm:$0xff] }
 0x3e9   :  { %v14747_v37 = vsel %vm7489_vm12, %v1776_v63, %v9744_v33  ;;  %v16357_v31 = vxor.u32 2147483648, %v16356_v51  ;;  %v16359_v33 = vxor.u32 2147483648, %v16358_v36  ;;  %v9749_v56 = vunpack.i.h.bf16 %v9747_v45 }
 0x3ea   :  { %v9748_v5 = vunpack.i.l.bf16 %v9747_v45  ;;  %v16361_v40 = vxor.u32 2147483648, %v16360_v4  ;;  %v16363_v14 = vxor.u32 2147483648, %v16362_v35  ;;  %vm16365_vm1 = vweird.f32 %v16364_v46  ;;  %v9801_v45 = vld [vmem:[%s15531_s2 + $0x8] sm:$0xff]  }
 0x3eb   :  { %v1979_v58 = vsel %vm1977_vm9, %v16358_v36, %v16357_v31  ;;  %v1982_v24 = vsel %vm1980_vm15, %v16359_v33, %v16356_v51  ;;  %v3746_v36 = vxor.u32 2147483648, %v14547_v50  ;;  %v3749_v51 = vxor.u32 2147483648, %v14444_v23  ;;  %v16366_v33 = vld [vmem:[#allocation5_spill] sm:$0xff]  ;;  %9412 = vmatprep.subr.bf16.mxu0 %v9801_v45 }
 0x3ec   :  { %v1983_v42 = vsel %vm1976_vm0, %v1979_v58, %v1982_v24  ;;  %v1875_v63 = vsel %vm1873_vm14, %v16362_v35, %v16361_v40  ;;  %v1878_v21 = vsel %vm1876_vm10, %v16363_v14, %v16360_v4  ;;  %vm3949_vm0 = vweird.f32 %v14189_v29  ;;  %9413 = vmatpush3.bf16.msra.mxu0 %v9801_v45 }
 0x3ed   :  { %v1984_v11 = vsel %vm16365_vm1, nan, %v1983_v42  ;;  %v1879_v31 = vsel %vm1872_vm8, %v1875_v63, %v1878_v21  ;;  %vm16367_vm14 = vweird.f32 %v16366_v33  ;;  %v3850_v24 = vxor.u32 2147483648, %v14345_v12 }
 0x3ee   :  { %v14780_v58 = vsel %vm7489_vm12, %v1984_v11, %v9749_v56  ;;  %v1880_v46 = vsel %vm16367_vm14, nan, %v1879_v31  ;;  %v15863_v21 = vxor.u32 2147483648, %v14333_v25  ;;  %vm7043_vm8 = vcmp.lt.s32.totalorder %v14288_v55, 2 }
 0x3ef   :  { %v14787_v10 = vsel %vm7489_vm12, %v1880_v46, %v9748_v5  ;;  %vm7044_vm10 = vcmp.eq.s32.totalorder %v14288_v55, 0  ;;  %vm7047_vm9 = vcmp.eq.s32.totalorder %v14288_v55, 2  ;;  %vm4053_vm15 = vweird.f32 %v14036_v52 }
 0x3f0   :  { %v7559_v11 = vpack.c.bf16 %v14780_v58, %v14787_v10  ;;  %v7046_v56 = vsel %vm7044_vm10, %v14444_v23, %v3746_v36  ;;  %v7049_v42 = vsel %vm7047_vm9, %v3749_v51, %v14547_v50  ;;  %vm7146_vm1 = vcmp.lt.s32.totalorder %v14279_v2, 2 }
 0x3f1   :  { %v7050_v5 = vsel %vm7043_vm8, %v7046_v56, %v7049_v42  ;;  %vm7147_vm14 = vcmp.eq.s32.totalorder %v14279_v2, 0  ;;  %vm7150_vm5 = vcmp.eq.s32.totalorder %v14279_v2, 2  ;;  %v15860_v55 = vxor.u32 2147483648, %v14722_v22 }
 0x3f2   :  { %v7051_v4 = vsel %vm3741_vm3, nan, %v7050_v5  ;;  %v7149_v40 = vsel %vm7147_vm14, %v14333_v25, %v3850_v24  ;;  %v7152_v35 = vsel %vm7150_vm5, %v15863_v21, %v14345_v12  ;;  %v15859_v63 = vxor.u32 2147483648, %v14711_v18  ;;  %v16378_v21 = vld [vmem:[#allocation12_spill] sm:$0xff] }
 0x3f3   :  { %v7153_v14 = vsel %vm7146_vm1, %v7149_v40, %v7152_v35  ;;  %v15862_v31 = vxor.u32 2147483648, %v14562_v6  ;;  %v15861_v2 = vxor.u32 2147483648, %v14553_v39  ;;  %vm7249_vm8 = vcmp.lt.s32.totalorder %v14510_v16, 2 }
 0x3f4   :  { %v7154_v45 = vsel %vm15858_vm4, nan, %v7153_v14  ;;  %vm7250_vm10 = vcmp.eq.s32.totalorder %v14510_v16, 0  ;;  %vm7253_vm9 = vcmp.eq.s32.totalorder %v14510_v16, 2  ;;  %vm7352_vm14 = vcmp.lt.s32.totalorder %v14380_v61, 2  ;;  %v16368_v16 = vld [vmem:[#allocation37_spill] sm:$0xff] }
 0x3f5   :  { %v9790_v33 = vpack.i.bf16 %v7154_v45, %v7051_v4  ;;  %v7252_v46 = vsel %vm7250_vm10, %v14711_v18, %v15860_v55  ;;  %v7255_v56 = vsel %vm7253_vm9, %v15859_v63, %v14722_v22  ;;  %vm7353_vm5 = vcmp.eq.s32.totalorder %v14380_v61, 0  ;;  %v16369_v14 = vld [vmem:[#allocation77_spill] sm:$0xff] }
 0x3f6   :  { %v7256_v42 = vsel %vm7249_vm8, %v7252_v46, %v7255_v56  ;;  %v7355_v5 = vsel %vm7353_vm5, %v14553_v39, %v15862_v31  ;;  %vm7356_vm1 = vcmp.eq.s32.totalorder %v14380_v61, 2  ;;  %vm2080_vm4 = vcmp.lt.s32.totalorder %v16368_v16, 2  ;;  %v16371_v46 = vld [vmem:[#allocation76_spill] sm:$0xff]  ;;  %v16373_v63 = vld [vmem:[#allocation25_spill] sm:$0xff] }
 0x3f7   :  { %9791 = vrot.lane.b32.xlu0 %v9790_v33, %s10084_s0  ;;  %v7257_v4 = vsel %vm3949_vm0, nan, %v7256_v42  ;;  %v7358_v40 = vsel %vm7356_vm1, %v15861_v2, %v14562_v6  ;;  %vm2081_vm10 = vcmp.eq.s32.totalorder %v16368_v16, 0  ;;  %vm2084_vm8 = vcmp.eq.s32.totalorder %v16368_v16, 2  ;;  %v9752_v42 = vpop.permute.xlu0 %9751  ;;  %v16374_v16 = vld [vmem:[#allocation7_spill] sm:$0xff] }
 0x3f8   :  { %v7359_v35 = vsel %vm7352_vm14, %v7355_v5, %v7358_v40  ;;  %v16370_v45 = vxor.u32 2147483648, %v16369_v14  ;;  %v16372_v56 = vxor.u32 2147483648, %v16371_v46  ;;  %vm2184_vm9 = vcmp.lt.s32.totalorder %v16373_v63, 2 }
 0x3f9   :  { %v7360_v55 = vsel %vm4053_vm15, nan, %v7359_v35  ;;  %vm2185_vm5 = vcmp.eq.s32.totalorder %v16373_v63, 0  ;;  %vm2188_vm1 = vcmp.eq.s32.totalorder %v16373_v63, 2  ;;  %vm16375_vm14 = vweird.f32 %v16374_v16  ;;  %v16385_v16 = vld [vmem:[#allocation79_spill] sm:$0xff] }
 0x3fa   :  { %v2083_v61 = vsel %vm2081_vm10, %v16371_v46, %v16370_v45  ;;  %v2086_v33 = vsel %vm2084_vm8, %v16372_v56, %v16369_v14  ;;  %v9795_v5 = vpack.i.bf16 %v7360_v55, %v7257_v4  ;;  %v16376_v45 = vld [vmem:[#allocation13_spill] sm:$0xff]  ;;  %v16379_v14 = vxor.u32 2147483648, %v16378_v21  ;;  %v16381_v4 = vld [vmem:[#allocation3_spill] sm:$0xff] }
 0x3fb   :  { %v2087_v2 = vsel %vm2080_vm4, %v2083_v61, %v2086_v33  ;;  %v16377_v31 = vxor.u32 2147483648, %v16376_v45  ;;  %v16380_v35 = vpack.c.bf16 %v14470_v30, %v14479_v44  ;;  %v9754_v63 = vunpack.i.h.bf16 %v9752_v42  ;;  %v16382_v33 = vld [vmem:[#allocation59_spill] sm:$0xff] }
 0x3fc   :  { %v2088_v40 = vsel %vm16375_vm14, nan, %v2087_v2  ;;  %v2190_v56 = vsel %vm2188_vm1, %v16379_v14, %v16376_v45  ;;  %v9753_v55 = vunpack.i.l.bf16 %v9752_v42  ;;  %vm2288_vm4 = vcmp.lt.s32.totalorder %v16381_v4, 2  ;;  %v9757_v2 = vpop.permute.xlu1 %9756  ;;  %9796 = vrot.lane.b32.xlu1 %v9795_v5, %s10084_s0  ;;  %v16387_v45 = vld [vmem:[#allocation78_spill] sm:$0xff] }
 0x3fd   :  { %v2187_v46 = vsel %vm2185_vm5, %v16378_v21, %v16377_v31  ;;  %7666 = vrot.lane.b32.xlu0 %v16380_v35, %s10085_s15  ;;  %vm16383_vm10 = vweird.f32 %v16382_v33  ;;  %vm2289_vm8 = vcmp.eq.s32.totalorder %v16381_v4, 0  ;;  %vm2292_vm5 = vcmp.eq.s32.totalorder %v16381_v4, 2  ;;  %v16384_v21 = vld [vmem:[#allocation46_spill] sm:$0xff] }
 0x3fe   :  { %v2191_v61 = vsel %vm2184_vm9, %v2187_v46, %v2190_v56  ;;  %vm2392_vm1 = vcmp.lt.s32.totalorder %v16384_v21, 2  ;;  %v7502_v44 = vsel %vm7489_vm12, %v2088_v40, %v9753_v55  ;;  %vm2393_vm9 = vcmp.eq.s32.totalorder %v16384_v21, 0  ;;  %v16390_v55 = vld [vmem:[#allocation16_spill] sm:$0xff] }
 0x3ff   :  { %v2192_v31 = vsel %vm16383_vm10, nan, %v2191_v61  ;;  %vm2396_vm14 = vcmp.eq.s32.totalorder %v16384_v21, 2  ;;  %v16386_v5 = vxor.u32 2147483648, %v16385_v16  ;;  %v16388_v14 = vxor.u32 2147483648, %v16387_v45 }
 0x400   :  { %v7503_v30 = vsel %vm7489_vm12, %v2192_v31, %v9754_v63  ;;  %v9759_v35 = vunpack.i.h.bf16 %v9757_v2  ;;  %v16389_v61 = vpack.c.bf16 %v14609_v47, %v14605_v57  ;;  %v9758_v63 = vunpack.i.l.bf16 %v9757_v2  ;;  %v16392_v31 = vld [vmem:[#allocation56_spill] sm:$0xff] }
 0x401   :  { %v7560_v42 = vpack.c.bf16 %v7503_v30, %v7502_v44  ;;  %v2395_v46 = vsel %vm2393_vm9, %v16387_v45, %v16386_v5  ;;  %v2398_v56 = vsel %vm2396_vm14, %v16388_v14, %v16385_v16  ;;  %v16391_v33 = vxor.u32 2147483648, %v16390_v55 }
 0x402   :  { %7670 = vrot.lane.b32.xlu0 %v16389_v61, %s10085_s15  ;;  %v2399_v40 = vsel %vm2392_vm1, %v2395_v46, %v2398_v56  ;;  %v16393_v30 = vxor.u32 2147483648, %v16392_v31  ;;  %v16394_v16 = vpack.c.bf16 %v14493_v19, %v14504_v8  ;;  %v16397_v56 = vpack.c.bf16 %v14747_v37, %v14750_v3  ;;  %v16398_v8 = vld [vmem:[#allocation66_spill] sm:$0xff] }
 0x403   :  { %v2291_v21 = vsel %vm2289_vm8, %v16392_v31, %v16391_v33  ;;  %v2400_v45 = vsel %vm2389_vm2, nan, %v2399_v40  ;;  %v3222_v61 = vadd.s32 3, %v16398_v8  ;;  %v16399_v4 = vpack.c.bf16 %v14644_v34, %v14651_v15  ;;  %v16400_v40 = vld [vmem:[#allocation39_spill] sm:$0xff]  ;;  %v16401_v33 = vld [vmem:[#allocation101_spill] sm:$0xff] }
 0x404   :  { %v2294_v44 = vsel %vm2292_vm5, %v16393_v30, %v16390_v55  ;;  %7668 = vrot.lane.b32.xlu1 %v16394_v16, %s10085_s15  ;;  %v7505_v47 = vsel %vm7489_vm12, %v2400_v45, %v9759_v35  ;;  %v3326_v35 = vadd.s32 3, %v16400_v40  ;;  %v16402_v31 = vld [vmem:[#allocation51_spill] sm:$0xff]  ;;  %v3534_v37 = vadd.s32 3, %v14121_v13  ;;  %v16403_v30 = vld [vmem:[#allocation17_spill] sm:$0xff] }
 0x405   :  { %v2295_v57 = vsel %vm2288_vm4, %v2291_v21, %v2294_v44  ;;  %v3223_v55 = vand.u32 3, %v3222_v61  ;;  %v3638_v21 = vadd.s32 3, %v16402_v31  ;;  %v3846_v3 = vadd.s32 3, %v14195_v17 }
 0x406   :  { %v2296_v46 = vsel %vm2285_vm6, nan, %v2295_v57  ;;  %7674 = vrot.lane.b32.xlu0 %v16397_v56, %s10085_s15  ;;  %v3327_v34 = vand.u32 3, %v3326_v35  ;;  %v3742_v15 = vadd.s32 3, %v14258_v0  ;;  %v14925_v44 = vadd.s32 3, %v16403_v30 }
 0x407   :  { %v7504_v14 = vsel %vm7489_vm12, %v2296_v46, %v9758_v63  ;;  %v3430_v63 = vadd.s32 3, %v16401_v33  ;;  %v3639_v5 = vand.u32 3, %v3638_v21  ;;  %v3950_v45 = vadd.s32 3, %v14486_v26 }
 0x408   :  { %v7561_v19 = vpack.c.bf16 %v7505_v47, %v7504_v14  ;;  %7672 = vrot.lane.b32.xlu1 %v16399_v4, %s10085_s15  ;;  %vm3225_vm6 = vcmp.eq.s32.totalorder %v3223_v55, 0  ;;  %v3535_v58 = vand.u32 3, %v3534_v37  ;;  %v3847_v10 = vand.u32 3, %v3846_v3  ;;  %v16415_v3 = vld [vmem:[#allocation99_spill] sm:$0xff] }
 0x409   :  { %v3431_v16 = vand.u32 3, %v3430_v63  ;;  %v16404_v13 = vxor.u32 2147483648, %v16296_v43  ;;  %vm3228_vm2 = vcmp.eq.s32.totalorder %v3223_v55, 2  ;;  %v3743_v0 = vand.u32 3, %v3742_v15 }
 0x40a   :  { %7678 = vrot.lane.b32.xlu0 %v7560_v42, %s10085_s15  ;;  %v4054_v42 = vadd.s32 3, %v14338_v20  ;;  %vm3224_vm4 = vcmp.lt.s32.totalorder %v3223_v55, 2  ;;  %vm3329_vm10 = vcmp.eq.s32.totalorder %v3327_v34, 0  ;;  %v16406_v26 = vxor.u32 2147483648, %v14144_v32 }
 0x40b   :  { %v3227_v17 = vsel %vm3225_vm6, %v16297_v9, %v16404_v13  ;;  %vm3332_vm8 = vcmp.eq.s32.totalorder %v3327_v34, 2  ;;  %v3951_v46 = vand.u32 3, %v3950_v45  ;;  %vm3328_vm5 = vcmp.lt.s32.totalorder %v3327_v34, 2 }
 0x40c   :  { %7676 = vrot.lane.b32.xlu1 %v7559_v11, %s10085_s15  ;;  %v16405_v11 = vxor.u32 2147483648, %v16297_v9  ;;  %v4055_v57 = vand.u32 3, %v4054_v42  ;;  %v3331_v2 = vsel %vm3329_vm10, %v14078_v28, %v16406_v26  ;;  %v16407_v56 = vxor.u32 2147483648, %v14078_v28 }
 0x40d   :  { %vm3432_vm1 = vcmp.lt.s32.totalorder %v3431_v16, 2  ;;  %vm3433_vm9 = vcmp.eq.s32.totalorder %v3431_v16, 0  ;;  %vm3436_vm14 = vcmp.eq.s32.totalorder %v3431_v16, 2  ;;  %v16408_v8 = vxor.u32 2147483648, %v16332_v27 }
 0x40e   :  { %v3230_v20 = vsel %vm3228_vm2, %v16405_v11, %v16296_v43  ;;  %v16409_v62 = vxor.u32 2147483648, %v16333_v1  ;;  %vm3537_vm6 = vcmp.eq.s32.totalorder %v3535_v58, 0  ;;  %vm3540_vm2 = vcmp.eq.s32.totalorder %v3535_v58, 2 }
 0x40f   :  { %v3231_v47 = vsel %vm3224_vm4, %v3227_v17, %v3230_v20  ;;  %v3435_v61 = vsel %vm3433_vm9, %v16333_v1, %v16408_v8  ;;  %vm3641_vm4 = vcmp.eq.s32.totalorder %v3639_v5, 0  ;;  %v16410_v54 = vxor.u32 2147483648, %v16337_v59  ;;  %v16426_v20 = vld [vmem:[#allocation88_spill] sm:$0xff] }
 0x410   :  { %7680 = vrot.lane.b32.xlu1 %v7561_v19, %s10085_s15  ;;  %v14941_v14 = vsel %vm3221_vm13, nan, %v3231_v47  ;;  %v3334_v19 = vsel %vm3332_vm8, %v16407_v56, %v14144_v32  ;;  %v3438_v4 = vsel %vm3436_vm14, %v16409_v62, %v16332_v27  ;;  %vm3536_vm13 = vcmp.lt.s32.totalorder %v3535_v58, 2  ;;  %v16423_v58 = vld [vmem:[#allocation55_spill] sm:$0xff]  ;;  %v16432_v56 = vld [vmem:[#allocation85_spill] sm:$0xff] }
 0x411   :  { %v3335_v9 = vsel %vm3328_vm5, %v3331_v2, %v3334_v19  ;;  %v3439_v40 = vsel %vm3432_vm1, %v3435_v61, %v3438_v4  ;;  %v3643_v32 = vsel %vm3641_vm4, %v16338_v49, %v16410_v54  ;;  %v16411_v35 = vxor.u32 2147483648, %v14314_v60  ;;  %v16428_v47 = vld [vmem:[#allocation87_spill] sm:$0xff] }
 0x412   :  { %v14948_v43 = vsel %vm3325_vm7, nan, %v3335_v9  ;;  %v14958_v28 = vsel %vm3429_vm11, nan, %v3439_v40  ;;  %vm3644_vm7 = vcmp.eq.s32.totalorder %v3639_v5, 2  ;;  %vm3640_vm10 = vcmp.lt.s32.totalorder %v3639_v5, 2  ;;  %v16434_v40 = vld [vmem:[#allocation11_spill] sm:$0xff] }
 0x413   :  { %v3539_v55 = vsel %vm3537_vm6, %v14225_v38, %v16411_v35  ;;  %v16412_v27 = vxor.u32 2147483648, %v16338_v49  ;;  %v16413_v33 = vxor.u32 2147483648, %v14225_v38  ;;  %vm3745_vm11 = vcmp.eq.s32.totalorder %v3743_v0, 0 }
 0x414   :  { %v3747_v21 = vsel %vm3745_vm11, %v14444_v23, %v3746_v36  ;;  %vm3748_vm8 = vcmp.eq.s32.totalorder %v3743_v0, 2  ;;  %vm16414_vm5 = vweird.f32 %v16335_v48  ;;  %vm16416_vm1 = vweird.f32 %v16415_v3  ;;  %v9802_v23 = vld [vmem:[%s15531_s2 + $0x10] ss:$0 sps:$4 sm:$0xff]  }
 0x415   :  { %v3646_v1 = vsel %vm3644_vm7, %v16412_v27, %v16337_v59  ;;  %v3542_v53 = vsel %vm3540_vm2, %v16413_v33, %v14314_v60  ;;  %vm3744_vm9 = vcmp.lt.s32.totalorder %v3743_v0, 2  ;;  %v3750_v38 = vsel %vm3748_vm8, %v3749_v51, %v14547_v50  ;;  %v16425_v0 = vld [vmem:[#allocation80_spill] sm:$0xff]  ;;  %v16436_v27 = vld [vmem:[#allocation29_spill] sm:$0xff]  ;;  %v16438_v33 = vld [vmem:[#allocation90_spill] sm:$0xff] }
 0x416   :  { %v3647_v63 = vsel %vm3640_vm10, %v3643_v32, %v3646_v1  ;;  %v3543_v31 = vsel %vm3536_vm13, %v3539_v55, %v3542_v53  ;;  %v3751_v60 = vsel %vm3744_vm9, %v3747_v21, %v3750_v38  ;;  %vm3848_vm14 = vcmp.lt.s32.totalorder %v3847_v10, 2  ;;  %v16441_v21 = vld [vmem:[#allocation93_spill] sm:$0xff]  ;;  %v16443_v38 = vld [vmem:[#allocation91_spill] sm:$0xff] }
 0x417   :  { %v14977_v37 = vsel %vm16414_vm5, nan, %v3647_v63  ;;  %v14981_v49 = vsel %vm16416_vm1, nan, %v3543_v31  ;;  %vm3849_vm13 = vcmp.eq.s32.totalorder %v3847_v10, 0  ;;  %vm3852_vm6 = vcmp.eq.s32.totalorder %v3847_v10, 2  ;;  %v16440_v63 = vld [vmem:[#allocation89_spill] sm:$0xff] }
 0x418   :  { %v14988_v59 = vsel %vm3741_vm3, nan, %v3751_v60  ;;  %v3851_v48 = vsel %vm3849_vm13, %v14333_v25, %v3850_v24  ;;  %v16417_v36 = vxor.u32 2147483648, %v14333_v25  ;;  %vm3952_vm2 = vcmp.lt.s32.totalorder %v3951_v46, 2 }
 0x419   :  { %vm3953_vm4 = vcmp.eq.s32.totalorder %v3951_v46, 0  ;;  %vm3956_vm7 = vcmp.eq.s32.totalorder %v3951_v46, 2  ;;  %vm4057_vm10 = vcmp.eq.s32.totalorder %v4055_v57, 0  ;;  %vm16418_vm3 = vweird.f32 %v13991_v7 }
 0x41a   :  { %v3854_v34 = vsel %vm3852_vm6, %v16417_v36, %v14345_v12  ;;  %v16419_v51 = vxor.u32 2147483648, %v14562_v6  ;;  %vm4060_vm11 = vcmp.eq.s32.totalorder %v4055_v57, 2  ;;  %v16420_v25 = vxor.u32 2147483648, %v14722_v22 }
 0x41b   :  { %v3855_v50 = vsel %vm3848_vm14, %v3851_v48, %v3854_v34  ;;  %vm4056_vm8 = vcmp.lt.s32.totalorder %v4055_v57, 2  ;;  %v16421_v15 = vxor.u32 2147483648, %v14553_v39  ;;  %v16422_v42 = vxor.u32 2147483648, %v14711_v18 }
 0x41c   :  { %v15001_v41 = vsel %vm16418_vm3, nan, %v3855_v50  ;;  %v4059_v24 = vsel %vm4057_vm10, %v14553_v39, %v16419_v51  ;;  %v3955_v12 = vsel %vm3953_vm4, %v14711_v18, %v16420_v25  ;;  %vm7807_vm5 = vcmask 1043456   ;;  %v16446_v25 = vld [vmem:[#allocation92_spill] sm:$0xff] }
 0x41d   :  { %v4062_v30 = vsel %vm4060_vm11, %v16421_v15, %v14562_v6  ;;  %v3958_v7 = vsel %vm3956_vm7, %v16422_v42, %v14722_v22  ;;  %9580 = vmatprep.subr.msk.bf16.mxu0 %vm7807_vm5, %v9802_v23  ;;  %v7809_v45 = vsel %vm7807_vm5, %v9802_v23, 0  ;;  %v2598_v10 = vadd.s32 3, %v16423_v58  ;;  %v16424_v22 = vld [vmem:[#allocation83_spill] sm:$0xff]  ;;  %v16447_v15 = vld [vmem:[#allocation20_spill] sm:$0xff]  ;;  %v16448_v58 = vld [vmem:[#allocation49_spill] sm:$0xff] }
 0x41e   :  { %v4063_v16 = vsel %vm4056_vm8, %v4059_v24, %v4062_v30  ;;  %v3959_v5 = vsel %vm3952_vm2, %v3955_v12, %v3958_v7  ;;  %9415 = vmatpush3.bf16.msra.mxu0 %v7809_v45  ;;  %v2495_v39 = vand.u32 3, %v14925_v44  ;;  %v2702_v18 = vadd.s32 3, %v16424_v22  ;;  %v16430_v44 = vld [vmem:[#allocation86_spill] sm:$0xff] }
 0x41f   :  { %v15018_v13 = vsel %vm4053_vm15, nan, %v4063_v16  ;;  %v15022_v17 = vsel %vm3949_vm0, nan, %v3959_v5  ;;  %v2599_v6 = vand.u32 3, %v2598_v10  ;;  %v2806_v11 = vadd.s32 3, %v16425_v0 }
 0x420   :  { %vm2497_vm1 = vcmp.eq.s32.totalorder %v2495_v39, 0  ;;  %vm2500_vm9 = vcmp.eq.s32.totalorder %v2495_v39, 2  ;;  %v16427_v57 = vxor.u32 2147483648, %v16426_v20  ;;  %v16429_v26 = vxor.u32 2147483648, %v16428_v47 }
 0x421   :  { %vm2601_vm0 = vcmp.eq.s32.totalorder %v2599_v6, 0  ;;  %vm2604_vm15 = vcmp.eq.s32.totalorder %v2599_v6, 2  ;;  %v2703_v2 = vand.u32 3, %v2702_v18  ;;  %vm2496_vm14 = vcmp.lt.s32.totalorder %v2495_v39, 2  ;;  %v16450_v39 = vld [vmem:[#allocation47_spill] sm:$0xff] }
 0x422   :  { %v2499_v52 = vsel %vm2497_vm1, %v16428_v47, %v16427_v57  ;;  %v2502_v29 = vsel %vm2500_vm9, %v16429_v26, %v16426_v20  ;;  %v16431_v46 = vxor.u32 2147483648, %v16430_v44  ;;  %v16433_v9 = vxor.u32 2147483648, %v16432_v56  ;;  %v16452_v57 = vld [vmem:[#allocation94_spill] sm:$0xff] }
 0x423   :  { %v2807_v61 = vand.u32 3, %v2806_v11  ;;  %v2503_v62 = vsel %vm2496_vm14, %v2499_v52, %v2502_v29  ;;  %vm2600_vm13 = vcmp.lt.s32.totalorder %v2599_v6, 2  ;;  %vm16435_vm6 = vweird.f32 %v16434_v40  ;;  %v16453_v52 = vld [vmem:[#allocation97_spill] sm:$0xff]  ;;  %v16455_v29 = vld [vmem:[#allocation96_spill] sm:$0xff] }
 0x424   :  { %v2603_v19 = vsel %vm2601_vm0, %v16432_v56, %v16431_v46  ;;  %v2606_v8 = vsel %vm2604_vm15, %v16433_v9, %v16430_v44  ;;  %v2504_v54 = vsel %vm16435_vm6, nan, %v2503_v62  ;;  %v9762_v32 = vpop.permute.xlu0 %9761  ;;  %vm2705_vm2 = vcmp.eq.s32.totalorder %v2703_v2, 0  ;;  %v16457_v56 = vld [vmem:[#allocation22_spill] sm:$0xff] }
 0x425   :  { %v2607_v4 = vsel %vm2600_vm13, %v2603_v19, %v2606_v8  ;;  %v9764_v35 = vunpack.i.h.bf16 %v9762_v32  ;;  %v9763_v55 = vunpack.i.l.bf16 %v9762_v32  ;;  %vm2708_vm4 = vcmp.eq.s32.totalorder %v2703_v2, 2  ;;  %v16459_v9 = vld [vmem:[#allocation70_spill] sm:$0xff] }
 0x426   :  { %vm2809_vm7 = vcmp.eq.s32.totalorder %v2807_v61, 0  ;;  %vm16437_vm10 = vweird.f32 %v16436_v27  ;;  %v16439_v53 = vxor.u32 2147483648, %v16438_v33  ;;  %vm2812_vm3 = vcmp.eq.s32.totalorder %v2807_v61, 2  ;;  %v16461_v27 = vld [vmem:[#allocation14_spill] sm:$0xff] }
 0x427   :  { %v2608_v1 = vsel %vm16437_vm10, nan, %v2607_v4  ;;  %v16442_v3 = vxor.u32 2147483648, %v16441_v21  ;;  %v7506_v36 = vsel %vm7489_vm12, %v2504_v54, %v9763_v55  ;;  %v16444_v34 = vxor.u32 2147483648, %v16440_v63 }
 0x428   :  { %v2811_v31 = vsel %vm2809_vm7, %v16440_v63, %v16439_v53  ;;  %v7507_v48 = vsel %vm7489_vm12, %v2608_v1, %v9764_v35  ;;  %v16445_v50 = vxor.u32 2147483648, %v16443_v38  ;;  %vm2704_vm11 = vcmp.lt.s32.totalorder %v2703_v2, 2 }
 0x429   :  { %v2707_v60 = vsel %vm2705_vm2, %v16443_v38, %v16442_v3  ;;  %v2814_v23 = vsel %vm2812_vm3, %v16444_v34, %v16438_v33  ;;  %v7562_v24 = vpack.c.bf16 %v7507_v48, %v7506_v36  ;;  %vm2808_vm8 = vcmp.lt.s32.totalorder %v2807_v61, 2  ;;  %v16463_v33 = vld [vmem:[#allocation4_spill] sm:$0xff]  ;;  %v16467_v38 = vld [vmem:[#allocation102_spill] sm:$0xff] }
 0x42a   :  { %v2710_v51 = vsel %vm2708_vm4, %v16445_v50, %v16441_v21  ;;  %v3014_v12 = vadd.s32 3, %v16446_v25  ;;  %v2910_v30 = vadd.s32 3, %v16447_v15  ;;  %v2815_v42 = vsel %vm2808_vm8, %v2811_v31, %v2814_v23  ;;  %v9767_v16 = vpop.permute.xlu1 %9766  ;;  %v16465_v21 = vld [vmem:[#allocation103_spill] sm:$0xff]  ;;  %v16469_v25 = vld [vmem:[#allocation81_spill] sm:$0xff] }
 0x42b   :  { %v2711_v7 = vsel %vm2704_vm11, %v2707_v60, %v2710_v51  ;;  %7682 = vrot.lane.b32.xlu0 %v7562_v24, %s10085_s15  ;;  %v9769_v5 = vunpack.i.h.bf16 %v9767_v16  ;;  %v9768_v45 = vunpack.i.l.bf16 %v9767_v16  ;;  %vm16449_vm5 = vweird.f32 %v16448_v58 }
 0x42c   :  { %v2816_v10 = vsel %vm16449_vm5, nan, %v2815_v42  ;;  %vm16451_vm1 = vweird.f32 %v16450_v39  ;;  %v3015_v22 = vand.u32 3, %v3014_v12  ;;  %v2911_v18 = vand.u32 3, %v2910_v30 }
 0x42d   :  { %v2712_v6 = vsel %vm16451_vm1, nan, %v2711_v7  ;;  %v7509_v0 = vsel %vm7489_vm12, %v2816_v10, %v9769_v5  ;;  %v3118_v47 = vadd.s32 3, %v16452_v57  ;;  %v16454_v26 = vxor.u32 2147483648, %v16453_v52 }
 0x42e   :  { %v7508_v11 = vsel %vm7489_vm12, %v2712_v6, %v9768_v45  ;;  %vm2913_vm9 = vcmp.eq.s32.totalorder %v2911_v18, 0  ;;  %vm2916_vm0 = vcmp.eq.s32.totalorder %v2911_v18, 2  ;;  %vm3017_vm15 = vcmp.eq.s32.totalorder %v3015_v22, 0 }
 0x42f   :  { %v7563_v20 = vpack.c.bf16 %v7509_v0, %v7508_v11  ;;  %vm3020_vm14 = vcmp.eq.s32.totalorder %v3015_v22, 2  ;;  %v2915_v2 = vsel %vm2913_vm9, %v16455_v29, %v16454_v26  ;;  %v16456_v44 = vxor.u32 2147483648, %v16455_v29  ;;  %v9805_v29 = vld [vmem:[%s15532_s1 + $0x10] sm:$0xff]  }
 0x430   :  { %v16458_v19 = vxor.u32 2147483648, %v16457_v56  ;;  %v16460_v61 = vxor.u32 2147483648, %v16459_v9  ;;  %v3119_v4 = vand.u32 3, %v3118_v47  ;;  %vm2912_vm13 = vcmp.lt.s32.totalorder %v2911_v18, 2 }
 0x431   :  { %7684 = vrot.lane.b32.xlu1 %v7563_v20, %s10085_s15  ;;  %v2918_v46 = vsel %vm2916_vm0, %v16456_v44, %v16453_v52  ;;  %vm3016_vm6 = vcmp.lt.s32.totalorder %v3015_v22, 2  ;;  %vm16462_vm2 = vweird.f32 %v16461_v27  ;;  %vm16464_vm4 = vweird.f32 %v16463_v33 }
 0x432   :  { %v3019_v8 = vsel %vm3017_vm15, %v16459_v9, %v16458_v19  ;;  %v3022_v62 = vsel %vm3020_vm14, %v16460_v61, %v16457_v56  ;;  %v2919_v40 = vsel %vm2912_vm13, %v2915_v2, %v2918_v46  ;;  %vm3121_vm7 = vcmp.eq.s32.totalorder %v3119_v4, 0 }
 0x433   :  { %v3023_v54 = vsel %vm3016_vm6, %v3019_v8, %v3022_v62  ;;  %v2920_v1 = vsel %vm16462_vm2, nan, %v2919_v40  ;;  %vm3124_vm10 = vcmp.eq.s32.totalorder %v3119_v4, 2  ;;  %v16466_v3 = vxor.u32 2147483648, %v16465_v21 }
 0x434   :  { %v3024_v53 = vsel %vm16464_vm4, nan, %v3023_v54  ;;  %v16468_v48 = vxor.u32 2147483648, %v16467_v38  ;;  %vm3120_vm3 = vcmp.lt.s32.totalorder %v3119_v4, 2  ;;  %vm16470_vm11 = vweird.f32 %v16469_v25 }
 0x435   :  { %v3123_v60 = vsel %vm3121_vm7, %v16467_v38, %v16466_v3  ;;  %vm7698_vm8 = vcmask 130048   ;;  %vm7774_vm5 = vcmask 326656   ;;  %vm16471_vm1 = vcmask 23552  }
 0x436   :  { %v3126_v36 = vsel %vm3124_vm10, %v16468_v48, %v16465_v21  ;;  %v9811_v21 = vld [vmem:[%s15532_s1 + $0x40] sm:$0xff]   ;;  %vm16472_vm9 = vmmov %vm16471_vm1 }
 0x437   :  { %v9772_v32 = vpop.permute.xlu0 %9771  ;;  %v3127_v23 = vsel %vm3120_vm3, %v3123_v60, %v3126_v36  ;;  %v9812_v60 = vld [vmem:[%s15532_s1 + $0x48] sm:$0xff]   ;;  %vm16473_vm0 = vmmov %vm16471_vm1 }
 0x438   :  { %v9774_v35 = vunpack.i.h.bf16 %v9772_v32  ;;  %v9773_v55 = vunpack.i.l.bf16 %v9772_v32  ;;  %v3128_v12 = vsel %vm16470_vm11, nan, %v3127_v23  ;;  %v9809_v32 = vld [vmem:[%s15532_s1 + $0x30] sm:$0xff]   ;;  %vm16474_vm15 = vmmov %vm16473_vm0 }
 0x439   :  { %vm16475_vm14 = vmmov %vm16473_vm0 }
 0x43a   :  { %v7511_v63 = vsel %vm7489_vm12, %v3024_v53, %v9774_v35  ;;  %v7510_v31 = vsel %vm7489_vm12, %v2920_v1, %v9773_v55  ;;  %v9808_v35 = vld [vmem:[%s15532_s1 + $0x28] sm:$0xff]   ;;  %v9810_v53 = vld [vmem:[%s15532_s1 + $0x38] sm:$0xff]   ;;  %vm16476_vm13 = vmmov %vm16473_vm0 }
 0x43b   :  { %v7564_v34 = vpack.c.bf16 %v7511_v63, %v7510_v31  ;;  %vm16477_vm6 = vmmov %vm16473_vm0 }
 0x43c   :  { %vm16478_vm2 = vmmov %vm16473_vm0 }
 0x43d   :  { %7686 = vrot.lane.b32.xlu0 %v7564_v34, %s10085_s15  ;;  %v9813_v34 = vld [vmem:[%s15532_s1 + $0x50] sm:$0xff]   ;;  %vm16479_vm4 = vmmov %vm16473_vm0 }
 0x43e   :  { %v9777_v50 = vpop.permute.xlu1 %9776  ;;  %vm16480_vm7 = vmmov %vm16473_vm0 }
 0x43f   :  { %v9779_v51 = vunpack.i.h.bf16 %v9777_v50  ;;  %v9778_v24 = vunpack.i.l.bf16 %v9777_v50  ;;  %vm16481_vm10 = vmmov %vm16473_vm0 }
 0x440   :  { %vm16482_vm3 = vmmov %vm16473_vm0 }
 0x441   :  { %v7513_v15 = vsel %vm7489_vm12, %v14941_v14, %v9779_v51  ;;  %v7512_v30 = vsel %vm7489_vm12, %v3128_v12, %v9778_v24  ;;  %v9814_v51 = vld [vmem:[%s15532_s1 + $0x58] sm:$0xff]   ;;  %v9815_v12 = vld [vmem:[%s15532_s1 + $0x60] sm:$0xff]   ;;  %vm16483_vm11 = vmmov %vm16473_vm0 }
 0x442   :  { %v7565_v42 = vpack.c.bf16 %v7513_v15, %v7512_v30  ;;  %v8004_v15 = vld [vmem:[%s15533_s4] sm:$0xff]  ;;  %v8005_v30 = vld [vmem:[%s15533_s4 + $0x8] sm:$0xff] }
 0x444   :  { %7688 = vrot.lane.b32.xlu1 %v7565_v42, %s10085_s15  ;;  %v9560_v42 = vpack.c.bf16 %v8005_v30, %v8004_v15 }
 0x446   :  { %9561 = vmatprep.subr.bf16.mxu0 %v9560_v42  ;;  %9576 = vmatprep.subr.bf16.mxu1 %v9560_v42 }
 0x447   :  { %9578 = vmatpush3.bf16.msra.mxu1 %v9560_v42 }
 0x452   :  { %v9782_v7 = vpop.permute.xlu0 %9781 }
 0x453   :  { %v9784_v16 = vunpack.i.h.bf16 %v9782_v7  ;;  %v9783_v5 = vunpack.i.l.bf16 %v9782_v7  ;;  %v8006_v7 = vld [vmem:[%s15533_s4 + $0x10] sm:$0xff] }
 0x455   :  { %v7515_v45 = vsel %vm7489_vm12, %v14958_v28, %v9784_v16  ;;  %v7514_v58 = vsel %vm7489_vm12, %v14948_v43, %v9783_v5  ;;  %v9803_v43 = vld [vmem:[%s15532_s1] sm:$0xff]   ;;  %v8007_v16 = vld [vmem:[%s15533_s4 + $0x18] sm:$0xff] }
 0x456   :  { %v7566_v10 = vpack.c.bf16 %v7515_v45, %v7514_v58  ;;  %v9564_v45 = vpack.c.bf16 %v8007_v16, %v8006_v7 }
 0x457   :  { %v9787_v39 = vpop.permute.xlu1 %9786 }
 0x458   :  { %v9789_v6 = vunpack.i.h.bf16 %v9787_v39  ;;  %v9788_v22 = vunpack.i.l.bf16 %v9787_v39  ;;  %7690 = vrot.lane.b32.xlu0 %v7566_v10, %s10085_s15  ;;  %v9816_v10 = vld [vmem:[%s15532_s1 + $0x68] sm:$0xff]   ;;  %9577 = vmatprep.subr.bf16.mxu1 %v9564_v45 }
 0x459   :  { %9579 = vmatpush3.bf16.msra.mxu1 %v9564_v45 }
 0x45a   :  { %v7517_v14 = vsel %vm7489_vm12, %v14977_v37, %v9789_v6  ;;  %v7516_v18 = vsel %vm7489_vm12, %v14981_v49, %v9788_v22  ;;  %v9817_v22 = vld [vmem:[%s15532_s1 + $0x70] sm:$0xff]  }
 0x45b   :  { %v7567_v0 = vpack.c.bf16 %v7517_v14, %v7516_v18 }
 0x45d   :  { %7692 = vrot.lane.b32.xlu1 %v7567_v0, %s10085_s15  ;;  %v9818_v0 = vld [vmem:[%s15532_s1 + $0x78] sm:$0xff]  }
 0x469   :  { %v9792_v11 = vpop.permute.xlu0 %9791 }
 0x46a   :  { %v9794_v28 = vunpack.i.h.bf16 %v9792_v11  ;;  %v9793_v20 = vunpack.i.l.bf16 %v9792_v11 }
 0x46c   :  { %v7519_v57 = vsel %vm7489_vm12, %v15001_v41, %v9794_v28  ;;  %v7518_v37 = vsel %vm7489_vm12, %v14988_v59, %v9793_v20  ;;  %v9804_v59 = vld [vmem:[%s15532_s1 + $0x8] sm:$0xff]   ;;  %v15214_v20 = vld [vmem:[%s15534_s3] ss:$0 sm:$0xff] }
 0x46d   :  { %v7568_v47 = vpack.c.bf16 %v7519_v57, %v7518_v37  ;;  %v8369_v37 = vld [vmem:[%s15535_s6] sm:$0xff] }
 0x46e   :  { %v9797_v52 = vpop.permute.xlu1 %9796 }
 0x46f   :  { %v7667_v49 = vpop.permute.xlu0 %7666  ;;  %v9799_v2 = vunpack.i.h.bf16 %v9797_v52  ;;  %v9798_v44 = vunpack.i.l.bf16 %v9797_v52  ;;  %7694 = vrot.lane.b32.xlu0 %v7568_v47, %s10085_s15  ;;  %v8370_v47 = vld [vmem:[%s15535_s6 + $0x8] sm:$0xff] }
 0x470   :  { %v7701_v26 = vsel %vm7698_vm8, %v9803_v43, %v7667_v49 }
 0x471   :  { %9416 = vmatprep.mubr.msk.bf16.mxu0 %vm7774_vm5, %v7701_v26  ;;  %v7521_v41 = vsel %vm7489_vm12, %v15018_v13, %v9799_v2  ;;  %v7520_v46 = vsel %vm7489_vm12, %v15022_v17, %v9798_v44  ;;  %v9806_v13 = vld [vmem:[%s15532_s1 + $0x18] sm:$0xff]   ;;  %v9807_v17 = vld [vmem:[%s15532_s1 + $0x20] sm:$0xff]   ;;  %v15223_v26 = vpack.c.bf16 %v8370_v47, %v8369_v37  ;;  %vm8015_vm12 = vcmask 261120  }
 0x472   :  { %v7569_v19 = vpack.c.bf16 %v7521_v41, %v7520_v46 }
 0x473   :  { %9569 = vmatprep.subr.bf16.mxu1 %v15223_v26 }
 0x474   :  { %v7671_v56 = vpop.permute.xlu0 %7670  ;;  %7696 = vrot.lane.b32.xlu1 %v7569_v19, %s10085_s15 }
 0x475   :  { %v7707_v8 = vsel %vm7698_vm8, %v9805_v29, %v7671_v56 }
 0x476   :  { %v7669_v9 = vpop.permute.xlu1 %7668 }
 0x477   :  { %v7704_v61 = vsel %vm7698_vm8, %v9804_v59, %v7669_v9 }
 0x478   :  { %9417 = vmatmul.mubr.msk.bf16.vlgmr.msra.gmra.mrb[0].mxu0 %vm7774_vm5, %v7704_v61  ;;  %v7675_v4 = vpop.permute.xlu0 %7674 }
 0x479   :  { %9420 = vmatprep.mubr.msk.bf16.mxu0 %vm7774_vm5, %v7707_v8  ;;  %v7713_v54 = vsel %vm7698_vm8, %v9807_v17, %v7675_v4  ;;  %9563 = vmatpush3.bf16.msra.mxu0 %v9560_v42 }
 0x47a   :  { %v7673_v62 = vpop.permute.xlu1 %7672  ;;  %9565 = vmatprep.subr.bf16.mxu0 %v9564_v45 }
 0x47b   :  { %v7710_v40 = vsel %vm7698_vm8, %v9806_v13, %v7673_v62 }
 0x47c   :  { %v7679_v55 = vpop.permute.xlu0 %7678 }
 0x47d   :  { %v7719_v1 = vsel %vm7698_vm8, %v9809_v32, %v7679_v55  ;;  %9567 = vmatpush3.bf16.msra.mxu0 %v9564_v45 }
 0x47e   :  { %v7677_v27 = vpop.permute.xlu1 %7676 }
 0x47f   :  { %v7716_v33 = vsel %vm7698_vm8, %v9808_v35, %v7677_v27 }
 0x480   :  { %9421 = vmatmul.mubr.msk.bf16.gmra.mrb[4].mxu0 %vm7774_vm5, %v7710_v40 }
 0x481   :  { %9424 = vmatprep.mubr.msk.bf16.mxu0 %vm7774_vm5, %v7713_v54 }
 0x482   :  { %v7681_v63 = vpop.permute.xlu1 %7680 }
 0x483   :  { %v7722_v31 = vsel %vm7698_vm8, %v9810_v53, %v7681_v63 }
 0x488   :  { %9425 = vmatmul.mubr.msk.bf16.gmra.mrb[8].mxu0 %vm7774_vm5, %v7716_v33 }
 0x489   :  { %9428 = vmatprep.mubr.msk.bf16.mxu0 %vm7774_vm5, %v7719_v1 }
 0x490   :  { %9429 = vmatmul.mubr.msk.bf16.gmra.mrb[12].mxu0 %vm7774_vm5, %v7722_v31 }
 0x49d   :  { %v7683_v3 = vpop.permute.xlu0 %7682 }
 0x49e   :  { %v7725_v38 = vsel %vm7698_vm8, %v9811_v21, %v7683_v3 }
 0x49f   :  { %9432 = vmatprep.mubr.msk.bf16.mxu0 %vm7774_vm5, %v7725_v38 }
 0x4a3   :  { %v7685_v48 = vpop.permute.xlu1 %7684 }
 0x4a4   :  { %v7728_v36 = vsel %vm7698_vm8, %v9812_v60, %v7685_v48 }
 0x4a5   :  { %9433 = vmatmul.mubr.msk.bf16.gmra.mrb[16].mxu0 %vm7774_vm5, %v7728_v36 }
 0x4af   :  { %v7687_v23 = vpop.permute.xlu0 %7686 }
 0x4b0   :  { %v7731_v50 = vsel %vm7698_vm8, %v9813_v34, %v7687_v23 }
 0x4b1   :  { %9436 = vmatprep.mubr.msk.bf16.mxu0 %vm7774_vm5, %v7731_v50 }
 0x4b6   :  { %v7689_v24 = vpop.permute.xlu1 %7688 }
 0x4b7   :  { %v7734_v25 = vsel %vm7698_vm8, %v9814_v51, %v7689_v24 }
 0x4b8   :  { %9437 = vmatmul.mubr.msk.bf16.gmra.mrb[20].mxu0 %vm7774_vm5, %v7734_v25 }
 0x4ca   :  { %v7691_v5 = vpop.permute.xlu0 %7690 }
 0x4cb   :  { %v7737_v58 = vsel %vm7698_vm8, %v9815_v12, %v7691_v5 }
 0x4cc   :  { %9440 = vmatprep.mubr.msk.bf16.mxu0 %vm7774_vm5, %v7737_v58 }
 0x4cf   :  { %v7693_v39 = vpop.permute.xlu1 %7692 }
 0x4d0   :  { %v7740_v6 = vsel %vm7698_vm8, %v9816_v10, %v7693_v39 }
 0x4d1   :  { %9441 = vmatmul.mubr.msk.bf16.gmra.mrb[24].mxu0 %vm7774_vm5, %v7740_v6 }
 0x4e1   :  { %v7695_v14 = vpop.permute.xlu0 %7694 }
 0x4e2   :  { %v7743_v18 = vsel %vm7698_vm8, %v9817_v22, %v7695_v14 }
 0x4e3   :  { %9444 = vmatprep.mubr.msk.bf16.mxu0 %vm7774_vm5, %v7743_v18 }
 0x4e6   :  { %v7697_v11 = vpop.permute.xlu1 %7696 }
 0x4e7   :  { %v7746_v28 = vsel %vm7698_vm8, %v9818_v0, %v7697_v11  ;;  %vm16484_vm8 = vmmov %vm16473_vm0 }
 0x4e8   :  { %9445 = vmatmul.mubr.msk.bf16.gmra.mrb[28].mxu0 %vm7774_vm5, %v7746_v28  ;;  %vm16485_vm5 = vmmov %vm16473_vm0 }
 0x54b   :  { %v9418_v43 = vpop.f32.mrb[0].mxu0 }
 0x54c   :  { %v7845_v57 = vpop.f32.mrb[1].mxu0  ;;  %v7854_v29 = vadd.f32 %v9418_v43, %v15214_v20 }
 0x54d   :  { %v7846_v49 = vadd.f32 %v15214_v20, %v7845_v57  ;;  %v9419_v52 = vpop.f32.mrb[2].mxu0 }
 0x54e   :  { %v7848_v2 = vpop.f32.mrb[3].mxu0  ;;  %v7857_v41 = vadd.f32 %v9419_v52, %v15214_v20  ;;  %v7974_v56 = vmax.f32 %v7854_v29, 0.0 }
 0x54f   :  { %v7972_v44 = vmax.f32 %v7846_v49, 0.0  ;;  %v7849_v59 = vadd.f32 %v15214_v20, %v7848_v2 }
 0x550   :  { %v7975_v8 = vmax.f32 %v7857_v41, 0.0 }
 0x551   :  { %v7973_v46 = vmax.f32 %v7849_v59, 0.0  ;;  %9456 = vmatprep.mubr.msk.f32.mxu0 %vm8015_vm12, %v7972_v44 }
 0x553   :  { %v9422_v19 = vpop.f32.mrb[4].mxu0  ;;  %9457 = vmatmul.mubr.msk.f32.vlgmr.msra.gmra.mrb[32].mxu0 %vm8015_vm12, %v7973_v46  ;;  %v8371_v46 = vld [vmem:[%s15535_s6 + $0x10] sm:$0xff] }
 0x554   :  { %v7861_v9 = vpop.f32.mrb[5].mxu0  ;;  %9459 = vmatprep.mubr.msk.f32.mxu0 %vm8015_vm12, %v7974_v56  ;;  %v7870_v62 = vadd.f32 %v9422_v19, %v15214_v20  ;;  %v8372_v56 = vld [vmem:[%s15535_s6 + $0x18] sm:$0xff] }
 0x555   :  { %v7862_v61 = vadd.f32 %v15214_v20, %v7861_v9  ;;  %v9423_v13 = vpop.f32.mrb[6].mxu0  ;;  %v9572_v19 = vpack.c.bf16 %v8372_v56, %v8371_v46 }
 0x556   :  { %v7864_v17 = vpop.f32.mrb[7].mxu0  ;;  %v7873_v54 = vadd.f32 %v9423_v13, %v15214_v20  ;;  %v7978_v35 = vmax.f32 %v7870_v62, 0.0 }
 0x557   :  { %v7976_v4 = vmax.f32 %v7862_v61, 0.0  ;;  %v7865_v40 = vadd.f32 %v15214_v20, %v7864_v17  ;;  %9460 = vmatmul.mubr.msk.f32.gmra.mrb[34].mxu0 %vm8015_vm12, %v7975_v8 }
 0x558   :  { %v7979_v1 = vmax.f32 %v7873_v54, 0.0 }
 0x559   :  { %v7977_v32 = vmax.f32 %v7865_v40, 0.0  ;;  %9462 = vmatprep.mubr.msk.f32.mxu0 %vm8015_vm12, %v7976_v4 }
 0x55b   :  { %v9426_v55 = vpop.f32.mrb[8].mxu0  ;;  %9463 = vmatmul.mubr.msk.f32.gmra.mrb[36].mxu0 %vm8015_vm12, %v7977_v32 }
 0x55c   :  { %v7877_v27 = vpop.f32.mrb[9].mxu0  ;;  %9465 = vmatprep.mubr.msk.f32.mxu0 %vm8015_vm12, %v7978_v35  ;;  %v7886_v63 = vadd.f32 %v9426_v55, %v15214_v20 }
 0x55d   :  { %v7878_v33 = vadd.f32 %v15214_v20, %v7877_v27  ;;  %v9427_v53 = vpop.f32.mrb[10].mxu0 }
 0x55e   :  { %v7880_v31 = vpop.f32.mrb[11].mxu0  ;;  %v7889_v38 = vadd.f32 %v9427_v53, %v15214_v20  ;;  %v7982_v48 = vmax.f32 %v7886_v63, 0.0 }
 0x55f   :  { %v7980_v21 = vmax.f32 %v7878_v33, 0.0  ;;  %v7881_v3 = vadd.f32 %v15214_v20, %v7880_v31  ;;  %9466 = vmatmul.mubr.msk.f32.gmra.mrb[38].mxu0 %vm8015_vm12, %v7979_v1 }
 0x560   :  { %v7983_v50 = vmax.f32 %v7889_v38, 0.0 }
 0x561   :  { %v7981_v60 = vmax.f32 %v7881_v3, 0.0  ;;  %9468 = vmatprep.mubr.msk.f32.mxu0 %vm8015_vm12, %v7980_v21 }
 0x563   :  { %v9430_v36 = vpop.f32.mrb[12].mxu0  ;;  %9469 = vmatmul.mubr.msk.f32.gmra.mrb[40].mxu0 %vm8015_vm12, %v7981_v60 }
 0x564   :  { %v7902_v34 = vadd.f32 %v9430_v36, %v15214_v20  ;;  %v7893_v23 = vpop.f32.mrb[13].mxu0  ;;  %9471 = vmatprep.mubr.msk.f32.mxu0 %vm8015_vm12, %v7982_v48 }
 0x565   :  { %v7894_v51 = vadd.f32 %v15214_v20, %v7893_v23  ;;  %v9431_v24 = vpop.f32.mrb[14].mxu0 }
 0x566   :  { %v7986_v25 = vmax.f32 %v7902_v34, 0.0  ;;  %v7905_v12 = vadd.f32 %v9431_v24, %v15214_v20  ;;  %v7896_v15 = vpop.f32.mrb[15].mxu0  ;;  %v15299_v34 = vld [vmem:[%s15536_s5] ss:$0 sm:$0xff] }
 0x567   :  { %v7984_v30 = vmax.f32 %v7894_v51, 0.0  ;;  %v7897_v42 = vadd.f32 %v15214_v20, %v7896_v15  ;;  %9472 = vmatmul.mubr.msk.f32.gmra.mrb[42].mxu0 %vm8015_vm12, %v7983_v50 }
 0x568   :  { %v7987_v7 = vmax.f32 %v7905_v12, 0.0  ;;  %9477 = vmatprep.mubr.msk.f32.mxu1 %vm8015_vm12, %v7986_v25 }
 0x569   :  { %v7985_v16 = vmax.f32 %v7897_v42, 0.0  ;;  %9474 = vmatprep.mubr.msk.f32.mxu0 %vm8015_vm12, %v7984_v30 }
 0x56a   :  { %9478 = vmatmul.mubr.msk.f32.vlgmr.msra.gmra.mrb[0].mxu1 %vm8015_vm12, %v7987_v7 }
 0x56b   :  { %9475 = vmatmul.mubr.msk.f32.gmra.mrb[44].mxu0 %vm8015_vm12, %v7985_v16  ;;  %9571 = vmatpush3.bf16.msra.mxu1 %v15223_v26 }
 0x56c   :  { %9573 = vmatprep.subr.bf16.mxu1 %v9572_v19 }
 0x56f   :  { %9575 = vmatpush3.bf16.msra.mxu1 %v9572_v19 }
 0x578   :  { %v9434_v5 = vpop.f32.mrb[16].mxu0 }
 0x579   :  { %v7909_v45 = vpop.f32.mrb[17].mxu0  ;;  %v7918_v39 = vadd.f32 %v9434_v5, %v15214_v20 }
 0x57a   :  { %v7910_v58 = vadd.f32 %v15214_v20, %v7909_v45  ;;  %v9435_v10 = vpop.f32.mrb[18].mxu0 }
 0x57b   :  { %v7912_v6 = vpop.f32.mrb[19].mxu0  ;;  %v7921_v18 = vadd.f32 %v9435_v10, %v15214_v20  ;;  %v7990_v11 = vmax.f32 %v7918_v39, 0.0 }
 0x57c   :  { %v7988_v22 = vmax.f32 %v7910_v58, 0.0  ;;  %v7913_v14 = vadd.f32 %v15214_v20, %v7912_v6 }
 0x57d   :  { %v7991_v28 = vmax.f32 %v7921_v18, 0.0 }
 0x57e   :  { %v7989_v0 = vmax.f32 %v7913_v14, 0.0  ;;  %9480 = vmatprep.mubr.msk.f32.mxu1 %vm8015_vm12, %v7988_v22 }
 0x580   :  { %9481 = vmatmul.mubr.msk.f32.gmra.mrb[2].mxu1 %vm8015_vm12, %v7989_v0 }
 0x581   :  { %9483 = vmatprep.mubr.msk.f32.mxu1 %vm8015_vm12, %v7990_v11 }
 0x584   :  { %9484 = vmatmul.mubr.msk.f32.gmra.mrb[4].mxu1 %vm8015_vm12, %v7991_v28 }
 0x58b   :  { %v9438_v43 = vpop.f32.mrb[20].mxu0 }
 0x58c   :  { %v7925_v57 = vpop.f32.mrb[21].mxu0  ;;  %v7934_v49 = vadd.f32 %v9438_v43, %v15214_v20 }
 0x58d   :  { %v7926_v37 = vadd.f32 %v15214_v20, %v7925_v57  ;;  %v9439_v47 = vpop.f32.mrb[22].mxu0 }
 0x58e   :  { %v7928_v52 = vpop.f32.mrb[23].mxu0  ;;  %v7937_v2 = vadd.f32 %v9439_v47, %v15214_v20  ;;  %v7994_v59 = vmax.f32 %v7934_v49, 0.0 }
 0x58f   :  { %v7992_v26 = vmax.f32 %v7926_v37, 0.0  ;;  %v7929_v29 = vadd.f32 %v15214_v20, %v7928_v52 }
 0x590   :  { %v7995_v41 = vmax.f32 %v7937_v2, 0.0 }
 0x591   :  { %v7993_v44 = vmax.f32 %v7929_v29, 0.0  ;;  %9486 = vmatprep.mubr.msk.f32.mxu1 %vm8015_vm12, %v7992_v26 }
 0x593   :  { %9487 = vmatmul.mubr.msk.f32.gmra.mrb[6].mxu1 %vm8015_vm12, %v7993_v44 }
 0x594   :  { %9489 = vmatprep.mubr.msk.f32.mxu1 %vm8015_vm12, %v7994_v59 }
 0x597   :  { %9490 = vmatmul.mubr.msk.f32.gmra.mrb[8].mxu1 %vm8015_vm12, %v7995_v41 }
 0x5a4   :  { %v9442_v9 = vpop.f32.mrb[24].mxu0 }
 0x5a5   :  { %v7941_v8 = vpop.f32.mrb[25].mxu0  ;;  %v7950_v62 = vadd.f32 %v9442_v9, %v15214_v20 }
 0x5a6   :  { %v7942_v61 = vadd.f32 %v15214_v20, %v7941_v8  ;;  %v9443_v13 = vpop.f32.mrb[26].mxu0 }
 0x5a7   :  { %v7944_v17 = vpop.f32.mrb[27].mxu0  ;;  %v7953_v54 = vadd.f32 %v9443_v13, %v15214_v20  ;;  %v7998_v35 = vmax.f32 %v7950_v62, 0.0 }
 0x5a8   :  { %v7996_v4 = vmax.f32 %v7942_v61, 0.0  ;;  %v7945_v40 = vadd.f32 %v15214_v20, %v7944_v17 }
 0x5a9   :  { %v7999_v55 = vmax.f32 %v7953_v54, 0.0 }
 0x5aa   :  { %v7997_v32 = vmax.f32 %v7945_v40, 0.0  ;;  %9492 = vmatprep.mubr.msk.f32.mxu1 %vm8015_vm12, %v7996_v4 }
 0x5ac   :  { %9493 = vmatmul.mubr.msk.f32.gmra.mrb[10].mxu1 %vm8015_vm12, %v7997_v32 }
 0x5ad   :  { %9495 = vmatprep.mubr.msk.f32.mxu1 %vm8015_vm12, %v7998_v35 }
 0x5b0   :  { %9496 = vmatmul.mubr.msk.f32.gmra.mrb[12].mxu1 %vm8015_vm12, %v7999_v55 }
 0x5bb   :  { %v9446_v27 = vpop.f32.mrb[28].mxu0 }
 0x5bc   :  { %v7957_v1 = vpop.f32.mrb[29].mxu0  ;;  %v7966_v63 = vadd.f32 %v9446_v27, %v15214_v20 }
 0x5bd   :  { %v7958_v33 = vadd.f32 %v15214_v20, %v7957_v1  ;;  %v9447_v53 = vpop.f32.mrb[30].mxu0 }
 0x5be   :  { %v7960_v31 = vpop.f32.mrb[31].mxu0  ;;  %v7969_v38 = vadd.f32 %v9447_v53, %v15214_v20  ;;  %v8002_v48 = vmax.f32 %v7966_v63, 0.0 }
 0x5bf   :  { %v8000_v21 = vmax.f32 %v7958_v33, 0.0  ;;  %v7961_v3 = vadd.f32 %v15214_v20, %v7960_v31 }
 0x5c0   :  { %v8003_v36 = vmax.f32 %v7969_v38, 0.0 }
 0x5c1   :  { %v8001_v60 = vmax.f32 %v7961_v3, 0.0  ;;  %9498 = vmatprep.mubr.msk.f32.mxu1 %vm8015_vm12, %v8000_v21 }
 0x5c3   :  { %9499 = vmatmul.mubr.msk.f32.gmra.mrb[14].mxu1 %vm8015_vm12, %v8001_v60 }
 0x5c4   :  { %9501 = vmatprep.mubr.msk.f32.mxu1 %vm8015_vm12, %v8002_v48 }
 0x5c7   :  { %9502 = vmatmul.mubr.msk.f32.gmra.mrb[16].mxu1 %vm8015_vm12, %v8003_v36 }
 0x626   :  { %v9458_v23 = vpop.f32.mrb[32].mxu0 }
 0x627   :  { %v8184_v50 = vadd.f32 %v9458_v23, %v15299_v34  ;;  %v8178_v20 = vpop.f32.mrb[33].mxu0 }
 0x628   :  { %v8179_v51 = vadd.f32 %v15299_v34, %v8178_v20 }
 0x629   :  { %v8338_v12 = vmax.f32 %v8184_v50, 0.0 }
 0x62a   :  { %v8337_v24 = vmax.f32 %v8179_v51, 0.0  ;;  %v9461_v25 = vpop.f32.mrb[34].mxu0 }
 0x62b   :  { %v8194_v15 = vadd.f32 %v9461_v25, %v15299_v34  ;;  %v8188_v30 = vpop.f32.mrb[35].mxu0 }
 0x62c   :  { %v8189_v42 = vadd.f32 %v15299_v34, %v8188_v30  ;;  %9512 = vmatprep.mubr.msk.f32.mxu1 %vm8015_vm12, %v8337_v24 }
 0x62d   :  { %9513 = vmatmul.mubr.msk.f32.vlgmr.msra.gmra.mrb[18].mxu1 %vm8015_vm12, %v8338_v12  ;;  %v8340_v5 = vmax.f32 %v8194_v15, 0.0 }
 0x62e   :  { %v8339_v7 = vmax.f32 %v8189_v42, 0.0  ;;  %v9464_v16 = vpop.f32.mrb[36].mxu0 }
 0x62f   :  { %v8204_v45 = vadd.f32 %v9464_v16, %v15299_v34  ;;  %v8198_v58 = vpop.f32.mrb[37].mxu0 }
 0x630   :  { %v8199_v10 = vadd.f32 %v15299_v34, %v8198_v58  ;;  %9515 = vmatprep.mubr.msk.f32.mxu1 %vm8015_vm12, %v8339_v7 }
 0x631   :  { %9516 = vmatmul.mubr.msk.f32.gmra.mrb[20].mxu1 %vm8015_vm12, %v8340_v5  ;;  %v8342_v22 = vmax.f32 %v8204_v45, 0.0 }
 0x632   :  { %v8341_v39 = vmax.f32 %v8199_v10, 0.0  ;;  %v9467_v6 = vpop.f32.mrb[38].mxu0 }
 0x633   :  { %v8214_v14 = vadd.f32 %v9467_v6, %v15299_v34  ;;  %v8208_v18 = vpop.f32.mrb[39].mxu0 }
 0x634   :  { %v8209_v0 = vadd.f32 %v15299_v34, %v8208_v18  ;;  %9518 = vmatprep.mubr.msk.f32.mxu1 %vm8015_vm12, %v8341_v39 }
 0x635   :  { %9519 = vmatmul.mubr.msk.f32.gmra.mrb[22].mxu1 %vm8015_vm12, %v8342_v22  ;;  %v8344_v43 = vmax.f32 %v8214_v14, 0.0 }
 0x636   :  { %v8343_v11 = vmax.f32 %v8209_v0, 0.0  ;;  %v9470_v28 = vpop.f32.mrb[40].mxu0 }
 0x637   :  { %v8224_v57 = vadd.f32 %v9470_v28, %v15299_v34  ;;  %v8218_v37 = vpop.f32.mrb[41].mxu0 }
 0x638   :  { %v8219_v47 = vadd.f32 %v15299_v34, %v8218_v37  ;;  %9521 = vmatprep.mubr.msk.f32.mxu1 %vm8015_vm12, %v8343_v11 }
 0x639   :  { %9522 = vmatmul.mubr.msk.f32.gmra.mrb[24].mxu1 %vm8015_vm12, %v8344_v43  ;;  %v8346_v26 = vmax.f32 %v8224_v57, 0.0 }
 0x63a   :  { %v8345_v49 = vmax.f32 %v8219_v47, 0.0  ;;  %v9473_v52 = vpop.f32.mrb[42].mxu0 }
 0x63b   :  { %v8234_v29 = vadd.f32 %v9473_v52, %v15299_v34  ;;  %v8228_v2 = vpop.f32.mrb[43].mxu0 }
 0x63c   :  { %v8229_v44 = vadd.f32 %v15299_v34, %v8228_v2  ;;  %9524 = vmatprep.mubr.msk.f32.mxu1 %vm8015_vm12, %v8345_v49 }
 0x63d   :  { %v9479_v59 = vpop.f32.mrb[0].mxu1  ;;  %9525 = vmatmul.mubr.msk.f32.gmra.mrb[26].mxu1 %vm8015_vm12, %v8346_v26  ;;  %v8348_v19 = vmax.f32 %v8234_v29, 0.0 }
 0x63e   :  { %v8347_v41 = vmax.f32 %v8229_v44, 0.0  ;;  %v9476_v46 = vpop.f32.mrb[44].mxu0  ;;  %v8248_v56 = vpop.f32.mrb[1].mxu1  ;;  %v8254_v17 = vadd.f32 %v9479_v59, %v15299_v34  ;;  %v15368_v44 = vld [vmem:[%s15537_s7] ss:$0 sm:$0xff] }
 0x63f   :  { %v8244_v9 = vadd.f32 %v9476_v46, %v15299_v34  ;;  %v8238_v8 = vpop.f32.mrb[45].mxu0  ;;  %v8249_v61 = vadd.f32 %v15299_v34, %v8248_v56 }
 0x640   :  { %v8239_v13 = vadd.f32 %v15299_v34, %v8238_v8  ;;  %9527 = vmatprep.mubr.msk.f32.mxu1 %vm8015_vm12, %v8347_v41  ;;  %v8352_v54 = vmax.f32 %v8254_v17, 0.0 }
 0x641   :  { %9528 = vmatmul.mubr.msk.f32.gmra.mrb[28].mxu1 %vm8015_vm12, %v8348_v19  ;;  %v8350_v4 = vmax.f32 %v8244_v9, 0.0  ;;  %v8351_v40 = vmax.f32 %v8249_v61, 0.0 }
 0x642   :  { %v8349_v62 = vmax.f32 %v8239_v13, 0.0 }
 0x644   :  { %9530 = vmatprep.mubr.msk.f32.mxu1 %vm8015_vm12, %v8349_v62 }
 0x645   :  { %9531 = vmatmul.mubr.msk.f32.gmra.mrb[30].mxu1 %vm8015_vm12, %v8350_v4 }
 0x646   :  { %9533 = vmatprep.mubr.msk.f32.mxu1 %vm8015_vm12, %v8351_v40 }
 0x649   :  { %9534 = vmatmul.mubr.msk.f32.gmra.mrb[32].mxu1 %vm8015_vm12, %v8352_v54 }
 0x653   :  { %v9482_v32 = vpop.f32.mrb[2].mxu1 }
 0x654   :  { %v8264_v35 = vadd.f32 %v9482_v32, %v15299_v34  ;;  %v8258_v55 = vpop.f32.mrb[3].mxu1 }
 0x655   :  { %v8259_v27 = vadd.f32 %v15299_v34, %v8258_v55 }
 0x656   :  { %v8354_v53 = vmax.f32 %v8264_v35, 0.0 }
 0x657   :  { %v8353_v1 = vmax.f32 %v8259_v27, 0.0  ;;  %v9485_v33 = vpop.f32.mrb[4].mxu1 }
 0x658   :  { %v8274_v63 = vadd.f32 %v9485_v33, %v15299_v34  ;;  %v8268_v31 = vpop.f32.mrb[5].mxu1 }
 0x659   :  { %v8269_v21 = vadd.f32 %v15299_v34, %v8268_v31  ;;  %9536 = vmatprep.mubr.msk.f32.mxu1 %vm8015_vm12, %v8353_v1 }
 0x65a   :  { %9537 = vmatmul.mubr.msk.f32.gmra.mrb[34].mxu1 %vm8015_vm12, %v8354_v53  ;;  %v8356_v38 = vmax.f32 %v8274_v63, 0.0 }
 0x65b   :  { %v8355_v3 = vmax.f32 %v8269_v21, 0.0 }
 0x65d   :  { %9539 = vmatprep.mubr.msk.f32.mxu1 %vm8015_vm12, %v8355_v3 }
 0x65e   :  { %9540 = vmatmul.mubr.msk.f32.gmra.mrb[36].mxu1 %vm8015_vm12, %v8356_v38 }
 0x666   :  { %v9488_v60 = vpop.f32.mrb[6].mxu1 }
 0x667   :  { %v8284_v48 = vadd.f32 %v9488_v60, %v15299_v34  ;;  %v8278_v36 = vpop.f32.mrb[7].mxu1 }
 0x668   :  { %v8279_v23 = vadd.f32 %v15299_v34, %v8278_v36 }
 0x669   :  { %v8358_v51 = vmax.f32 %v8284_v48, 0.0 }
 0x66a   :  { %v8357_v50 = vmax.f32 %v8279_v23, 0.0  ;;  %v9491_v20 = vpop.f32.mrb[8].mxu1 }
 0x66b   :  { %v8294_v24 = vadd.f32 %v9491_v20, %v15299_v34  ;;  %v8288_v25 = vpop.f32.mrb[9].mxu1 }
 0x66c   :  { %v8289_v12 = vadd.f32 %v15299_v34, %v8288_v25  ;;  %9542 = vmatprep.mubr.msk.f32.mxu1 %vm8015_vm12, %v8357_v50 }
 0x66d   :  { %9543 = vmatmul.mubr.msk.f32.gmra.mrb[38].mxu1 %vm8015_vm12, %v8358_v51  ;;  %v8360_v30 = vmax.f32 %v8294_v24, 0.0 }
 0x66e   :  { %v8359_v15 = vmax.f32 %v8289_v12, 0.0 }
 0x670   :  { %9545 = vmatprep.mubr.msk.f32.mxu1 %vm8015_vm12, %v8359_v15 }
 0x671   :  { %9546 = vmatmul.mubr.msk.f32.gmra.mrb[40].mxu1 %vm8015_vm12, %v8360_v30 }
 0x67f   :  { %v9494_v42 = vpop.f32.mrb[10].mxu1 }
 0x680   :  { %v8304_v7 = vadd.f32 %v9494_v42, %v15299_v34  ;;  %v8298_v16 = vpop.f32.mrb[11].mxu1 }
 0x681   :  { %v8299_v5 = vadd.f32 %v15299_v34, %v8298_v16 }
 0x682   :  { %v8362_v10 = vmax.f32 %v8304_v7, 0.0 }
 0x683   :  { %v8361_v45 = vmax.f32 %v8299_v5, 0.0  ;;  %v9497_v58 = vpop.f32.mrb[12].mxu1 }
 0x684   :  { %v8314_v39 = vadd.f32 %v9497_v58, %v15299_v34  ;;  %v8308_v6 = vpop.f32.mrb[13].mxu1 }
 0x685   :  { %v8309_v22 = vadd.f32 %v15299_v34, %v8308_v6  ;;  %9548 = vmatprep.mubr.msk.f32.mxu1 %vm8015_vm12, %v8361_v45 }
 0x686   :  { %9549 = vmatmul.mubr.msk.f32.gmra.mrb[42].mxu1 %vm8015_vm12, %v8362_v10  ;;  %v8364_v18 = vmax.f32 %v8314_v39, 0.0 }
 0x687   :  { %v8363_v14 = vmax.f32 %v8309_v22, 0.0 }
 0x689   :  { %9551 = vmatprep.mubr.msk.f32.mxu1 %vm8015_vm12, %v8363_v14 }
 0x68a   :  { %9552 = vmatmul.mubr.msk.f32.gmra.mrb[44].mxu1 %vm8015_vm12, %v8364_v18 }
 0x696   :  { %v9500_v0 = vpop.f32.mrb[14].mxu1 }
 0x697   :  { %v8324_v11 = vadd.f32 %v9500_v0, %v15299_v34  ;;  %v8318_v28 = vpop.f32.mrb[15].mxu1 }
 0x698   :  { %v8319_v43 = vadd.f32 %v15299_v34, %v8318_v28 }
 0x699   :  { %v8366_v47 = vmax.f32 %v8324_v11, 0.0 }
 0x69a   :  { %v8365_v57 = vmax.f32 %v8319_v43, 0.0  ;;  %v9503_v37 = vpop.f32.mrb[16].mxu1 }
 0x69b   :  { %v8334_v49 = vadd.f32 %v9503_v37, %v15299_v34  ;;  %v8328_v52 = vpop.f32.mrb[17].mxu1 }
 0x69c   :  { %v8329_v26 = vadd.f32 %v15299_v34, %v8328_v52  ;;  %9554 = vmatprep.mubr.msk.f32.mxu1 %vm8015_vm12, %v8365_v57 }
 0x69d   :  { %9555 = vmatmul.mubr.msk.f32.gmra.mrb[46].mxu1 %vm8015_vm12, %v8366_v47  ;;  %v8368_v2 = vmax.f32 %v8334_v49, 0.0 }
 0x69e   :  { %v8367_v29 = vmax.f32 %v8329_v26, 0.0 }
 0x6a0   :  { %9557 = vmatprep.mubr.msk.f32.mxu1 %vm8015_vm12, %v8367_v29 }
 0x6a1   :  { %9558 = vmatmul.mubr.msk.f32.gmra.mrb[48].mxu1 %vm8015_vm12, %v8368_v2  ;;  %vm16486_vm12 = vmmov %vm16473_vm0 }
 0x700   :  { %v9514_v59 = vpop.f32.mrb[18].mxu1 }
 0x701   :  { %v8548_v41 = vadd.f32 %v9514_v59, %v15368_v44  ;;  %v8542_v46 = vpop.f32.mrb[19].mxu1 }
 0x702   :  { %v8543_v34 = vadd.f32 %v15368_v44, %v8542_v46 }
 0x703   :  { %v9288_v56 = vmul.f32 -1.442695, %v8548_v41 }
 0x704   :  { %v9287_v19 = vmul.f32 -1.442695, %v8543_v34  ;;  %v9517_v9 = vpop.f32.mrb[20].mxu1 }
 0x705   :  { %9947 = vpow2.f32 %v9288_v56  ;;  %v8558_v8 = vadd.f32 %v9517_v9, %v15368_v44  ;;  %v8552_v61 = vpop.f32.mrb[21].mxu1 }
 0x706   :  { %9949 = vpow2.f32 %v9287_v19  ;;  %v8553_v13 = vadd.f32 %v15368_v44, %v8552_v61 }
 0x707   :  { %v9290_v62 = vmul.f32 -1.442695, %v8558_v8 }
 0x708   :  { %v9289_v17 = vmul.f32 -1.442695, %v8553_v13  ;;  %v9520_v4 = vpop.f32.mrb[22].mxu1 }
 0x709   :  { %9951 = vpow2.f32 %v9290_v62  ;;  %v8568_v40 = vadd.f32 %v9520_v4, %v15368_v44  ;;  %v8562_v54 = vpop.f32.mrb[23].mxu1 }
 0x70a   :  { %9953 = vpow2.f32 %v9289_v17  ;;  %v8563_v32 = vadd.f32 %v15368_v44, %v8562_v54 }
 0x70b   :  { %v9292_v35 = vmul.f32 -1.442695, %v8568_v40 }
 0x70c   :  { %v9291_v55 = vmul.f32 -1.442695, %v8563_v32  ;;  %v9523_v27 = vpop.f32.mrb[24].mxu1 }
 0x70d   :  { %9955 = vpow2.f32 %v9292_v35  ;;  %v8578_v1 = vadd.f32 %v9523_v27, %v15368_v44  ;;  %v8572_v33 = vpop.f32.mrb[25].mxu1 }
 0x70e   :  { %9957 = vpow2.f32 %v9291_v55  ;;  %v8573_v53 = vadd.f32 %v15368_v44, %v8572_v33 }
 0x70f   :  { %v9948_v63 = vpop.eup %9947  ;;  %v9294_v31 = vmul.f32 -1.442695, %v8578_v1 }
 0x710   :  { %v9950_v21 = vpop.eup %9949  ;;  %v8798_v3 = vadd.f32 1.0, %v9948_v63  ;;  %v9293_v38 = vmul.f32 -1.442695, %v8573_v53  ;;  %v9526_v60 = vpop.f32.mrb[26].mxu1 }
 0x711   :  { %v8797_v48 = vadd.f32 1.0, %v9950_v21  ;;  %9959 = vpow2.f32 %v9294_v31  ;;  %v8588_v36 = vadd.f32 %v9526_v60, %v15368_v44  ;;  %v8582_v23 = vpop.f32.mrb[27].mxu1 }
 0x712   :  { %9961 = vrcp.f32 %v8798_v3  ;;  %v8583_v50 = vadd.f32 %v15368_v44, %v8582_v23 }
 0x713   :  { %v9952_v20 = vpop.eup %9951  ;;  %9963 = vrcp.f32 %v8797_v48  ;;  %v9296_v51 = vmul.f32 -1.442695, %v8588_v36 }
 0x714   :  { %v9954_v24 = vpop.eup %9953  ;;  %v8800_v25 = vadd.f32 1.0, %v9952_v20  ;;  %9965 = vpow2.f32 %v9293_v38  ;;  %v9295_v12 = vmul.f32 -1.442695, %v8583_v50  ;;  %v9529_v15 = vpop.f32.mrb[28].mxu1 }
 0x715   :  { %v8799_v30 = vadd.f32 1.0, %v9954_v24  ;;  %9967 = vpow2.f32 %v9296_v51  ;;  %v8598_v42 = vadd.f32 %v9529_v15, %v15368_v44  ;;  %v8592_v7 = vpop.f32.mrb[29].mxu1 }
 0x716   :  { %9969 = vrcp.f32 %v8800_v25  ;;  %v8593_v16 = vadd.f32 %v15368_v44, %v8592_v7 }
 0x717   :  { %v9956_v5 = vpop.eup %9955  ;;  %9971 = vrcp.f32 %v8799_v30  ;;  %v9298_v45 = vmul.f32 -1.442695, %v8598_v42 }
 0x718   :  { %v9958_v58 = vpop.eup %9957  ;;  %v8802_v10 = vadd.f32 1.0, %v9956_v5  ;;  %9973 = vpow2.f32 %v9295_v12  ;;  %v9297_v39 = vmul.f32 -1.442695, %v8593_v16  ;;  %v9532_v6 = vpop.f32.mrb[30].mxu1 }
 0x719   :  { %v8801_v22 = vadd.f32 1.0, %v9958_v58  ;;  %9975 = vpow2.f32 %v9298_v45  ;;  %v8608_v14 = vadd.f32 %v9532_v6, %v15368_v44  ;;  %v8602_v18 = vpop.f32.mrb[31].mxu1 }
 0x71a   :  { %9977 = vrcp.f32 %v8802_v10  ;;  %v8603_v0 = vadd.f32 %v15368_v44, %v8602_v18 }
 0x71b   :  { %v9960_v11 = vpop.eup %9959  ;;  %9979 = vrcp.f32 %v8801_v22  ;;  %v9300_v28 = vmul.f32 -1.442695, %v8608_v14 }
 0x71c   :  { %v9962_v43 = vpop.eup %9961  ;;  %v8804_v57 = vadd.f32 1.0, %v9960_v11  ;;  %9981 = vpow2.f32 %v9297_v39  ;;  %v9299_v37 = vmul.f32 -1.442695, %v8603_v0  ;;  %v9535_v47 = vpop.f32.mrb[32].mxu1 }
 0x71d   :  { %v9964_v49 = vpop.eup %9963  ;;  %8894 = vst.msk [vmem:[%s15538_s8 + $0x8] sm:$0xff] %vm16471_vm1, %v9962_v43  ;;  %9983 = vpow2.f32 %v9300_v28  ;;  %v8618_v52 = vadd.f32 %v9535_v47, %v15368_v44  ;;  %v8612_v26 = vpop.f32.mrb[33].mxu1  ;;  %vm16487_vm1 = vmmov %vm16473_vm0 }
 0x71e   :  { %v9966_v29 = vpop.eup %9965  ;;  %8893 = vst.msk [vmem:[%s15538_s8] sm:$0xff] %vm16472_vm9, %v9964_v49  ;;  %9985 = vrcp.f32 %v8804_v57  ;;  %v8613_v2 = vadd.f32 %v15368_v44, %v8612_v26  ;;  %vm16488_vm9 = vmmov %vm16473_vm0 }
 0x71f   :  { %v9968_v59 = vpop.eup %9967  ;;  %v8803_v41 = vadd.f32 1.0, %v9966_v29  ;;  %9987 = vpow2.f32 %v9299_v37  ;;  %v9302_v46 = vmul.f32 -1.442695, %v8618_v52 }
 0x720   :  { %v9970_v34 = vpop.eup %9969  ;;  %v8806_v56 = vadd.f32 1.0, %v9968_v59  ;;  %v9301_v19 = vmul.f32 -1.442695, %v8613_v2 }
 0x721   :  { %v9972_v9 = vpop.eup %9971  ;;  %8896 = vst.msk [vmem:[%s15538_s8 + $0x18] sm:$0xff] %vm16473_vm0, %v9970_v34  ;;  %9989 = vrcp.f32 %v8803_v41 }
 0x722   :  { %v9974_v8 = vpop.eup %9973  ;;  %8895 = vst.msk [vmem:[%s15538_s8 + $0x10] sm:$0xff] %vm16474_vm15, %v9972_v9  ;;  %9991 = vrcp.f32 %v8806_v56  ;;  %vm16489_vm15 = vmmov %vm16473_vm0 }
 0x723   :  { %v9976_v61 = vpop.eup %9975  ;;  %v8805_v13 = vadd.f32 1.0, %v9974_v8  ;;  %9993 = vpow2.f32 %v9302_v46 }
 0x724   :  { %v9978_v62 = vpop.eup %9977  ;;  %v8808_v17 = vadd.f32 1.0, %v9976_v61  ;;  %9995 = vpow2.f32 %v9301_v19 }
 0x725   :  { %v9980_v4 = vpop.eup %9979  ;;  %8898 = vst.msk [vmem:[%s15538_s8 + $0x28] sm:$0xff] %vm16475_vm14, %v9978_v62  ;;  %9997 = vrcp.f32 %v8805_v13  ;;  %vm16490_vm14 = vmmov %vm16473_vm0 }
 0x726   :  { %v9982_v40 = vpop.eup %9981  ;;  %8897 = vst.msk [vmem:[%s15538_s8 + $0x20] sm:$0xff] %vm16476_vm13, %v9980_v4  ;;  %9999 = vrcp.f32 %v8808_v17  ;;  %vm16491_vm13 = vmmov %vm16473_vm0 }
 0x727   :  { %v9984_v54 = vpop.eup %9983  ;;  %v8807_v32 = vadd.f32 1.0, %v9982_v40 }
 0x728   :  { %v9986_v35 = vpop.eup %9985  ;;  %v8810_v55 = vadd.f32 1.0, %v9984_v54 }
 0x729   :  { %v9988_v27 = vpop.eup %9987  ;;  %8900 = vst.msk [vmem:[%s15538_s8 + $0x38] sm:$0xff] %vm16477_vm6, %v9986_v35  ;;  %10001 = vrcp.f32 %v8807_v32  ;;  %vm16492_vm6 = vmmov %vm16473_vm0 }
 0x72a   :  { %10003 = vrcp.f32 %v8810_v55  ;;  %v8809_v1 = vadd.f32 1.0, %v9988_v27 }
 0x72b   :  { %v9990_v33 = vpop.eup %9989 }
 0x72c   :  { %v9992_v53 = vpop.eup %9991  ;;  %8899 = vst.msk [vmem:[%s15538_s8 + $0x30] sm:$0xff] %vm16478_vm2, %v9990_v33  ;;  %10005 = vrcp.f32 %v8809_v1  ;;  %vm16493_vm2 = vmmov %vm16473_vm0 }
 0x72d   :  { %v9994_v63 = vpop.eup %9993  ;;  %8902 = vst.msk [vmem:[%s15538_s8 + $0x48] sm:$0xff] %vm16479_vm4, %v9992_v53  ;;  %v9538_v50 = vpop.f32.mrb[34].mxu1  ;;  %vm16494_vm4 = vmmov %vm16473_vm0 }
 0x72e   :  { %v9996_v31 = vpop.eup %9995  ;;  %v8812_v21 = vadd.f32 1.0, %v9994_v63  ;;  %v8628_v20 = vadd.f32 %v9538_v50, %v15368_v44  ;;  %v8622_v51 = vpop.f32.mrb[35].mxu1 }
 0x72f   :  { %v9998_v3 = vpop.eup %9997  ;;  %v8811_v38 = vadd.f32 1.0, %v9996_v31  ;;  %v8623_v25 = vadd.f32 %v15368_v44, %v8622_v51 }
 0x730   :  { %v10000_v60 = vpop.eup %9999  ;;  %8901 = vst.msk [vmem:[%s15538_s8 + $0x40] sm:$0xff] %vm16480_vm7, %v9998_v3  ;;  %10007 = vrcp.f32 %v8812_v21  ;;  %v9304_v15 = vmul.f32 -1.442695, %v8628_v20  ;;  %vm16495_vm7 = vmmov %vm16473_vm0 }
 0x731   :  { %8904 = vst.msk [vmem:[%s15538_s8 + $0x58] sm:$0xff] %vm16481_vm10, %v10000_v60  ;;  %10009 = vrcp.f32 %v8811_v38  ;;  %v9303_v30 = vmul.f32 -1.442695, %v8623_v25  ;;  %v9541_v42 = vpop.f32.mrb[36].mxu1  ;;  %vm16496_vm10 = vmmov %vm16473_vm0 }
 0x732   :  { %10011 = vpow2.f32 %v9304_v15  ;;  %v8638_v7 = vadd.f32 %v9541_v42, %v15368_v44  ;;  %v8632_v16 = vpop.f32.mrb[37].mxu1 }
 0x733   :  { %v10002_v48 = vpop.eup %10001  ;;  %10013 = vpow2.f32 %v9303_v30  ;;  %v8633_v5 = vadd.f32 %v15368_v44, %v8632_v16 }
 0x734   :  { %v10004_v36 = vpop.eup %10003  ;;  %8903 = vst.msk [vmem:[%s15538_s8 + $0x50] sm:$0xff] %vm16482_vm3, %v10002_v48  ;;  %v9306_v45 = vmul.f32 -1.442695, %v8638_v7  ;;  %vm16497_vm3 = vmmov %vm16473_vm0 }
 0x735   :  { %8906 = vst.msk [vmem:[%s15538_s8 + $0x68] sm:$0xff] %vm16483_vm11, %v10004_v36  ;;  %v9305_v58 = vmul.f32 -1.442695, %v8633_v5  ;;  %vm16498_vm11 = vmmov %vm16473_vm0 }
 0x736   :  { %v10006_v23 = vpop.eup %10005  ;;  %10015 = vpow2.f32 %v9306_v45 }
 0x737   :  { %8905 = vst.msk [vmem:[%s15538_s8 + $0x60] sm:$0xff] %vm16484_vm8, %v10006_v23  ;;  %10017 = vpow2.f32 %v9305_v58  ;;  %vm16499_vm8 = vmmov %vm16473_vm0 }
 0x73a   :  { %v10008_v24 = vpop.eup %10007 }
 0x73b   :  { %v10010_v12 = vpop.eup %10009  ;;  %8908 = vst.msk [vmem:[%s15538_s8 + $0x78] sm:$0xff] %vm16485_vm5, %v10008_v24  ;;  %vm16500_vm5 = vmmov %vm16473_vm0 }
 0x73c   :  { %8907 = vst.msk [vmem:[%s15538_s8 + $0x70] sm:$0xff] %vm16486_vm12, %v10010_v12  ;;  %v10012_v10 = vpop.eup %10011  ;;  %vm16501_vm12 = vmmov %vm16473_vm0 }
 0x73d   :  { %v10014_v39 = vpop.eup %10013  ;;  %v8814_v6 = vadd.f32 1.0, %v10012_v10 }
 0x73e   :  { %v8813_v22 = vadd.f32 1.0, %v10014_v39 }
 0x73f   :  { %10019 = vrcp.f32 %v8814_v6 }
 0x740   :  { %v10016_v14 = vpop.eup %10015  ;;  %10021 = vrcp.f32 %v8813_v22  ;;  %v9544_v18 = vpop.f32.mrb[38].mxu1 }
 0x741   :  { %v10018_v0 = vpop.eup %10017  ;;  %v8816_v11 = vadd.f32 1.0, %v10016_v14  ;;  %v8648_v28 = vadd.f32 %v9544_v18, %v15368_v44  ;;  %v8642_v43 = vpop.f32.mrb[39].mxu1 }
 0x742   :  { %v8815_v57 = vadd.f32 1.0, %v10018_v0  ;;  %v8643_v37 = vadd.f32 %v15368_v44, %v8642_v43 }
 0x743   :  { %10023 = vrcp.f32 %v8816_v11  ;;  %v9308_v47 = vmul.f32 -1.442695, %v8648_v28 }
 0x744   :  { %10025 = vrcp.f32 %v8815_v57  ;;  %v9307_v49 = vmul.f32 -1.442695, %v8643_v37  ;;  %v9547_v52 = vpop.f32.mrb[40].mxu1 }
 0x745   :  { %10027 = vpow2.f32 %v9308_v47  ;;  %v8658_v26 = vadd.f32 %v9547_v52, %v15368_v44  ;;  %v8652_v29 = vpop.f32.mrb[41].mxu1 }
 0x746   :  { %10029 = vpow2.f32 %v9307_v49  ;;  %v8653_v2 = vadd.f32 %v15368_v44, %v8652_v29 }
 0x747   :  { %v9310_v59 = vmul.f32 -1.442695, %v8658_v26 }
 0x748   :  { %v9309_v41 = vmul.f32 -1.442695, %v8653_v2 }
 0x749   :  { %v10020_v46 = vpop.eup %10019  ;;  %10031 = vpow2.f32 %v9310_v59 }
 0x74a   :  { %v10022_v34 = vpop.eup %10021  ;;  %8910 = vst.msk [vmem:[%s15538_s8 + $0x88] sm:$0xff] %vm16487_vm1, %v10020_v46  ;;  %10033 = vpow2.f32 %v9309_v41 }
 0x74b   :  { %8909 = vst.msk [vmem:[%s15538_s8 + $0x80] sm:$0xff] %vm16488_vm9, %v10022_v34 }
 0x74d   :  { %v10024_v56 = vpop.eup %10023 }
 0x74e   :  { %v10026_v19 = vpop.eup %10025  ;;  %8912 = vst.msk [vmem:[%s15538_s8 + $0x98] sm:$0xff] %vm16473_vm0, %v10024_v56 }
 0x74f   :  { %v10028_v9 = vpop.eup %10027  ;;  %8911 = vst.msk [vmem:[%s15538_s8 + $0x90] sm:$0xff] %vm16489_vm15, %v10026_v19 }
 0x750   :  { %v10030_v8 = vpop.eup %10029  ;;  %v8818_v61 = vadd.f32 1.0, %v10028_v9 }
 0x751   :  { %v8817_v13 = vadd.f32 1.0, %v10030_v8 }
 0x752   :  { %10035 = vrcp.f32 %v8818_v61 }
 0x753   :  { %v10032_v62 = vpop.eup %10031  ;;  %10037 = vrcp.f32 %v8817_v13 }
 0x754   :  { %v10034_v17 = vpop.eup %10033  ;;  %v8820_v4 = vadd.f32 1.0, %v10032_v62 }
 0x755   :  { %v8819_v40 = vadd.f32 1.0, %v10034_v17 }
 0x756   :  { %10039 = vrcp.f32 %v8820_v4 }
 0x757   :  { %10041 = vrcp.f32 %v8819_v40 }
 0x759   :  { %v9550_v54 = vpop.f32.mrb[42].mxu1 }
 0x75a   :  { %v8668_v32 = vadd.f32 %v9550_v54, %v15368_v44  ;;  %v8662_v35 = vpop.f32.mrb[43].mxu1 }
 0x75b   :  { %v8663_v55 = vadd.f32 %v15368_v44, %v8662_v35 }
 0x75c   :  { %v9312_v27 = vmul.f32 -1.442695, %v8668_v32  ;;  %v10036_v31 = vpop.eup %10035 }
 0x75d   :  { %v9311_v1 = vmul.f32 -1.442695, %v8663_v55  ;;  %v9553_v33 = vpop.f32.mrb[44].mxu1  ;;  %v10038_v3 = vpop.eup %10037  ;;  %8914 = vst.msk [vmem:[%s15538_s8 + $0xa8] sm:$0xff] %vm16490_vm14, %v10036_v31 }
 0x75e   :  { %10043 = vpow2.f32 %v9312_v27  ;;  %v8678_v53 = vadd.f32 %v9553_v33, %v15368_v44  ;;  %v8672_v63 = vpop.f32.mrb[45].mxu1  ;;  %8913 = vst.msk [vmem:[%s15538_s8 + $0xa0] sm:$0xff] %vm16491_vm13, %v10038_v3 }
 0x75f   :  { %10045 = vpow2.f32 %v9311_v1  ;;  %v8673_v21 = vadd.f32 %v15368_v44, %v8672_v63 }
 0x760   :  { %v9314_v38 = vmul.f32 -1.442695, %v8678_v53  ;;  %v10040_v48 = vpop.eup %10039 }
 0x761   :  { %v9313_v60 = vmul.f32 -1.442695, %v8673_v21  ;;  %v10042_v36 = vpop.eup %10041  ;;  %8916 = vst.msk [vmem:[%s15538_s8 + $0xb8] sm:$0xff] %vm16492_vm6, %v10040_v48 }
 0x762   :  { %10047 = vpow2.f32 %v9314_v38  ;;  %8915 = vst.msk [vmem:[%s15538_s8 + $0xb0] sm:$0xff] %vm16493_vm2, %v10042_v36 }
 0x763   :  { %10049 = vpow2.f32 %v9313_v60 }
 0x768   :  { %v10044_v23 = vpop.eup %10043 }
 0x769   :  { %v10046_v50 = vpop.eup %10045  ;;  %v8822_v20 = vadd.f32 1.0, %v10044_v23 }
 0x76a   :  { %v8821_v51 = vadd.f32 1.0, %v10046_v50 }
 0x76b   :  { %10051 = vrcp.f32 %v8822_v20 }
 0x76c   :  { %v10048_v24 = vpop.eup %10047  ;;  %10053 = vrcp.f32 %v8821_v51 }
 0x76d   :  { %v10050_v12 = vpop.eup %10049  ;;  %v8824_v15 = vadd.f32 1.0, %v10048_v24 }
 0x76e   :  { %v8823_v7 = vadd.f32 1.0, %v10050_v12 }
 0x76f   :  { %10055 = vrcp.f32 %v8824_v15 }
 0x770   :  { %v9556_v25 = vpop.f32.mrb[46].mxu1  ;;  %10057 = vrcp.f32 %v8823_v7 }
 0x771   :  { %v8688_v30 = vadd.f32 %v9556_v25, %v15368_v44  ;;  %v8682_v42 = vpop.f32.mrb[47].mxu1 }
 0x772   :  { %v8683_v16 = vadd.f32 %v15368_v44, %v8682_v42 }
 0x773   :  { %v9316_v5 = vmul.f32 -1.442695, %v8688_v30 }
 0x774   :  { %v9315_v45 = vmul.f32 -1.442695, %v8683_v16  ;;  %v9559_v58 = vpop.f32.mrb[48].mxu1 }
 0x775   :  { %10059 = vpow2.f32 %v9316_v5  ;;  %v8698_v10 = vadd.f32 %v9559_v58, %v15368_v44  ;;  %v8692_v39 = vpop.f32.mrb[49].mxu1  ;;  %v10052_v18 = vpop.eup %10051 }
 0x776   :  { %10061 = vpow2.f32 %v9315_v45  ;;  %v8693_v6 = vadd.f32 %v15368_v44, %v8692_v39  ;;  %v10054_v0 = vpop.eup %10053  ;;  %8918 = vst.msk [vmem:[%s15538_s8 + $0xc8] sm:$0xff] %vm16494_vm4, %v10052_v18 }
 0x777   :  { %v9318_v22 = vmul.f32 -1.442695, %v8698_v10  ;;  %8917 = vst.msk [vmem:[%s15538_s8 + $0xc0] sm:$0xff] %vm16495_vm7, %v10054_v0 }
 0x778   :  { %v9317_v14 = vmul.f32 -1.442695, %v8693_v6 }
 0x779   :  { %10063 = vpow2.f32 %v9318_v22  ;;  %v10056_v11 = vpop.eup %10055 }
 0x77a   :  { %10065 = vpow2.f32 %v9317_v14  ;;  %v10058_v28 = vpop.eup %10057  ;;  %8920 = vst.msk [vmem:[%s15538_s8 + $0xd8] sm:$0xff] %vm16496_vm10, %v10056_v11 }
 0x77b   :  { %8919 = vst.msk [vmem:[%s15538_s8 + $0xd0] sm:$0xff] %vm16497_vm3, %v10058_v28 }
 0x77f   :  { %v10060_v44 = vpop.eup %10059 }
 0x780   :  { %v10062_v43 = vpop.eup %10061  ;;  %v8826_v57 = vadd.f32 1.0, %v10060_v44 }
 0x781   :  { %v8825_v37 = vadd.f32 1.0, %v10062_v43 }
 0x782   :  { %10067 = vrcp.f32 %v8826_v57 }
 0x783   :  { %v10064_v47 = vpop.eup %10063  ;;  %10069 = vrcp.f32 %v8825_v37 }
 0x784   :  { %v10066_v49 = vpop.eup %10065  ;;  %v8828_v52 = vadd.f32 1.0, %v10064_v47 }
 0x785   :  { %v8827_v26 = vadd.f32 1.0, %v10066_v49 }
 0x786   :  { %10071 = vrcp.f32 %v8828_v52 }
 0x787   :  { %10073 = vrcp.f32 %v8827_v26 }
 0x78c   :  { %v10068_v29 = vpop.eup %10067 }
 0x78d   :  { %v10070_v2 = vpop.eup %10069  ;;  %8922 = vst.msk [vmem:[%s15538_s8 + $0xe8] sm:$0xff] %vm16498_vm11, %v10068_v29 }
 0x78e   :  { %8921 = vst.msk [vmem:[%s15538_s8 + $0xe0] sm:$0xff] %vm16499_vm8, %v10070_v2 }
 0x790   :  { %v10072_v59 = vpop.eup %10071 }
 0x791   :  { %v10074_v41 = vpop.eup %10073  ;;  %8924 = vst.msk [vmem:[%s15538_s8 + $0xf8] sm:$0xff] %vm16500_vm5, %v10072_v59 }
 0x792   :  { %8923 = vst.msk [vmem:[%s15538_s8 + $0xf0] sm:$0xff] %vm16501_vm12, %v10074_v41 }

</bundles_post_ra>
